<compile_context>
chip_gen: v5e
topology: v5e:2x2
jax: 0.10.0
libtpu: 0.0.40
codegen_flags: <defaults>
</compile_context>

<pallas_src>
import functools

import jax
import jax.numpy as jnp
import numpy as np
from jax.experimental import pallas as pl
from jax.experimental.pallas import tpu as pltpu


def _zero_halo(ref, h, w, c):
    """Zero the 1-pixel halo of a (h+2, w+2, c) pad scratch (interior untouched)."""
    z_row = jnp.zeros((1, w + 2, c), ref.dtype)
    z_col = jnp.zeros((h + 2, 1, c), ref.dtype)
    ref[0:1, :, :] = z_row
    ref[h + 1:h + 2, :, :] = z_row
    ref[:, 0:1, :] = z_col
    ref[:, w + 1:w + 2, :] = z_col


def _wide_basic_kernel(x_ref, s1_ref, t1_ref, w1_ref,
                       s2_ref, t2_ref, w2_ref, bo_ref, ws_ref,
                       o_ref, pad1_ref, pad2_ref,
                       *, H, W, Cin, Cout, stride, has_proj):
    Ho, Wo = H // stride, W // stride
    cdt = jnp.bfloat16                                   # MXU operand dtype

    # Cheap (perimeter-only), idempotent, megacore-safe.
    _zero_halo(pad1_ref, H, W, Cin)
    _zero_halo(pad2_ref, H, W, Cout)

    x = x_ref[0].astype(jnp.float32)                     # (H, W, Cin)

    # ---- BN1 (eval, folded to scale/shift) + ReLU — f32 on the VPU ----------
    a1 = jnp.maximum(x * s1_ref[...].reshape(1, 1, Cin)
                     + t1_ref[...].reshape(1, 1, Cin), 0.0)
    pad1_ref[1:H + 1, 1:W + 1, :] = a1.astype(cdt)       # bf16 storage for MXU

    # ---- conv1: 3x3, pad=1, stride=1 — 9 windowed ref loads, bf16 MXU dots --
    # (conv1 bias is folded into the BN2 shift t2 in the wrapper)
    acc1 = jnp.zeros((H * W, Cout), jnp.float32)
    for t in range(9):
        dy, dx = t // 3, t % 3
        win = pad1_ref[dy:dy + H, dx:dx + W, :].reshape(H * W, Cin)
        acc1 = acc1 + jnp.dot(win, w1_ref[t], preferred_element_type=jnp.float32)
    c1 = acc1.reshape(H, W, Cout)

    # Dropout: eval-mode identity.
    # TODO(synk): training-mode dropout (pltpu.prng_random_bits mask) not wired in.

    # ---- BN2 (eval, conv1-bias folded in) + ReLU -----------------------------
    a2 = jnp.maximum(c1 * s2_ref[...].reshape(1, 1, Cout)
                     + t2_ref[...].reshape(1, 1, Cout), 0.0)
    pad2_ref[1:H + 1, 1:W + 1, :] = a2.astype(cdt)

    # ---- conv2: 3x3, pad=1, stride=s ----------------------------------------
    acc2 = jnp.zeros((Ho * Wo, Cout), jnp.float32)
    if stride == 1:
        for t in range(9):
            dy, dx = t // 3, t % 3
            win = pad2_ref[dy:dy + H, dx:dx + W, :].reshape(H * W, Cout)
            acc2 = acc2 + jnp.dot(win, w2_ref[t], preferred_element_type=jnp.float32)
    else:
        # TODO(synk): compact the strided rows/cols once instead of 9 strided slices.
        p2 = pad2_ref[...]
        for t in range(9):
            dy, dx = t // 3, t % 3
            win = p2[dy:dy + H:stride, dx:dx + W:stride, :].reshape(Ho * Wo, Cout)
            acc2 = acc2 + jnp.dot(win, w2_ref[t], preferred_element_type=jnp.float32)
    c2 = acc2.reshape(Ho, Wo, Cout)

    # ---- shortcut + fused output bias (b2 [+ bs]) ----------------------------
    bo = bo_ref[...].reshape(1, 1, Cout)
    if has_proj:
        xs = x[0:H:stride, 0:W:stride, :].reshape(Ho * Wo, Cin).astype(cdt)
        sc = jnp.dot(xs, ws_ref[...], preferred_element_type=jnp.float32)
        out = c2 + sc.reshape(Ho, Wo, Cout) + bo
    else:
        out = c2 + x + bo

    o_ref[0] = out.astype(o_ref.dtype)


def wide_basic_forward(x_nchw, params, *, stride=1):
    """PyTorch-NCHW in, PyTorch-NCHW out. Hot path runs inside one Pallas kernel."""
    N, Cin, H, W = x_nchw.shape
    Cout = params["w1"].shape[0]                       # torch weight: (Cout, Cin, 3, 3)
    assert stride in (1, 2) and H % stride == 0 and W % stride == 0, \
        "k=3/pad=1/stride=s output size only matches H//s, W//s for even H, W"
    Ho, Wo = H // stride, W // stride
    has_proj = (stride != 1) or (Cin != Cout)
    eps = 1e-5

    x = jnp.transpose(x_nchw, (0, 2, 3, 1)).astype(jnp.float32)     # NHWC

    # Fold BN (eval mode) into scale/shift (kept f32); fold conv1 bias into the
    # BN2 shift and conv2/shortcut biases into one output bias.
    s1 = params["bn1_gamma"] / jnp.sqrt(params["bn1_var"] + eps)
    t1 = params["bn1_beta"] - params["bn1_mean"] * s1
    s2 = params["bn2_gamma"] / jnp.sqrt(params["bn2_var"] + eps)
    t2 = params["bn2_beta"] - params["bn2_mean"] * s2 + params["b1"] * s2
    b_out = params["b2"] + (params["bs"] if has_proj else 0.0)

    # torch conv weights (Cout, Cin, kh, kw) -> (kh*kw, Cin, Cout), bf16 for MXU.
    w1 = jnp.transpose(params["w1"], (2, 3, 1, 0)).reshape(9, Cin, Cout).astype(jnp.bfloat16)
    w2 = jnp.transpose(params["w2"], (2, 3, 1, 0)).reshape(9, Cout, Cout).astype(jnp.bfloat16)
    if has_proj:
        ws = jnp.transpose(params["ws"], (2, 3, 1, 0)).reshape(Cin, Cout).astype(jnp.bfloat16)
    else:
        ws = jnp.zeros((Cin, Cout), jnp.bfloat16)

    kernel = functools.partial(_wide_basic_kernel, H=H, W=W, Cin=Cin,
                               Cout=Cout, stride=stride, has_proj=has_proj)

    def const_spec(shape):
        nd = len(shape)
        return pl.BlockSpec(shape, lambda n, _nd=nd: (0,) * _nd)

    out = pl.pallas_call(
        kernel,
        out_shape=jax.ShapeDtypeStruct((N, Ho, Wo, Cout), jnp.float32),
        grid=(N,),
        in_specs=[
            pl.BlockSpec((1, H, W, Cin), lambda n: (n, 0, 0, 0)),   # x (one image)
            const_spec((1, Cin)), const_spec((1, Cin)),             # BN1 scale/shift
            const_spec((9, Cin, Cout)),                             # conv1 w (bf16)
            const_spec((1, Cout)), const_spec((1, Cout)),           # BN2 scale/shift(+b1)
            const_spec((9, Cout, Cout)),                            # conv2 w (bf16)
            const_spec((1, Cout)),                                  # fused output bias
            const_spec((Cin, Cout)),                                # shortcut w (bf16)
        ],
        out_specs=pl.BlockSpec((1, Ho, Wo, Cout), lambda n: (n, 0, 0, 0)),
        scratch_shapes=[pltpu.VMEM((H + 2, W + 2, Cin), jnp.bfloat16),
                        pltpu.VMEM((H + 2, W + 2, Cout), jnp.bfloat16)],
        compiler_params=pltpu.CompilerParams(
            dimension_semantics=("parallel",),       # images are independent -> megacore
            vmem_limit_bytes=64 * 1024 * 1024,       # v5e default scoped limit is 16 MiB
        ),
    )(x, s1.reshape(1, Cin).astype(jnp.float32), t1.reshape(1, Cin).astype(jnp.float32),
      w1, s2.reshape(1, Cout).astype(jnp.float32), t2.reshape(1, Cout).astype(jnp.float32),
      w2, b_out.reshape(1, Cout).astype(jnp.float32), ws)

    return jnp.transpose(out, (0, 3, 1, 2))                         # back to NCHW


# ----------------------------- pure-JAX reference -----------------------------
def _torch_conv_nhwc(x, w_oihw, b, stride, pad):
    w = jnp.transpose(w_oihw, (2, 3, 1, 0))                          # HWIO
    y = jax.lax.conv_general_dilated(
        x, w, window_strides=(stride, stride),
        padding=((pad, pad), (pad, pad)),
        dimension_numbers=("NHWC", "HWIO", "NHWC"))
    return y + b.reshape(1, 1, 1, -1)


def reference_forward(x_nchw, params, *, stride=1):
    eps = 1e-5
    x = jnp.transpose(x_nchw, (0, 2, 3, 1)).astype(jnp.float32)
    Cin = x.shape[-1]
    Cout = params["w1"].shape[0]
    a1 = jax.nn.relu((x - params["bn1_mean"]) / jnp.sqrt(params["bn1_var"] + eps)
                     * params["bn1_gamma"] + params["bn1_beta"])
    c1 = _torch_conv_nhwc(a1, params["w1"], params["b1"], 1, 1)
    a2 = jax.nn.relu((c1 - params["bn2_mean"]) / jnp.sqrt(params["bn2_var"] + eps)
                     * params["bn2_gamma"] + params["bn2_beta"])
    c2 = _torch_conv_nhwc(a2, params["w2"], params["b2"], stride, 1)
    if stride != 1 or Cin != Cout:
        sc = _torch_conv_nhwc(x, params["ws"], params["bs"], stride, 0)
    else:
        sc = x
    return jnp.transpose(c2 + sc, (0, 3, 1, 2))


if __name__ == "__main__":
    N, Cin, Cout, H, W, stride = 2, 4, 8, 16, 16, 1
    f32 = jnp.float32
    ks = jax.random.split(jax.random.PRNGKey(0), 16)
    params = dict(
        bn1_gamma=jax.random.uniform(ks[0], (Cin,), f32, 0.5, 1.5),
        bn1_beta=0.1 * jax.random.normal(ks[1], (Cin,), f32),
        bn1_mean=0.1 * jax.random.normal(ks[2], (Cin,), f32),
        bn1_var=jax.random.uniform(ks[3], (Cin,), f32, 0.5, 1.5),
        w1=0.2 * jax.random.normal(ks[4], (Cout, Cin, 3, 3), f32),
        b1=0.1 * jax.random.normal(ks[5], (Cout,), f32),
        bn2_gamma=jax.random.uniform(ks[6], (Cout,), f32, 0.5, 1.5),
        bn2_beta=0.1 * jax.random.normal(ks[7], (Cout,), f32),
        bn2_mean=0.1 * jax.random.normal(ks[8], (Cout,), f32),
        bn2_var=jax.random.uniform(ks[9], (Cout,), f32, 0.5, 1.5),
        w2=0.2 * jax.random.normal(ks[10], (Cout, Cout, 3, 3), f32),
        b2=0.1 * jax.random.normal(ks[11], (Cout,), f32),
        ws=0.2 * jax.random.normal(ks[12], (Cout, Cin, 1, 1), f32),
        bs=0.1 * jax.random.normal(ks[13], (Cout,), f32),
    )
    x = jax.random.normal(ks[14], (N, Cin, H, W), f32)

    out = jax.block_until_ready(wide_basic_forward(x, params, stride=stride))
    ref = reference_forward(x, params, stride=stride)
    # Kernel uses bf16 MXU operands (f32 accumulation); reference is full f32,
    # so tolerances reflect bf16 operand rounding, not a logic difference.
    np.testing.assert_allclose(np.asarray(out), np.asarray(ref), rtol=5e-2, atol=8e-2)
    print("KERNEL_OK")
</pallas_src>

<mosaic_0001>
module attributes {stable_mosaic.version = 11 : i64} {
  func.func @_wide_basic_kernel(%arg0: i32, %arg1: memref<1x16x16x4xf32, #tpu.memory_space<vmem>>, %arg2: memref<1x4xf32, #tpu.memory_space<vmem>>, %arg3: memref<1x4xf32, #tpu.memory_space<vmem>>, %arg4: memref<9x4x8xbf16, #tpu.memory_space<vmem>>, %arg5: memref<1x8xf32, #tpu.memory_space<vmem>>, %arg6: memref<1x8xf32, #tpu.memory_space<vmem>>, %arg7: memref<9x8x8xbf16, #tpu.memory_space<vmem>>, %arg8: memref<1x8xf32, #tpu.memory_space<vmem>>, %arg9: memref<4x8xbf16, #tpu.memory_space<vmem>>, %arg10: memref<1x16x16x8xf32, #tpu.memory_space<vmem>>, %arg11: memref<18x18x4xbf16, #tpu.memory_space<vmem>>, %arg12: memref<18x18x8xbf16, #tpu.memory_space<vmem>>) attributes {dimension_semantics = [#tpu.dimension_semantics<parallel>], iteration_bounds = array<i64: 2>, scalar_prefetch = 0 : i64, scratch_operands = 2 : i64, tpu.core_type = #tpu.core_type<tc>, window_params = [{transform_indices = @transform_0, window_bounds = array<i64: 1, 16, 16, 4>}, {pipeline_mode = #tpu.pipeline_mode<synchronous>, transform_indices = @transform_1, window_bounds = array<i64: 1, 4>}, {pipeline_mode = #tpu.pipeline_mode<synchronous>, transform_indices = @transform_2, window_bounds = array<i64: 1, 4>}, {pipeline_mode = #tpu.pipeline_mode<synchronous>, transform_indices = @transform_3, window_bounds = array<i64: 9, 4, 8>}, {pipeline_mode = #tpu.pipeline_mode<synchronous>, transform_indices = @transform_4, window_bounds = array<i64: 1, 8>}, {pipeline_mode = #tpu.pipeline_mode<synchronous>, transform_indices = @transform_5, window_bounds = array<i64: 1, 8>}, {pipeline_mode = #tpu.pipeline_mode<synchronous>, transform_indices = @transform_6, window_bounds = array<i64: 9, 8, 8>}, {pipeline_mode = #tpu.pipeline_mode<synchronous>, transform_indices = @transform_7, window_bounds = array<i64: 1, 8>}, {pipeline_mode = #tpu.pipeline_mode<synchronous>, transform_indices = @transform_8, window_bounds = array<i64: 4, 8>}, {transform_indices = @transform_9, window_bounds = array<i64: 1, 16, 16, 8>}]} {
    %cst = arith.constant 0.000000e+00 : bf16
    %0 = vector.broadcast %cst : bf16 to vector<1x18x4xbf16>
    %cst_0 = arith.constant 0.000000e+00 : bf16
    %1 = vector.broadcast %cst_0 : bf16 to vector<18x1x4xbf16>
    %c0 = arith.constant 0 : index
    %c0_1 = arith.constant 0 : index
    %c0_2 = arith.constant 0 : index
    %2 = vector.load %arg11[%c0, %c0_1, %c0_2] : memref<18x18x4xbf16, #tpu.memory_space<vmem>>, vector<1x18x4xbf16>
    tpu.vector_store %arg11[%c0, %c0_1, %c0_2], %0 {strides = array<i32>} : memref<18x18x4xbf16, #tpu.memory_space<vmem>>, vector<1x18x4xbf16>,
    %c17 = arith.constant 17 : index
    %c0_3 = arith.constant 0 : index
    %c0_4 = arith.constant 0 : index
    %3 = vector.load %arg11[%c17, %c0_3, %c0_4] : memref<18x18x4xbf16, #tpu.memory_space<vmem>>, vector<1x18x4xbf16>
    tpu.vector_store %arg11[%c17, %c0_3, %c0_4], %0 {strides = array<i32>} : memref<18x18x4xbf16, #tpu.memory_space<vmem>>, vector<1x18x4xbf16>,
    %c0_5 = arith.constant 0 : index
    %c0_6 = arith.constant 0 : index
    %c0_7 = arith.constant 0 : index
    %4 = vector.load %arg11[%c0_5, %c0_6, %c0_7] : memref<18x18x4xbf16, #tpu.memory_space<vmem>>, vector<18x1x4xbf16>
    tpu.vector_store %arg11[%c0_5, %c0_6, %c0_7], %1 {strides = array<i32>} : memref<18x18x4xbf16, #tpu.memory_space<vmem>>, vector<18x1x4xbf16>,
    %c0_8 = arith.constant 0 : index
    %c17_9 = arith.constant 17 : index
    %c0_10 = arith.constant 0 : index
    %5 = vector.load %arg11[%c0_8, %c17_9, %c0_10] : memref<18x18x4xbf16, #tpu.memory_space<vmem>>, vector<18x1x4xbf16>
    tpu.vector_store %arg11[%c0_8, %c17_9, %c0_10], %1 {strides = array<i32>} : memref<18x18x4xbf16, #tpu.memory_space<vmem>>, vector<18x1x4xbf16>,
    %cst_11 = arith.constant 0.000000e+00 : bf16
    %6 = vector.broadcast %cst_11 : bf16 to vector<1x18x8xbf16>
    %cst_12 = arith.constant 0.000000e+00 : bf16
    %7 = vector.broadcast %cst_12 : bf16 to vector<18x1x8xbf16>
    %c0_13 = arith.constant 0 : index
    %c0_14 = arith.constant 0 : index
    %c0_15 = arith.constant 0 : index
    %8 = vector.load %arg12[%c0_13, %c0_14, %c0_15] : memref<18x18x8xbf16, #tpu.memory_space<vmem>>, vector<1x18x8xbf16>
    tpu.vector_store %arg12[%c0_13, %c0_14, %c0_15], %6 {strides = array<i32>} : memref<18x18x8xbf16, #tpu.memory_space<vmem>>, vector<1x18x8xbf16>,
    %c17_16 = arith.constant 17 : index
    %c0_17 = arith.constant 0 : index
    %c0_18 = arith.constant 0 : index
    %9 = vector.load %arg12[%c17_16, %c0_17, %c0_18] : memref<18x18x8xbf16, #tpu.memory_space<vmem>>, vector<1x18x8xbf16>
    tpu.vector_store %arg12[%c17_16, %c0_17, %c0_18], %6 {strides = array<i32>} : memref<18x18x8xbf16, #tpu.memory_space<vmem>>, vector<1x18x8xbf16>,
    %c0_19 = arith.constant 0 : index
    %c0_20 = arith.constant 0 : index
    %c0_21 = arith.constant 0 : index
    %10 = vector.load %arg12[%c0_19, %c0_20, %c0_21] : memref<18x18x8xbf16, #tpu.memory_space<vmem>>, vector<18x1x8xbf16>
    tpu.vector_store %arg12[%c0_19, %c0_20, %c0_21], %7 {strides = array<i32>} : memref<18x18x8xbf16, #tpu.memory_space<vmem>>, vector<18x1x8xbf16>,
    %c0_22 = arith.constant 0 : index
    %c17_23 = arith.constant 17 : index
    %c0_24 = arith.constant 0 : index
    %11 = vector.load %arg12[%c0_22, %c17_23, %c0_24] : memref<18x18x8xbf16, #tpu.memory_space<vmem>>, vector<18x1x8xbf16>
    tpu.vector_store %arg12[%c0_22, %c17_23, %c0_24], %7 {strides = array<i32>} : memref<18x18x8xbf16, #tpu.memory_space<vmem>>, vector<18x1x8xbf16>,
    %c0_25 = arith.constant 0 : index
    %c0_26 = arith.constant 0 : index
    %c0_27 = arith.constant 0 : index
    %c0_28 = arith.constant 0 : index
    %12 = vector.load %arg1[%c0_25, %c0_26, %c0_27, %c0_28] : memref<1x16x16x4xf32, #tpu.memory_space<vmem>>, vector<1x16x16x4xf32>
    %13 = vector.shape_cast %12 : vector<1x16x16x4xf32> to vector<16x16x4xf32>
    %c0_29 = arith.constant 0 : index
    %c0_30 = arith.constant 0 : index
    %14 = vector.load %arg2[%c0_29, %c0_30] : memref<1x4xf32, #tpu.memory_space<vmem>>, vector<1x4xf32>
    %15 = vector.shape_cast %14 : vector<1x4xf32> to vector<1x1x4xf32>
    %16 = vector.broadcast %15 : vector<1x1x4xf32> to vector<16x16x4xf32>
    %17 = arith.mulf %13, %16 : vector<16x16x4xf32>
    %c0_31 = arith.constant 0 : index
    %c0_32 = arith.constant 0 : index
    %18 = vector.load %arg3[%c0_31, %c0_32] : memref<1x4xf32, #tpu.memory_space<vmem>>, vector<1x4xf32>
    %19 = vector.shape_cast %18 : vector<1x4xf32> to vector<1x1x4xf32>
    %20 = vector.broadcast %19 : vector<1x1x4xf32> to vector<16x16x4xf32>
    %21 = arith.addf %17, %20 : vector<16x16x4xf32>
    %cst_33 = arith.constant 0.000000e+00 : f32
    %22 = vector.broadcast %cst_33 : f32 to vector<16x16x4xf32>
    %23 = arith.maximumf %21, %22 : vector<16x16x4xf32>
    %24 = arith.truncf %23 : vector<16x16x4xf32> to vector<16x16x4xbf16>
    %c1 = arith.constant 1 : index
    %c1_34 = arith.constant 1 : index
    %c0_35 = arith.constant 0 : index
    %25 = vector.load %arg11[%c1, %c1_34, %c0_35] : memref<18x18x4xbf16, #tpu.memory_space<vmem>>, vector<16x16x4xbf16>
    tpu.vector_store %arg11[%c1, %c1_34, %c0_35], %24 {strides = array<i32>} : memref<18x18x4xbf16, #tpu.memory_space<vmem>>, vector<16x16x4xbf16>,
    %cst_36 = arith.constant 0.000000e+00 : f32
    %26 = vector.broadcast %cst_36 : f32 to vector<256x8xf32>
    %c0_37 = arith.constant 0 : index
    %c0_38 = arith.constant 0 : index
    %c0_39 = arith.constant 0 : index
    %27 = vector.load %arg11[%c0_37, %c0_38, %c0_39] : memref<18x18x4xbf16, #tpu.memory_space<vmem>>, vector<16x16x4xbf16>
    %28 = vector.shape_cast %27 : vector<16x16x4xbf16> to vector<256x4xbf16>
    %c0_40 = arith.constant 0 : index
    %c0_41 = arith.constant 0 : index
    %c0_42 = arith.constant 0 : index
    %29 = vector.load %arg4[%c0_40, %c0_41, %c0_42] : memref<9x4x8xbf16, #tpu.memory_space<vmem>>, vector<1x4x8xbf16>
    %30 = vector.shape_cast %29 : vector<1x4x8xbf16> to vector<4x8xbf16>
    %cst_43 = arith.constant dense<0.000000e+00> : vector<256x8xf32>
    %31 = tpu.matmul %28, %30, %cst_43 {dimension_numbers = #tpu.dot_dimension_numbers<[1], [0], [0], [1], [0, 0, 1, 1], [], []>} : vector<256x4xbf16>, vector<4x8xbf16>, vector<256x8xf32> -> vector<256x8xf32>
    %32 = arith.addf %26, %31 : vector<256x8xf32>
    %c0_44 = arith.constant 0 : index
    %c1_45 = arith.constant 1 : index
    %c0_46 = arith.constant 0 : index
    %33 = vector.load %arg11[%c0_44, %c1_45, %c0_46] : memref<18x18x4xbf16, #tpu.memory_space<vmem>>, vector<16x16x4xbf16>
    %34 = vector.shape_cast %33 : vector<16x16x4xbf16> to vector<256x4xbf16>
    %c1_47 = arith.constant 1 : index
    %c0_48 = arith.constant 0 : index
    %c0_49 = arith.constant 0 : index
    %35 = vector.load %arg4[%c1_47, %c0_48, %c0_49] : memref<9x4x8xbf16, #tpu.memory_space<vmem>>, vector<1x4x8xbf16>
    %36 = vector.shape_cast %35 : vector<1x4x8xbf16> to vector<4x8xbf16>
    %cst_50 = arith.constant dense<0.000000e+00> : vector<256x8xf32>
    %37 = tpu.matmul %34, %36, %cst_50 {dimension_numbers = #tpu.dot_dimension_numbers<[1], [0], [0], [1], [0, 0, 1, 1], [], []>} : vector<256x4xbf16>, vector<4x8xbf16>, vector<256x8xf32> -> vector<256x8xf32>
    %38 = arith.addf %32, %37 : vector<256x8xf32>
    %c0_51 = arith.constant 0 : index
    %c2 = arith.constant 2 : index
    %c0_52 = arith.constant 0 : index
    %39 = vector.load %arg11[%c0_51, %c2, %c0_52] : memref<18x18x4xbf16, #tpu.memory_space<vmem>>, vector<16x16x4xbf16>
    %40 = vector.shape_cast %39 : vector<16x16x4xbf16> to vector<256x4xbf16>
    %c2_53 = arith.constant 2 : index
    %c0_54 = arith.constant 0 : index
    %c0_55 = arith.constant 0 : index
    %41 = vector.load %arg4[%c2_53, %c0_54, %c0_55] : memref<9x4x8xbf16, #tpu.memory_space<vmem>>, vector<1x4x8xbf16>
    %42 = vector.shape_cast %41 : vector<1x4x8xbf16> to vector<4x8xbf16>
    %cst_56 = arith.constant dense<0.000000e+00> : vector<256x8xf32>
    %43 = tpu.matmul %40, %42, %cst_56 {dimension_numbers = #tpu.dot_dimension_numbers<[1], [0], [0], [1], [0, 0, 1, 1], [], []>} : vector<256x4xbf16>, vector<4x8xbf16>, vector<256x8xf32> -> vector<256x8xf32>
    %44 = arith.addf %38, %43 : vector<256x8xf32>
    %c1_57 = arith.constant 1 : index
    %c0_58 = arith.constant 0 : index
    %c0_59 = arith.constant 0 : index
    %45 = vector.load %arg11[%c1_57, %c0_58, %c0_59] : memref<18x18x4xbf16, #tpu.memory_space<vmem>>, vector<16x16x4xbf16>
    %46 = vector.shape_cast %45 : vector<16x16x4xbf16> to vector<256x4xbf16>
    %c3 = arith.constant 3 : index
    %c0_60 = arith.constant 0 : index
    %c0_61 = arith.constant 0 : index
    %47 = vector.load %arg4[%c3, %c0_60, %c0_61] : memref<9x4x8xbf16, #tpu.memory_space<vmem>>, vector<1x4x8xbf16>
    %48 = vector.shape_cast %47 : vector<1x4x8xbf16> to vector<4x8xbf16>
    %cst_62 = arith.constant dense<0.000000e+00> : vector<256x8xf32>
    %49 = tpu.matmul %46, %48, %cst_62 {dimension_numbers = #tpu.dot_dimension_numbers<[1], [0], [0], [1], [0, 0, 1, 1], [], []>} : vector<256x4xbf16>, vector<4x8xbf16>, vector<256x8xf32> -> vector<256x8xf32>
    %50 = arith.addf %44, %49 : vector<256x8xf32>
    %c1_63 = arith.constant 1 : index
    %c1_64 = arith.constant 1 : index
    %c0_65 = arith.constant 0 : index
    %51 = vector.load %arg11[%c1_63, %c1_64, %c0_65] : memref<18x18x4xbf16, #tpu.memory_space<vmem>>, vector<16x16x4xbf16>
    %52 = vector.shape_cast %51 : vector<16x16x4xbf16> to vector<256x4xbf16>
    %c4 = arith.constant 4 : index
    %c0_66 = arith.constant 0 : index
    %c0_67 = arith.constant 0 : index
    %53 = vector.load %arg4[%c4, %c0_66, %c0_67] : memref<9x4x8xbf16, #tpu.memory_space<vmem>>, vector<1x4x8xbf16>
    %54 = vector.shape_cast %53 : vector<1x4x8xbf16> to vector<4x8xbf16>
    %cst_68 = arith.constant dense<0.000000e+00> : vector<256x8xf32>
    %55 = tpu.matmul %52, %54, %cst_68 {dimension_numbers = #tpu.dot_dimension_numbers<[1], [0], [0], [1], [0, 0, 1, 1], [], []>} : vector<256x4xbf16>, vector<4x8xbf16>, vector<256x8xf32> -> vector<256x8xf32>
    %56 = arith.addf %50, %55 : vector<256x8xf32>
    %c1_69 = arith.constant 1 : index
    %c2_70 = arith.constant 2 : index
    %c0_71 = arith.constant 0 : index
    %57 = vector.load %arg11[%c1_69, %c2_70, %c0_71] : memref<18x18x4xbf16, #tpu.memory_space<vmem>>, vector<16x16x4xbf16>
    %58 = vector.shape_cast %57 : vector<16x16x4xbf16> to vector<256x4xbf16>
    %c5 = arith.constant 5 : index
    %c0_72 = arith.constant 0 : index
    %c0_73 = arith.constant 0 : index
    %59 = vector.load %arg4[%c5, %c0_72, %c0_73] : memref<9x4x8xbf16, #tpu.memory_space<vmem>>, vector<1x4x8xbf16>
    %60 = vector.shape_cast %59 : vector<1x4x8xbf16> to vector<4x8xbf16>
    %cst_74 = arith.constant dense<0.000000e+00> : vector<256x8xf32>
    %61 = tpu.matmul %58, %60, %cst_74 {dimension_numbers = #tpu.dot_dimension_numbers<[1], [0], [0], [1], [0, 0, 1, 1], [], []>} : vector<256x4xbf16>, vector<4x8xbf16>, vector<256x8xf32> -> vector<256x8xf32>
    %62 = arith.addf %56, %61 : vector<256x8xf32>
    %c2_75 = arith.constant 2 : index
    %c0_76 = arith.constant 0 : index
    %c0_77 = arith.constant 0 : index
    %63 = vector.load %arg11[%c2_75, %c0_76, %c0_77] : memref<18x18x4xbf16, #tpu.memory_space<vmem>>, vector<16x16x4xbf16>
    %64 = vector.shape_cast %63 : vector<16x16x4xbf16> to vector<256x4xbf16>
    %c6 = arith.constant 6 : index
    %c0_78 = arith.constant 0 : index
    %c0_79 = arith.constant 0 : index
    %65 = vector.load %arg4[%c6, %c0_78, %c0_79] : memref<9x4x8xbf16, #tpu.memory_space<vmem>>, vector<1x4x8xbf16>
    %66 = vector.shape_cast %65 : vector<1x4x8xbf16> to vector<4x8xbf16>
    %cst_80 = arith.constant dense<0.000000e+00> : vector<256x8xf32>
    %67 = tpu.matmul %64, %66, %cst_80 {dimension_numbers = #tpu.dot_dimension_numbers<[1], [0], [0], [1], [0, 0, 1, 1], [], []>} : vector<256x4xbf16>, vector<4x8xbf16>, vector<256x8xf32> -> vector<256x8xf32>
    %68 = arith.addf %62, %67 : vector<256x8xf32>
    %c2_81 = arith.constant 2 : index
    %c1_82 = arith.constant 1 : index
    %c0_83 = arith.constant 0 : index
    %69 = vector.load %arg11[%c2_81, %c1_82, %c0_83] : memref<18x18x4xbf16, #tpu.memory_space<vmem>>, vector<16x16x4xbf16>
    %70 = vector.shape_cast %69 : vector<16x16x4xbf16> to vector<256x4xbf16>
    %c7 = arith.constant 7 : index
    %c0_84 = arith.constant 0 : index
    %c0_85 = arith.constant 0 : index
    %71 = vector.load %arg4[%c7, %c0_84, %c0_85] : memref<9x4x8xbf16, #tpu.memory_space<vmem>>, vector<1x4x8xbf16>
    %72 = vector.shape_cast %71 : vector<1x4x8xbf16> to vector<4x8xbf16>
    %cst_86 = arith.constant dense<0.000000e+00> : vector<256x8xf32>
    %73 = tpu.matmul %70, %72, %cst_86 {dimension_numbers = #tpu.dot_dimension_numbers<[1], [0], [0], [1], [0, 0, 1, 1], [], []>} : vector<256x4xbf16>, vector<4x8xbf16>, vector<256x8xf32> -> vector<256x8xf32>
    %74 = arith.addf %68, %73 : vector<256x8xf32>
    %c2_87 = arith.constant 2 : index
    %c2_88 = arith.constant 2 : index
    %c0_89 = arith.constant 0 : index
    %75 = vector.load %arg11[%c2_87, %c2_88, %c0_89] : memref<18x18x4xbf16, #tpu.memory_space<vmem>>, vector<16x16x4xbf16>
    %76 = vector.shape_cast %75 : vector<16x16x4xbf16> to vector<256x4xbf16>
    %c8 = arith.constant 8 : index
    %c0_90 = arith.constant 0 : index
    %c0_91 = arith.constant 0 : index
    %77 = vector.load %arg4[%c8, %c0_90, %c0_91] : memref<9x4x8xbf16, #tpu.memory_space<vmem>>, vector<1x4x8xbf16>
    %78 = vector.shape_cast %77 : vector<1x4x8xbf16> to vector<4x8xbf16>
    %cst_92 = arith.constant dense<0.000000e+00> : vector<256x8xf32>
    %79 = tpu.matmul %76, %78, %cst_92 {dimension_numbers = #tpu.dot_dimension_numbers<[1], [0], [0], [1], [0, 0, 1, 1], [], []>} : vector<256x4xbf16>, vector<4x8xbf16>, vector<256x8xf32> -> vector<256x8xf32>
    %80 = arith.addf %74, %79 : vector<256x8xf32>
    %81 = vector.shape_cast %80 : vector<256x8xf32> to vector<16x16x8xf32>
    %c0_93 = arith.constant 0 : index
    %c0_94 = arith.constant 0 : index
    %82 = vector.load %arg5[%c0_93, %c0_94] : memref<1x8xf32, #tpu.memory_space<vmem>>, vector<1x8xf32>
    %83 = vector.shape_cast %82 : vector<1x8xf32> to vector<1x1x8xf32>
    %84 = vector.broadcast %83 : vector<1x1x8xf32> to vector<16x16x8xf32>
    %85 = arith.mulf %81, %84 : vector<16x16x8xf32>
    %c0_95 = arith.constant 0 : index
    %c0_96 = arith.constant 0 : index
    %86 = vector.load %arg6[%c0_95, %c0_96] : memref<1x8xf32, #tpu.memory_space<vmem>>, vector<1x8xf32>
    %87 = vector.shape_cast %86 : vector<1x8xf32> to vector<1x1x8xf32>
    %88 = vector.broadcast %87 : vector<1x1x8xf32> to vector<16x16x8xf32>
    %89 = arith.addf %85, %88 : vector<16x16x8xf32>
    %cst_97 = arith.constant 0.000000e+00 : f32
    %90 = vector.broadcast %cst_97 : f32 to vector<16x16x8xf32>
    %91 = arith.maximumf %89, %90 : vector<16x16x8xf32>
    %92 = arith.truncf %91 : vector<16x16x8xf32> to vector<16x16x8xbf16>
    %c1_98 = arith.constant 1 : index
    %c1_99 = arith.constant 1 : index
    %c0_100 = arith.constant 0 : index
    %93 = vector.load %arg12[%c1_98, %c1_99, %c0_100] : memref<18x18x8xbf16, #tpu.memory_space<vmem>>, vector<16x16x8xbf16>
    tpu.vector_store %arg12[%c1_98, %c1_99, %c0_100], %92 {strides = array<i32>} : memref<18x18x8xbf16, #tpu.memory_space<vmem>>, vector<16x16x8xbf16>,
    %cst_101 = arith.constant 0.000000e+00 : f32
    %94 = vector.broadcast %cst_101 : f32 to vector<256x8xf32>
    %c0_102 = arith.constant 0 : index
    %c0_103 = arith.constant 0 : index
    %c0_104 = arith.constant 0 : index
    %95 = vector.load %arg12[%c0_102, %c0_103, %c0_104] : memref<18x18x8xbf16, #tpu.memory_space<vmem>>, vector<16x16x8xbf16>
    %96 = vector.shape_cast %95 : vector<16x16x8xbf16> to vector<256x8xbf16>
    %c0_105 = arith.constant 0 : index
    %c0_106 = arith.constant 0 : index
    %c0_107 = arith.constant 0 : index
    %97 = vector.load %arg7[%c0_105, %c0_106, %c0_107] : memref<9x8x8xbf16, #tpu.memory_space<vmem>>, vector<1x8x8xbf16>
    %98 = vector.shape_cast %97 : vector<1x8x8xbf16> to vector<8x8xbf16>
    %cst_108 = arith.constant dense<0.000000e+00> : vector<256x8xf32>
    %99 = tpu.matmul %96, %98, %cst_108 {dimension_numbers = #tpu.dot_dimension_numbers<[1], [0], [0], [1], [0, 0, 1, 1], [], []>} : vector<256x8xbf16>, vector<8x8xbf16>, vector<256x8xf32> -> vector<256x8xf32>
    %100 = arith.addf %94, %99 : vector<256x8xf32>
    %c0_109 = arith.constant 0 : index
    %c1_110 = arith.constant 1 : index
    %c0_111 = arith.constant 0 : index
    %101 = vector.load %arg12[%c0_109, %c1_110, %c0_111] : memref<18x18x8xbf16, #tpu.memory_space<vmem>>, vector<16x16x8xbf16>
    %102 = vector.shape_cast %101 : vector<16x16x8xbf16> to vector<256x8xbf16>
    %c1_112 = arith.constant 1 : index
    %c0_113 = arith.constant 0 : index
    %c0_114 = arith.constant 0 : index
    %103 = vector.load %arg7[%c1_112, %c0_113, %c0_114] : memref<9x8x8xbf16, #tpu.memory_space<vmem>>, vector<1x8x8xbf16>
    %104 = vector.shape_cast %103 : vector<1x8x8xbf16> to vector<8x8xbf16>
    %cst_115 = arith.constant dense<0.000000e+00> : vector<256x8xf32>
    %105 = tpu.matmul %102, %104, %cst_115 {dimension_numbers = #tpu.dot_dimension_numbers<[1], [0], [0], [1], [0, 0, 1, 1], [], []>} : vector<256x8xbf16>, vector<8x8xbf16>, vector<256x8xf32> -> vector<256x8xf32>
    %106 = arith.addf %100, %105 : vector<256x8xf32>
    %c0_116 = arith.constant 0 : index
    %c2_117 = arith.constant 2 : index
    %c0_118 = arith.constant 0 : index
    %107 = vector.load %arg12[%c0_116, %c2_117, %c0_118] : memref<18x18x8xbf16, #tpu.memory_space<vmem>>, vector<16x16x8xbf16>
    %108 = vector.shape_cast %107 : vector<16x16x8xbf16> to vector<256x8xbf16>
    %c2_119 = arith.constant 2 : index
    %c0_120 = arith.constant 0 : index
    %c0_121 = arith.constant 0 : index
    %109 = vector.load %arg7[%c2_119, %c0_120, %c0_121] : memref<9x8x8xbf16, #tpu.memory_space<vmem>>, vector<1x8x8xbf16>
    %110 = vector.shape_cast %109 : vector<1x8x8xbf16> to vector<8x8xbf16>
    %cst_122 = arith.constant dense<0.000000e+00> : vector<256x8xf32>
    %111 = tpu.matmul %108, %110, %cst_122 {dimension_numbers = #tpu.dot_dimension_numbers<[1], [0], [0], [1], [0, 0, 1, 1], [], []>} : vector<256x8xbf16>, vector<8x8xbf16>, vector<256x8xf32> -> vector<256x8xf32>
    %112 = arith.addf %106, %111 : vector<256x8xf32>
    %c1_123 = arith.constant 1 : index
    %c0_124 = arith.constant 0 : index
    %c0_125 = arith.constant 0 : index
    %113 = vector.load %arg12[%c1_123, %c0_124, %c0_125] : memref<18x18x8xbf16, #tpu.memory_space<vmem>>, vector<16x16x8xbf16>
    %114 = vector.shape_cast %113 : vector<16x16x8xbf16> to vector<256x8xbf16>
    %c3_126 = arith.constant 3 : index
    %c0_127 = arith.constant 0 : index
    %c0_128 = arith.constant 0 : index
    %115 = vector.load %arg7[%c3_126, %c0_127, %c0_128] : memref<9x8x8xbf16, #tpu.memory_space<vmem>>, vector<1x8x8xbf16>
    %116 = vector.shape_cast %115 : vector<1x8x8xbf16> to vector<8x8xbf16>
    %cst_129 = arith.constant dense<0.000000e+00> : vector<256x8xf32>
    %117 = tpu.matmul %114, %116, %cst_129 {dimension_numbers = #tpu.dot_dimension_numbers<[1], [0], [0], [1], [0, 0, 1, 1], [], []>} : vector<256x8xbf16>, vector<8x8xbf16>, vector<256x8xf32> -> vector<256x8xf32>
    %118 = arith.addf %112, %117 : vector<256x8xf32>
    %c1_130 = arith.constant 1 : index
    %c1_131 = arith.constant 1 : index
    %c0_132 = arith.constant 0 : index
    %119 = vector.load %arg12[%c1_130, %c1_131, %c0_132] : memref<18x18x8xbf16, #tpu.memory_space<vmem>>, vector<16x16x8xbf16>
    %120 = vector.shape_cast %119 : vector<16x16x8xbf16> to vector<256x8xbf16>
    %c4_133 = arith.constant 4 : index
    %c0_134 = arith.constant 0 : index
    %c0_135 = arith.constant 0 : index
    %121 = vector.load %arg7[%c4_133, %c0_134, %c0_135] : memref<9x8x8xbf16, #tpu.memory_space<vmem>>, vector<1x8x8xbf16>
    %122 = vector.shape_cast %121 : vector<1x8x8xbf16> to vector<8x8xbf16>
    %cst_136 = arith.constant dense<0.000000e+00> : vector<256x8xf32>
    %123 = tpu.matmul %120, %122, %cst_136 {dimension_numbers = #tpu.dot_dimension_numbers<[1], [0], [0], [1], [0, 0, 1, 1], [], []>} : vector<256x8xbf16>, vector<8x8xbf16>, vector<256x8xf32> -> vector<256x8xf32>
    %124 = arith.addf %118, %123 : vector<256x8xf32>
    %c1_137 = arith.constant 1 : index
    %c2_138 = arith.constant 2 : index
    %c0_139 = arith.constant 0 : index
    %125 = vector.load %arg12[%c1_137, %c2_138, %c0_139] : memref<18x18x8xbf16, #tpu.memory_space<vmem>>, vector<16x16x8xbf16>
    %126 = vector.shape_cast %125 : vector<16x16x8xbf16> to vector<256x8xbf16>
    %c5_140 = arith.constant 5 : index
    %c0_141 = arith.constant 0 : index
    %c0_142 = arith.constant 0 : index
    %127 = vector.load %arg7[%c5_140, %c0_141, %c0_142] : memref<9x8x8xbf16, #tpu.memory_space<vmem>>, vector<1x8x8xbf16>
    %128 = vector.shape_cast %127 : vector<1x8x8xbf16> to vector<8x8xbf16>
    %cst_143 = arith.constant dense<0.000000e+00> : vector<256x8xf32>
    %129 = tpu.matmul %126, %128, %cst_143 {dimension_numbers = #tpu.dot_dimension_numbers<[1], [0], [0], [1], [0, 0, 1, 1], [], []>} : vector<256x8xbf16>, vector<8x8xbf16>, vector<256x8xf32> -> vector<256x8xf32>
    %130 = arith.addf %124, %129 : vector<256x8xf32>
    %c2_144 = arith.constant 2 : index
    %c0_145 = arith.constant 0 : index
    %c0_146 = arith.constant 0 : index
    %131 = vector.load %arg12[%c2_144, %c0_145, %c0_146] : memref<18x18x8xbf16, #tpu.memory_space<vmem>>, vector<16x16x8xbf16>
    %132 = vector.shape_cast %131 : vector<16x16x8xbf16> to vector<256x8xbf16>
    %c6_147 = arith.constant 6 : index
    %c0_148 = arith.constant 0 : index
    %c0_149 = arith.constant 0 : index
    %133 = vector.load %arg7[%c6_147, %c0_148, %c0_149] : memref<9x8x8xbf16, #tpu.memory_space<vmem>>, vector<1x8x8xbf16>
    %134 = vector.shape_cast %133 : vector<1x8x8xbf16> to vector<8x8xbf16>
    %cst_150 = arith.constant dense<0.000000e+00> : vector<256x8xf32>
    %135 = tpu.matmul %132, %134, %cst_150 {dimension_numbers = #tpu.dot_dimension_numbers<[1], [0], [0], [1], [0, 0, 1, 1], [], []>} : vector<256x8xbf16>, vector<8x8xbf16>, vector<256x8xf32> -> vector<256x8xf32>
    %136 = arith.addf %130, %135 : vector<256x8xf32>
    %c2_151 = arith.constant 2 : index
    %c1_152 = arith.constant 1 : index
    %c0_153 = arith.constant 0 : index
    %137 = vector.load %arg12[%c2_151, %c1_152, %c0_153] : memref<18x18x8xbf16, #tpu.memory_space<vmem>>, vector<16x16x8xbf16>
    %138 = vector.shape_cast %137 : vector<16x16x8xbf16> to vector<256x8xbf16>
    %c7_154 = arith.constant 7 : index
    %c0_155 = arith.constant 0 : index
    %c0_156 = arith.constant 0 : index
    %139 = vector.load %arg7[%c7_154, %c0_155, %c0_156] : memref<9x8x8xbf16, #tpu.memory_space<vmem>>, vector<1x8x8xbf16>
    %140 = vector.shape_cast %139 : vector<1x8x8xbf16> to vector<8x8xbf16>
    %cst_157 = arith.constant dense<0.000000e+00> : vector<256x8xf32>
    %141 = tpu.matmul %138, %140, %cst_157 {dimension_numbers = #tpu.dot_dimension_numbers<[1], [0], [0], [1], [0, 0, 1, 1], [], []>} : vector<256x8xbf16>, vector<8x8xbf16>, vector<256x8xf32> -> vector<256x8xf32>
    %142 = arith.addf %136, %141 : vector<256x8xf32>
    %c2_158 = arith.constant 2 : index
    %c2_159 = arith.constant 2 : index
    %c0_160 = arith.constant 0 : index
    %143 = vector.load %arg12[%c2_158, %c2_159, %c0_160] : memref<18x18x8xbf16, #tpu.memory_space<vmem>>, vector<16x16x8xbf16>
    %144 = vector.shape_cast %143 : vector<16x16x8xbf16> to vector<256x8xbf16>
    %c8_161 = arith.constant 8 : index
    %c0_162 = arith.constant 0 : index
    %c0_163 = arith.constant 0 : index
    %145 = vector.load %arg7[%c8_161, %c0_162, %c0_163] : memref<9x8x8xbf16, #tpu.memory_space<vmem>>, vector<1x8x8xbf16>
    %146 = vector.shape_cast %145 : vector<1x8x8xbf16> to vector<8x8xbf16>
    %cst_164 = arith.constant dense<0.000000e+00> : vector<256x8xf32>
    %147 = tpu.matmul %144, %146, %cst_164 {dimension_numbers = #tpu.dot_dimension_numbers<[1], [0], [0], [1], [0, 0, 1, 1], [], []>} : vector<256x8xbf16>, vector<8x8xbf16>, vector<256x8xf32> -> vector<256x8xf32>
    %148 = arith.addf %142, %147 : vector<256x8xf32>
    %149 = vector.shape_cast %148 : vector<256x8xf32> to vector<16x16x8xf32>
    %c0_165 = arith.constant 0 : index
    %c0_166 = arith.constant 0 : index
    %150 = vector.load %arg8[%c0_165, %c0_166] : memref<1x8xf32, #tpu.memory_space<vmem>>, vector<1x8xf32>
    %151 = vector.shape_cast %150 : vector<1x8xf32> to vector<1x1x8xf32>
    %152 = vector.shape_cast %13 : vector<16x16x4xf32> to vector<256x4xf32>
    %153 = arith.truncf %152 : vector<256x4xf32> to vector<256x4xbf16>
    %c0_167 = arith.constant 0 : index
    %c0_168 = arith.constant 0 : index
    %154 = vector.load %arg9[%c0_167, %c0_168] : memref<4x8xbf16, #tpu.memory_space<vmem>>, vector<4x8xbf16>
    %cst_169 = arith.constant dense<0.000000e+00> : vector<256x8xf32>
    %155 = tpu.matmul %153, %154, %cst_169 {dimension_numbers = #tpu.dot_dimension_numbers<[1], [0], [0], [1], [0, 0, 1, 1], [], []>} : vector<256x4xbf16>, vector<4x8xbf16>, vector<256x8xf32> -> vector<256x8xf32>
    %156 = vector.shape_cast %155 : vector<256x8xf32> to vector<16x16x8xf32>
    %157 = arith.addf %149, %156 : vector<16x16x8xf32>
    %158 = vector.broadcast %151 : vector<1x1x8xf32> to vector<16x16x8xf32>
    %159 = arith.addf %157, %158 : vector<16x16x8xf32>
    %c0_170 = arith.constant 0 : index
    %c0_171 = arith.constant 0 : index
    %c0_172 = arith.constant 0 : index
    %c0_173 = arith.constant 0 : index
    %160 = vector.load %arg10[%c0_170, %c0_171, %c0_172, %c0_173] : memref<1x16x16x8xf32, #tpu.memory_space<vmem>>, vector<1x16x16x8xf32>
    %161 = vector.shape_cast %160 : vector<1x16x16x8xf32> to vector<16x16x8xf32>
    %162 = vector.shape_cast %159 : vector<16x16x8xf32> to vector<1x16x16x8xf32>
    tpu.vector_store %arg10[%c0_170, %c0_171, %c0_172, %c0_173], %162 {strides = array<i32>} : memref<1x16x16x8xf32, #tpu.memory_space<vmem>>, vector<1x16x16x8xf32>,
    return
  }
  func.func @transform_0(%arg0: i32) -> (i32, i32, i32, i32) {
    %c0_i32 = arith.constant 0 : i32
    %c0_i32_0 = arith.constant 0 : i32
    %c0_i32_1 = arith.constant 0 : i32
    %c0_i32_2 = arith.constant 0 : i32
    return %arg0, %c0_i32, %c0_i32_0, %c0_i32_1 : i32, i32, i32, i32
  }
  func.func @transform_1(%arg0: i32) -> (i32, i32) {
    %c0_i32 = arith.constant 0 : i32
    %c0_i32_0 = arith.constant 0 : i32
    %c0_i32_1 = arith.constant 0 : i32
    return %c0_i32, %c0_i32_0 : i32, i32
  }
  func.func @transform_2(%arg0: i32) -> (i32, i32) {
    %c0_i32 = arith.constant 0 : i32
    %c0_i32_0 = arith.constant 0 : i32
    %c0_i32_1 = arith.constant 0 : i32
    return %c0_i32, %c0_i32_0 : i32, i32
  }
  func.func @transform_3(%arg0: i32) -> (i32, i32, i32) {
    %c0_i32 = arith.constant 0 : i32
    %c0_i32_0 = arith.constant 0 : i32
    %c0_i32_1 = arith.constant 0 : i32
    %c0_i32_2 = arith.constant 0 : i32
    return %c0_i32, %c0_i32_0, %c0_i32_1 : i32, i32, i32
  }
  func.func @transform_4(%arg0: i32) -> (i32, i32) {
    %c0_i32 = arith.constant 0 : i32
    %c0_i32_0 = arith.constant 0 : i32
    %c0_i32_1 = arith.constant 0 : i32
    return %c0_i32, %c0_i32_0 : i32, i32
  }
  func.func @transform_5(%arg0: i32) -> (i32, i32) {
    %c0_i32 = arith.constant 0 : i32
    %c0_i32_0 = arith.constant 0 : i32
    %c0_i32_1 = arith.constant 0 : i32
    return %c0_i32, %c0_i32_0 : i32, i32
  }
  func.func @transform_6(%arg0: i32) -> (i32, i32, i32) {
    %c0_i32 = arith.constant 0 : i32
    %c0_i32_0 = arith.constant 0 : i32
    %c0_i32_1 = arith.constant 0 : i32
    %c0_i32_2 = arith.constant 0 : i32
    return %c0_i32, %c0_i32_0, %c0_i32_1 : i32, i32, i32
  }
  func.func @transform_7(%arg0: i32) -> (i32, i32) {
    %c0_i32 = arith.constant 0 : i32
    %c0_i32_0 = arith.constant 0 : i32
    %c0_i32_1 = arith.constant 0 : i32
    return %c0_i32, %c0_i32_0 : i32, i32
  }
  func.func @transform_8(%arg0: i32) -> (i32, i32) {
    %c0_i32 = arith.constant 0 : i32
    %c0_i32_0 = arith.constant 0 : i32
    %c0_i32_1 = arith.constant 0 : i32
    return %c0_i32, %c0_i32_0 : i32, i32
  }
  func.func @transform_9(%arg0: i32) -> (i32, i32, i32, i32) {
    %c0_i32 = arith.constant 0 : i32
    %c0_i32_0 = arith.constant 0 : i32
    %c0_i32_1 = arith.constant 0 : i32
    %c0_i32_2 = arith.constant 0 : i32
    return %arg0, %c0_i32, %c0_i32_0, %c0_i32_1 : i32, i32, i32, i32
  }
}

</mosaic_0001>

<bundles_post_ra>
// kernel: tpu_custom_call.1
= control target key start
LH: loop header
LB: loop body
LE: loop exit
PB: predicated region body
PF: predicated region fallthrough
CT: control target
= control target key end

     0   :  { %s10913_s30 = smov 0   ;;  %s15095_s0 = inlined_call_operand.vmem [shape: f32[2,16,16,4], index: 0, kind: input, shape index: {}]   ;;  %s15096_s1 = inlined_call_operand.vmem [shape: f32[1,4], index: 1, kind: input, shape index: {}]   ;;  %s15097_s2 = inlined_call_operand.vmem [shape: f32[1,4], index: 2, kind: input, shape index: {}]   ;;  %s15098_s3 = inlined_call_operand.vmem [shape: bf16[9,4,8], index: 3, kind: input, shape index: {}]   ;;  %s15099_s4 = inlined_call_operand.vmem [shape: f32[1,8], index: 4, kind: input, shape index: {}]   ;;  %s15100_s5 = inlined_call_operand.vmem [shape: f32[1,8], index: 5, kind: input, shape index: {}]   ;;  %s15101_s6 = inlined_call_operand.vmem [shape: bf16[9,8,8], index: 6, kind: input, shape index: {}]   ;;  %s15102_s7 = inlined_call_operand.vmem [shape: f32[1,8], index: 7, kind: input, shape index: {}]   ;;  %s15103_s8 = inlined_call_operand.vmem [shape: bf16[4,8], index: 8, kind: input, shape index: {}]   ;;  %s15104_s9 = inlined_call_operand.vmem [shape: f32[2,16,16,8], index: 9, kind: output, shape index: {}]  }
   0x1 LB: > { %s9878_s10 = sadd.s32 4294967295, %s10860_s30   ;;  %p9882_p0 = scmp.ge.s32.totalorder %s10860_s30, 1  ;;  %s10860_s30 = sphi %s10913_s30, %s19_s30  }
   0x2   : > { %p287_p1 = scmp.lt.s32.totalorder %s10860_s30, 3 }
   0x4   : > { %p288_p2 = pnand %p9882_p0, %p287_p1 }
   0x6   : > { %291 = sbr.rel (%p288_p2) target bundleno = 1595 (0x63b), region = 56 }
   0xb   : > { %v9887_v0 = vld [vmem:[%s15098_s3 + $0x2] sm:$0x3]  ;;  %vm1716_vm0 = vcmask 1041408   ;;  %vm334_vm1 = vcmask 27648   ;;  %vm337_vm2 = vcmask 24576   ;;  %v10862_v2 = vmov 0  }
   0xc   : > { %v1718_v1 = vsel %vm1716_vm0, %v9887_v0, 0  ;;  %335 = vst.msk [vmem:[#allocation2] sm:$0xf] %vm334_vm1, %v10862_v2  ;;  %vm344_vm3 = vsmask.f32 256  ;;  %vm456_vm4 = vcmask 60416  }
   0xd   : > { %1727 = vmatpush.bf16.msra.mxu0 %v1718_v1  ;;  %336 = vst.msk [vmem:[#allocation2 + $0x4] sm:$0xf] %vm334_vm1, %v10862_v2  ;;  %10787 = vmatpush.bf16.msra.mxu3 %v1718_v1  ;;  %vm400_vm5 = vsmask.f32 7938  ;;  %v10000_v3 = vld [vmem:[%s15098_s3 + $0x4] sm:$0x3]  ;;  %vm10943_vm6 = vmand %vm337_vm2, %vm344_vm3 }
   0xe   : > { %338 = vst.msk [vmem:[#allocation2 + $0x8] sm:$0x1] %vm337_vm2, %v10862_v2  ;;  %v10934_v4 = vsel %vm1716_vm0, %v10000_v3, 0  ;;  %v1213_v5 = vld [vmem:[%s15098_s3] sm:$0x3]  ;;  %p323_p3 = scmp.lt.s32.totalorder %s9878_s10, 1  ;;  %vm10957_vm10 = vmand %vm337_vm2, %vm400_vm5 }
   0xf   : > { %340 = vst.msk [vmem:[#allocation2 + $0xcc] sm:$0xf] %vm334_vm1, %v10862_v2  ;;  %vm459_vm7 = vcmask 57344   ;;  %2300 = vmatpush.bf16.msra.mxu2 %v10934_v4  ;;  %vm2077_vm8 = vcmask 1042432   ;;  %v1938_v7 = vsel %vm1716_vm0, %v1213_v5, 0  ;;  %vm2078_vm9 = vcmask 1046532  }
  0x10   : > { %341 = vst.msk [vmem:[#allocation2 + $0xd0] sm:$0xf] %vm334_vm1, %v10862_v2  ;;  %1947 = vmatpush.bf16.msra.mxu1 %v1938_v7  ;;  %s15389_s10 = smov (!%p323_p3, %s9878_s10), 1  ;;  %v382_v8 = vld [vmem:[#allocation2 + $0x90] sm:$0x1]  ;;  %vm10970_vm12 = vmor %vm2077_vm8, %vm2078_vm9  ;;  %vm1667_vm13 = vcmask 31744  }
  0x11   : > { %342 = vst.msk [vmem:[#allocation2 + $0xd4] sm:$0x1] %vm337_vm2, %v10862_v2  ;;  %10788 = vmatpush.bf16.msrb.mxu3 %v1938_v7  ;;  %v438_v12 = vld [vmem:[#allocation2 + $0x98] sm:$0x1]  ;;  %vm1230_vm11 = vsmask.f32 3328  ;;  %vm11046_vm8 = vmand %vm334_vm1, %vm400_vm5 }
  0x12   : > { %457 = vst.msk [vmem:[#allocation3] sm:$0xf] %vm456_vm4, %v10862_v2  ;;  %s10689_s17 = sshll.u32 %s15389_s10, 8  ;;  %v383_v22 = vsel %vm10943_vm6, 0, %v382_v8  ;;  %v439_v25 = vsel %vm10957_vm10, 0, %v438_v12 }
  0x13   : > { %v346_v9 = vld [vmem:[#allocation2] sm:$0x1]  ;;  %458 = vst.msk [vmem:[#allocation3 + $0x4] sm:$0xf] %vm456_vm4, %v10862_v2  ;;  %v2029_v11 = vld [vmem:[#allocation2] sm:$0xe]  ;;  %s10984_s20 = scalar_lea.vmem %s15095_s0, %s10689_s17  ;;  %s14850_s11 = scalar_lea.vmem %s15104_s9, %s10689_s17 }
  0x14   : > { %v347_v13 = vsel %vm10943_vm6, 0, %v346_v9  ;;  %v1182_v14 = vld [vmem:[#allocation2 + $0x4] sm:$0xf]  ;;  %460 = vst.msk [vmem:[#allocation3 + $0x8] sm:$0x1] %vm459_vm7, %v10862_v2  ;;  %v9984_v15 = vrot.slane %v2029_v11, 9 }
  0x15   : > { %348 = vst [vmem:[#allocation2] sm:$0x1] %v347_v13  ;;  %v402_v16 = vld [vmem:[#allocation2 + $0x8] sm:$0x1]  ;;  %v1243_v17 = vshll.u32 %v1182_v14, 16  ;;  %v1247_v18 = vshrl.u32 %v1182_v14, 16 }
  0x16   : > { %v403_v19 = vsel %vm10957_vm10, 0, %v402_v16  ;;  %462 = vst.msk [vmem:[#allocation3 + $0xcc] sm:$0xf] %vm456_vm4, %v10862_v2  ;;  %v2082_v21 = vrot.slane %v1182_v14, 5  ;;  %v598_v26 = vld [vmem:[%s10984_s20 + $0xb0] sm:$0xff]  ;;  %v599_v27 = vld [vmem:[%s10984_s20 + $0xb8] sm:$0xff] }
  0x17   : > { %404 = vst [vmem:[#allocation2 + $0x8] sm:$0x1] %v403_v19  ;;  %v10977_v23 = vrot.slane %v1243_v17, 5  ;;  %v1249_v24 = vrot.slane %v1247_v18, 4  ;;  %v576_v28 = vld [vmem:[%s10984_s20] sm:$0xff]  ;;  %v577_v37 = vld [vmem:[%s10984_s20 + $0x8] sm:$0xff] }
  0x18   : > { %463 = vst.msk [vmem:[#allocation3 + $0xd0] sm:$0xf] %vm456_vm4, %v10862_v2  ;;  %v2083_v30 = vsel %vm10970_vm12, %v9984_v15, %v2082_v21  ;;  %v10999_v31 = vld [vmem:[%s15096_s1] ss:$0 sm:$0xff]  ;;  %vm1231_vm14 = vsmask.f32 7440 }
  0x19   : > { %v1250_v29 = vor.u32 %v1249_v24, %v10977_v23  ;;  %464 = vst.msk [vmem:[#allocation3 + $0xd4] sm:$0x1] %vm459_vm7, %v10862_v2  ;;  %v11004_v32 = vld [vmem:[%s15097_s2] ss:$0 sm:$0xff]  ;;  %v2084_v33 = vrot.slane %v2082_v21, 4  ;;  %v634_v34 = vmul.f32 %v10999_v31, %v598_v26  ;;  %v635_v35 = vmul.f32 %v10999_v31, %v599_v27  ;;  %vm11024_vm2 = vmor %vm1230_vm11, %vm1231_vm14 }
  0x1a   : > { %384 = vst [vmem:[#allocation2 + $0x90] sm:$0x1] %v383_v22  ;;  %v349_v36 = vld [vmem:[#allocation2 + $0xc] sm:$0x1]  ;;  %v612_v38 = vmul.f32 %v10999_v31, %v576_v28  ;;  %v2194_v41 = vunpack.c.l.b16 %v2083_v30  ;;  %v405_v43 = vld [vmem:[#allocation2 + $0x14] sm:$0x1]  ;;  %v613_v44 = vmul.f32 %v10999_v31, %v577_v37 }
  0x1b   : > { %440 = vst [vmem:[#allocation2 + $0x98] sm:$0x1] %v439_v25  ;;  %v1251_v40 = vrot.slane %v1250_v29, 4  ;;  %v350_v42 = vsel %vm10943_vm6, 0, %v349_v36  ;;  %v670_v47 = vadd.f32 %v11004_v32, %v634_v34  ;;  %v671_v48 = vadd.f32 %v11004_v32, %v635_v35  ;;  %v385_v49 = vld [vmem:[#allocation2 + $0x9c] sm:$0x1] }
  0x1c   : > { %v1181_v39 = vld [vmem:[#allocation2] sm:$0xf]  ;;  %vm744_vm15 = vsmask.f32 4368  ;;  %351 = vst [vmem:[#allocation2 + $0xc] sm:$0x1] %v350_v42  ;;  %v648_v52 = vadd.f32 %v11004_v32, %v612_v38  ;;  %v649_v53 = vadd.f32 %v11004_v32, %v613_v44 }
  0x1d   : > { %v1234_v45 = vshrl.u32 %v1181_v39, 16  ;;  %v1237_v46 = vshll.u32 %v1181_v39, 16  ;;  %v406_v51 = vsel %vm10957_vm10, 0, %v405_v43  ;;  %v386_v54 = vsel %vm10943_vm6, 0, %v385_v49  ;;  %v441_v55 = vld [vmem:[#allocation2 + $0xa4] sm:$0x1]  ;;  %vm11053_vm9 = vmor %vm344_vm3, %vm744_vm15 }
  0x1e   : > { %v1214_v50 = vld [vmem:[#allocation2 + $0x8] sm:$0x1]  ;;  %v10691_v60 = vld [vmem:[#allocation2] sm:$0xff]  ;;  %v702_v63 = vmax.f32 %v670_v47, 0.0  ;;  %v703_v0 = vmax.f32 %v671_v48, 0.0  ;;  %v680_v1 = vmax.f32 %v648_v52, 0.0 }
  0x1f   : > { %v1236_v56 = vrot.slane %v1234_v45, 4  ;;  %v1239_v57 = vrot.slane %v1237_v46, 5  ;;  %v1253_v58 = vshll.u32 %v1214_v50, 16  ;;  %v2085_v59 = vrot.slane %v1214_v50, 5  ;;  %v600_v61 = vld [vmem:[%s10984_s20 + $0xc0] sm:$0xff]  ;;  %9968 = vmatmul.msk.bf16.vlgmr.msra.gmra.mxu1 %vm1667_vm13, %v10691_v60  ;;  %v601_v35 = vld [vmem:[%s10984_s20 + $0xc8] sm:$0xff] }
  0x20   : > { %407 = vst [vmem:[#allocation2 + $0x14] sm:$0x1] %v406_v51  ;;  %v681_v2 = vmax.f32 %v649_v53, 0.0  ;;  %v442_v8 = vsel %vm10957_vm10, 0, %v441_v55  ;;  %v734_v11 = vpack.c.bf16 %v702_v63, %v702_v63  ;;  %v735_v12 = vpack.c.bf16 %v703_v0, %v703_v0  ;;  %v10098_v28 = vld [vmem:[%s15098_s3 + $0x8] sm:$0x3] }
  0x21   : > { %v1240_v3 = vor.u32 %v1239_v57, %v1236_v56  ;;  %v1255_v5 = vrot.slane %v1253_v58, 5  ;;  %v2086_v7 = vsel %vm10970_vm12, %v2084_v33, %v2085_v59  ;;  %387 = vst [vmem:[#allocation2 + $0x9c] sm:$0x1] %v386_v54  ;;  %v712_v13 = vpack.c.bf16 %v680_v1, %v680_v1  ;;  %v1146_v37 = vld [vmem:[#allocation2 + $0x90] sm:$0xf]  ;;  %v579_v59 = vld [vmem:[%s10984_s20 + $0x18] sm:$0xff] }
  0x22   : > { %v2195_v9 = vunpack.c.l.b16 %v2086_v7  ;;  %443 = vst [vmem:[#allocation2 + $0xa4] sm:$0x1] %v442_v8  ;;  %v713_v16 = vpack.c.bf16 %v681_v2, %v681_v2  ;;  %v636_v17 = vmul.f32 %v10999_v31, %v600_v61  ;;  %v934_v21 = vshrl.u32 %v734_v11, 16  ;;  %v1150_v45 = vld [vmem:[#allocation2 + $0x98] sm:$0x1]  ;;  %v578_v58 = vld [vmem:[%s10984_s20 + $0x10] sm:$0xff] }
  0x23   : > { %v1241_v14 = vrot.slane %v1240_v3, 4  ;;  %v1256_v15 = vsel %vm11024_vm2, %v1251_v40, %v1255_v5  ;;  %v937_v22 = vshll.u32 %v734_v11, 16  ;;  %v942_v25 = vshrl.u32 %v735_v12, 16  ;;  %v1069_v47 = vld [vmem:[#allocation2 + $0xc] sm:$0xf]  ;;  %v602_v2 = vld [vmem:[%s10984_s20 + $0xd0] sm:$0xff] }
  0x24   : > { %v1620_v18 = vunpack.c.l.b16 %v1256_v15  ;;  %v2226_v19 = vpack.c.b16 %v2195_v9, %v2194_v41  ;;  %v945_v26 = vshll.u32 %v735_v12, 16  ;;  %v747_v27 = vshrl.u32 %v712_v13, 16  ;;  %v352_v57 = vld [vmem:[#allocation2 + $0x18] sm:$0x1]  ;;  %v408_v1 = vld [vmem:[#allocation2 + $0x20] sm:$0x1] }
  0x25   : > { %v1246_v24 = vsel %vm11024_vm2, %v1241_v14, %v10977_v23  ;;  %v936_v30 = vrot.slane %v934_v21, 7  ;;  %v750_v33 = vshll.u32 %v712_v13, 16  ;;  %v755_v34 = vshrl.u32 %v713_v16, 16  ;;  %v603_v3 = vld [vmem:[%s10984_s20 + $0xd8] sm:$0xff]  ;;  %v580_v9 = vld [vmem:[%s10984_s20 + $0x20] sm:$0xff]  ;;  %v581_v15 = vld [vmem:[%s10984_s20 + $0x28] sm:$0xff] }
  0x26   : > { %v1619_v29 = vunpack.c.l.b16 %v1246_v24  ;;  %10001 = vmatmul.msk.bf16.vlgmr.msra.gmra.mxu2 %vm1667_vm13, %v2226_v19  ;;  %v944_v23 = vrot.slane %v942_v25, 7  ;;  %v749_v38 = vrot.slane %v747_v27, 7  ;;  %v758_v39 = vshll.u32 %v713_v16, 16 }
  0x27   : > { %v3231_v40 = vsel %vm1716_vm0, %v10098_v28, 0  ;;  %v939_v43 = vor.u32 %v937_v22, %v936_v30  ;;  %v940_v44 = vrot.slane %v936_v30, 4  ;;  %v757_v46 = vrot.slane %v755_v34, 7  ;;  %v1073_v52 = vld [vmem:[#allocation2 + $0x14] sm:$0x1] }
  0x28   : > { %v1651_v41 = vpack.c.b16 %v1620_v18, %v1619_v29  ;;  %3240 = vmatpush.bf16.msrb.mxu0 %v3231_v40  ;;  %v947_v48 = vor.u32 %v945_v26, %v944_v23  ;;  %v949_v49 = vrot.slane %v944_v23, 4  ;;  %v752_v50 = vor.u32 %v750_v33, %v749_v38  ;;  %v11086_v18 = vld [vmem:[#allocation2 + $0xa8] sm:$0x1] }
  0x29   : > { %v753_v51 = vrot.slane %v749_v38, 4  ;;  %v1147_v53 = vsel %vm11046_vm8, %v939_v43, %v1146_v37  ;;  %v760_v54 = vor.u32 %v758_v39, %v757_v46  ;;  %v762_v55 = vrot.slane %v757_v46, 4 }
  0x2a   : > { %9888 = vmatmul.msk.bf16.vlgmr.msra.gmra.mxu0 %vm1667_vm13, %v1651_v41  ;;  %v637_v56 = vmul.f32 %v10999_v31, %v601_v35  ;;  %v948_v60 = vsel %vm11053_vm9, %v940_v44, %v947_v48  ;;  %1148 = vst [vmem:[#allocation2 + $0x90] sm:$0xf] %v1147_v53  ;;  %v1151_v61 = vsel %vm10943_vm6, %v949_v49, %v1150_v45  ;;  %v353_v12 = vsel %vm10943_vm6, 0, %v352_v57 }
  0x2b   : > { %v1070_v63 = vsel %vm11046_vm8, %v752_v50, %v1069_v47  ;;  %v672_v0 = vadd.f32 %v11004_v32, %v636_v17  ;;  %1149 = vst.msk [vmem:[#allocation2 + $0x94] sm:$0xf] %vm334_vm1, %v948_v60  ;;  %v761_v5 = vsel %vm11053_vm9, %v753_v51, %v760_v54  ;;  %v1074_v7 = vsel %vm10943_vm6, %v762_v55, %v1073_v52 }
  0x2c   : > { %v673_v8 = vadd.f32 %v11004_v32, %v637_v56  ;;  %1152 = vst [vmem:[#allocation2 + $0x98] sm:$0x1] %v1151_v61  ;;  %v614_v13 = vmul.f32 %v10999_v31, %v578_v58  ;;  %v615_v14 = vmul.f32 %v10999_v31, %v579_v59  ;;  %v409_v17 = vsel %vm10957_vm10, 0, %v408_v1 }
  0x2d   : > { %v704_v11 = vmax.f32 %v672_v0, 0.0  ;;  %1071 = vst [vmem:[#allocation2 + $0xc] sm:$0xf] %v1070_v63  ;;  %v638_v19 = vmul.f32 %v10999_v31, %v602_v2  ;;  %v639_v21 = vmul.f32 %v10999_v31, %v603_v3  ;;  %v616_v26 = vmul.f32 %v10999_v31, %v580_v9 }
  0x2e   : > { %v705_v16 = vmax.f32 %v673_v8, 0.0  ;;  %1072 = vst.msk [vmem:[#allocation2 + $0x10] sm:$0xf] %vm334_vm1, %v761_v5  ;;  %v650_v24 = vadd.f32 %v11004_v32, %v614_v13  ;;  %v11093_v25 = vadd.f32 %v11004_v32, %v615_v14  ;;  %v617_v28 = vmul.f32 %v10999_v31, %v581_v15 }
  0x2f   : > { %v736_v22 = vpack.c.bf16 %v704_v11, %v704_v11  ;;  %1075 = vst [vmem:[#allocation2 + $0x14] sm:$0x1] %v1074_v7  ;;  %v389_v34 = vsel %vm10943_vm6, 0, %v11086_v18  ;;  %v11105_v38 = vadd.f32 %v11004_v32, %v638_v19  ;;  %v11108_v39 = vadd.f32 %v11004_v32, %v639_v21 }
  0x30   : > { %v11096_v27 = vpack.c.bf16 %v705_v16, %v705_v16  ;;  %354 = vst [vmem:[#allocation2 + $0x18] sm:$0x1] %v353_v12  ;;  %v682_v33 = vmax.f32 %v650_v24, 0.0  ;;  %v683_v37 = vmax.f32 %v11093_v25, 0.0  ;;  %v11112_v45 = vadd.f32 %v11004_v32, %v616_v26 }
  0x31   : > { %v951_v29 = vshrl.u32 %v736_v22, 16  ;;  %v954_v30 = vshll.u32 %v736_v22, 16  ;;  %v1205_v35 = vld [vmem:[#allocation2 + $0x90] sm:$0xf]  ;;  %410 = vst [vmem:[#allocation2 + $0x20] sm:$0x1] %v409_v17  ;;  %v11115_v50 = vadd.f32 %v11004_v32, %v617_v28 }
  0x32   : > { %v959_v23 = vshrl.u32 %v11096_v27, 16  ;;  %v1206_v40 = vld [vmem:[#allocation2 + $0x94] sm:$0xf]  ;;  %v1522_v41 = vshrl.u32 %v1205_v35, 16  ;;  %v1525_v43 = vshll.u32 %v1205_v35, 16  ;;  %v962_v44 = vshll.u32 %v11096_v27, 16 }
  0x33   : > { %v1226_v46 = vld [vmem:[#allocation2 + $0x98] sm:$0x1]  ;;  %v1531_v47 = vshll.u32 %v1206_v40, 16  ;;  %v1535_v48 = vshrl.u32 %v1206_v40, 16  ;;  %v953_v49 = vrot.slane %v951_v29, 7  ;;  %v11117_v55 = vpack.c.bf16 %v682_v33, %v682_v33 }
  0x34   : > { %v1524_v51 = vrot.slane %v1522_v41, 4  ;;  %v1527_v52 = vrot.slane %v1525_v43, 5  ;;  %v1541_v53 = vshll.u32 %v1226_v46, 16  ;;  %v1183_v54 = vld [vmem:[#allocation2 + $0xc] sm:$0xf]  ;;  %v961_v60 = vrot.slane %v959_v23, 7 }
  0x35   : > { %v1533_v56 = vrot.slane %v1531_v47, 5  ;;  %v1537_v57 = vrot.slane %v1535_v48, 4  ;;  %v1184_v58 = vld [vmem:[#allocation2 + $0x10] sm:$0xf]  ;;  %v1258_v59 = vshrl.u32 %v1183_v54, 16  ;;  %v1261_v1 = vshll.u32 %v1183_v54, 16 }
  0x36   : > { %v1528_v61 = vor.u32 %v1527_v52, %v1524_v51  ;;  %v1543_v63 = vrot.slane %v1541_v53, 5  ;;  %v1215_v0 = vld [vmem:[#allocation2 + $0x14] sm:$0x1]  ;;  %v1267_v2 = vshll.u32 %v1184_v58, 16  ;;  %v10692_v3 = vld [vmem:[#allocation2 + $0xc] sm:$0xff]  ;;  %v1271_v8 = vshrl.u32 %v1184_v58, 16 }
  0x37   : > { %v1538_v5 = vor.u32 %v1537_v57, %v1533_v56  ;;  %v1260_v7 = vrot.slane %v1258_v59, 4  ;;  %v1277_v9 = vshll.u32 %v1215_v0, 16  ;;  %v2030_v11 = vld [vmem:[#allocation2 + $0xc] sm:$0xe]  ;;  %v1263_v13 = vrot.slane %v1261_v1, 5  ;;  %9969 = vmatmul.msk.bf16.gmra.mxu1 %vm1667_vm13, %v10692_v3 }
  0x38   : > { %v1529_v12 = vrot.slane %v1528_v61, 4  ;;  %v1269_v14 = vrot.slane %v1267_v2, 5  ;;  %v9985_v15 = vrot.slane %v2030_v11, 9  ;;  %v1273_v17 = vrot.slane %v1271_v8, 4  ;;  %390 = vst [vmem:[#allocation2 + $0xa8] sm:$0x1] %v389_v34 }
  0x39   : > { %v1539_v16 = vrot.slane %v1538_v5, 4  ;;  %v1279_v18 = vrot.slane %v1277_v9, 5  ;;  %v2089_v19 = vrot.slane %v1184_v58, 5  ;;  %v1264_v22 = vor.u32 %v1263_v13, %v1260_v7  ;;  %v1153_v35 = vld [vmem:[#allocation2 + $0x9c] sm:$0xf] }
  0x3a   : > { %v1534_v21 = vsel %vm11024_vm2, %v1529_v12, %v1533_v56  ;;  %v2092_v24 = vrot.slane %v1215_v0, 5  ;;  %v956_v26 = vor.u32 %v954_v30, %v953_v49  ;;  %v1274_v29 = vor.u32 %v1273_v17, %v1269_v14  ;;  %v1157_v52 = vld [vmem:[#allocation2 + $0xa4] sm:$0x1]  ;;  %v444_v56 = vld [vmem:[#allocation2 + $0xb0] sm:$0x1] }
  0x3b   : > { %v1544_v27 = vsel %vm11024_vm2, %v1539_v16, %v1543_v63  ;;  %v1643_v28 = vunpack.c.l.b16 %v1534_v21  ;;  %v2090_v33 = vsel %vm10970_vm12, %v9985_v15, %v2089_v19  ;;  %v1265_v40 = vrot.slane %v1264_v22, 4  ;;  %v411_v1 = vld [vmem:[#allocation2 + $0x2c] sm:$0x1]  ;;  %v1076_v5 = vld [vmem:[#allocation2 + $0x18] sm:$0xf] }
  0x3c   : > { %v1644_v23 = vunpack.c.l.b16 %v1544_v27  ;;  %v2091_v41 = vrot.slane %v2089_v19, 4  ;;  %v2196_v43 = vunpack.c.l.b16 %v2090_v33  ;;  %v1275_v46 = vrot.slane %v1274_v29, 4  ;;  %v1080_v12 = vld [vmem:[#allocation2 + $0x20] sm:$0x1] }
  0x3d   : > { %v957_v47 = vrot.slane %v953_v49, 4  ;;  %v964_v48 = vor.u32 %v962_v44, %v961_v60  ;;  %v966_v51 = vrot.slane %v961_v60, 4  ;;  %v1270_v34 = vsel %vm11024_vm2, %v1265_v40, %v1269_v14  ;;  %v355_v49 = vld [vmem:[#allocation2 + $0x24] sm:$0x1] }
  0x3e   : > { %v1663_v30 = vpack.c.b16 %v1644_v23, %v1643_v28  ;;  %v2093_v53 = vsel %vm10970_vm12, %v2091_v41, %v2092_v24  ;;  %v1154_v54 = vsel %vm11046_vm8, %v956_v26, %v1153_v35  ;;  %v1280_v57 = vsel %vm11024_vm2, %v1275_v46, %v1279_v18  ;;  %v604_v18 = vld [vmem:[%s10984_s20 + $0xe0] sm:$0xff] }
  0x3f   : > { %v1621_v58 = vunpack.c.l.b16 %v1270_v34  ;;  %v2197_v59 = vunpack.c.l.b16 %v2093_v53  ;;  %v965_v44 = vsel %vm11053_vm9, %v957_v47, %v964_v48  ;;  %1155 = vst [vmem:[#allocation2 + $0x9c] sm:$0xf] %v1154_v54  ;;  %v1622_v60 = vunpack.c.l.b16 %v1280_v57  ;;  %v1160_v48 = vld [vmem:[#allocation2 + $0xa8] sm:$0xf] }
  0x40   : > { %9900 = vmatmul.msk.bf16.vlgmr.msra.gmra.mxu3 %vm1667_vm13, %v1663_v30  ;;  %1156 = vst.msk [vmem:[#allocation2 + $0xa0] sm:$0xf] %vm334_vm1, %v965_v44  ;;  %v1158_v61 = vsel %vm10943_vm6, %v966_v51, %v1157_v52  ;;  %v715_v63 = vpack.c.bf16 %v683_v37, %v683_v37  ;;  %v764_v0 = vshrl.u32 %v11117_v55, 16  ;;  %v767_v3 = vshll.u32 %v11117_v55, 16 }
  0x41   : > { %v2227_v2 = vpack.c.b16 %v2197_v59, %v2196_v43  ;;  %1159 = vst [vmem:[#allocation2 + $0xa4] sm:$0x1] %v1158_v61  ;;  %v445_v7 = vsel %vm10957_vm10, 0, %v444_v56  ;;  %v706_v8 = vmax.f32 %v11105_v38, 0.0  ;;  %10789 = vmatpush.bf16.msra.mxu3 %v10934_v4  ;;  %v1652_v9 = vpack.c.b16 %v1622_v60, %v1621_v58  ;;  %v605_v60 = vld [vmem:[%s10984_s20 + $0xe8] sm:$0xff] }
  0x42   : > { %v766_v11 = vrot.slane %v764_v0, 7  ;;  %v772_v25 = vshrl.u32 %v715_v63, 16  ;;  %v775_v37 = vshll.u32 %v715_v63, 16  ;;  %446 = vst [vmem:[#allocation2 + $0xb0] sm:$0x1] %v445_v7  ;;  %v707_v13 = vmax.f32 %v11108_v39, 0.0 }
  0x43   : > { %10002 = vmatmul.msk.bf16.gmra.mxu2 %vm1667_vm13, %v2227_v2  ;;  %v738_v55 = vpack.c.bf16 %v706_v8, %v706_v8  ;;  %v356_v14 = vsel %vm10943_vm6, 0, %v355_v49  ;;  %v412_v38 = vsel %vm10957_vm10, 0, %v411_v1  ;;  %9889 = vmatmul.msk.bf16.gmra.mxu0 %vm1667_vm13, %v1652_v9  ;;  %v684_v17 = vmax.f32 %v11112_v45, 0.0 }
  0x44   : > { %v769_v4 = vor.u32 %v767_v3, %v766_v11  ;;  %v770_v15 = vrot.slane %v766_v11, 4  ;;  %v774_v16 = vrot.slane %v772_v25, 7  ;;  %357 = vst [vmem:[#allocation2 + $0x24] sm:$0x1] %v356_v14  ;;  %v739_v19 = vpack.c.bf16 %v707_v13, %v707_v13 }
  0x45   : > { %v968_v21 = vshrl.u32 %v738_v55, 16  ;;  %v971_v22 = vshll.u32 %v738_v55, 16  ;;  %413 = vst [vmem:[#allocation2 + $0x2c] sm:$0x1] %v412_v38  ;;  %v685_v39 = vmax.f32 %v11115_v50, 0.0  ;;  %v11161_v29 = vpack.c.bf16 %v684_v17, %v684_v17 }
  0x46   : > { %v1207_v24 = vld [vmem:[#allocation2 + $0x9c] sm:$0xf]  ;;  %v777_v26 = vor.u32 %v775_v37, %v774_v16  ;;  %v779_v27 = vrot.slane %v774_v16, 4  ;;  %v1077_v28 = vsel %vm11046_vm8, %v769_v4, %v1076_v5  ;;  %v11166_v40 = vmul.f32 %v10999_v31, %v604_v18 }
  0x47   : > { %v1208_v33 = vld [vmem:[#allocation2 + $0xa0] sm:$0xf]  ;;  %v1546_v35 = vshrl.u32 %v1207_v24, 16  ;;  %v1549_v23 = vshll.u32 %v1207_v24, 16  ;;  %1078 = vst [vmem:[#allocation2 + $0x18] sm:$0xf] %v1077_v28  ;;  %v11163_v45 = vpack.c.bf16 %v685_v39, %v685_v39  ;;  %v11181_v13 = vmul.f32 %v10999_v31, %v605_v60 }
  0x48   : > { %v1227_v41 = vld [vmem:[#allocation2 + $0xa4] sm:$0x1]  ;;  %v1555_v43 = vshll.u32 %v1208_v33, 16  ;;  %v1559_v50 = vshrl.u32 %v1208_v33, 16  ;;  %v778_v46 = vsel %vm11053_vm9, %v770_v15, %v777_v26  ;;  %v1081_v47 = vsel %vm10943_vm6, %v779_v27, %v1080_v12 }
  0x49   : > { %v1548_v51 = vrot.slane %v1546_v35, 4  ;;  %v1551_v52 = vrot.slane %v1549_v23, 5  ;;  %v1565_v30 = vshll.u32 %v1227_v41, 16  ;;  %1079 = vst.msk [vmem:[#allocation2 + $0x1c] sm:$0xf] %vm334_vm1, %v778_v46  ;;  %v970_v34 = vrot.slane %v968_v21, 7 }
  0x4a   : > { %v1557_v53 = vrot.slane %v1555_v43, 5  ;;  %v1561_v54 = vrot.slane %v1559_v50, 4  ;;  %1082 = vst [vmem:[#allocation2 + $0x20] sm:$0x1] %v1081_v47  ;;  %v976_v56 = vshrl.u32 %v739_v19, 16  ;;  %v979_v57 = vshll.u32 %v739_v19, 16 }
  0x4b   : > { %v1552_v58 = vor.u32 %v1551_v52, %v1548_v51  ;;  %v1567_v59 = vrot.slane %v1565_v30, 5  ;;  %v973_v44 = vor.u32 %v971_v22, %v970_v34  ;;  %v974_v49 = vrot.slane %v970_v34, 4  ;;  %v1164_v5 = vld [vmem:[#allocation2 + $0xb0] sm:$0x1]  ;;  %v391_v50 = vld [vmem:[#allocation2 + $0xb4] sm:$0x1] }
  0x4c   : > { %v1562_v61 = vor.u32 %v1561_v54, %v1557_v53  ;;  %v978_v63 = vrot.slane %v976_v56, 7  ;;  %v781_v0 = vshrl.u32 %v11161_v29, 16  ;;  %v784_v1 = vshll.u32 %v11161_v29, 16 }
  0x4d   : > { %v1553_v2 = vrot.slane %v1552_v58, 4  ;;  %v1161_v3 = vsel %vm11046_vm8, %v973_v44, %v1160_v48  ;;  %v789_v7 = vshrl.u32 %v11163_v45, 16  ;;  %v792_v8 = vshll.u32 %v11163_v45, 16 }
  0x4e   : > { %v1563_v9 = vrot.slane %v1562_v61, 4  ;;  %v1185_v11 = vld [vmem:[#allocation2 + $0x18] sm:$0xf]  ;;  %v981_v37 = vor.u32 %v979_v57, %v978_v63  ;;  %v983_v12 = vrot.slane %v978_v63, 4  ;;  %1162 = vst [vmem:[#allocation2 + $0xa8] sm:$0xf] %v1161_v3 }
  0x4f   : > { %v2031_v25 = vld [vmem:[#allocation2 + $0x18] sm:$0xe]  ;;  %v1558_v55 = vsel %vm11024_vm2, %v1553_v2, %v1557_v53  ;;  %v1282_v14 = vshrl.u32 %v1185_v11, 16  ;;  %v1285_v38 = vshll.u32 %v1185_v11, 16  ;;  %v783_v43 = vrot.slane %v781_v0, 7 }
  0x50   : > { %v9986_v4 = vrot.slane %v2031_v25, 9  ;;  %v1568_v15 = vsel %vm11024_vm2, %v1563_v9, %v1567_v59  ;;  %v1645_v16 = vunpack.c.l.b16 %v1558_v55  ;;  %v1186_v17 = vld [vmem:[#allocation2 + $0x1c] sm:$0xf]  ;;  %v982_v18 = vsel %vm11053_vm9, %v974_v49, %v981_v37  ;;  %v1083_v59 = vld [vmem:[#allocation2 + $0x24] sm:$0xf] }
  0x51   : > { %v1165_v19 = vsel %vm10943_vm6, %v983_v12, %v1164_v5  ;;  %v10693_v21 = vld [vmem:[#allocation2 + $0x18] sm:$0xff]  ;;  %v1646_v22 = vunpack.c.l.b16 %v1568_v15  ;;  %v1216_v39 = vld [vmem:[#allocation2 + $0x20] sm:$0x1]  ;;  %v1284_v24 = vrot.slane %v1282_v14, 4  ;;  %v1287_v26 = vrot.slane %v1285_v38, 5 }
  0x52   : > { %v1291_v27 = vshll.u32 %v1186_v17, 16  ;;  %v1295_v28 = vshrl.u32 %v1186_v17, 16  ;;  %v1301_v29 = vshll.u32 %v1216_v39, 16  ;;  %v2096_v33 = vrot.slane %v1186_v17, 5  ;;  %1163 = vst.msk [vmem:[#allocation2 + $0xac] sm:$0xf] %vm334_vm1, %v982_v18  ;;  %9970 = vmatmul.msk.bf16.gmra.mxu1 %vm1667_vm13, %v10693_v21 }
  0x53   : > { %v2099_v35 = vrot.slane %v1216_v39, 5  ;;  %v1664_v23 = vpack.c.b16 %v1646_v22, %v1645_v16  ;;  %v1288_v45 = vor.u32 %v1287_v26, %v1284_v24  ;;  %1166 = vst [vmem:[#allocation2 + $0xb0] sm:$0x1] %v1165_v19  ;;  %v786_v34 = vor.u32 %v784_v1, %v783_v43  ;;  %v1087_v5 = vld [vmem:[#allocation2 + $0x2c] sm:$0x1]  ;;  %v582_v22 = vld [vmem:[%s10984_s20 + $0x30] sm:$0xff] }
  0x54   : > { %v1293_v41 = vrot.slane %v1291_v27, 5  ;;  %v1297_v46 = vrot.slane %v1295_v28, 4  ;;  %v1303_v47 = vrot.slane %v1301_v29, 5  ;;  %v2097_v48 = vsel %vm10970_vm12, %v9986_v4, %v2096_v33  ;;  %v447_v9 = vld [vmem:[#allocation2 + $0xbc] sm:$0x1] }
  0x55   : > { %v2098_v51 = vrot.slane %v2096_v33, 4  ;;  %9901 = vmatmul.msk.bf16.gmra.mxu3 %vm1667_vm13, %v1664_v23  ;;  %v1289_v52 = vrot.slane %v1288_v45, 4  ;;  %v2198_v30 = vunpack.c.l.b16 %v2097_v48  ;;  %v787_v53 = vrot.slane %v783_v43, 4  ;;  %v1209_v57 = vld [vmem:[#allocation2 + $0xa8] sm:$0xf]  ;;  %v583_v28 = vld [vmem:[%s10984_s20 + $0x38] sm:$0xff] }
  0x56   : > { %v1298_v54 = vor.u32 %v1297_v46, %v1293_v41  ;;  %v791_v58 = vrot.slane %v789_v7, 7  ;;  %v392_v44 = vsel %vm10943_vm6, 0, %v391_v50  ;;  %v1570_v61 = vshrl.u32 %v1209_v57, 16  ;;  %v358_v55 = vld [vmem:[#allocation2 + $0x30] sm:$0x1] }
  0x57   : > { %v2100_v56 = vsel %vm10970_vm12, %v2098_v51, %v2099_v35  ;;  %v1294_v49 = vsel %vm11024_vm2, %v1289_v52, %v1293_v41  ;;  %v1573_v63 = vshll.u32 %v1209_v57, 16  ;;  %393 = vst [vmem:[#allocation2 + $0xb4] sm:$0x1] %v392_v44  ;;  %v1084_v12 = vsel %vm11046_vm8, %v786_v34, %v1083_v59  ;;  %v414_v21 = vld [vmem:[#allocation2 + $0x38] sm:$0x1] }
  0x58   : > { %v2199_v60 = vunpack.c.l.b16 %v2100_v56  ;;  %v1299_v0 = vrot.slane %v1298_v54, 4  ;;  %v1623_v1 = vunpack.c.l.b16 %v1294_v49  ;;  %v794_v2 = vor.u32 %v792_v8, %v791_v58  ;;  %1085 = vst [vmem:[#allocation2 + $0x24] sm:$0xf] %v1084_v12  ;;  %v361_v45 = vld [vmem:[#allocation2 + $0x3c] sm:$0x1] }
  0x59   : > { %v796_v3 = vrot.slane %v791_v58, 4  ;;  %v1210_v25 = vld [vmem:[#allocation2 + $0xac] sm:$0xf]  ;;  %v1572_v7 = vrot.slane %v1570_v61, 4  ;;  %v1575_v37 = vrot.slane %v1573_v63, 5  ;;  %v448_v26 = vsel %vm10957_vm10, 0, %v447_v9 }
  0x5a   : > { %v2228_v11 = vpack.c.b16 %v2199_v60, %v2198_v30  ;;  %v1304_v14 = vsel %vm11024_vm2, %v1299_v0, %v1303_v47  ;;  %v1228_v38 = vld [vmem:[#allocation2 + $0xb0] sm:$0x1]  ;;  %v1579_v4 = vshll.u32 %v1210_v25, 16  ;;  %v1583_v15 = vshrl.u32 %v1210_v25, 16  ;;  %449 = vst [vmem:[#allocation2 + $0xbc] sm:$0x1] %v448_v26 }
  0x5b   : > { %v795_v8 = vsel %vm11053_vm9, %v787_v53, %v794_v2  ;;  %v1624_v16 = vunpack.c.l.b16 %v1304_v14  ;;  %v1576_v17 = vor.u32 %v1575_v37, %v1572_v7  ;;  %v1589_v18 = vshll.u32 %v1228_v38, 16  ;;  %v584_v47 = vld [vmem:[%s10984_s20 + $0x40] sm:$0xff] }
  0x5c   : > { %10003 = vmatmul.msk.bf16.gmra.mxu2 %vm1667_vm13, %v2228_v11  ;;  %1086 = vst.msk [vmem:[#allocation2 + $0x28] sm:$0xf] %vm334_vm1, %v795_v8  ;;  %v1088_v19 = vsel %vm10943_vm6, %v796_v3, %v1087_v5  ;;  %v1581_v39 = vrot.slane %v1579_v4, 5  ;;  %v1585_v24 = vrot.slane %v1583_v15, 4  ;;  %v676_v27 = vadd.f32 %v11004_v32, %v11166_v40 }
  0x5d   : > { %1089 = vst [vmem:[#allocation2 + $0x2c] sm:$0x1] %v1088_v19  ;;  %v1653_v29 = vpack.c.b16 %v1624_v16, %v1623_v1  ;;  %v1577_v33 = vrot.slane %v1576_v17, 4  ;;  %v1591_v35 = vrot.slane %v1589_v18, 5  ;;  %v677_v23 = vadd.f32 %v11004_v32, %v11181_v13 }
  0x5e   : > { %v1586_v41 = vor.u32 %v1585_v24, %v1581_v39  ;;  %v708_v43 = vmax.f32 %v676_v27, 0.0  ;;  %v359_v50 = vsel %vm10943_vm6, 0, %v358_v55  ;;  %v415_v46 = vsel %vm10957_vm10, 0, %v414_v21 }
  0x5f   : > { %9890 = vmatmul.msk.bf16.gmra.mxu0 %vm1667_vm13, %v1653_v29  ;;  %v1582_v40 = vsel %vm11024_vm2, %v1577_v33, %v1581_v39  ;;  %v709_v48 = vmax.f32 %v677_v23, 0.0  ;;  %360 = vst [vmem:[#allocation2 + $0x30] sm:$0x1] %v359_v50  ;;  %v618_v51 = vmul.f32 %v10999_v31, %v582_v22  ;;  %v619_v13 = vmul.f32 %v10999_v31, %v583_v28  ;;  %v1187_v54 = vld [vmem:[#allocation2 + $0x24] sm:$0xf] }
  0x60   : > { %v1587_v52 = vrot.slane %v1586_v41, 4  ;;  %v1647_v30 = vunpack.c.l.b16 %v1582_v40  ;;  %v740_v34 = vpack.c.bf16 %v708_v43, %v708_v43  ;;  %416 = vst [vmem:[#allocation2 + $0x38] sm:$0x1] %v415_v46  ;;  %v362_v53 = vsel %vm10943_vm6, 0, %v361_v45  ;;  %v2032_v56 = vld [vmem:[#allocation2 + $0x24] sm:$0xe] }
  0x61   : > { %v741_v57 = vpack.c.bf16 %v709_v48, %v709_v48  ;;  %v654_v58 = vadd.f32 %v11004_v32, %v618_v51  ;;  %v655_v59 = vadd.f32 %v11004_v32, %v619_v13  ;;  %363 = vst [vmem:[#allocation2 + $0x3c] sm:$0x1] %v362_v53  ;;  %v11235_v44 = vmul.f32 %v10999_v31, %v584_v47  ;;  %v417_v39 = vld [vmem:[#allocation2 + $0x44] sm:$0x1]  ;;  %v1167_v41 = vld [vmem:[#allocation2 + $0xb4] sm:$0xf] }
  0x62   : > { %v1592_v49 = vsel %vm11024_vm2, %v1587_v52, %v1591_v35  ;;  %v1306_v61 = vshrl.u32 %v1187_v54, 16  ;;  %v1309_v63 = vshll.u32 %v1187_v54, 16  ;;  %v9987_v0 = vrot.slane %v2032_v56, 9  ;;  %v1171_v13 = vld [vmem:[#allocation2 + $0xbc] sm:$0x1]  ;;  %v585_v52 = vld [vmem:[%s10984_s20 + $0x48] sm:$0xff] }
  0x63   : > { %v1188_v60 = vld [vmem:[#allocation2 + $0x28] sm:$0xf]  ;;  %v1648_v2 = vunpack.c.l.b16 %v1592_v49  ;;  %v985_v19 = vshrl.u32 %v740_v34, 16  ;;  %v988_v21 = vshll.u32 %v740_v34, 16  ;;  %v993_v22 = vshrl.u32 %v741_v57, 16 }
  0x64   : > { %v10694_v1 = vld [vmem:[#allocation2 + $0x24] sm:$0xff]  ;;  %v1217_v3 = vld [vmem:[#allocation2 + $0x2c] sm:$0x1]  ;;  %v1315_v5 = vshll.u32 %v1188_v60, 16  ;;  %v1319_v9 = vshrl.u32 %v1188_v60, 16  ;;  %v2103_v11 = vrot.slane %v1188_v60, 5 }
  0x65   : > { %v1308_v25 = vrot.slane %v1306_v61, 4  ;;  %v1311_v7 = vrot.slane %v1309_v63, 5  ;;  %v1325_v37 = vshll.u32 %v1217_v3, 16  ;;  %v2106_v12 = vrot.slane %v1217_v3, 5  ;;  %9971 = vmatmul.msk.bf16.gmra.mxu1 %vm1667_vm13, %v10694_v1  ;;  %v364_v49 = vld [vmem:[#allocation2 + $0x48] sm:$0x1] }
  0x66   : > { %v1665_v55 = vpack.c.b16 %v1648_v2, %v1647_v30  ;;  %v1317_v14 = vrot.slane %v1315_v5, 5  ;;  %v1321_v38 = vrot.slane %v1319_v9, 4  ;;  %v2104_v4 = vsel %vm10970_vm12, %v9987_v0, %v2103_v11  ;;  %v586_v60 = vld [vmem:[%s10984_s20 + $0x50] sm:$0xff]  ;;  %v587_v61 = vld [vmem:[%s10984_s20 + $0x58] sm:$0xff] }
  0x67   : > { %v1312_v15 = vor.u32 %v1311_v7, %v1308_v25  ;;  %v1327_v8 = vrot.slane %v1325_v37, 5  ;;  %v2105_v16 = vrot.slane %v2103_v11, 4  ;;  %v2200_v17 = vunpack.c.l.b16 %v2104_v4  ;;  %v1090_v2 = vld [vmem:[#allocation2 + $0x30] sm:$0xf] }
  0x68   : > { %9902 = vmatmul.msk.bf16.gmra.mxu3 %vm1667_vm13, %v1665_v55  ;;  %v1322_v18 = vor.u32 %v1321_v38, %v1317_v14  ;;  %v996_v27 = vshll.u32 %v741_v57, 16  ;;  %v686_v28 = vmax.f32 %v654_v58, 0.0  ;;  %v987_v35 = vrot.slane %v985_v19, 7 }
  0x69   : > { %v1313_v24 = vrot.slane %v1312_v15, 4  ;;  %v2107_v26 = vsel %vm10970_vm12, %v2105_v16, %v2106_v12  ;;  %v995_v23 = vrot.slane %v993_v22, 7  ;;  %v687_v43 = vmax.f32 %v655_v59, 0.0  ;;  %v420_v12 = vld [vmem:[#allocation2 + $0x50] sm:$0x1] }
  0x6a   : > { %v1323_v29 = vrot.slane %v1322_v18, 4  ;;  %v2201_v33 = vunpack.c.l.b16 %v2107_v26  ;;  %v718_v50 = vpack.c.bf16 %v686_v28, %v686_v28  ;;  %v418_v46 = vsel %vm10957_vm10, 0, %v417_v39  ;;  %v1094_v16 = vld [vmem:[#allocation2 + $0x38] sm:$0x1] }
  0x6b   : > { %v1318_v45 = vsel %vm11024_vm2, %v1313_v24, %v1317_v14  ;;  %v990_v51 = vor.u32 %v988_v21, %v987_v35  ;;  %419 = vst [vmem:[#allocation2 + $0x44] sm:$0x1] %v418_v46  ;;  %v991_v34 = vrot.slane %v987_v35, 4  ;;  %v998_v53 = vor.u32 %v996_v27, %v995_v23 }
  0x6c   : > { %v1328_v47 = vsel %vm11024_vm2, %v1323_v29, %v1327_v8  ;;  %v1625_v40 = vunpack.c.l.b16 %v1318_v45  ;;  %v2229_v48 = vpack.c.b16 %v2201_v33, %v2200_v17  ;;  %v1000_v54 = vrot.slane %v995_v23, 4 }
  0x6d   : > { %v1626_v30 = vunpack.c.l.b16 %v1328_v47  ;;  %v1168_v56 = vsel %vm11046_vm8, %v990_v51, %v1167_v41  ;;  %v719_v57 = vpack.c.bf16 %v687_v43, %v687_v43  ;;  %v798_v58 = vshrl.u32 %v718_v50, 16 }
  0x6e   : > { %10004 = vmatmul.msk.bf16.gmra.mxu2 %vm1667_vm13, %v2229_v48  ;;  %v801_v59 = vshll.u32 %v718_v50, 16  ;;  %v999_v0 = vsel %vm11053_vm9, %v991_v34, %v998_v53  ;;  %1169 = vst [vmem:[#allocation2 + $0xb4] sm:$0xf] %v1168_v56  ;;  %v1172_v1 = vsel %vm10943_vm6, %v1000_v54, %v1171_v13  ;;  %v621_v3 = vmul.f32 %v10999_v31, %v585_v52  ;;  %v588_v56 = vld [vmem:[%s10984_s20 + $0x60] sm:$0xff] }
  0x6f   : > { %v1654_v63 = vpack.c.b16 %v1626_v30, %v1625_v40  ;;  %1170 = vst.msk [vmem:[#allocation2 + $0xb8] sm:$0xf] %vm334_vm1, %v999_v0  ;;  %v800_v5 = vrot.slane %v798_v58, 7  ;;  %v806_v9 = vshrl.u32 %v719_v57, 16  ;;  %v809_v11 = vshll.u32 %v719_v57, 16 }
  0x70   : > { %v656_v25 = vadd.f32 %v11004_v32, %v11235_v44  ;;  %1173 = vst [vmem:[#allocation2 + $0xbc] sm:$0x1] %v1172_v1  ;;  %v657_v7 = vadd.f32 %v11004_v32, %v621_v3  ;;  %v365_v37 = vsel %vm10943_vm6, 0, %v364_v49  ;;  %v622_v55 = vmul.f32 %v10999_v31, %v586_v60  ;;  %v1097_v60 = vld [vmem:[#allocation2 + $0x3c] sm:$0xf] }
  0x71   : > { %9891 = vmatmul.msk.bf16.gmra.mxu0 %vm1667_vm13, %v1654_v63  ;;  %v623_v14 = vmul.f32 %v10999_v31, %v587_v61  ;;  %v803_v38 = vor.u32 %v801_v59, %v800_v5  ;;  %v804_v4 = vrot.slane %v800_v5, 4  ;;  %v808_v15 = vrot.slane %v806_v9, 7  ;;  %366 = vst [vmem:[#allocation2 + $0x48] sm:$0x1] %v365_v37  ;;  %v11291_v3 = vld [vmem:[%s15096_s1] ss:$0 sm:$0xff] }
  0x72   : > { %v688_v8 = vmax.f32 %v656_v25, 0.0  ;;  %v689_v44 = vmax.f32 %v657_v7, 0.0  ;;  %v421_v17 = vsel %vm10957_vm10, 0, %v420_v12  ;;  %v658_v18 = vadd.f32 %v11004_v32, %v622_v55 }
  0x73   : > { %v659_v19 = vadd.f32 %v11004_v32, %v623_v14  ;;  %v811_v21 = vor.u32 %v809_v11, %v808_v15  ;;  %v813_v22 = vrot.slane %v808_v15, 4  ;;  %v1091_v39 = vsel %vm11046_vm8, %v803_v38, %v1090_v2  ;;  %422 = vst [vmem:[#allocation2 + $0x50] sm:$0x1] %v421_v17 }
  0x74   : > { %v720_v31 = vpack.c.bf16 %v688_v8, %v688_v8  ;;  %1092 = vst [vmem:[#allocation2 + $0x30] sm:$0xf] %v1091_v39  ;;  %v721_v24 = vpack.c.bf16 %v689_v44, %v689_v44  ;;  %v690_v26 = vmax.f32 %v658_v18, 0.0  ;;  %v11294_v5 = vmul.f32 %v11291_v3, %v588_v56 }
  0x75   : > { %v691_v27 = vmax.f32 %v659_v19, 0.0  ;;  %v1211_v28 = vld [vmem:[#allocation2 + $0xb4] sm:$0xf]  ;;  %v812_v29 = vsel %vm11053_vm9, %v804_v4, %v811_v21  ;;  %v1095_v33 = vsel %vm10943_vm6, %v813_v22, %v1094_v16  ;;  %vm6194_vm11 = vcmask 1043456  }
  0x76   : > { %v815_v35 = vshrl.u32 %v720_v31, 16  ;;  %v818_v32 = vshll.u32 %v720_v31, 16  ;;  %v1212_v23 = vld [vmem:[#allocation2 + $0xb8] sm:$0xf]  ;;  %v1594_v45 = vshrl.u32 %v1211_v28, 16  ;;  %v1597_v41 = vshll.u32 %v1211_v28, 16 }
  0x77   : > { %1093 = vst.msk [vmem:[#allocation2 + $0x34] sm:$0xf] %vm334_vm1, %v812_v29  ;;  %v1229_v43 = vld [vmem:[#allocation2 + $0xbc] sm:$0x1]  ;;  %v1603_v50 = vshll.u32 %v1212_v23, 16  ;;  %v1607_v46 = vshrl.u32 %v1212_v23, 16  ;;  %v11282_v47 = vpack.c.bf16 %v690_v26, %v690_v26  ;;  %v11284_v40 = vpack.c.bf16 %v691_v27, %v691_v27 }
  0x78   : > { %1096 = vst [vmem:[#allocation2 + $0x38] sm:$0x1] %v1095_v33  ;;  %v1596_v48 = vrot.slane %v1594_v45, 4  ;;  %v1599_v51 = vrot.slane %v1597_v41, 5  ;;  %v1613_v13 = vshll.u32 %v1229_v43, 16  ;;  %v817_v52 = vrot.slane %v815_v35, 7 }
  0x79   : > { %v1605_v30 = vrot.slane %v1603_v50, 5  ;;  %v1609_v34 = vrot.slane %v1607_v46, 4  ;;  %v823_v53 = vshrl.u32 %v721_v24, 16  ;;  %v826_v54 = vshll.u32 %v721_v24, 16  ;;  %v1101_v27 = vld [vmem:[#allocation2 + $0x44] sm:$0x1] }
  0x7a   : > { %v1600_v57 = vor.u32 %v1599_v51, %v1596_v48  ;;  %v1615_v58 = vrot.slane %v1613_v13, 5  ;;  %v820_v59 = vor.u32 %v818_v32, %v817_v52  ;;  %v821_v49 = vrot.slane %v817_v52, 4  ;;  %v589_v51 = vld [vmem:[%s10984_s20 + $0x68] sm:$0xff] }
  0x7b   : > { %v1610_v61 = vor.u32 %v1609_v34, %v1605_v30  ;;  %v1189_v63 = vld [vmem:[#allocation2 + $0x30] sm:$0xf]  ;;  %v825_v1 = vrot.slane %v823_v53, 7  ;;  %v832_v2 = vshrl.u32 %v11282_v47, 16  ;;  %v840_v34 = vshrl.u32 %v11284_v40, 16 }
  0x7c   : > { %v2033_v0 = vld [vmem:[#allocation2 + $0x30] sm:$0xe]  ;;  %v1601_v9 = vrot.slane %v1600_v57, 4  ;;  %v1330_v11 = vshrl.u32 %v1189_v63, 16  ;;  %v1333_v25 = vshll.u32 %v1189_v63, 16  ;;  %v1098_v4 = vsel %vm11046_vm8, %v820_v59, %v1097_v60 }
  0x7d   : > { %v9988_v7 = vrot.slane %v2033_v0, 9  ;;  %v1611_v37 = vrot.slane %v1610_v61, 4  ;;  %v828_v14 = vor.u32 %v826_v54, %v825_v1  ;;  %v830_v38 = vrot.slane %v825_v1, 4  ;;  %1099 = vst [vmem:[#allocation2 + $0x3c] sm:$0xf] %v1098_v4 }
  0x7e   : > { %v1190_v12 = vld [vmem:[#allocation2 + $0x34] sm:$0xf]  ;;  %v1606_v15 = vsel %vm11024_vm2, %v1601_v9, %v1605_v30  ;;  %v1332_v16 = vrot.slane %v1330_v11, 4  ;;  %v1335_v44 = vrot.slane %v1333_v25, 5  ;;  %v834_v48 = vrot.slane %v832_v2, 7 }
  0x7f   : > { %v10695_v55 = vld [vmem:[#allocation2 + $0x30] sm:$0xff]  ;;  %v1218_v8 = vld [vmem:[#allocation2 + $0x38] sm:$0x1]  ;;  %v1339_v17 = vshll.u32 %v1190_v12, 16  ;;  %v1616_v18 = vsel %vm11024_vm2, %v1611_v37, %v1615_v58  ;;  %v1649_v19 = vunpack.c.l.b16 %v1606_v15  ;;  %v1343_v21 = vshrl.u32 %v1190_v12, 16 }
  0x80   : > { %v1349_v22 = vshll.u32 %v1218_v8, 16  ;;  %9972 = vmatmul.msk.bf16.gmra.mxu1 %vm1667_vm13, %v10695_v55  ;;  %v1650_v39 = vunpack.c.l.b16 %v1616_v18  ;;  %v1336_v31 = vor.u32 %v1335_v44, %v1332_v16  ;;  %v2110_v26 = vrot.slane %v1190_v12, 5  ;;  %v1104_v58 = vld [vmem:[#allocation2 + $0x48] sm:$0xf]  ;;  %v367_v59 = vld [vmem:[#allocation2 + $0x54] sm:$0x1] }
  0x81   : > { %v1341_v24 = vrot.slane %v1339_v17, 5  ;;  %v1345_v28 = vrot.slane %v1343_v21, 4  ;;  %v2113_v33 = vrot.slane %v1218_v8, 5  ;;  %v829_v35 = vsel %vm11053_vm9, %v821_v49, %v828_v14  ;;  %v1108_v55 = vld [vmem:[#allocation2 + $0x50] sm:$0x1] }
  0x82   : > { %v1351_v29 = vrot.slane %v1349_v22, 5  ;;  %v1666_v32 = vpack.c.b16 %v1650_v39, %v1649_v19  ;;  %v1337_v23 = vrot.slane %v1336_v31, 4  ;;  %v2111_v45 = vsel %vm10970_vm12, %v9988_v7, %v2110_v26  ;;  %1100 = vst.msk [vmem:[#allocation2 + $0x40] sm:$0xf] %vm334_vm1, %v829_v35  ;;  %v423_v14 = vld [vmem:[#allocation2 + $0x5c] sm:$0x1] }
  0x83   : > { %v2112_v41 = vrot.slane %v2110_v26, 4  ;;  %v1346_v43 = vor.u32 %v1345_v28, %v1341_v24  ;;  %v2202_v50 = vunpack.c.l.b16 %v2111_v45  ;;  %v1102_v46 = vsel %vm10943_vm6, %v830_v38, %v1101_v27 }
  0x84   : > { %9903 = vmatmul.msk.bf16.gmra.mxu3 %vm1667_vm13, %v1666_v32  ;;  %v1342_v13 = vsel %vm11024_vm2, %v1337_v23, %v1341_v24  ;;  %1103 = vst [vmem:[#allocation2 + $0x44] sm:$0x1] %v1102_v46  ;;  %v835_v30 = vshll.u32 %v11282_v47, 16  ;;  %v838_v57 = vrot.slane %v834_v48, 4  ;;  %v1191_v49 = vld [vmem:[#allocation2 + $0x3c] sm:$0xf]  ;;  %v625_v1 = vmul.f32 %v11291_v3, %v589_v51 }
  0x85   : > { %v2114_v52 = vsel %vm10970_vm12, %v2112_v41, %v2113_v33  ;;  %v1347_v53 = vrot.slane %v1346_v43, 4  ;;  %v1627_v54 = vunpack.c.l.b16 %v1342_v13  ;;  %v2034_v60 = vld [vmem:[#allocation2 + $0x3c] sm:$0xe]  ;;  %v842_v63 = vrot.slane %v840_v34, 7  ;;  %v11340_v41 = vld [vmem:[%s15097_s2] ss:$0 sm:$0xff] }
  0x86   : > { %v2203_v56 = vunpack.c.l.b16 %v2114_v52  ;;  %v837_v61 = vor.u32 %v835_v30, %v834_v48  ;;  %v843_v0 = vshll.u32 %v11284_v40, 16  ;;  %v1354_v9 = vshrl.u32 %v1191_v49, 16  ;;  %v370_v46 = vld [vmem:[#allocation2 + $0x60] sm:$0x1]  ;;  %v10703_v48 = vld [vmem:[#allocation2 + $0x90] sm:$0xff]  ;;  %v591_v30 = vld [vmem:[%s10984_s20 + $0x78] sm:$0xff] }
  0x87   : > { %v1352_v2 = vsel %vm11024_vm2, %v1347_v53, %v1351_v29  ;;  %v1357_v11 = vshll.u32 %v1191_v49, 16  ;;  %v9989_v7 = vrot.slane %v2034_v60, 9  ;;  %v847_v12 = vrot.slane %v842_v63, 4  ;;  %v590_v52 = vld [vmem:[%s10984_s20 + $0x70] sm:$0xff] }
  0x88   : > { %v2230_v47 = vpack.c.b16 %v2203_v56, %v2202_v50  ;;  %v1628_v25 = vunpack.c.l.b16 %v1352_v2  ;;  %v845_v37 = vor.u32 %v843_v0, %v842_v63  ;;  %v1356_v4 = vrot.slane %v1354_v9, 4 }
  0x89   : > { %v1192_v38 = vld [vmem:[#allocation2 + $0x40] sm:$0xf]  ;;  %v1359_v15 = vrot.slane %v1357_v11, 5  ;;  %v1105_v40 = vsel %vm11046_vm8, %v837_v61, %v1104_v58  ;;  %v368_v8 = vsel %vm10943_vm6, 0, %v367_v59  ;;  %v1109_v31 = vsel %vm10943_vm6, %v847_v12, %v1108_v55 }
  0x8a   : > { %10005 = vmatmul.msk.bf16.gmra.mxu2 %vm1667_vm13, %v2230_v47  ;;  %v1655_v16 = vpack.c.b16 %v1628_v25, %v1627_v54  ;;  %v1363_v44 = vshll.u32 %v1192_v38, 16  ;;  %v1367_v17 = vshrl.u32 %v1192_v38, 16  ;;  %v2117_v18 = vrot.slane %v1192_v38, 5  ;;  %1106 = vst [vmem:[#allocation2 + $0x48] sm:$0xf] %v1105_v40  ;;  %v10696_v22 = vld [vmem:[#allocation2 + $0x3c] sm:$0xff] }
  0x8b   : > { %v1219_v19 = vld [vmem:[#allocation2 + $0x44] sm:$0x1]  ;;  %v1360_v21 = vor.u32 %v1359_v15, %v1356_v4  ;;  %v846_v39 = vsel %vm11053_vm9, %v838_v57, %v845_v37  ;;  %369 = vst [vmem:[#allocation2 + $0x54] sm:$0x1] %v368_v8  ;;  %v424_v24 = vsel %vm10957_vm10, 0, %v423_v14  ;;  %v660_v43 = vadd.f32 %v11340_v41, %v11294_v5 }
  0x8c   : > { %9892 = vmatmul.msk.bf16.gmra.mxu0 %vm1667_vm13, %v1655_v16  ;;  %v1365_v26 = vrot.slane %v1363_v44, 5  ;;  %v1369_v27 = vrot.slane %v1367_v17, 4  ;;  %v1373_v28 = vshll.u32 %v1219_v19, 16  ;;  %1107 = vst.msk [vmem:[#allocation2 + $0x4c] sm:$0xf] %vm334_vm1, %v846_v39  ;;  %v2118_v33 = vsel %vm10970_vm12, %v9989_v7, %v2117_v18 }
  0x8d   : > { %v1361_v29 = vrot.slane %v1360_v21, 4  ;;  %v2119_v35 = vrot.slane %v2117_v18, 4  ;;  %v2120_v32 = vrot.slane %v1219_v19, 5  ;;  %1110 = vst [vmem:[#allocation2 + $0x50] sm:$0x1] %v1109_v31  ;;  %v661_v50 = vadd.f32 %v11340_v41, %v625_v1 }
  0x8e   : > { %v1370_v23 = vor.u32 %v1369_v27, %v1365_v26  ;;  %v1375_v45 = vrot.slane %v1373_v28, 5  ;;  %425 = vst [vmem:[#allocation2 + $0x5c] sm:$0x1] %v424_v24  ;;  %v371_v13 = vsel %vm10943_vm6, 0, %v370_v46  ;;  %v692_v54 = vmax.f32 %v660_v43, 0.0 }
  0x8f   : > { %v2121_v51 = vsel %vm10970_vm12, %v2119_v35, %v2120_v32  ;;  %v1366_v34 = vsel %vm11024_vm2, %v1361_v29, %v1365_v26  ;;  %372 = vst [vmem:[#allocation2 + $0x60] sm:$0x1] %v371_v13  ;;  %v426_v5 = vld [vmem:[#allocation2 + $0x68] sm:$0x1]  ;;  %v2204_v56 = vunpack.c.l.b16 %v2118_v33  ;;  %v693_v59 = vmax.f32 %v661_v50, 0.0 }
  0x90   : > { %9973 = vmatmul.msk.bf16.gmra.mxu1 %vm1667_vm13, %v10696_v22  ;;  %v1371_v53 = vrot.slane %v1370_v23, 4  ;;  %v2205_v57 = vunpack.c.l.b16 %v2121_v51  ;;  %v427_v49 = vsel %vm10957_vm10, 0, %v426_v5  ;;  %v626_v0 = vmul.f32 %v11291_v3, %v590_v52  ;;  %v11364_v43 = vld [vmem:[#allocation2 + $0x94] sm:$0xf]  ;;  %v592_v52 = vld [vmem:[%s10984_s20 + $0x80] sm:$0xff] }
  0x91   : > { %v1193_v58 = vld [vmem:[#allocation2 + $0x48] sm:$0xf]  ;;  %428 = vst [vmem:[#allocation2 + $0x68] sm:$0x1] %v427_v49  ;;  %v1629_v1 = vunpack.c.l.b16 %v1366_v34  ;;  %v724_v11 = vpack.c.bf16 %v692_v54, %v692_v54  ;;  %v627_v25 = vmul.f32 %v11291_v3, %v591_v30  ;;  %v725_v40 = vpack.c.bf16 %v693_v59, %v693_v59 }
  0x92   : > { %v1376_v60 = vsel %vm11024_vm2, %v1371_v53, %v1375_v45  ;;  %v1378_v61 = vshrl.u32 %v1193_v58, 16  ;;  %v1381_v63 = vshll.u32 %v1193_v58, 16  ;;  %v2035_v9 = vld [vmem:[#allocation2 + $0x48] sm:$0xe]  ;;  %v2231_v38 = vpack.c.b16 %v2205_v57, %v2204_v56  ;;  %v1111_v33 = vld [vmem:[#allocation2 + $0x54] sm:$0xf] }
  0x93   : > { %v1630_v2 = vunpack.c.l.b16 %v1376_v60  ;;  %v1194_v47 = vld [vmem:[#allocation2 + $0x4c] sm:$0xf]  ;;  %v849_v17 = vshrl.u32 %v724_v11, 16  ;;  %v9990_v19 = vrot.slane %v2035_v9, 9  ;;  %v852_v21 = vshll.u32 %v724_v11, 16 }
  0x94   : > { %9980 = vmatmul.msk.bf16.vlgmr.msrb.gmra.mxu3 %vm1667_vm13, %v10703_v48  ;;  %v1220_v7 = vld [vmem:[#allocation2 + $0x50] sm:$0x1]  ;;  %v1380_v37 = vrot.slane %v1378_v61, 4  ;;  %v1383_v12 = vrot.slane %v1381_v63, 5  ;;  %v1387_v55 = vshll.u32 %v1194_v47, 16  ;;  %v1391_v14 = vshrl.u32 %v1194_v47, 16 }
  0x95   : > { %v1397_v4 = vshll.u32 %v1220_v7, 16  ;;  %v2124_v15 = vrot.slane %v1194_v47, 5  ;;  %v1656_v18 = vpack.c.b16 %v1630_v2, %v1629_v1  ;;  %v662_v22 = vadd.f32 %v11340_v41, %v626_v0  ;;  %v10697_v46 = vld [vmem:[#allocation2 + $0x48] sm:$0xff]  ;;  %v1115_v54 = vld [vmem:[#allocation2 + $0x5c] sm:$0x1] }
  0x96   : > { %v1384_v8 = vor.u32 %v1383_v12, %v1380_v37  ;;  %v1389_v16 = vrot.slane %v1387_v55, 5  ;;  %v1393_v44 = vrot.slane %v1391_v14, 4  ;;  %v2127_v24 = vrot.slane %v1220_v7, 5  ;;  %v373_v56 = vld [vmem:[#allocation2 + $0x6c] sm:$0x1] }
  0x97   : > { %v2126_v31 = vrot.slane %v2124_v15, 4  ;;  %v851_v26 = vrot.slane %v849_v17, 7  ;;  %v857_v28 = vshrl.u32 %v725_v40, 16  ;;  %v860_v29 = vshll.u32 %v725_v40, 16  ;;  %v593_v57 = vld [vmem:[%s10984_s20 + $0x88] sm:$0xff] }
  0x98   : > { %v1394_v39 = vor.u32 %v1393_v44, %v1389_v16  ;;  %v1385_v27 = vrot.slane %v1384_v8, 4  ;;  %v663_v35 = vadd.f32 %v11340_v41, %v627_v25  ;;  %v1399_v23 = vrot.slane %v1397_v4, 5  ;;  %v10704_v25 = vld [vmem:[#allocation2 + $0x9c] sm:$0xff]  ;;  %v429_v40 = vld [vmem:[#allocation2 + $0x74] sm:$0x1] }
  0x99   : > { %v854_v45 = vor.u32 %v852_v21, %v851_v26  ;;  %v2166_v50 = vrot.slane %v11364_v43, 5  ;;  %v855_v48 = vrot.slane %v851_v26, 4  ;;  %v859_v51 = vrot.slane %v857_v28, 7  ;;  %v1118_v44 = vld [vmem:[#allocation2 + $0x60] sm:$0xf] }
  0x9a   : > { %10006 = vmatmul.msk.bf16.gmra.mxu2 %vm1667_vm13, %v2231_v38  ;;  %v1395_v32 = vrot.slane %v1394_v39, 4  ;;  %v694_v13 = vmax.f32 %v662_v22, 0.0  ;;  %v2125_v30 = vsel %vm10970_vm12, %v9990_v19, %v2124_v15  ;;  %v2128_v34 = vsel %vm10970_vm12, %v2126_v31, %v2127_v24  ;;  %v10807_v39 = vld [vmem:[#allocation2 + $0x98] sm:$0x1]  ;;  %v1122_v28 = vld [vmem:[#allocation2 + $0x68] sm:$0x1] }
  0x9b   : > { %v1112_v53 = vsel %vm11046_vm8, %v854_v45, %v1111_v33  ;;  %v695_v5 = vmax.f32 %v663_v35, 0.0  ;;  %v1390_v58 = vsel %vm11024_vm2, %v1385_v27, %v1389_v16  ;;  %v862_v59 = vor.u32 %v860_v29, %v859_v51 }
  0x9c   : > { %9893 = vmatmul.msk.bf16.gmra.mxu0 %vm1667_vm13, %v1656_v18  ;;  %v864_v49 = vrot.slane %v859_v51, 4  ;;  %1113 = vst [vmem:[#allocation2 + $0x54] sm:$0xf] %v1112_v53  ;;  %v726_v60 = vpack.c.bf16 %v694_v13, %v694_v13  ;;  %v1400_v61 = vsel %vm11024_vm2, %v1395_v32, %v1399_v23  ;;  %v374_v0 = vsel %vm10943_vm6, 0, %v373_v56 }
  0x9d   : > { %v727_v63 = vpack.c.bf16 %v695_v5, %v695_v5  ;;  %v628_v1 = vmul.f32 %v11291_v3, %v592_v52  ;;  %v863_v2 = vsel %vm11053_vm9, %v855_v48, %v862_v59  ;;  %375 = vst [vmem:[#allocation2 + $0x6c] sm:$0x1] %v374_v0  ;;  %v629_v11 = vmul.f32 %v11291_v3, %v593_v57 }
  0x9e   : > { %v1116_v47 = vsel %vm10943_vm6, %v864_v49, %v1115_v54  ;;  %v866_v9 = vshrl.u32 %v726_v60, 16  ;;  %1114 = vst.msk [vmem:[#allocation2 + $0x58] sm:$0xf] %vm334_vm1, %v863_v2  ;;  %v869_v7 = vshll.u32 %v726_v60, 16  ;;  %v1631_v14 = vunpack.c.l.b16 %v1390_v58 }
  0x9f   : > { %v874_v37 = vshrl.u32 %v727_v63, 16  ;;  %v877_v12 = vshll.u32 %v727_v63, 16  ;;  %v664_v55 = vadd.f32 %v11340_v41, %v628_v1  ;;  %v2206_v38 = vunpack.c.l.b16 %v2125_v30  ;;  %1117 = vst [vmem:[#allocation2 + $0x5c] sm:$0x1] %v1116_v47 }
  0xa0   : > { %9974 = vmatmul.msk.bf16.gmra.mxu1 %vm1667_vm13, %v10697_v46  ;;  %v2207_v4 = vunpack.c.l.b16 %v2128_v34  ;;  %v868_v15 = vrot.slane %v866_v9, 7  ;;  %v1632_v8 = vunpack.c.l.b16 %v1400_v61  ;;  %v430_v17 = vsel %vm10957_vm10, 0, %v429_v40 }
  0xa1   : > { %v876_v16 = vrot.slane %v874_v37, 7  ;;  %v696_v18 = vmax.f32 %v664_v55, 0.0  ;;  %431 = vst [vmem:[#allocation2 + $0x74] sm:$0x1] %v430_v17  ;;  %v665_v22 = vadd.f32 %v11340_v41, %v629_v11  ;;  %v2169_v31 = vrot.slane %v10807_v39, 5 }
  0xa2   : > { %v871_v19 = vor.u32 %v869_v7, %v868_v15  ;;  %v872_v21 = vrot.slane %v868_v15, 4  ;;  %v2232_v29 = vpack.c.b16 %v2207_v4, %v2206_v38  ;;  %v2168_v45 = vrot.slane %v2166_v50, 4  ;;  %v2041_v55 = vld [vmem:[#allocation2 + $0x90] sm:$0xe] }
  0xa3   : > { %v1195_v24 = vld [vmem:[#allocation2 + $0x54] sm:$0xf]  ;;  %v879_v26 = vor.u32 %v877_v12, %v876_v16  ;;  %v881_v27 = vrot.slane %v876_v16, 4  ;;  %v1657_v46 = vpack.c.b16 %v1632_v8, %v1631_v14  ;;  %v728_v51 = vpack.c.bf16 %v696_v18, %v696_v18  ;;  %v1949_v12 = vpop.f32.mrf.mxu1 }
  0xa4   : > { %9981 = vmatmul.msk.bf16.gmra.mxu3 %vm1667_vm13, %v10704_v25  ;;  %v1402_v33 = vshrl.u32 %v1195_v24, 16  ;;  %v1405_v35 = vshll.u32 %v1195_v24, 16  ;;  %v2036_v32 = vld [vmem:[#allocation2 + $0x54] sm:$0xe]  ;;  %v1119_v23 = vsel %vm11046_vm8, %v871_v19, %v1118_v44  ;;  %v697_v53 = vmax.f32 %v665_v22, 0.0  ;;  %v10705_v24 = vld [vmem:[#allocation2 + $0xa8] sm:$0xff] }
  0xa5   : > { %v880_v48 = vsel %vm11053_vm9, %v872_v21, %v879_v26  ;;  %1120 = vst [vmem:[#allocation2 + $0x60] sm:$0xf] %v1119_v23  ;;  %v1196_v13 = vld [vmem:[#allocation2 + $0x58] sm:$0xf]  ;;  %v1123_v34 = vsel %vm10943_vm6, %v881_v27, %v1122_v28  ;;  %v9991_v57 = vrot.slane %v2036_v32, 9  ;;  %v883_v1 = vshrl.u32 %v728_v51, 16 }
  0xa6   : > { %v1404_v52 = vrot.slane %v1402_v33, 4  ;;  %v1407_v30 = vrot.slane %v1405_v35, 5  ;;  %v1221_v54 = vld [vmem:[#allocation2 + $0x5c] sm:$0x1]  ;;  %v1411_v5 = vshll.u32 %v1196_v13, 16  ;;  %v1415_v56 = vshrl.u32 %v1196_v13, 16 }
  0xa7   : > { %v2131_v58 = vrot.slane %v1196_v13, 5  ;;  %v1421_v49 = vshll.u32 %v1221_v54, 16  ;;  %v2134_v60 = vrot.slane %v1221_v54, 5  ;;  %1121 = vst.msk [vmem:[#allocation2 + $0x64] sm:$0xf] %vm334_vm1, %v880_v48  ;;  %v10698_v47 = vld [vmem:[#allocation2 + $0x54] sm:$0xff]  ;;  %v11405_v9 = vpack.c.bf16 %v697_v53, %v697_v53  ;;  %v1729_v37 = vpop.f32.mrf.mxu0 }
  0xa8   : > { %v1408_v59 = vor.u32 %v1407_v30, %v1404_v52  ;;  %v1413_v61 = vrot.slane %v1411_v5, 5  ;;  %v1417_v63 = vrot.slane %v1415_v56, 4  ;;  %1124 = vst [vmem:[#allocation2 + $0x68] sm:$0x1] %v1123_v34  ;;  %v2170_v14 = vsel %vm10970_vm12, %v2168_v45, %v2169_v31  ;;  %v1125_v30 = vld [vmem:[#allocation2 + $0x6c] sm:$0xf] }
  0xa9   : > { %v2133_v0 = vrot.slane %v2131_v58, 4  ;;  %v1423_v25 = vrot.slane %v1421_v49, 5  ;;  %v2132_v7 = vsel %vm10970_vm12, %v9991_v57, %v2131_v58  ;;  %v1950_v15 = vadd.f32 %v1949_v12, %v1729_v37  ;;  %v2302_v18 = vpop.f32.mrf.mxu2  ;;  %v10017_v56 = vld [vmem:[%s15098_s3 + $0x6] sm:$0x3] }
  0xaa   : > { %10007 = vmatmul.msk.bf16.gmra.mxu2 %vm1667_vm13, %v2232_v29  ;;  %v1409_v2 = vrot.slane %v1408_v59, 4  ;;  %v1418_v11 = vor.u32 %v1417_v63, %v1413_v61  ;;  %v9996_v40 = vrot.slane %v2041_v55, 9  ;;  %v886_v8 = vshll.u32 %v728_v51, 16  ;;  %v595_v55 = vld [vmem:[%s10984_s20 + $0x98] sm:$0xff] }
  0xab   : > { %v2135_v38 = vsel %vm10970_vm12, %v2133_v0, %v2134_v60  ;;  %v885_v19 = vrot.slane %v883_v1, 7  ;;  %v2208_v22 = vunpack.c.l.b16 %v2132_v7  ;;  %v11417_v39 = vadd.f32 %v2302_v18, %v1950_v15  ;;  %v376_v60 = vld [vmem:[#allocation2 + $0x78] sm:$0x1] }
  0xac   : > { %9894 = vmatmul.msk.bf16.gmra.mxu0 %vm1667_vm13, %v1657_v46  ;;  %v1197_v4 = vld [vmem:[#allocation2 + $0x60] sm:$0xf]  ;;  %v1419_v16 = vrot.slane %v1418_v11, 4  ;;  %v1414_v21 = vsel %vm11024_vm2, %v1409_v2, %v1413_v61  ;;  %v2167_v31 = vsel %vm10970_vm12, %v9996_v40, %v2166_v50  ;;  %v2209_v27 = vunpack.c.l.b16 %v2135_v38  ;;  %v594_v61 = vld [vmem:[%s10984_s20 + $0x90] sm:$0xff] }
  0xad   : > { %v1426_v44 = vshrl.u32 %v1197_v4, 16  ;;  %v1429_v17 = vshll.u32 %v1197_v4, 16  ;;  %v2218_v23 = vunpack.c.l.b16 %v2167_v31  ;;  %v891_v45 = vshrl.u32 %v11405_v9, 16  ;;  %v2037_v54 = vld [vmem:[#allocation2 + $0x60] sm:$0xe] }
  0xae   : > { %v1424_v26 = vsel %vm11024_vm2, %v1419_v16, %v1423_v25  ;;  %v1198_v28 = vld [vmem:[#allocation2 + $0x64] sm:$0xf]  ;;  %v2219_v48 = vunpack.c.l.b16 %v2170_v14  ;;  %v888_v51 = vor.u32 %v886_v8, %v885_v19  ;;  %v1633_v43 = vunpack.c.l.b16 %v1414_v21  ;;  %v432_v11 = vld [vmem:[#allocation2 + $0x80] sm:$0x1] }
  0xaf   : > { %v1428_v29 = vrot.slane %v1426_v44, 4  ;;  %v1431_v33 = vrot.slane %v1429_v17, 5  ;;  %v1435_v35 = vshll.u32 %v1198_v28, 16  ;;  %v1439_v32 = vshrl.u32 %v1198_v28, 16  ;;  %v1222_v46 = vld [vmem:[#allocation2 + $0x68] sm:$0x1]  ;;  %v11453_v21 = vpop.f32.mrf.mxu0 }
  0xb0   : > { %9975 = vmatmul.msk.bf16.gmra.mxu1 %vm1667_vm13, %v10698_v47  ;;  %v1634_v13 = vunpack.c.l.b16 %v1424_v26  ;;  %v2233_v34 = vpack.c.b16 %v2209_v27, %v2208_v22  ;;  %v2138_v5 = vrot.slane %v1198_v28, 5  ;;  %v1445_v57 = vshll.u32 %v1222_v46, 16  ;;  %v1129_v47 = vld [vmem:[#allocation2 + $0x74] sm:$0x1]  ;;  %v10699_v22 = vld [vmem:[#allocation2 + $0x60] sm:$0xff]  ;;  %v11461_v26 = vpop.f32.mrf.mxu1 }
  0xb1   : > { %v11426_v50 = vrot.slane %v1435_v35, 5  ;;  %v1441_v52 = vrot.slane %v1439_v32, 4  ;;  %v1432_v53 = vor.u32 %v1431_v33, %v1428_v29  ;;  %v11432_v58 = vpack.c.b16 %v2219_v48, %v2218_v23  ;;  %v11464_v28 = vpop.f32.mrf.mxu2  ;;  %v596_v48 = vld [vmem:[%s10984_s20 + $0xa0] sm:$0xff] }
  0xb2   : > { %v2577_v59 = vsel %vm1716_vm0, %v10017_v56, 0  ;;  %v893_v49 = vrot.slane %v891_v45, 7  ;;  %v889_v0 = vrot.slane %v885_v19, 4  ;;  %v894_v1 = vshll.u32 %v11405_v9, 16 }
  0xb3   : > { %v1442_v63 = vor.u32 %v1441_v52, %v11426_v50  ;;  %2586 = vmatpush.bf16.msrb.mxu3 %v2577_v59  ;;  %v1126_v2 = vsel %vm11046_vm8, %v888_v51, %v1125_v30  ;;  %v1658_v25 = vpack.c.b16 %v1634_v13, %v1633_v43  ;;  %v9992_v7 = vrot.slane %v2037_v54, 9  ;;  %v597_v51 = vld [vmem:[%s10984_s20 + $0xa8] sm:$0xff]  ;;  %v10706_v43 = vld [vmem:[#allocation2 + $0xb4] sm:$0xff] }
  0xb4   : > { %9982 = vmatmul.msk.bf16.gmra.mxu3 %vm1667_vm13, %v10705_v24  ;;  %v2141_v37 = vrot.slane %v1222_v46, 5  ;;  %v898_v12 = vrot.slane %v893_v49, 4  ;;  %1127 = vst [vmem:[#allocation2 + $0x6c] sm:$0xf] %v1126_v2  ;;  %v2140_v14 = vrot.slane %v2138_v5, 4  ;;  %v896_v38 = vor.u32 %v894_v1, %v893_v49 }
  0xb5   : > { %v377_v4 = vsel %vm10943_vm6, 0, %v376_v60  ;;  %v630_v15 = vmul.f32 %v11291_v3, %v594_v61  ;;  %v1433_v9 = vrot.slane %v1432_v53, 4  ;;  %v1447_v40 = vrot.slane %v1445_v57, 5 }
  0xb6   : > { %v1130_v8 = vsel %vm10943_vm6, %v898_v12, %v1129_v47  ;;  %378 = vst [vmem:[#allocation2 + $0x78] sm:$0x1] %v377_v4  ;;  %v433_v16 = vsel %vm10957_vm10, 0, %v432_v11  ;;  %v1443_v44 = vrot.slane %v1442_v63, 4  ;;  %v897_v17 = vsel %vm11053_vm9, %v889_v0, %v896_v38  ;;  %v379_v4 = vld [vmem:[#allocation2 + $0x84] sm:$0x1] }
  0xb7   : > { %1131 = vst [vmem:[#allocation2 + $0x74] sm:$0x1] %v1130_v8  ;;  %v631_v18 = vmul.f32 %v11291_v3, %v595_v55  ;;  %v666_v19 = vadd.f32 %v11340_v41, %v630_v15  ;;  %v2139_v31 = vsel %vm10970_vm12, %v9992_v7, %v2138_v5  ;;  %v2142_v24 = vsel %vm10970_vm12, %v2140_v14, %v2141_v37 }
  0xb8   : > { %1128 = vst.msk [vmem:[#allocation2 + $0x70] sm:$0xf] %vm334_vm1, %v897_v17  ;;  %v1438_v33 = vsel %vm11024_vm2, %v1433_v9, %v11426_v50  ;;  %v1448_v35 = vsel %vm11024_vm2, %v1443_v44, %v1447_v40  ;;  %v2210_v23 = vunpack.c.l.b16 %v2139_v31  ;;  %v2211_v45 = vunpack.c.l.b16 %v2142_v24  ;;  %v1954_v2 = vpop.f32.mrf.mxu1 }
  0xb9   : > { %434 = vst [vmem:[#allocation2 + $0x80] sm:$0x1] %v433_v16  ;;  %v667_v27 = vadd.f32 %v11340_v41, %v631_v18  ;;  %v698_v29 = vmax.f32 %v666_v19, 0.0  ;;  %v1636_v53 = vunpack.c.l.b16 %v1448_v35  ;;  %v632_v5 = vmul.f32 %v11291_v3, %v596_v48  ;;  %v435_v18 = vld [vmem:[#allocation2 + $0x8c] sm:$0x1] }
  0xba   : > { %10008 = vmatmul.msk.bf16.gmra.mxu2 %vm1667_vm13, %v2233_v34  ;;  %v1635_v34 = vunpack.c.l.b16 %v1438_v33  ;;  %v633_v56 = vmul.f32 %v11291_v3, %v597_v51  ;;  %v2234_v57 = vpack.c.b16 %v2211_v45, %v2210_v23  ;;  %v436_v23 = vsel %vm10957_vm10, 0, %v435_v18 }
  0xbb   : > { %v1199_v32 = vld [vmem:[#allocation2 + $0x6c] sm:$0xf]  ;;  %v699_v46 = vmax.f32 %v667_v27, 0.0  ;;  %v730_v30 = vpack.c.bf16 %v698_v29, %v698_v29  ;;  %v668_v15 = vadd.f32 %v11340_v41, %v632_v5  ;;  %437 = vst [vmem:[#allocation2 + $0x8c] sm:$0x1] %v436_v23 }
  0xbc   : > { %9895 = vmatmul.msk.bf16.gmra.mxu0 %vm1667_vm13, %v1658_v25  ;;  %v1450_v13 = vshrl.u32 %v1199_v32, 16  ;;  %v1453_v52 = vshll.u32 %v1199_v32, 16  ;;  %v2038_v60 = vld [vmem:[#allocation2 + $0x6c] sm:$0xe]  ;;  %v1659_v25 = vpack.c.b16 %v1636_v53, %v1635_v34  ;;  %v669_v9 = vadd.f32 %v11340_v41, %v633_v56 }
  0xbd   : > { %v900_v50 = vshrl.u32 %v730_v30, 16  ;;  %v731_v61 = vpack.c.bf16 %v699_v46, %v699_v46  ;;  %v903_v11 = vshll.u32 %v730_v30, 16  ;;  %v1132_v38 = vld [vmem:[#allocation2 + $0x78] sm:$0xf]  ;;  %v9993_v8 = vrot.slane %v2038_v60, 9 }
  0xbe   : > { %v1223_v63 = vld [vmem:[#allocation2 + $0x74] sm:$0x1]  ;;  %v1452_v0 = vrot.slane %v1450_v13, 4  ;;  %v1455_v1 = vrot.slane %v1453_v52, 5  ;;  %v380_v32 = vsel %vm10943_vm6, 0, %v379_v4  ;;  %v700_v45 = vmax.f32 %v668_v15, 0.0 }
  0xbf   : > { %v11474_v54 = vld [vmem:[#allocation2 + $0x70] sm:$0xf]  ;;  %v902_v47 = vrot.slane %v900_v50, 7  ;;  %v1469_v40 = vshll.u32 %v1223_v63, 16  ;;  %v2148_v16 = vrot.slane %v1223_v63, 5  ;;  %v908_v17 = vshrl.u32 %v731_v61, 16 }
  0xc0   : > { %9976 = vmatmul.msk.bf16.gmra.mxu1 %vm1667_vm13, %v10699_v22  ;;  %v1459_v59 = vshll.u32 %v11474_v54, 16  ;;  %v1463_v49 = vshrl.u32 %v11474_v54, 16  ;;  %v1734_v7 = vpop.f32.mrf.mxu0  ;;  %v2145_v12 = vrot.slane %v11474_v54, 5  ;;  %v1456_v19 = vor.u32 %v1455_v1, %v1452_v0  ;;  %v1136_v35 = vld [vmem:[#allocation2 + $0x80] sm:$0x1]  ;;  %v10700_v51 = vld [vmem:[#allocation2 + $0x6c] sm:$0xff]  ;;  %v11499_v53 = vpop.f32.mrf.mxu1 }
  0xc1   : > { %v1955_v55 = vadd.f32 %v1954_v2, %v1734_v7  ;;  %v905_v14 = vor.u32 %v903_v11, %v902_v47  ;;  %v911_v24 = vshll.u32 %v731_v61, 16  ;;  %v906_v29 = vrot.slane %v902_v47, 4  ;;  %381 = vst [vmem:[#allocation2 + $0x84] sm:$0x1] %v380_v32  ;;  %v10808_v50 = vld [vmem:[#allocation2 + $0xa0] sm:$0xf] }
  0xc2   : > { %v11481_v37 = vrot.slane %v1459_v59, 5  ;;  %v1465_v3 = vrot.slane %v1463_v49, 4  ;;  %v2147_v27 = vrot.slane %v2145_v12, 4  ;;  %v910_v33 = vrot.slane %v908_v17, 7  ;;  %v2042_v60 = vld [vmem:[#allocation2 + $0x9c] sm:$0xe] }
  0xc3   : > { %v1133_v41 = vsel %vm11046_vm8, %v905_v14, %v1132_v38  ;;  %v701_v46 = vmax.f32 %v669_v9, 0.0  ;;  %v11496_v48 = vpop.f32.mrf.mxu3  ;;  %v1457_v52 = vrot.slane %v1456_v19, 4  ;;  %v1471_v34 = vrot.slane %v1469_v40, 5  ;;  %v10809_v0 = vld [vmem:[#allocation2 + $0xa4] sm:$0x1] }
  0xc4   : > { %9983 = vmatmul.msk.bf16.gmra.mxu3 %vm1667_vm13, %v10706_v43  ;;  %v1466_v22 = vor.u32 %v1465_v3, %v11481_v37  ;;  %1134 = vst [vmem:[#allocation2 + $0x78] sm:$0xf] %v1133_v41  ;;  %v913_v43 = vor.u32 %v911_v24, %v910_v33  ;;  %v915_v13 = vrot.slane %v910_v33, 4  ;;  %v732_v54 = vpack.c.bf16 %v700_v45, %v700_v45  ;;  %v1143_v41 = vld [vmem:[#allocation2 + $0x8c] sm:$0x1] }
  0xc5   : > { %v2173_v5 = vrot.slane %v10808_v50, 5  ;;  %v2146_v59 = vsel %vm10970_vm12, %v9993_v8, %v2145_v12  ;;  %v2149_v49 = vsel %vm10970_vm12, %v2147_v27, %v2148_v16  ;;  %v733_v61 = vpack.c.bf16 %v701_v46, %v701_v46 }
  0xc6   : > { %v2307_v44 = vpop.f32.mrf.mxu2  ;;  %v1467_v30 = vrot.slane %v1466_v22, 4  ;;  %v914_v56 = vsel %vm11053_vm9, %v906_v29, %v913_v43  ;;  %v917_v63 = vshrl.u32 %v732_v54, 16  ;;  %v2176_v1 = vrot.slane %v10809_v0, 5  ;;  %v10148_v29 = vld [vmem:[%s15098_s3 + $0xc] sm:$0x3] }
  0xc7   : > { %v11487_v31 = vadd.f32 %v2307_v44, %v1955_v55  ;;  %1135 = vst.msk [vmem:[#allocation2 + $0x7c] sm:$0xf] %vm334_vm1, %v914_v56  ;;  %v920_v2 = vshll.u32 %v732_v54, 16  ;;  %v1462_v47 = vsel %vm11024_vm2, %v1457_v52, %v11481_v37  ;;  %v925_v7 = vshrl.u32 %v733_v61, 16 }
  0xc8   : > { %v1472_v11 = vsel %vm11024_vm2, %v1467_v30, %v1471_v34  ;;  %v2212_v3 = vunpack.c.l.b16 %v2146_v59  ;;  %v2213_v12 = vunpack.c.l.b16 %v2149_v49  ;;  %v9997_v55 = vrot.slane %v2042_v60, 9  ;;  %v11516_v4 = vpop.f32.mrf.mxu0  ;;  %v1139_v16 = vld [vmem:[#allocation2 + $0x84] sm:$0xf] }
  0xc9   : > { %v928_v38 = vshll.u32 %v733_v61, 16  ;;  %v2175_v15 = vrot.slane %v2173_v5, 4  ;;  %v1637_v44 = vunpack.c.l.b16 %v1462_v47  ;;  %v1638_v17 = vunpack.c.l.b16 %v1472_v11 }
  0xca   : > { %10009 = vmatmul.msk.bf16.gmra.mxu2 %vm1667_vm13, %v2234_v57  ;;  %v1137_v57 = vsel %vm10943_vm6, %v915_v13, %v1136_v35  ;;  %v927_v18 = vrot.slane %v925_v7, 7  ;;  %v2235_v32 = vpack.c.b16 %v2213_v12, %v2212_v3  ;;  %v2174_v43 = vsel %vm10970_vm12, %v9997_v55, %v2173_v5  ;;  %v10131_v12 = vld [vmem:[%s15098_s3 + $0xa] sm:$0x3] }
  0xcb   : > { %1138 = vst [vmem:[#allocation2 + $0x80] sm:$0x1] %v1137_v57  ;;  %v1201_v14 = vld [vmem:[#allocation2 + $0x78] sm:$0xf]  ;;  %v11527_v35 = vpop.f32.mrf.mxu3  ;;  %v1660_v54 = vpack.c.b16 %v1638_v17, %v1637_v44  ;;  %v2177_v50 = vsel %vm10970_vm12, %v2175_v15, %v2176_v1  ;;  %v3629_v15 = vsel %vm1716_vm0, %v10131_v12, 0 }
  0xcc   : > { %9896 = vmatmul.msk.bf16.gmra.mxu0 %vm1667_vm13, %v1659_v25  ;;  %v919_v25 = vrot.slane %v917_v63, 7  ;;  %v1474_v9 = vshrl.u32 %v1201_v14, 16  ;;  %v1477_v40 = vshll.u32 %v1201_v14, 16  ;;  %v2039_v45 = vld [vmem:[#allocation2 + $0x78] sm:$0xe]  ;;  %v930_v46 = vor.u32 %v928_v38, %v927_v18  ;;  %3638 = vmatpush.bf16.msrb.mxu1 %v3629_v15 }
  0xcd   : > { %v9994_v5 = vrot.slane %v2039_v45, 9  ;;  %v2221_v47 = vunpack.c.l.b16 %v2177_v50 }
  0xce   : > { %v922_v8 = vor.u32 %v920_v2, %v919_v25  ;;  %v923_v37 = vrot.slane %v919_v25, 4  ;;  %v1476_v19 = vrot.slane %v1474_v9, 4  ;;  %v1479_v22 = vrot.slane %v1477_v40, 5  ;;  %v11520_v24 = vpop.f32.mrf.mxu2  ;;  %v1202_v23 = vld [vmem:[#allocation2 + $0x7c] sm:$0xf] }
  0xcf   : > { %v1959_v27 = vpop.f32.mrf.mxu1  ;;  %v1483_v52 = vshll.u32 %v1202_v23, 16  ;;  %v1487_v30 = vshrl.u32 %v1202_v23, 16  ;;  %v2152_v34 = vrot.slane %v1202_v23, 5  ;;  %v2220_v2 = vunpack.c.l.b16 %v2174_v43  ;;  %v10701_v11 = vld [vmem:[#allocation2 + $0x78] sm:$0xff] }
  0xd0   : > { %9977 = vmatmul.msk.bf16.gmra.mxu1 %vm1667_vm13, %v10700_v51  ;;  %v1140_v33 = vsel %vm11046_vm8, %v922_v8, %v1139_v16  ;;  %v932_v51 = vrot.slane %v927_v18, 4  ;;  %v931_v56 = vsel %vm11053_vm9, %v923_v37, %v930_v46  ;;  %v1480_v59 = vor.u32 %v1479_v22, %v1476_v19  ;;  %v10810_v18 = vld [vmem:[#allocation2 + $0xac] sm:$0xf] }
  0xd1   : > { %1141 = vst [vmem:[#allocation2 + $0x84] sm:$0xf] %v1140_v33  ;;  %v1485_v49 = vrot.slane %v1483_v52, 5  ;;  %v1489_v60 = vrot.slane %v1487_v30, 4  ;;  %v2154_v0 = vrot.slane %v2152_v34, 4  ;;  %v2153_v3 = vsel %vm10970_vm12, %v9994_v5, %v2152_v34 }
  0xd2   : > { %v1224_v13 = vld [vmem:[#allocation2 + $0x80] sm:$0x1]  ;;  %v1144_v57 = vsel %vm10943_vm6, %v932_v51, %v1143_v41  ;;  %1142 = vst.msk [vmem:[#allocation2 + $0x88] sm:$0xf] %vm334_vm1, %v931_v56  ;;  %v1481_v7 = vrot.slane %v1480_v59, 4  ;;  %v2239_v44 = vpack.c.b16 %v2221_v47, %v2220_v2  ;;  %v2180_v19 = vrot.slane %v10810_v18, 5 }
  0xd3   : > { %v1493_v61 = vshll.u32 %v1224_v13, 16  ;;  %1145 = vst [vmem:[#allocation2 + $0x8c] sm:$0x1] %v1144_v57  ;;  %v1490_v63 = vor.u32 %v1489_v60, %v1485_v49  ;;  %v2155_v1 = vrot.slane %v1224_v13, 5  ;;  %v2043_v33 = vld [vmem:[#allocation2 + $0xa8] sm:$0xe] }
  0xd4   : > { %10013 = vmatmul.msk.bf16.vlgmr.msra.gmra.mxu3 %vm1667_vm13, %v11432_v58  ;;  %v3916_v58 = vsel %vm1716_vm0, %v10148_v29, 0  ;;  %v2214_v29 = vunpack.c.l.b16 %v2153_v3  ;;  %v9998_v51 = vrot.slane %v2043_v33, 9  ;;  %v2182_v43 = vrot.slane %v2180_v19, 4  ;;  %v10811_v13 = vld [vmem:[#allocation2 + $0xb0] sm:$0x1] }
  0xd5   : > { %3925 = vmatpush.bf16.msrb.mxu2 %v3916_v58  ;;  %v1491_v55 = vrot.slane %v1490_v63, 4  ;;  %v1495_v14 = vrot.slane %v1493_v61, 5  ;;  %v2156_v9 = vsel %vm10970_vm12, %v2154_v0, %v2155_v1  ;;  %v2183_v52 = vrot.slane %v10811_v13, 5  ;;  %v11577_v33 = vld [vmem:[#allocation2 + $0x10] sm:$0xf] }
  0xd6   : > { %v2215_v45 = vunpack.c.l.b16 %v2156_v9  ;;  %v2181_v0 = vsel %vm10970_vm12, %v9998_v51, %v2180_v19 }
  0xd7   : > { %v11549_v16 = vpop.f32.mrf.mxu1  ;;  %v1496_v23 = vsel %vm11024_vm2, %v1491_v55, %v1495_v14  ;;  %v2184_v2 = vsel %vm10970_vm12, %v2182_v43, %v2183_v52  ;;  %v2044_v43 = vld [vmem:[#allocation2 + $0xb4] sm:$0xe] }
  0xd8   : > { %v1203_v8 = vld [vmem:[#allocation2 + $0x84] sm:$0xf]  ;;  %v11551_v17 = vpop.f32.mrf.mxu3  ;;  %v1640_v34 = vunpack.c.l.b16 %v1496_v23  ;;  %v2236_v57 = vpack.c.b16 %v2215_v45, %v2214_v29  ;;  %v2223_v15 = vunpack.c.l.b16 %v2184_v2  ;;  %v10812_v23 = vld [vmem:[#allocation2 + $0xb8] sm:$0xf] }
  0xd9   : > { %v1204_v22 = vld [vmem:[#allocation2 + $0x88] sm:$0xf]  ;;  %v1498_v41 = vshrl.u32 %v1203_v8, 16  ;;  %v2040_v60 = vld [vmem:[#allocation2 + $0x84] sm:$0xe]  ;;  %v2187_v45 = vrot.slane %v10812_v23, 5 }
  0xda   : > { %10010 = vmatmul.msk.bf16.gmra.mxu2 %vm1667_vm13, %v2235_v32  ;;  %v1501_v32 = vshll.u32 %v1203_v8, 16  ;;  %v1507_v58 = vshll.u32 %v1204_v22, 16  ;;  %v1511_v46 = vshrl.u32 %v1204_v22, 16  ;;  %v2159_v5 = vrot.slane %v1204_v22, 5  ;;  %v1225_v61 = vld [vmem:[#allocation2 + $0x8c] sm:$0x1] }
  0xdb   : > { %v1500_v50 = vrot.slane %v1498_v41, 4  ;;  %v1517_v12 = vshll.u32 %v1225_v61, 16  ;;  %v2162_v14 = vrot.slane %v1225_v61, 5  ;;  %v10702_v9 = vld [vmem:[#allocation2 + $0x84] sm:$0xff] }
  0xdc   : > { %9897 = vmatmul.msk.bf16.gmra.mxu0 %vm1667_vm13, %v1660_v54  ;;  %v1739_v25 = vpop.f32.mrf.mxu0  ;;  %v1503_v56 = vrot.slane %v1501_v32, 5  ;;  %v1509_v59 = vrot.slane %v1507_v58, 5  ;;  %v2161_v55 = vrot.slane %v2159_v5, 4 }
  0xdd   : > { %v1960_v38 = vadd.f32 %v1959_v27, %v1739_v25  ;;  %v1486_v27 = vsel %vm11024_vm2, %v1481_v7, %v1485_v49  ;;  %v1513_v49 = vrot.slane %v1511_v46, 4  ;;  %v1519_v19 = vrot.slane %v1517_v12, 5  ;;  %v2702_v12 = vld [vmem:[#allocation2 + $0x14] sm:$0x1] }
  0xde   : > { %v1639_v30 = vunpack.c.l.b16 %v1486_v27  ;;  %v1504_v47 = vor.u32 %v1503_v56, %v1500_v50  ;;  %v2163_v22 = vsel %vm10970_vm12, %v2161_v55, %v2162_v14  ;;  %v2700_v27 = vld [vmem:[#allocation2 + $0xc] sm:$0xf]  ;;  %v2758_v50 = vshll.u32 %v11577_v33, 16 }
  0xdf   : > { %v2312_v40 = vpop.f32.mrf.mxu2  ;;  %v1514_v3 = vor.u32 %v1513_v49, %v1509_v59  ;;  %v2217_v46 = vunpack.c.l.b16 %v2163_v22  ;;  %v2749_v13 = vshrl.u32 %v2700_v27, 16  ;;  %v2752_v52 = vshll.u32 %v2700_v27, 16 }
  0xe0   : > { %v11553_v37 = vadd.f32 %v2312_v40, %v1960_v38  ;;  %9978 = vmatmul.msk.bf16.gmra.mxu1 %vm1667_vm13, %v10701_v11  ;;  %v1661_v1 = vpack.c.b16 %v1640_v34, %v1639_v30  ;;  %v9995_v11 = vrot.slane %v2040_v60, 9  ;;  %v11569_v7 = vpop.f32.mrf.mxu3  ;;  %v2222_v38 = vunpack.c.l.b16 %v2181_v0 }
  0xe1   : > { %v1505_v40 = vrot.slane %v1504_v47, 4  ;;  %v1515_v18 = vrot.slane %v1514_v3, 4  ;;  %v2762_v56 = vshrl.u32 %v11577_v33, 16  ;;  %v9999_v60 = vrot.slane %v2044_v43, 9 }
  0xe2   : > { %v1964_v25 = vpop.f32.mrf.mxu1  ;;  %v2160_v8 = vsel %vm10970_vm12, %v9995_v11, %v2159_v5  ;;  %v2240_v41 = vpack.c.b16 %v2223_v15, %v2222_v38  ;;  %v2189_v5 = vrot.slane %v2187_v45, 4  ;;  %v2751_v2 = vrot.slane %v2749_v13, 4  ;;  %v10229_v11 = vld [vmem:[%s15098_s3 + $0xe] sm:$0x3] }
  0xe3   : > { %v2216_v32 = vunpack.c.l.b16 %v2160_v8  ;;  %v1510_v58 = vsel %vm11024_vm2, %v1505_v40, %v1509_v59  ;;  %v1520_v30 = vsel %vm11024_vm2, %v1515_v18, %v1519_v19  ;;  %v10813_v59 = vld [vmem:[#allocation2 + $0xbc] sm:$0x1]  ;;  %v2754_v47 = vrot.slane %v2752_v52, 5 }
  0xe4   : > { %10014 = vmatmul.msk.bf16.gmra.mxu3 %vm1667_vm13, %v2239_v44  ;;  %v11561_v54 = vpop.f32.mrf.mxu0  ;;  %v2190_v61 = vrot.slane %v10813_v59, 5  ;;  %v1641_v0 = vunpack.c.l.b16 %v1510_v58  ;;  %v2760_v55 = vrot.slane %v2758_v50, 5  ;;  %v2764_v14 = vrot.slane %v2762_v56, 4  ;;  %v10262_v50 = vld [vmem:[%s15098_s3 + $0x10] sm:$0x3] }
  0xe5   : > { %v2237_v3 = vpack.c.b16 %v2217_v46, %v2216_v32  ;;  %v4570_v38 = vsel %vm1716_vm0, %v10229_v11, 0  ;;  %v2188_v40 = vsel %vm10970_vm12, %v9999_v60, %v2187_v45  ;;  %v2755_v8 = vor.u32 %v2754_v47, %v2751_v2  ;;  %v2703_v32 = vld [vmem:[#allocation2 + $0x18] sm:$0xf] }
  0xe6   : > { %4579 = vmatpush.bf16.msra.mxu3 %v4570_v38  ;;  %v2191_v19 = vsel %vm10970_vm12, %v2189_v5, %v2190_v61  ;;  %v2765_v22 = vor.u32 %v2764_v14, %v2760_v55  ;;  %v3423_v46 = vrot.slane %v2702_v12, 5  ;;  %v2224_v45 = vunpack.c.l.b16 %v2188_v40 }
  0xe7   : > { %v11563_v63 = vpop.f32.mrf.mxu2  ;;  %v2756_v43 = vrot.slane %v2755_v8, 4  ;;  %v2773_v59 = vshrl.u32 %v2703_v32, 16  ;;  %v2776_v61 = vshll.u32 %v2703_v32, 16 }
  0xe9   : > { %v2775_v14 = vrot.slane %v2773_v59, 4  ;;  %v2778_v38 = vrot.slane %v2776_v61, 5  ;;  %v2706_v59 = vld [vmem:[#allocation2 + $0x24] sm:$0xf] }
  0xea   : > { %10011 = vmatmul.msk.bf16.gmra.mxu2 %vm1667_vm13, %v2236_v57  ;;  %v1966_v57 = vpop.f32.mrf.mxu1 }
  0xeb   : > { %v11588_v49 = vpop.f32.mrf.mxu3 }
  0xec   : > { %9898 = vmatmul.msk.bf16.gmra.mxu0 %vm1667_vm13, %v1661_v1  ;;  %v1642_v1 = vunpack.c.l.b16 %v1520_v30  ;;  %v2704_v30 = vld [vmem:[#allocation2 + $0x1c] sm:$0xf] }
  0xed   : > { %v2782_v2 = vshll.u32 %v2704_v30, 16  ;;  %v2786_v47 = vshrl.u32 %v2704_v30, 16 }
  0xee   : > { %v1744_v44 = vpop.f32.mrf.mxu0 }
  0xef   : > { %v1965_v29 = vadd.f32 %v1964_v25, %v1744_v44  ;;  %v2768_v44 = vshll.u32 %v2702_v12, 16  ;;  %v2788_v40 = vrot.slane %v2786_v47, 4 }
  0xf0   : > { %9979 = vmatmul.msk.bf16.gmra.mxu1 %vm1667_vm13, %v10702_v9  ;;  %v1662_v9 = vpack.c.b16 %v1642_v1, %v1641_v0 }
  0xf1   : > { %v2317_v51 = vpop.f32.mrf.mxu2  ;;  %v2770_v13 = vrot.slane %v2768_v44, 5 }
  0xf2   : > { %v11584_v34 = vadd.f32 %v2317_v51, %v1965_v29  ;;  %v3420_v29 = vrot.slane %v11577_v33, 5  ;;  %v2225_v51 = vunpack.c.l.b16 %v2191_v19  ;;  %v2766_v33 = vrot.slane %v2765_v22, 4  ;;  %v10723_v19 = vld [vmem:[#allocation2 + $0x18] sm:$0xff] }
  0xf3   : > { %v11607_v56 = vpop.f32.mrf.mxu3  ;;  %v2779_v22 = vor.u32 %v2778_v38, %v2775_v14  ;;  %v2800_v14 = vshll.u32 %v2706_v59, 16 }
  0xf4   : > { %10015 = vmatmul.msk.bf16.gmra.mxu3 %vm1667_vm13, %v2240_v41  ;;  %v3354_v41 = vld [vmem:[#allocation2 + $0xc] sm:$0xe]  ;;  %v3422_v58 = vrot.slane %v3420_v29, 4  ;;  %v2241_v11 = vpack.c.b16 %v2225_v51, %v2224_v45  ;;  %v2771_v12 = vsel %vm11024_vm2, %v2766_v33, %v2770_v13 }
  0xf5   : > { %v10115_v23 = vrot.slane %v3354_v41, 9  ;;  %v3135_v44 = vunpack.c.l.b16 %v2771_v12  ;;  %v2780_v45 = vrot.slane %v2779_v22, 4  ;;  %v10707_v12 = vld [vmem:[#allocation2 + $0xc] sm:$0xff] }
  0xf6   : > { %v1746_v25 = vpop.f32.mrf.mxu0  ;;  %v3424_v5 = vsel %vm10970_vm12, %v3422_v58, %v3423_v46  ;;  %v3427_v58 = vrot.slane %v2704_v30, 5 }
  0xf7   : > { %v1967_v15 = vadd.f32 %v1966_v57, %v1746_v25  ;;  %v4968_v57 = vsel %vm1716_vm0, %v10262_v50, 0  ;;  %v3421_v60 = vsel %vm10970_vm12, %v10115_v23, %v3420_v29  ;;  %v3533_v1 = vunpack.c.l.b16 %v3424_v5 }
  0xf8   : > { %4977 = vmatpush.bf16.msra.mxu0 %v4968_v57  ;;  %v3532_v0 = vunpack.c.l.b16 %v3421_v60  ;;  %v3429_v33 = vrot.slane %v3427_v58, 4 }
  0xf9   : > { %v2319_v18 = vpop.f32.mrf.mxu2 }
  0xfa   : > { %10012 = vmatmul.msk.bf16.gmra.mxu2 %vm1667_vm13, %v2237_v3  ;;  %v11600_v27 = vadd.f32 %v2319_v18, %v1967_v15  ;;  %v3564_v25 = vpack.c.b16 %v3533_v1, %v3532_v0  ;;  %v2761_v3 = vsel %vm11024_vm2, %v2756_v43, %v2760_v55  ;;  %v2705_v15 = vld [vmem:[#allocation2 + $0x20] sm:$0x1]  ;;  %v3355_v43 = vld [vmem:[#allocation2 + $0x18] sm:$0xe]  ;;  %v2707_v0 = vld [vmem:[#allocation2 + $0x28] sm:$0xf] }
  0xfb   : > { %v3134_v8 = vunpack.c.l.b16 %v2761_v3  ;;  %v2792_v29 = vshll.u32 %v2705_v15, 16  ;;  %v10116_v50 = vrot.slane %v3355_v43, 9  ;;  %v3430_v57 = vrot.slane %v2705_v15, 5 }
  0xfc   : > { %9899 = vmatmul.msk.bf16.gmra.mxu0 %vm1667_vm13, %v1662_v9  ;;  %v2784_v9 = vrot.slane %v2782_v2, 5  ;;  %v2797_v3 = vshrl.u32 %v2706_v59, 16  ;;  %v2806_v38 = vshll.u32 %v2707_v0, 16  ;;  %v2810_v15 = vshrl.u32 %v2707_v0, 16 }
  0xfd   : > { %v1969_v52 = vpop.f32.mrf.mxu1  ;;  %v3166_v32 = vpack.c.b16 %v3135_v44, %v3134_v8  ;;  %v2794_v51 = vrot.slane %v2792_v29, 5  ;;  %v3428_v1 = vsel %vm10970_vm12, %v10116_v50, %v3427_v58  ;;  %v3434_v59 = vrot.slane %v2707_v0, 5 }
  0xfe   : > { %v2789_v55 = vor.u32 %v2788_v40, %v2784_v9  ;;  %v3534_v30 = vunpack.c.l.b16 %v3428_v1 }
 0x100   : > { %10132 = vmatmul.msk.bf16.vlgmr.msrb.gmra.mxu1 %vm1667_vm13, %v3564_v25  ;;  %v2790_v13 = vrot.slane %v2789_v55, 4  ;;  %v2799_v55 = vrot.slane %v2797_v3, 4 }
 0x102   : > { %v2795_v25 = vsel %vm11024_vm2, %v2790_v13, %v2794_v51  ;;  %v10724_v51 = vld [vmem:[#allocation2 + $0x24] sm:$0xff] }
 0x103   : > { %v3137_v22 = vunpack.c.l.b16 %v2795_v25 }
 0x104   : > { %10016 = vmatmul.msk.bf16.gmra.mxu3 %vm1667_vm13, %v2241_v11  ;;  %v2785_v11 = vsel %vm11024_vm2, %v2780_v45, %v2784_v9  ;;  %v2802_v9 = vrot.slane %v2800_v14, 5  ;;  %v2708_v45 = vld [vmem:[#allocation2 + $0x2c] sm:$0x1] }
 0x105   : > { %v1971_v18 = vpop.f32.mrf.mxu1  ;;  %v3437_v25 = vrot.slane %v2708_v45, 5 }
 0x107   : > { %v11620_v41 = vpop.f32.mrf.mxu3 }
 0x109   : > { %v1749_v23 = vpop.f32.mrf.mxu0 }
 0x10a   : > { %10213 = vmatmul.msk.bf16.vlgmr.msrb.gmra.mxu2 %vm1667_vm13, %v10723_v19  ;;  %v1970_v46 = vadd.f32 %v1969_v52, %v1749_v23  ;;  %v3431_v52 = vsel %vm10970_vm12, %v3429_v33, %v3430_v57  ;;  %v3136_v19 = vunpack.c.l.b16 %v2785_v11  ;;  %v2812_v23 = vrot.slane %v2810_v15, 4 }
 0x10b   : > { %v3535_v2 = vunpack.c.l.b16 %v3431_v52  ;;  %v2816_v33 = vshll.u32 %v2708_v45, 16  ;;  %v3356_v52 = vld [vmem:[#allocation2 + $0x24] sm:$0xe]  ;;  %v3436_v11 = vrot.slane %v3434_v59, 4 }
 0x10c   : > { %10099 = vmatmul.msk.bf16.vlgmr.msrb.gmra.mxu0 %vm1667_vm13, %v3166_v32  ;;  %v2808_v32 = vrot.slane %v2806_v38, 5  ;;  %v3167_v13 = vpack.c.b16 %v3137_v22, %v3136_v19 }
 0x10d   : > { %v2322_v60 = vpop.f32.mrf.mxu2  ;;  %v1974_v5 = vpop.f32.mrf.mxu1  ;;  %v3565_v40 = vpack.c.b16 %v3535_v2, %v3534_v30  ;;  %v11643_v30 = vld [vmem:[#allocation2 + $0x34] sm:$0xf]  ;;  %v10117_v2 = vrot.slane %v3356_v52, 9  ;;  %v2818_v38 = vrot.slane %v2816_v33, 5  ;;  %v3438_v0 = vsel %vm10970_vm12, %v3436_v11, %v3437_v25  ;;  %v2711_v11 = vld [vmem:[#allocation2 + $0x38] sm:$0x1] }
 0x10e   : > { %v11624_v61 = vadd.f32 %v2322_v60, %v1970_v46  ;;  %v2813_v50 = vor.u32 %v2812_v23, %v2808_v32  ;;  %v2709_v60 = vld [vmem:[#allocation2 + $0x30] sm:$0xf]  ;;  %v2830_v19 = vshll.u32 %v11643_v30, 16  ;;  %v2834_v22 = vshrl.u32 %v11643_v30, 16  ;;  %v10708_v23 = vld [vmem:[#allocation2 + $0x18] sm:$0xff] }
 0x10f   : > { %v11630_v47 = vpop.f32.mrf.mxu3 }
 0x110   : > { %10133 = vmatmul.msk.bf16.gmra.mxu1 %vm1667_vm13, %v3565_v40  ;;  %v2814_v14 = vrot.slane %v2813_v50, 4  ;;  %v2821_v40 = vshrl.u32 %v2709_v60, 16 }
 0x111   : > { %v1751_v8 = vpop.f32.mrf.mxu0 }
 0x112   : > { %v1972_v44 = vadd.f32 %v1971_v18, %v1751_v8  ;;  %v2803_v18 = vor.u32 %v2802_v9, %v2799_v55  ;;  %v3537_v55 = vunpack.c.l.b16 %v3438_v0  ;;  %v2823_v50 = vrot.slane %v2821_v40, 4 }
 0x114   : > { %10082 = vmatmul.msk.bf16.vlgmr.msrb.gmra.mxu3 %vm1667_vm13, %v10707_v12  ;;  %v2804_v12 = vrot.slane %v2803_v18, 4  ;;  %v2819_v18 = vsel %vm11024_vm2, %v2814_v14, %v2818_v38 }
 0x115   : > { %v2324_v29 = vpop.f32.mrf.mxu2  ;;  %v1976_v58 = vpop.f32.mrf.mxu1  ;;  %v3139_v52 = vunpack.c.l.b16 %v2819_v18 }
 0x116   : > { %v11638_v46 = vadd.f32 %v2324_v29, %v1972_v44  ;;  %v2824_v44 = vshll.u32 %v2709_v60, 16  ;;  %v2832_v60 = vrot.slane %v2830_v19, 5 }
 0x117   : > { %v11640_v43 = vpop.f32.mrf.mxu3 }
 0x119   : > { %v1754_v57 = vpop.f32.mrf.mxu0 }
 0x11a   : > { %10214 = vmatmul.msk.bf16.gmra.mxu2 %vm1667_vm13, %v10724_v51  ;;  %v1975_v1 = vadd.f32 %v1974_v5, %v1754_v57  ;;  %v3435_v5 = vsel %vm10970_vm12, %v10117_v2, %v3434_v59  ;;  %v2826_v57 = vrot.slane %v2824_v44, 5  ;;  %v2836_v59 = vrot.slane %v2834_v22, 4 }
 0x11b   : > { %v3536_v29 = vunpack.c.l.b16 %v3435_v5  ;;  %v3441_v44 = vrot.slane %v11643_v30, 5 }
 0x11c   : > { %10100 = vmatmul.msk.bf16.gmra.mxu0 %vm1667_vm13, %v3167_v13  ;;  %v2809_v13 = vsel %vm11024_vm2, %v2804_v12, %v2808_v32  ;;  %v10725_v32 = vld [vmem:[#allocation2 + $0x30] sm:$0xff]  ;;  %v2827_v12 = vor.u32 %v2826_v57, %v2823_v50  ;;  %v2837_v5 = vor.u32 %v2836_v59, %v2832_v60  ;;  %v2712_v50 = vld [vmem:[#allocation2 + $0x3c] sm:$0xf]  ;;  %v2713_v57 = vld [vmem:[#allocation2 + $0x40] sm:$0xf] }
 0x11d   : > { %v2327_v3 = vpop.f32.mrf.mxu2  ;;  %v1979_v15 = vpop.f32.mrf.mxu1  ;;  %v3566_v45 = vpack.c.b16 %v3537_v55, %v3536_v29  ;;  %v3357_v29 = vld [vmem:[#allocation2 + $0x30] sm:$0xe] }
 0x11e   : > { %v11646_v8 = vadd.f32 %v2327_v3, %v1975_v1  ;;  %v3138_v1 = vunpack.c.l.b16 %v2809_v13  ;;  %v2828_v19 = vrot.slane %v2827_v12, 4  ;;  %v2838_v22 = vrot.slane %v2837_v5, 4  ;;  %v10709_v12 = vld [vmem:[#allocation2 + $0x24] sm:$0xff] }
 0x11f   : > { %v11654_v9 = vpop.f32.mrf.mxu3  ;;  %v2848_v5 = vshll.u32 %v2712_v50, 16 }
 0x120   : > { %10134 = vmatmul.msk.bf16.gmra.mxu1 %vm1667_vm13, %v3566_v45  ;;  %v3168_v38 = vpack.c.b16 %v3139_v52, %v3138_v1  ;;  %v3443_v45 = vrot.slane %v3441_v44, 4 }
 0x121   : > { %v1756_v51 = vpop.f32.mrf.mxu0 }
 0x122   : > { %v1977_v33 = vadd.f32 %v1976_v58, %v1756_v51  ;;  %v2840_v58 = vshll.u32 %v2711_v11, 16  ;;  %v3444_v51 = vrot.slane %v2711_v11, 5 }
 0x124   : > { %10083 = vmatmul.msk.bf16.gmra.mxu3 %vm1667_vm13, %v10708_v23  ;;  %v2842_v55 = vrot.slane %v2840_v58, 5  ;;  %v10118_v23 = vrot.slane %v3357_v29, 9  ;;  %v3445_v30 = vsel %vm10970_vm12, %v3443_v45, %v3444_v51  ;;  %v2854_v58 = vshll.u32 %v2713_v57, 16 }
 0x125   : > { %v2329_v2 = vpop.f32.mrf.mxu2  ;;  %v1981_v25 = vpop.f32.mrf.mxu1  ;;  %v3539_v1 = vunpack.c.l.b16 %v3445_v30 }
 0x126   : > { %v11662_v3 = vadd.f32 %v2329_v2, %v1977_v33  ;;  %v3442_v59 = vsel %vm10970_vm12, %v10118_v23, %v3441_v44  ;;  %v2833_v2 = vsel %vm11024_vm2, %v2828_v19, %v2832_v60  ;;  %v2843_v11 = vsel %vm11024_vm2, %v2838_v22, %v2842_v55 }
 0x127   : > { %v11664_v14 = vpop.f32.mrf.mxu3  ;;  %v3140_v29 = vunpack.c.l.b16 %v2833_v2  ;;  %v3141_v23 = vunpack.c.l.b16 %v2843_v11  ;;  %v2850_v60 = vrot.slane %v2848_v5, 5  ;;  %v2856_v19 = vrot.slane %v2854_v58, 5  ;;  %v2715_v11 = vld [vmem:[#allocation2 + $0x48] sm:$0xf]  ;;  %v3358_v5 = vld [vmem:[#allocation2 + $0x3c] sm:$0xe] }
 0x128   : > { %15120 = vst [vmem:[#allocation4_spill] sm:$0xff] %v11662_v3  ;;  %v11688_v58 = vld [vmem:[#allocation2 + $0x4c] sm:$0xf] }
 0x129   : > { %v1759_v40 = vpop.f32.mrf.mxu0 }
 0x12a   : > { %10215 = vmatmul.msk.bf16.gmra.mxu2 %vm1667_vm13, %v10725_v32  ;;  %v1980_v0 = vadd.f32 %v1979_v15, %v1759_v40  ;;  %v3538_v15 = vunpack.c.l.b16 %v3442_v59  ;;  %v2845_v32 = vshrl.u32 %v2712_v50, 16  ;;  %v2714_v50 = vld [vmem:[#allocation2 + $0x44] sm:$0x1]  ;;  %v10726_v59 = vld [vmem:[#allocation2 + $0x3c] sm:$0xff] }
 0x12c   : > { %10101 = vmatmul.msk.bf16.gmra.mxu0 %vm1667_vm13, %v3168_v38  ;;  %v2858_v38 = vshrl.u32 %v2713_v57, 16  ;;  %v3567_v40 = vpack.c.b16 %v3539_v1, %v3538_v15  ;;  %v2847_v51 = vrot.slane %v2845_v32, 4  ;;  %v3169_v15 = vpack.c.b16 %v3141_v23, %v3140_v29 }
 0x12d   : > { %v2332_v13 = vpop.f32.mrf.mxu2  ;;  %v1984_v18 = vpop.f32.mrf.mxu1 }
 0x12e   : > { %v11669_v33 = vadd.f32 %v2332_v13, %v1980_v0  ;;  %v2860_v13 = vrot.slane %v2858_v38, 4  ;;  %v10119_v38 = vrot.slane %v3358_v5, 9 }
 0x12f   : > { %v11675_v52 = vpop.f32.mrf.mxu3 }
 0x130   : > { %15121 = vst [vmem:[#allocation5_spill] sm:$0xff] %v11669_v33  ;;  %10135 = vmatmul.msk.bf16.gmra.mxu1 %vm1667_vm13, %v3567_v40  ;;  %v2861_v1 = vor.u32 %v2860_v13, %v2856_v19  ;;  %v2864_v40 = vshll.u32 %v2714_v50, 16 }
 0x131   : > { %v1761_v44 = vpop.f32.mrf.mxu0 }
 0x132   : > { %v1982_v0 = vadd.f32 %v1981_v25, %v1761_v44  ;;  %v2851_v25 = vor.u32 %v2850_v60, %v2847_v51  ;;  %v2862_v29 = vrot.slane %v2861_v1, 4  ;;  %v2866_v23 = vrot.slane %v2864_v40, 5  ;;  %v10710_v40 = vld [vmem:[#allocation2 + $0x30] sm:$0xff] }
 0x133   : > { %v2869_v60 = vshrl.u32 %v2715_v11, 16 }
 0x134   : > { %10084 = vmatmul.msk.bf16.gmra.mxu3 %vm1667_vm13, %v10709_v12  ;;  %v3448_v12 = vrot.slane %v2713_v57, 5 }
 0x135   : > { %v2334_v45 = vpop.f32.mrf.mxu2  ;;  %v1986_v22 = vpop.f32.mrf.mxu1 }
 0x136   : > { %v11683_v55 = vadd.f32 %v2334_v45, %v1982_v0  ;;  %v3450_v44 = vrot.slane %v3448_v12, 4  ;;  %v3451_v0 = vrot.slane %v2714_v50, 5  ;;  %v2882_v50 = vshrl.u32 %v11688_v58, 16 }
 0x137   : > { %v11685_v30 = vpop.f32.mrf.mxu3 }
 0x138   : > { %15122 = vst [vmem:[#allocation6_spill] sm:$0xff] %v11683_v55  ;;  %v2852_v55 = vrot.slane %v2851_v25, 4  ;;  %v3452_v57 = vsel %vm10970_vm12, %v3450_v44, %v3451_v0  ;;  %v2884_v33 = vrot.slane %v2882_v50, 4 }
 0x139   : > { %v1764_v2 = vpop.f32.mrf.mxu0  ;;  %v3541_v5 = vunpack.c.l.b16 %v3452_v57 }
 0x13a   : > { %10216 = vmatmul.msk.bf16.gmra.mxu2 %vm1667_vm13, %v10726_v59  ;;  %v1985_v32 = vadd.f32 %v1984_v18, %v1764_v2  ;;  %v2872_v59 = vshll.u32 %v2715_v11, 16  ;;  %v3449_v18 = vsel %vm10970_vm12, %v10119_v38, %v3448_v12  ;;  %v2878_v2 = vshll.u32 %v11688_v58, 16 }
 0x13b   : > { %v2857_v11 = vsel %vm11024_vm2, %v2852_v55, %v2856_v19  ;;  %v2867_v12 = vsel %vm11024_vm2, %v2862_v29, %v2866_v23  ;;  %v2871_v38 = vrot.slane %v2869_v60, 4  ;;  %v10727_v19 = vld [vmem:[#allocation2 + $0x48] sm:$0xff] }
 0x13c   : > { %10102 = vmatmul.msk.bf16.gmra.mxu0 %vm1667_vm13, %v3169_v15  ;;  %v3540_v15 = vunpack.c.l.b16 %v3449_v18  ;;  %v2874_v0 = vrot.slane %v2872_v59, 5  ;;  %v3143_v18 = vunpack.c.l.b16 %v2867_v12 }
 0x13d   : > { %v2337_v45 = vpop.f32.mrf.mxu2  ;;  %v1989_v51 = vpop.f32.mrf.mxu1 }
 0x13e   : > { %v11691_v13 = vadd.f32 %v2337_v45, %v1985_v32  ;;  %v3568_v32 = vpack.c.b16 %v3541_v5, %v3540_v15  ;;  %v2717_v15 = vld [vmem:[#allocation2 + $0x50] sm:$0x1]  ;;  %v2875_v55 = vor.u32 %v2874_v0, %v2871_v38 }
 0x13f   : > { %v2021_v25 = vpop.f32.mrf.mxu3  ;;  %v2888_v23 = vshll.u32 %v2717_v15, 16  ;;  %v3458_v38 = vrot.slane %v2717_v15, 5 }
 0x140   : > { %15123 = vst [vmem:[#allocation7_spill] sm:$0xff] %v11691_v13  ;;  %v11700_v1 = vadd.f32 %v2021_v25, %v11607_v56  ;;  %v2880_v13 = vrot.slane %v2878_v2, 5  ;;  %10136 = vmatmul.msk.bf16.gmra.mxu1 %vm1667_vm13, %v3568_v32  ;;  %v3142_v56 = vunpack.c.l.b16 %v2857_v11  ;;  %v3455_v2 = vrot.slane %v11688_v58, 5 }
 0x141   : > { %v1766_v45 = vpop.f32.mrf.mxu0  ;;  %v2890_v11 = vrot.slane %v2888_v23, 5 }
 0x142   : > { %v1987_v44 = vadd.f32 %v1986_v22, %v1766_v45  ;;  %v2885_v3 = vor.u32 %v2884_v33, %v2880_v13  ;;  %v3170_v60 = vpack.c.b16 %v3143_v18, %v3142_v56  ;;  %v3359_v45 = vld [vmem:[#allocation2 + $0x48] sm:$0xe]  ;;  %v2719_v56 = vld [vmem:[#allocation2 + $0x58] sm:$0xf] }
 0x143   : > { %v10120_v12 = vrot.slane %v3359_v45, 9 }
 0x144   : > { %10085 = vmatmul.msk.bf16.gmra.mxu3 %vm1667_vm13, %v10710_v40  ;;  %v2876_v40 = vrot.slane %v2875_v55, 4  ;;  %v2886_v32 = vrot.slane %v2885_v3, 4 }
 0x145   : > { %v2339_v57 = vpop.f32.mrf.mxu2  ;;  %v1991_v5 = vpop.f32.mrf.mxu1  ;;  %v3456_v18 = vsel %vm10970_vm12, %v10120_v12, %v3455_v2 }
 0x146   : > { %v11708_v25 = vadd.f32 %v2339_v57, %v1987_v44  ;;  %v3457_v44 = vrot.slane %v3455_v2, 4  ;;  %v3542_v3 = vunpack.c.l.b16 %v3456_v18  ;;  %v2881_v15 = vsel %vm11024_vm2, %v2876_v40, %v2880_v13 }
 0x147   : > { %v2024_v29 = vpop.f32.mrf.mxu3  ;;  %v2891_v55 = vsel %vm11024_vm2, %v2886_v32, %v2890_v11  ;;  %v2906_v2 = vshrl.u32 %v2719_v56, 16 }
 0x148   : > { %v11711_v22 = vadd.f32 %v2024_v29, %v11620_v41  ;;  %v2718_v41 = vld [vmem:[#allocation2 + $0x54] sm:$0xf]  ;;  %v3459_v58 = vsel %vm10970_vm12, %v3457_v44, %v3458_v38  ;;  %v3144_v38 = vunpack.c.l.b16 %v2881_v15 }
 0x149   : > { %v1769_v59 = vpop.f32.mrf.mxu0  ;;  %v2893_v29 = vshrl.u32 %v2718_v41, 16  ;;  %v2896_v23 = vshll.u32 %v2718_v41, 16  ;;  %v2908_v41 = vrot.slane %v2906_v2, 4  ;;  %v3360_v2 = vld [vmem:[#allocation2 + $0x54] sm:$0xe] }
 0x14a   : > { %10217 = vmatmul.msk.bf16.gmra.mxu2 %vm1667_vm13, %v10727_v19  ;;  %v1990_v50 = vadd.f32 %v1989_v51, %v1769_v59  ;;  %v3543_v51 = vunpack.c.l.b16 %v3459_v58  ;;  %v10711_v59 = vld [vmem:[#allocation2 + $0x3c] sm:$0xff] }
 0x14b   : > { %v2895_v40 = vrot.slane %v2893_v29, 4  ;;  %v2898_v32 = vrot.slane %v2896_v23, 5  ;;  %v2720_v58 = vld [vmem:[#allocation2 + $0x5c] sm:$0x1]  ;;  %v2721_v29 = vld [vmem:[#allocation2 + $0x60] sm:$0xf] }
 0x14c   : > { %10103 = vmatmul.msk.bf16.gmra.mxu0 %vm1667_vm13, %v3170_v60  ;;  %v3569_v45 = vpack.c.b16 %v3543_v51, %v3542_v3  ;;  %v2010_v3 = vadd.f32 %v11640_v43, %v11496_v48  ;;  %v3462_v23 = vrot.slane %v2719_v56, 5  ;;  %v10121_v48 = vrot.slane %v3360_v2, 9 }
 0x14d   : > { %v2342_v33 = vpop.f32.mrf.mxu2  ;;  %v1994_v0 = vpop.f32.mrf.mxu1  ;;  %v2899_v15 = vor.u32 %v2898_v32, %v2895_v40 }
 0x14e   : > { %v11716_v57 = vadd.f32 %v2342_v33, %v1990_v50  ;;  %v2902_v50 = vshll.u32 %v2719_v56, 16  ;;  %v3145_v33 = vunpack.c.l.b16 %v2891_v55  ;;  %v3464_v43 = vrot.slane %v3462_v23, 4 }
 0x14f   : > { %v2026_v19 = vpop.f32.mrf.mxu3  ;;  %v2900_v40 = vrot.slane %v2899_v15, 4  ;;  %v3463_v56 = vsel %vm10970_vm12, %v10121_v48, %v3462_v23 }
 0x150   : > { %v11727_v60 = vadd.f32 %v2026_v19, %v11630_v47  ;;  %10137 = vmatmul.msk.bf16.gmra.mxu1 %vm1667_vm13, %v3569_v45  ;;  %v2904_v11 = vrot.slane %v2902_v50, 5  ;;  %v10728_v19 = vld [vmem:[#allocation2 + $0x54] sm:$0xff]  ;;  %v3171_v51 = vpack.c.b16 %v3145_v33, %v3144_v38  ;;  %v3465_v38 = vrot.slane %v2720_v58, 5 }
 0x151   : > { %v1771_v12 = vpop.f32.mrf.mxu0 }
 0x152   : > { %v1992_v44 = vadd.f32 %v1991_v5, %v1771_v12  ;;  %v2909_v55 = vor.u32 %v2908_v41, %v2904_v11 }
 0x154   : > { %10086 = vmatmul.msk.bf16.gmra.mxu3 %vm1667_vm13, %v10711_v59  ;;  %v2912_v59 = vshll.u32 %v2720_v58, 16  ;;  %v2910_v32 = vrot.slane %v2909_v55, 4 }
 0x155   : > { %v2344_v13 = vpop.f32.mrf.mxu2  ;;  %v1996_v18 = vpop.f32.mrf.mxu1 }
 0x156   : > { %v11731_v47 = vadd.f32 %v2344_v13, %v1992_v44  ;;  %v2012_v44 = vadd.f32 %v11654_v9, %v11527_v35  ;;  %v11740_v13 = vld [vmem:[#allocation2 + $0x64] sm:$0xf]  ;;  %v2914_v41 = vrot.slane %v2912_v59, 5  ;;  %v3466_v35 = vsel %vm10970_vm12, %v3464_v43, %v3465_v38  ;;  %v10712_v59 = vld [vmem:[#allocation2 + $0x48] sm:$0xff] }
 0x157   : > { %v2362_v5 = vpop.f32.mrf.mxu3  ;;  %v2926_v9 = vshll.u32 %v11740_v13, 16  ;;  %v2930_v58 = vshrl.u32 %v11740_v13, 16 }
 0x158   : > { %v11735_v45 = vadd.f32 %v2362_v5, %v2010_v3  ;;  %v2915_v23 = vsel %vm11024_vm2, %v2910_v32, %v2914_v41 }
 0x159   : > { %v1774_v12 = vpop.f32.mrf.mxu0 }
 0x15a   : > { %15124 = vst [vmem:[#allocation8_spill] sm:$0xff] %v11735_v45  ;;  %10218 = vmatmul.msk.bf16.gmra.mxu2 %vm1667_vm13, %v10728_v19  ;;  %v1995_v50 = vadd.f32 %v1994_v0, %v1774_v12  ;;  %v2917_v19 = vshrl.u32 %v2721_v29, 16  ;;  %v2920_v0 = vshll.u32 %v2721_v29, 16  ;;  %v3545_v12 = vunpack.c.l.b16 %v3466_v35 }
 0x15b   : > { %v2905_v29 = vsel %vm11024_vm2, %v2900_v40, %v2904_v11  ;;  %v2932_v45 = vrot.slane %v2930_v58, 4  ;;  %v10729_v11 = vld [vmem:[#allocation2 + $0x60] sm:$0xff]  ;;  %v2015_v40 = vadd.f32 %v11664_v14, %v11551_v17 }
 0x15c   : > { %10104 = vmatmul.msk.bf16.gmra.mxu0 %vm1667_vm13, %v3171_v51  ;;  %v3544_v51 = vunpack.c.l.b16 %v3463_v56  ;;  %v2919_v48 = vrot.slane %v2917_v19, 4  ;;  %v2922_v38 = vrot.slane %v2920_v0, 5  ;;  %v3147_v56 = vunpack.c.l.b16 %v2915_v23  ;;  %v3361_v23 = vld [vmem:[#allocation2 + $0x60] sm:$0xe] }
 0x15d   : > { %v2347_v33 = vpop.f32.mrf.mxu2  ;;  %v1999_v3 = vpop.f32.mrf.mxu1 }
 0x15e   : > { %v11743_v5 = vadd.f32 %v2347_v33, %v1995_v50  ;;  %v3570_v2 = vpack.c.b16 %v3545_v12, %v3544_v51  ;;  %v2928_v33 = vrot.slane %v2926_v9, 5  ;;  %v2723_v51 = vld [vmem:[#allocation2 + $0x68] sm:$0x1]  ;;  %v2923_v32 = vor.u32 %v2922_v38, %v2919_v48 }
 0x15f   : > { %v2364_v15 = vpop.f32.mrf.mxu3  ;;  %v2936_v19 = vshll.u32 %v2723_v51, 16  ;;  %v3472_v17 = vrot.slane %v2723_v51, 5 }
 0x160   : > { %v11751_v55 = vadd.f32 %v2364_v15, %v2012_v44  ;;  %10138 = vmatmul.msk.bf16.gmra.mxu1 %vm1667_vm13, %v3570_v2  ;;  %v3146_v44 = vunpack.c.l.b16 %v2905_v29 }
 0x161   : > { %v1776_v50 = vpop.f32.mrf.mxu0 }
 0x162   : > { %15125 = vst [vmem:[#allocation9_spill] sm:$0xff] %v11751_v55  ;;  %v1997_v43 = vadd.f32 %v1996_v18, %v1776_v50  ;;  %v2933_v18 = vor.u32 %v2932_v45, %v2928_v33  ;;  %v3172_v9 = vpack.c.b16 %v3147_v56, %v3146_v44  ;;  %v2924_v50 = vrot.slane %v2923_v32, 4  ;;  %v2724_v45 = vld [vmem:[#allocation2 + $0x6c] sm:$0xf]  ;;  %v2725_v44 = vld [vmem:[#allocation2 + $0x70] sm:$0xf] }
 0x164   : > { %10087 = vmatmul.msk.bf16.gmra.mxu3 %vm1667_vm13, %v10712_v59  ;;  %v3469_v59 = vrot.slane %v11740_v13, 5  ;;  %v2934_v29 = vrot.slane %v2933_v18, 4  ;;  %v2929_v32 = vsel %vm11024_vm2, %v2924_v50, %v2928_v33 }
 0x165   : > { %v2349_v35 = vpop.f32.mrf.mxu2  ;;  %v2001_v12 = vpop.f32.mrf.mxu1 }
 0x166   : > { %v11759_v15 = vadd.f32 %v2349_v35, %v1997_v43  ;;  %v2938_v43 = vrot.slane %v2936_v19, 5  ;;  %v10122_v35 = vrot.slane %v3361_v23, 9  ;;  %v3471_v55 = vrot.slane %v3469_v59, 4 }
 0x167   : > { %v2367_v41 = vpop.f32.mrf.mxu3  ;;  %v2944_v19 = vshll.u32 %v2724_v45, 16 }
 0x168   : > { %v11763_v0 = vadd.f32 %v2367_v41, %v2015_v40  ;;  %v3470_v56 = vsel %vm10970_vm12, %v10122_v35, %v3469_v59  ;;  %v3473_v13 = vsel %vm10970_vm12, %v3471_v55, %v3472_v17  ;;  %v2939_v18 = vsel %vm11024_vm2, %v2934_v29, %v2938_v43 }
 0x169   : > { %v1779_v58 = vpop.f32.mrf.mxu0  ;;  %v3547_v40 = vunpack.c.l.b16 %v3473_v13  ;;  %v2941_v41 = vshrl.u32 %v2724_v45, 16  ;;  %v2950_v59 = vshll.u32 %v2725_v44, 16  ;;  %v2946_v17 = vrot.slane %v2944_v19, 5  ;;  %v10730_v45 = vld [vmem:[#allocation2 + $0x6c] sm:$0xff]  ;;  %v2726_v13 = vld [vmem:[#allocation2 + $0x74] sm:$0x1] }
 0x16a   : > { %10219 = vmatmul.msk.bf16.gmra.mxu2 %vm1667_vm13, %v10729_v11  ;;  %v2000_v2 = vadd.f32 %v1999_v3, %v1779_v58  ;;  %v2017_v3 = vadd.f32 %v11675_v52, %v11569_v7  ;;  %v3546_v11 = vunpack.c.l.b16 %v3470_v56  ;;  %v10713_v58 = vld [vmem:[#allocation2 + $0x54] sm:$0xff]  ;;  %v3148_v7 = vunpack.c.l.b16 %v2929_v32 }
 0x16b   : > { %v3149_v52 = vunpack.c.l.b16 %v2939_v18  ;;  %v2943_v50 = vrot.slane %v2941_v41, 4  ;;  %v2952_v29 = vrot.slane %v2950_v59, 5  ;;  %v2020_v56 = vadd.f32 %v11685_v30, %v11588_v49  ;;  %v3362_v59 = vld [vmem:[#allocation2 + $0x6c] sm:$0xe] }
 0x16c   : > { %10105 = vmatmul.msk.bf16.gmra.mxu0 %vm1667_vm13, %v3172_v9  ;;  %v3571_v55 = vpack.c.b16 %v3547_v40, %v3546_v11  ;;  %v3476_v41 = vrot.slane %v2725_v44, 5 }
 0x16d   : > { %v2352_v14 = vpop.f32.mrf.mxu2  ;;  %v2004_v38 = vpop.f32.mrf.mxu1  ;;  %v3173_v40 = vpack.c.b16 %v3149_v52, %v3148_v7 }
 0x16e   : > { %v11768_v48 = vadd.f32 %v2352_v14, %v2000_v2  ;;  %v2954_v2 = vshrl.u32 %v2725_v44, 16 }
 0x16f   : > { %v2369_v51 = vpop.f32.mrf.mxu3 }
 0x170   : > { %v11780_v9 = vadd.f32 %v2369_v51, %v2017_v3  ;;  %10139 = vmatmul.msk.bf16.gmra.mxu1 %vm1667_vm13, %v3571_v55  ;;  %v2956_v43 = vrot.slane %v2954_v2, 4  ;;  %v2947_v51 = vor.u32 %v2946_v17, %v2943_v50  ;;  %v10123_v2 = vrot.slane %v3362_v59, 9 }
 0x171   : > { %v1781_v23 = vpop.f32.mrf.mxu0  ;;  %v3478_v55 = vrot.slane %v3476_v41, 4 }
 0x172   : > { %v2002_v35 = vadd.f32 %v2001_v12, %v1781_v23  ;;  %v2957_v32 = vor.u32 %v2956_v43, %v2952_v29  ;;  %v3479_v23 = vrot.slane %v2726_v13, 5  ;;  %v2948_v30 = vrot.slane %v2947_v51, 4  ;;  %v10714_v51 = vld [vmem:[#allocation2 + $0x60] sm:$0xff] }
 0x173   : > { %v3477_v52 = vsel %vm10970_vm12, %v10123_v2, %v3476_v41 }
 0x174   : > { %10088 = vmatmul.msk.bf16.gmra.mxu3 %vm1667_vm13, %v10713_v58  ;;  %v2960_v58 = vshll.u32 %v2726_v13, 16  ;;  %v3480_v44 = vsel %vm10970_vm12, %v3478_v55, %v3479_v23  ;;  %v3548_v50 = vunpack.c.l.b16 %v3477_v52 }
 0x175   : > { %v2354_v33 = vpop.f32.mrf.mxu2  ;;  %v2006_v12 = vpop.f32.mrf.mxu1  ;;  %v3549_v17 = vunpack.c.l.b16 %v3480_v44 }
 0x176   : > { %v11784_v14 = vadd.f32 %v2354_v33, %v2002_v35  ;;  %v2958_v35 = vrot.slane %v2957_v32, 4  ;;  %v2727_v33 = vld [vmem:[#allocation2 + $0x78] sm:$0xf]  ;;  %v2962_v7 = vrot.slane %v2960_v58, 5  ;;  %v2953_v58 = vsel %vm11024_vm2, %v2948_v30, %v2952_v29  ;;  %v2729_v30 = vld [vmem:[#allocation2 + $0x80] sm:$0x1] }
 0x177   : > { %v2372_v3 = vpop.f32.mrf.mxu3  ;;  %v2968_v13 = vshll.u32 %v2727_v33, 16  ;;  %v3572_v32 = vpack.c.b16 %v3549_v17, %v3548_v50  ;;  %v10731_v29 = vld [vmem:[#allocation2 + $0x78] sm:$0xff] }
 0x178   : > { %v11788_v11 = vadd.f32 %v2372_v3, %v2020_v56  ;;  %v2963_v41 = vsel %vm11024_vm2, %v2958_v35, %v2962_v7 }
 0x179   : > { %v1784_v18 = vpop.f32.mrf.mxu0  ;;  %v2970_v23 = vrot.slane %v2968_v13, 5 }
 0x17a   : > { %15126 = vst [vmem:[#allocation10_spill] sm:$0xff] %v11788_v11  ;;  %10220 = vmatmul.msk.bf16.gmra.mxu2 %vm1667_vm13, %v10730_v45  ;;  %v2005_v19 = vadd.f32 %v2004_v38, %v1784_v18  ;;  %v2728_v38 = vld [vmem:[#allocation2 + $0x7c] sm:$0xf]  ;;  %v2965_v45 = vshrl.u32 %v2727_v33, 16 }
 0x17b   : > { %v2978_v59 = vshrl.u32 %v2728_v38, 16 }
 0x17c   : > { %10106 = vmatmul.msk.bf16.gmra.mxu0 %vm1667_vm13, %v3173_v40  ;;  %v2967_v55 = vrot.slane %v2965_v45, 4 }
 0x17d   : > { %v2357_v49 = vpop.f32.mrf.mxu2  ;;  %v11798_v3 = vpop.f32.mrf.mxu1  ;;  %v2980_v50 = vrot.slane %v2978_v59, 4  ;;  %v3486_v59 = vrot.slane %v2729_v30, 5 }
 0x17e   : > { %v11792_v56 = vadd.f32 %v2357_v49, %v2005_v19  ;;  %v2974_v19 = vshll.u32 %v2728_v38, 16  ;;  %v3151_v49 = vunpack.c.l.b16 %v2963_v41  ;;  %v2971_v35 = vor.u32 %v2970_v23, %v2967_v55  ;;  %v2730_v55 = vld [vmem:[#allocation2 + $0x84] sm:$0xf] }
 0x17f   : > { %v2374_v43 = vpop.f32.mrf.mxu3 }
 0x180   : > { %v11801_v40 = vadd.f32 %v2374_v43, %v11700_v1  ;;  %10140 = vmatmul.msk.bf16.gmra.mxu1 %vm1667_vm13, %v3572_v32  ;;  %v3150_v1 = vunpack.c.l.b16 %v2953_v58  ;;  %v2976_v44 = vrot.slane %v2974_v19, 5  ;;  %v3483_v32 = vrot.slane %v2728_v38, 5 }
 0x181   : > { %v1786_v18 = vpop.f32.mrf.mxu0  ;;  %v2972_v58 = vrot.slane %v2971_v35, 4  ;;  %v2992_v35 = vshll.u32 %v2730_v55, 16 }
 0x182   : > { %15127 = vst [vmem:[#allocation11_spill] sm:$0xff] %v11801_v40  ;;  %v2007_v2 = vadd.f32 %v2006_v12, %v1786_v18  ;;  %v3174_v43 = vpack.c.b16 %v3151_v49, %v3150_v1  ;;  %v2981_v13 = vor.u32 %v2980_v50, %v2976_v44  ;;  %v3363_v18 = vld [vmem:[#allocation2 + $0x78] sm:$0xe]  ;;  %v3485_v19 = vrot.slane %v3483_v32, 4  ;;  %v3364_v40 = vld [vmem:[#allocation2 + $0x84] sm:$0xe] }
 0x183   : > { %v10124_v41 = vrot.slane %v3363_v18, 9  ;;  %v10125_v11 = vrot.slane %v3364_v40, 9 }
 0x184   : > { %10089 = vmatmul.msk.bf16.gmra.mxu3 %vm1667_vm13, %v10714_v51  ;;  %v2984_v51 = vshll.u32 %v2729_v30, 16  ;;  %v2982_v23 = vrot.slane %v2981_v13, 4  ;;  %v3487_v49 = vsel %vm10970_vm12, %v3485_v19, %v3486_v59  ;;  %v2977_v30 = vsel %vm11024_vm2, %v2972_v58, %v2976_v44 }
 0x185   : > { %v2359_v33 = vpop.f32.mrf.mxu2  ;;  %v11811_v7 = vpop.f32.mrf.mxu1  ;;  %v3484_v1 = vsel %vm10970_vm12, %v10124_v41, %v3483_v32  ;;  %v3551_v50 = vunpack.c.l.b16 %v3487_v49  ;;  %v3152_v59 = vunpack.c.l.b16 %v2977_v30  ;;  %v2994_v58 = vrot.slane %v2992_v35, 5 }
 0x186   : > { %v11809_v52 = vadd.f32 %v2359_v33, %v2007_v2  ;;  %v2731_v33 = vld [vmem:[#allocation2 + $0x88] sm:$0xf]  ;;  %v3550_v38 = vunpack.c.l.b16 %v3484_v1 }
 0x187   : > { %v2377_v17 = vpop.f32.mrf.mxu3  ;;  %v2998_v18 = vshll.u32 %v2731_v33, 16 }
 0x188   : > { %v11814_v12 = vadd.f32 %v2377_v17, %v11711_v22  ;;  %v2986_v22 = vrot.slane %v2984_v51, 5  ;;  %v2989_v17 = vshrl.u32 %v2730_v55, 16  ;;  %v10715_v51 = vld [vmem:[#allocation2 + $0x6c] sm:$0xff]  ;;  %v3573_v32 = vpack.c.b16 %v3551_v50, %v3550_v38  ;;  %v5694_v38 = vld [vmem:[%s15101_s6] sm:$0xf]  ;;  %v10732_v50 = vld [vmem:[#allocation2 + $0x84] sm:$0xff] }
 0x189   : > { %v3242_v45 = vpop.f32.mrf.mxu0 }
 0x18a   : > { %15128 = vst [vmem:[#allocation12_spill] sm:$0xff] %v11814_v12  ;;  %10221 = vmatmul.msk.bf16.gmra.mxu2 %vm1667_vm13, %v10731_v29  ;;  %v3002_v12 = vshrl.u32 %v2731_v33, 16  ;;  %v2987_v19 = vsel %vm11024_vm2, %v2982_v23, %v2986_v22  ;;  %v2991_v44 = vrot.slane %v2989_v17, 4  ;;  %v6416_v23 = vsel %vm6194_vm11, %v5694_v38, 0  ;;  %v2732_v22 = vld [vmem:[#allocation2 + $0x8c] sm:$0x1] }
 0x18b   : > { %v3153_v55 = vunpack.c.l.b16 %v2987_v19  ;;  %6425 = vmatpush.bf16.msra.mxu2 %v6416_v23  ;;  %v3490_v19 = vrot.slane %v2731_v33, 5  ;;  %v10279_v33 = vld [vmem:[%s15101_s6 + $0x4] sm:$0xf] }
 0x18c   : > { %10107 = vmatmul.msk.bf16.gmra.mxu0 %vm1667_vm13, %v3174_v43  ;;  %v3004_v49 = vrot.slane %v3002_v12, 4  ;;  %v2995_v30 = vor.u32 %v2994_v58, %v2991_v44  ;;  %v3008_v12 = vshll.u32 %v2732_v22, 16  ;;  %v3493_v58 = vrot.slane %v2732_v22, 5 }
 0x18d   : > { %v11818_v2 = vpop.f32.mrf.mxu2  ;;  %v11826_v43 = vpop.f32.mrf.mxu1  ;;  %v3492_v44 = vrot.slane %v3490_v19, 4  ;;  %v3491_v40 = vsel %vm10970_vm12, %v10125_v11, %v3490_v19  ;;  %v10716_v19 = vld [vmem:[#allocation2 + $0x78] sm:$0xff] }
 0x18e   : > { %v2996_v23 = vrot.slane %v2995_v30, 4 }
 0x18f   : > { %v2379_v29 = vpop.f32.mrf.mxu3 }
 0x190   : > { %v11829_v13 = vadd.f32 %v2379_v29, %v11727_v60  ;;  %10141 = vmatmul.msk.bf16.gmra.mxu1 %vm1667_vm13, %v3573_v32  ;;  %v3000_v60 = vrot.slane %v2998_v18, 5 }
 0x191   : > { %v11831_v41 = vpop.f32.mrf.mxu0 }
 0x192   : > { %15129 = vst [vmem:[#allocation13_spill] sm:$0xff] %v11829_v13  ;;  %v3005_v32 = vor.u32 %v3004_v49, %v3000_v60  ;;  %v1952_v13 = vadd.f32 %v11461_v26, %v11453_v21  ;;  %v2733_v49 = vld [vmem:[#allocation2 + $0x90] sm:$0xf]  ;;  %v11858_v21 = vld [vmem:[#allocation2 + $0x94] sm:$0xf]  ;;  %v6196_v26 = vsel %vm6194_vm11, %v10279_v33, 0 }
 0x193   : > { %6205 = vmatpush.bf16.msra.mxu1 %v6196_v26 }
 0x194   : > { %10090 = vmatmul.msk.bf16.gmra.mxu3 %vm1667_vm13, %v10715_v51  ;;  %v3175_v51 = vpack.c.b16 %v3153_v55, %v3152_v59  ;;  %v3006_v59 = vrot.slane %v3005_v32, 4  ;;  %v3013_v32 = vshrl.u32 %v2733_v49, 16 }
 0x195   : > { %v11837_v1 = vpop.f32.mrf.mxu2  ;;  %v11843_v17 = vpop.f32.mrf.mxu1 }
 0x197   : > { %v2588_v29 = vpop.f32.mrf.mxu3 }
 0x198   : > { %v2668_v35 = vadd.f32 %v2588_v29, %v11417_v39  ;;  %v3552_v29 = vunpack.c.l.b16 %v3491_v40 }
 0x199   : > { %v11846_v18 = vpop.f32.mrf.mxu0 }
 0x19a   : > { %10222 = vmatmul.msk.bf16.gmra.mxu2 %vm1667_vm13, %v10732_v50  ;;  %v3322_v38 = vadd.f32 %v3242_v45, %v2668_v35  ;;  %v3010_v50 = vrot.slane %v3008_v12, 5  ;;  %v3494_v45 = vsel %vm10970_vm12, %v3492_v44, %v3493_v58  ;;  %v3016_v12 = vshll.u32 %v2733_v49, 16 }
 0x19b   : > { %v3553_v30 = vunpack.c.l.b16 %v3494_v45  ;;  %v3022_v44 = vshll.u32 %v11858_v21, 16 }
 0x19c   : > { %10108 = vmatmul.msk.bf16.gmra.mxu0 %vm1667_vm13, %v3175_v51  ;;  %v3720_v39 = vadd.f32 %v11798_v3, %v3322_v38  ;;  %v2383_v3 = vadd.f32 %v11464_v28, %v1952_v13  ;;  %v3001_v51 = vsel %vm11024_vm2, %v2996_v23, %v3000_v60  ;;  %v3026_v28 = vshrl.u32 %v11858_v21, 16 }
 0x19d   : > { %v11853_v55 = vpop.f32.mrf.mxu2  ;;  %v11871_v38 = vpop.f32.mrf.mxu1  ;;  %v3574_v13 = vpack.c.b16 %v3553_v30, %v3552_v29  ;;  %v3011_v58 = vsel %vm11024_vm2, %v3006_v59, %v3010_v50  ;;  %v3154_v60 = vunpack.c.l.b16 %v3001_v51  ;;  %v3015_v23 = vrot.slane %v3013_v32, 4  ;;  %v2735_v29 = vld [vmem:[#allocation2 + $0x98] sm:$0x1]  ;;  %v10733_v30 = vld [vmem:[#allocation2 + $0x90] sm:$0xff] }
 0x19e   : > { %v11867_v22 = vadd.f32 %v11818_v2, %v3720_v39  ;;  %v3018_v49 = vrot.slane %v3016_v12, 5  ;;  %v3155_v26 = vunpack.c.l.b16 %v3011_v58  ;;  %v3024_v45 = vrot.slane %v3022_v44, 5  ;;  %v2736_v44 = vld [vmem:[#allocation2 + $0x9c] sm:$0xf] }
 0x19f   : > { %v2590_v35 = vpop.f32.mrf.mxu3  ;;  %v1957_v59 = vadd.f32 %v11499_v53, %v11516_v4 }
 0x1a0   : > { %v2669_v11 = vadd.f32 %v2590_v35, %v2383_v3  ;;  %10142 = vmatmul.msk.bf16.gmra.mxu1 %vm1667_vm13, %v3574_v13  ;;  %v3028_v3 = vrot.slane %v3026_v28, 4  ;;  %v3019_v35 = vor.u32 %v3018_v49, %v3015_v23  ;;  %v3176_v32 = vpack.c.b16 %v3155_v26, %v3154_v60  ;;  %v3365_v13 = vld [vmem:[#allocation2 + $0x90] sm:$0xe] }
 0x1a1   : > { %v3249_v2 = vpop.f32.mrf.mxu0  ;;  %v3497_v28 = vrot.slane %v11858_v21, 5  ;;  %v2385_v53 = vadd.f32 %v11520_v24, %v1957_v59  ;;  %v3500_v60 = vrot.slane %v2735_v29, 5  ;;  %v3037_v21 = vshrl.u32 %v2736_v44, 16 }
 0x1a2   : > { %v3323_v39 = vadd.f32 %v11831_v41, %v2669_v11  ;;  %v3029_v12 = vor.u32 %v3028_v3, %v3024_v45  ;;  %v3032_v11 = vshll.u32 %v2735_v29, 16  ;;  %v3020_v58 = vrot.slane %v3019_v35, 4 }
 0x1a3   : > { %v3040_v3 = vshll.u32 %v2736_v44, 16 }
 0x1a4   : > { %v3721_v33 = vadd.f32 %v11811_v7, %v3323_v39  ;;  %10091 = vmatmul.msk.bf16.gmra.mxu3 %vm1667_vm13, %v10716_v19  ;;  %v10126_v39 = vrot.slane %v3365_v13, 9  ;;  %v3030_v49 = vrot.slane %v3029_v12, 4  ;;  %v10717_v12 = vld [vmem:[#allocation2 + $0x84] sm:$0xff] }
 0x1a5   : > { %v11881_v40 = vpop.f32.mrf.mxu2  ;;  %v11888_v51 = vpop.f32.mrf.mxu1  ;;  %v3042_v13 = vrot.slane %v3040_v3, 5 }
 0x1a6   : > { %v11886_v41 = vadd.f32 %v11837_v1, %v3721_v33  ;;  %v11897_v1 = vld [vmem:[#allocation2 + $0xa0] sm:$0xf]  ;;  %v3034_v33 = vrot.slane %v3032_v11, 5 }
 0x1a7   : > { %v2593_v50 = vpop.f32.mrf.mxu3  ;;  %v3046_v24 = vshll.u32 %v11897_v1, 16  ;;  %v3050_v59 = vshrl.u32 %v11897_v1, 16 }
 0x1a8   : > { %v2670_v7 = vadd.f32 %v2593_v50, %v11487_v31  ;;  %v3499_v31 = vrot.slane %v3497_v28, 4 }
 0x1a9   : > { %v11891_v19 = vpop.f32.mrf.mxu0 }
 0x1aa   : > { %10223 = vmatmul.msk.bf16.gmra.mxu2 %vm1667_vm13, %v10733_v30  ;;  %v3324_v4 = vadd.f32 %v11846_v18, %v2670_v7  ;;  %v3498_v18 = vsel %vm10970_vm12, %v10126_v39, %v3497_v28  ;;  %v3501_v30 = vsel %vm10970_vm12, %v3499_v31, %v3500_v60  ;;  %v3025_v28 = vsel %vm11024_vm2, %v3020_v58, %v3024_v45 }
 0x1ab   : > { %v3555_v50 = vunpack.c.l.b16 %v3501_v30  ;;  %v11920_v31 = vrot.slane %v3046_v24, 5  ;;  %v3052_v60 = vrot.slane %v3050_v59, 4 }
 0x1ac   : > { %10109 = vmatmul.msk.bf16.gmra.mxu0 %vm1667_vm13, %v3176_v32  ;;  %v3722_v23 = vadd.f32 %v11826_v43, %v3324_v4  ;;  %v3554_v43 = vunpack.c.l.b16 %v3498_v18  ;;  %v3035_v4 = vsel %vm11024_vm2, %v3030_v49, %v3034_v33  ;;  %v3156_v18 = vunpack.c.l.b16 %v3025_v28  ;;  %v10734_v33 = vld [vmem:[#allocation2 + $0x9c] sm:$0xff] }
 0x1ad   : > { %v11901_v26 = vpop.f32.mrf.mxu2  ;;  %v11912_v7 = vpop.f32.mrf.mxu1  ;;  %v3157_v45 = vunpack.c.l.b16 %v3035_v4  ;;  %v1962_v49 = vadd.f32 %v11549_v16, %v11561_v54  ;;  %v3053_v3 = vor.u32 %v3052_v60, %v11920_v31  ;;  %v10814_v16 = vld [vmem:[%s15096_s1] ss:$0 sm:$0xff]  ;;  %v3504_v28 = vrot.slane %v11897_v1, 5 }
 0x1ae   : > { %v11909_v29 = vadd.f32 %v11853_v55, %v3722_v23  ;;  %v3575_v11 = vpack.c.b16 %v3555_v50, %v3554_v43  ;;  %v3039_v55 = vrot.slane %v3037_v21, 4  ;;  %v607_v43 = vld [vmem:[%s10984_s20 + $0xf8] sm:$0xff]  ;;  %v10815_v60 = vld [vmem:[%s15097_s2] ss:$0 sm:$0xff] }
 0x1af   : > { %v2595_v35 = vpop.f32.mrf.mxu3  ;;  %v643_v4 = vmul.f32 %v10814_v16, %v607_v43 }
 0x1b0   : > { %v2671_v32 = vadd.f32 %v2595_v35, %v2385_v53  ;;  %10143 = vmatmul.msk.bf16.gmra.mxu1 %vm1667_vm13, %v3575_v11  ;;  %v2738_v53 = vld [vmem:[#allocation2 + $0xa4] sm:$0x1]  ;;  %v3177_v35 = vpack.c.b16 %v3157_v45, %v3156_v18  ;;  %v2739_v11 = vld [vmem:[#allocation2 + $0xa8] sm:$0xf]  ;;  %v3506_v45 = vrot.slane %v3504_v28, 4 }
 0x1b1   : > { %v11914_v44 = vpop.f32.mrf.mxu0  ;;  %v3056_v24 = vshll.u32 %v2738_v53, 16 }
 0x1b2   : > { %v3325_v39 = vadd.f32 %v3249_v2, %v2671_v32  ;;  %v3043_v2 = vor.u32 %v3042_v13, %v3039_v55  ;;  %v2387_v32 = vadd.f32 %v11563_v63, %v1962_v49  ;;  %v11950_v63 = vld [vmem:[#allocation2 + $0xac] sm:$0xf]  ;;  %v3507_v49 = vrot.slane %v2738_v53, 5 }
 0x1b3   : > { %v3058_v13 = vrot.slane %v3056_v24, 5  ;;  %v394_v24 = vld [vmem:[#allocation2 + $0xc0] sm:$0x1]  ;;  %v3511_v36 = vrot.slane %v11950_v63, 5 }
 0x1b4   : > { %v3723_v23 = vadd.f32 %v11843_v17, %v3325_v39  ;;  %10092 = vmatmul.msk.bf16.gmra.mxu3 %vm1667_vm13, %v10717_v12  ;;  %v606_v17 = vld [vmem:[%s10984_s20 + $0xf0] sm:$0xff]  ;;  %v3044_v12 = vrot.slane %v3043_v2, 4  ;;  %v3366_v39 = vld [vmem:[#allocation2 + $0x9c] sm:$0xe]  ;;  %v679_v2 = vadd.f32 %v10815_v60, %v643_v4  ;;  %v3508_v43 = vsel %vm10970_vm12, %v3506_v45, %v3507_v49  ;;  %v450_v45 = vld [vmem:[#allocation2 + $0xc8] sm:$0x1] }
 0x1b5   : > { %v11925_v58 = vpop.f32.mrf.mxu2  ;;  %v11933_v59 = vpop.f32.mrf.mxu1  ;;  %v642_v54 = vmul.f32 %v10814_v16, %v606_v17  ;;  %v10127_v18 = vrot.slane %v3366_v39, 9  ;;  %v395_v53 = vsel %vm10943_vm6, 0, %v394_v24  ;;  %v3557_v16 = vunpack.c.l.b16 %v3508_v43 }
 0x1b6   : > { %v11930_v21 = vadd.f32 %v11881_v40, %v3723_v23  ;;  %396 = vst [vmem:[#allocation2 + $0xc0] sm:$0x1] %v395_v53  ;;  %v3049_v4 = vsel %vm11024_vm2, %v3044_v12, %v11920_v31  ;;  %v3074_v39 = vshrl.u32 %v11950_v63, 16  ;;  %v451_v12 = vsel %vm10957_vm10, 0, %v450_v45 }
 0x1b7   : > { %v2598_v30 = vpop.f32.mrf.mxu3  ;;  %v678_v23 = vadd.f32 %v10815_v60, %v642_v54  ;;  %v3505_v17 = vsel %vm10970_vm12, %v10127_v18, %v3504_v28  ;;  %452 = vst [vmem:[#allocation2 + $0xc8] sm:$0x1] %v451_v12 }
 0x1b8   : > { %v2672_v50 = vadd.f32 %v2598_v30, %v11553_v37  ;;  %v3054_v37 = vrot.slane %v3053_v3, 4  ;;  %v3064_v3 = vshll.u32 %v2739_v11, 16 }
 0x1b9   : > { %v11942_v40 = vpop.f32.mrf.mxu0  ;;  %v710_v30 = vmax.f32 %v678_v23, 0.0  ;;  %v10718_v23 = vld [vmem:[#allocation2 + $0x90] sm:$0xff] }
 0x1ba   : > { %10224 = vmatmul.msk.bf16.gmra.mxu2 %vm1667_vm13, %v10734_v33  ;;  %v3326_v55 = vadd.f32 %v11891_v19, %v2672_v50  ;;  %v3061_v19 = vshrl.u32 %v2739_v11, 16  ;;  %v711_v50 = vmax.f32 %v679_v2, 0.0  ;;  %v3059_v28 = vsel %vm11024_vm2, %v3054_v37, %v3058_v13 }
 0x1bb   : > { %v742_v54 = vpack.c.bf16 %v710_v30, %v710_v30  ;;  %v3066_v30 = vrot.slane %v3064_v3, 5  ;;  %v3076_v3 = vrot.slane %v3074_v39, 4 }
 0x1bc   : > { %10110 = vmatmul.msk.bf16.gmra.mxu0 %vm1667_vm13, %v3177_v35  ;;  %v3724_v1 = vadd.f32 %v11871_v38, %v3326_v55  ;;  %v3556_v38 = vunpack.c.l.b16 %v3505_v17  ;;  %v3070_v55 = vshll.u32 %v11950_v63, 16  ;;  %v743_v49 = vpack.c.bf16 %v711_v50, %v711_v50 }
 0x1bd   : > { %v11954_v33 = vpop.f32.mrf.mxu2  ;;  %v11972_v60 = vpop.f32.mrf.mxu1  ;;  %v1002_v2 = vshrl.u32 %v742_v54, 16  ;;  %v3063_v24 = vrot.slane %v3061_v19, 4  ;;  %v1005_v13 = vshll.u32 %v742_v54, 16  ;;  %v3158_v17 = vunpack.c.l.b16 %v3049_v4  ;;  %v1174_v4 = vld [vmem:[#allocation2 + $0xc0] sm:$0xf] }
 0x1be   : > { %v11963_v35 = vadd.f32 %v11901_v26, %v3724_v1  ;;  %v3576_v18 = vpack.c.b16 %v3557_v16, %v3556_v38  ;;  %v11980_v43 = vrot.slane %v3070_v55, 5  ;;  %v1010_v53 = vshrl.u32 %v743_v49, 16 }
 0x1bf   : > { %v2600_v11 = vpop.f32.mrf.mxu3  ;;  %v1004_v37 = vrot.slane %v1002_v2, 7  ;;  %v1013_v16 = vshll.u32 %v743_v49, 16 }
 0x1c0   : > { %v2673_v26 = vadd.f32 %v2600_v11, %v2387_v32  ;;  %10144 = vmatmul.msk.bf16.gmra.mxu1 %vm1667_vm13, %v3576_v18  ;;  %v3159_v32 = vunpack.c.l.b16 %v3059_v28  ;;  %v3067_v11 = vor.u32 %v3066_v30, %v3063_v24  ;;  %v1012_v54 = vrot.slane %v1010_v53, 7 }
 0x1c1   : > { %v11974_v1 = vpop.f32.mrf.mxu0  ;;  %v1007_v38 = vor.u32 %v1005_v13, %v1004_v37  ;;  %v1008_v18 = vrot.slane %v1004_v37, 4  ;;  %v3077_v49 = vor.u32 %v3076_v3, %v11980_v43  ;;  %v11996_v37 = vld [vmem:[#allocation2 + $0xb8] sm:$0xf] }
 0x1c2   : > { %v3327_v31 = vadd.f32 %v11914_v44, %v2673_v26  ;;  %v2741_v44 = vld [vmem:[#allocation2 + $0xb0] sm:$0x1]  ;;  %v10735_v26 = vld [vmem:[#allocation2 + $0xa8] sm:$0xff]  ;;  %v3178_v45 = vpack.c.b16 %v3159_v32, %v3158_v17  ;;  %v1015_v2 = vor.u32 %v1013_v16, %v1012_v54  ;;  %v1017_v30 = vrot.slane %v1012_v54, 4 }
 0x1c3   : > { %v1175_v55 = vsel %vm11046_vm8, %v1007_v38, %v1174_v4  ;;  %v3080_v24 = vshll.u32 %v2741_v44, 16  ;;  %v3068_v12 = vrot.slane %v3067_v11, 4  ;;  %v3367_v32 = vld [vmem:[#allocation2 + $0xa8] sm:$0xe]  ;;  %v3514_v3 = vrot.slane %v2741_v44, 5 }
 0x1c4   : > { %v3725_v50 = vadd.f32 %v11888_v51, %v3327_v31  ;;  %10093 = vmatmul.msk.bf16.gmra.mxu3 %vm1667_vm13, %v10718_v23  ;;  %1176 = vst [vmem:[#allocation2 + $0xc0] sm:$0xf] %v1175_v55  ;;  %v1016_v13 = vsel %vm11053_vm9, %v1008_v18, %v1015_v2  ;;  %v10128_v53 = vrot.slane %v3367_v32, 9  ;;  %v3078_v63 = vrot.slane %v3077_v49, 4 }
 0x1c5   : > { %v11984_v19 = vpop.f32.mrf.mxu2  ;;  %v11991_v23 = vpop.f32.mrf.mxu1  ;;  %1177 = vst.msk [vmem:[#allocation2 + $0xc4] sm:$0xf] %vm334_vm1, %v1016_v13  ;;  %v3082_v11 = vrot.slane %v3080_v24, 5  ;;  %v3094_v54 = vshll.u32 %v11996_v37, 16  ;;  %v10719_v24 = vld [vmem:[#allocation2 + $0x9c] sm:$0xff]  ;;  %vm12261_vm1 = vmand %vm459_vm7, %vm344_vm3 }
 0x1c6   : > { %v11987_v28 = vadd.f32 %v11925_v58, %v3725_v50  ;;  %v2742_v58 = vld [vmem:[#allocation2 + $0xb4] sm:$0xf]  ;;  %v3513_v50 = vrot.slane %v3511_v36, 4  ;;  %v3512_v4 = vsel %vm10970_vm12, %v10128_v53, %v3511_v36  ;;  %v3073_v36 = vsel %vm11024_vm2, %v3068_v12, %v11980_v43  ;;  %v2744_v43 = vld [vmem:[#allocation2 + $0xbc] sm:$0x1]  ;;  %vm12278_vm3 = vmand %vm459_vm7, %vm400_vm5 }
 0x1c7   : > { %v2603_v51 = vpop.f32.mrf.mxu3  ;;  %v3085_v18 = vshrl.u32 %v2742_v58, 16  ;;  %v10736_v12 = vld [vmem:[#allocation2 + $0xb4] sm:$0xff]  ;;  %vm12423_vm7 = vmand %vm456_vm4, %vm400_vm5 }
 0x1c8   : > { %v2674_v39 = vadd.f32 %v2603_v51, %v11584_v34  ;;  %v1178_v34 = vld [vmem:[#allocation2 + $0xc8] sm:$0x1]  ;;  %v3515_v44 = vsel %vm10970_vm12, %v3513_v50, %v3514_v3  ;;  %v3098_v51 = vshrl.u32 %v11996_v37, 16  ;;  %v3160_v50 = vunpack.c.l.b16 %v3073_v36 }
 0x1c9   : > { %v3262_v31 = vpop.f32.mrf.mxu0  ;;  %v1179_v38 = vsel %vm10943_vm6, %v1017_v30, %v1178_v34  ;;  %v3087_v13 = vrot.slane %v3085_v18, 4  ;;  %v3096_v34 = vrot.slane %v3094_v54, 5  ;;  %v3104_v18 = vshll.u32 %v2744_v43, 16 }
 0x1ca   : > { %10225 = vmatmul.msk.bf16.gmra.mxu2 %vm1667_vm13, %v10735_v26  ;;  %v3328_v17 = vadd.f32 %v11942_v40, %v2674_v39  ;;  %1180 = vst [vmem:[#allocation2 + $0xc8] sm:$0x1] %v1179_v38  ;;  %v3088_v40 = vshll.u32 %v2742_v58, 16  ;;  %v3100_v53 = vrot.slane %v3098_v51, 4 }
 0x1cc   : > { %10111 = vmatmul.msk.bf16.gmra.mxu0 %vm1667_vm13, %v3178_v45  ;;  %v3726_v16 = vadd.f32 %v11912_v7, %v3328_v17  ;;  %v3558_v7 = vunpack.c.l.b16 %v3512_v4  ;;  %v3559_v45 = vunpack.c.l.b16 %v3515_v44  ;;  %v3090_v32 = vrot.slane %v3088_v40, 5 }
 0x1cd   : > { %v3947_v26 = vpop.f32.mrf.mxu2  ;;  %v12016_v39 = vpop.f32.mrf.mxu1  ;;  %v3518_v44 = vrot.slane %v11996_v37, 5 }
 0x1ce   : > { %v12013_v55 = vadd.f32 %v11954_v33, %v3726_v16  ;;  %v3577_v30 = vpack.c.b16 %v3559_v45, %v3558_v7  ;;  %v3083_v33 = vsel %vm11024_vm2, %v3078_v63, %v3082_v11  ;;  %v3091_v63 = vor.u32 %v3090_v32, %v3087_v13  ;;  %v2746_v13 = vld [vmem:[#allocation2 + $0xc4] sm:$0xf] }
 0x1cf   : > { %v2605_v2 = vpop.f32.mrf.mxu3  ;;  %v3161_v3 = vunpack.c.l.b16 %v3083_v33 }
 0x1d0   : > { %v2675_v49 = vadd.f32 %v2605_v2, %v11600_v27  ;;  %10145 = vmatmul.msk.bf16.gmra.mxu1 %vm1667_vm13, %v3577_v30  ;;  %v3092_v7 = vrot.slane %v3091_v63, 4  ;;  %v3368_v2 = vld [vmem:[#allocation2 + $0xb4] sm:$0xe]  ;;  %v3521_v30 = vrot.slane %v2744_v43, 5 }
 0x1d1   : > { %v3264_v58 = vpop.f32.mrf.mxu0 }
 0x1d2   : > { %v3329_v17 = vadd.f32 %v11974_v1, %v2675_v49  ;;  %v3101_v1 = vor.u32 %v3100_v53, %v3096_v34  ;;  %v10129_v49 = vrot.slane %v3368_v2, 9 }
 0x1d4   : > { %v3727_v27 = vadd.f32 %v11933_v59, %v3329_v17  ;;  %10094 = vmatmul.msk.bf16.gmra.mxu3 %vm1667_vm13, %v10719_v24  ;;  %v3179_v59 = vpack.c.b16 %v3161_v3, %v3160_v50  ;;  %v3102_v45 = vrot.slane %v3101_v1, 4  ;;  %v3520_v24 = vrot.slane %v3518_v44, 4  ;;  %v10720_v1 = vld [vmem:[#allocation2 + $0xa8] sm:$0xff] }
 0x1d5   : > { %v12028_v38 = vpop.f32.mrf.mxu2  ;;  %v12033_v40 = vpop.f32.mrf.mxu1  ;;  %v3519_v17 = vsel %vm10970_vm12, %v10129_v49, %v3518_v44  ;;  %v3097_v50 = vsel %vm11024_vm2, %v3092_v7, %v3096_v34  ;;  %v397_v7 = vld [vmem:[#allocation2 + $0xcc] sm:$0x1] }
 0x1d6   : > { %v12031_v16 = vadd.f32 %v11984_v19, %v3727_v27  ;;  %v3106_v19 = vrot.slane %v3104_v18, 5  ;;  %v3560_v32 = vunpack.c.l.b16 %v3519_v17  ;;  %v3122_v18 = vshrl.u32 %v2746_v13, 16 }
 0x1d7   : > { %v2608_v11 = vpop.f32.mrf.mxu3  ;;  %v3162_v44 = vunpack.c.l.b16 %v3097_v50  ;;  %v398_v49 = vsel %vm10943_vm6, 0, %v397_v7  ;;  %v3525_v50 = vrot.slane %v2746_v13, 5  ;;  %vm6145_vm6 = vcmask 64512  }
 0x1d8   : > { %v2676_v54 = vadd.f32 %v2608_v11, %v11624_v61  ;;  %v2745_v61 = vld [vmem:[#allocation2 + $0xc0] sm:$0xf]  ;;  %v3118_v11 = vshll.u32 %v2746_v13, 16  ;;  %399 = vst [vmem:[#allocation2 + $0xcc] sm:$0x1] %v398_v49 }
 0x1d9   : > { %v3267_v4 = vpop.f32.mrf.mxu0  ;;  %v3109_v3 = vshrl.u32 %v2745_v61, 16  ;;  %v3112_v43 = vshll.u32 %v2745_v61, 16 }
 0x1da   : > { %10226 = vmatmul.msk.bf16.gmra.mxu2 %vm1667_vm13, %v10736_v12  ;;  %v3330_v51 = vadd.f32 %v3262_v31, %v2676_v54  ;;  %v3522_v31 = vsel %vm10970_vm12, %v3520_v24, %v3521_v30  ;;  %v2747_v24 = vld [vmem:[#allocation2 + $0xc8] sm:$0x1]  ;;  %v10737_v30 = vld [vmem:[#allocation2 + $0xc0] sm:$0xff] }
 0x1db   : > { %v3561_v53 = vunpack.c.l.b16 %v3522_v31  ;;  %v3114_v2 = vrot.slane %v3112_v43, 5  ;;  %v3527_v43 = vrot.slane %v3525_v50, 4 }
 0x1dc   : > { %10112 = vmatmul.msk.bf16.gmra.mxu0 %vm1667_vm13, %v3179_v59  ;;  %v3728_v36 = vadd.f32 %v11972_v60, %v3330_v51  ;;  %v3107_v60 = vsel %vm11024_vm2, %v3102_v45, %v3106_v19  ;;  %v3111_v51 = vrot.slane %v3109_v3, 4  ;;  %v3120_v19 = vrot.slane %v3118_v11, 5  ;;  %v3369_v3 = vld [vmem:[#allocation2 + $0xc0] sm:$0xe] }
 0x1dd   : > { %v3952_v33 = vpop.f32.mrf.mxu2  ;;  %v12050_v12 = vpop.f32.mrf.mxu1  ;;  %v3163_v34 = vunpack.c.l.b16 %v3107_v60  ;;  %v10130_v6 = vrot.slane %v3369_v3, 9 }
 0x1de   : > { %v12044_v37 = vadd.f32 %v3947_v26, %v3728_v36  ;;  %v3578_v26 = vpack.c.b16 %v3561_v53, %v3560_v32  ;;  %v3115_v31 = vor.u32 %v3114_v2, %v3111_v51  ;;  %v3128_v53 = vshll.u32 %v2747_v24, 16 }
 0x1df   : > { %v2610_v27 = vpop.f32.mrf.mxu3  ;;  %v3180_v36 = vpack.c.b16 %v3163_v34, %v3162_v44  ;;  %v3526_v44 = vsel %vm10970_vm12, %v10130_v6, %v3525_v50  ;;  %v4039_v50 = vld [vmem:[#allocation2 + $0x18] sm:$0xf]  ;;  %v4041_v6 = vld [vmem:[#allocation2 + $0x20] sm:$0x1] }
 0x1e0   : > { %v2677_v63 = vadd.f32 %v2610_v27, %v11638_v46  ;;  %10146 = vmatmul.msk.bf16.gmra.mxu1 %vm1667_vm13, %v3578_v26  ;;  %v3124_v46 = vrot.slane %v3122_v18, 4  ;;  %v3116_v11 = vrot.slane %v3115_v31, 4  ;;  %v3130_v26 = vrot.slane %v3128_v53, 5  ;;  %v4040_v53 = vld [vmem:[#allocation2 + $0x1c] sm:$0xf] }
 0x1e1   : > { %v3269_v54 = vpop.f32.mrf.mxu0 }
 0x1e2   : > { %v12053_v59 = vadd.f32 %v3264_v58, %v2677_v63  ;;  %v3125_v32 = vor.u32 %v3124_v46, %v3120_v19  ;;  %v3528_v63 = vrot.slane %v2747_v24, 5  ;;  %v15131_v46 = vld [vmem:[#allocation4_spill] sm:$0xff]  ;;  %v3121_v24 = vsel %vm11024_vm2, %v3116_v11, %v3120_v19 }
 0x1e4   : > { %10095 = vmatmul.msk.bf16.gmra.mxu3 %vm1667_vm13, %v10720_v1  ;;  %v3126_v18 = vrot.slane %v3125_v32, 4  ;;  %v3529_v34 = vsel %vm10970_vm12, %v3527_v43, %v3528_v63  ;;  %v4759_v43 = vrot.slane %v4040_v53, 5 }
 0x1e5   : > { %v12057_v45 = vpop.f32.mrf.mxu2  ;;  %v12061_v61 = vpop.f32.mrf.mxu1  ;;  %v3563_v51 = vunpack.c.l.b16 %v3529_v34  ;;  %v4101_v34 = vshrl.u32 %v4040_v53, 16 }
 0x1e7   : > { %v2613_v58 = vpop.f32.mrf.mxu3 }
 0x1e8   : > { %v2678_v17 = vadd.f32 %v2613_v58, %v11646_v8 }
 0x1e9   : > { %v3272_v27 = vpop.f32.mrf.mxu0 }
 0x1ea   : > { %10227 = vmatmul.msk.bf16.gmra.mxu2 %vm1667_vm13, %v10737_v30  ;;  %v3332_v60 = vadd.f32 %v3267_v4, %v2678_v17  ;;  %v3562_v4 = vunpack.c.l.b16 %v3526_v44  ;;  %v3131_v30 = vsel %vm11024_vm2, %v3126_v18, %v3130_v26  ;;  %v4693_v18 = vld [vmem:[#allocation2 + $0x18] sm:$0xe]  ;;  %v4091_v26 = vshll.u32 %v4039_v50, 16 }
 0x1eb   : > { %v3165_v31 = vunpack.c.l.b16 %v3131_v30  ;;  %v4097_v44 = vshll.u32 %v4040_v53, 16 }
 0x1ec   : > { %10113 = vmatmul.msk.bf16.gmra.mxu0 %vm1667_vm13, %v3180_v36  ;;  %v3730_v1 = vadd.f32 %v12016_v39, %v3332_v60  ;;  %v10721_v39 = vld [vmem:[#allocation2 + $0xb4] sm:$0xff]  ;;  %v3579_v58 = vpack.c.b16 %v3563_v51, %v3562_v4  ;;  %v10738_v60 = vld [vmem:[#allocation2 + $0xcc] sm:$0xff] }
 0x1ed   : > { %v3957_v8 = vpop.f32.mrf.mxu2  ;;  %v12073_v2 = vpop.f32.mrf.mxu1 }
 0x1ee   : > { %v12071_v13 = vadd.f32 %v3952_v33, %v3730_v1  ;;  %v3164_v33 = vunpack.c.l.b16 %v3121_v24  ;;  %v4088_v1 = vshrl.u32 %v4039_v50, 16 }
 0x1ef   : > { %v2615_v7 = vpop.f32.mrf.mxu3 }
 0x1f0   : > { %15130 = vst [vmem:[#allocation14_spill] sm:$0xff] %v12071_v13  ;;  %v2679_v49 = vadd.f32 %v2615_v7, %v15131_v46  ;;  %10147 = vmatmul.msk.bf16.gmra.mxu1 %vm1667_vm13, %v3579_v58  ;;  %v3181_v19 = vpack.c.b16 %v3165_v31, %v3164_v33  ;;  %v10246_v7 = vrot.slane %v4693_v18, 9  ;;  %v4761_v46 = vrot.slane %v4759_v43, 4 }
 0x1f1   : > { %v3274_v36 = vpop.f32.mrf.mxu0  ;;  %v4093_v58 = vrot.slane %v4091_v26, 5  ;;  %v4099_v33 = vrot.slane %v4097_v44, 5  ;;  %v4103_v31 = vrot.slane %v4101_v34, 4  ;;  %v4107_v18 = vshll.u32 %v4041_v6, 16 }
 0x1f2   : > { %v12080_v17 = vadd.f32 %v3269_v54, %v2679_v49  ;;  %v15134_v54 = vld [vmem:[#allocation5_spill] sm:$0xff]  ;;  %v4762_v49 = vrot.slane %v4041_v6, 5  ;;  %v4760_v53 = vsel %vm10970_vm12, %v10246_v7, %v4759_v43 }
 0x1f3   : > { %v4109_v7 = vrot.slane %v4107_v18, 5 }
 0x1f4   : > { %10096 = vmatmul.msk.bf16.gmra.mxu3 %vm1667_vm13, %v10721_v39  ;;  %v4090_v39 = vrot.slane %v4088_v1, 4  ;;  %v15136_v1 = vld [vmem:[#allocation6_spill] sm:$0xff] }
 0x1f5   : > { %v12084_v32 = vpop.f32.mrf.mxu2  ;;  %v12086_v63 = vpop.f32.mrf.mxu1 }
 0x1f6   : > { %15132 = vst [vmem:[#allocation4_spill] sm:$0xff] %v12084_v32 }
 0x1f7   : > { %v2618_v3 = vpop.f32.mrf.mxu3  ;;  %15133 = vst [vmem:[#allocation15_spill] sm:$0xff] %v12086_v63 }
 0x1f8   : > { %v2680_v11 = vadd.f32 %v2618_v3, %v15134_v54 }
 0x1f9   : > { %v3277_v4 = vpop.f32.mrf.mxu0 }
 0x1fa   : > { %10228 = vmatmul.msk.bf16.gmra.mxu2 %vm1667_vm13, %v10738_v60  ;;  %v3334_v51 = vadd.f32 %v3272_v27, %v2680_v11  ;;  %v4763_v27 = vsel %vm10970_vm12, %v4761_v46, %v4762_v49  ;;  %v4094_v11 = vor.u32 %v4093_v58, %v4090_v39  ;;  %v4043_v46 = vld [vmem:[#allocation2 + $0x28] sm:$0xf]  ;;  %v4042_v49 = vld [vmem:[#allocation2 + $0x24] sm:$0xf] }
 0x1fb   : > { %v4872_v34 = vunpack.c.l.b16 %v4763_v27  ;;  %v15139_v39 = vld [vmem:[#allocation7_spill] sm:$0xff]  ;;  %v4125_v18 = vshrl.u32 %v4043_v46, 16 }
 0x1fc   : > { %10114 = vmatmul.msk.bf16.gmra.mxu0 %vm1667_vm13, %v3181_v19  ;;  %v3732_v24 = vadd.f32 %v12050_v12, %v3334_v51  ;;  %v10722_v19 = vld [vmem:[#allocation2 + $0xc0] sm:$0xff]  ;;  %v4104_v12 = vor.u32 %v4103_v31, %v4099_v33  ;;  %v4095_v51 = vrot.slane %v4094_v11, 4  ;;  %v4115_v11 = vshll.u32 %v4042_v49, 16 }
 0x1fd   : > { %v3962_v30 = vpop.f32.mrf.mxu2  ;;  %v12098_v60 = vpop.f32.mrf.mxu1  ;;  %v4694_v31 = vld [vmem:[#allocation2 + $0x24] sm:$0xe]  ;;  %v4127_v32 = vrot.slane %v4125_v18, 4  ;;  %v4045_v18 = vld [vmem:[#allocation2 + $0x30] sm:$0xf] }
 0x1fe   : > { %v12092_v3 = vadd.f32 %v3957_v8, %v3732_v24  ;;  %v4871_v8 = vunpack.c.l.b16 %v4760_v53  ;;  %v4105_v43 = vrot.slane %v4104_v12, 4  ;;  %v4766_v53 = vrot.slane %v4043_v46, 5 }
 0x1ff   : > { %v2620_v50 = vpop.f32.mrf.mxu3  ;;  %v4121_v12 = vshll.u32 %v4043_v46, 16 }
 0x200   : > { %15135 = vst [vmem:[#allocation5_spill] sm:$0xff] %v12092_v3  ;;  %v2681_v54 = vadd.f32 %v2620_v50, %v15136_v1  ;;  %v4903_v50 = vpack.c.b16 %v4872_v34, %v4871_v8  ;;  %v4110_v58 = vsel %vm11024_vm2, %v4105_v43, %v4109_v7  ;;  %v10247_v34 = vrot.slane %v4694_v31, 9 }
 0x201   : > { %v3279_v26 = vpop.f32.mrf.mxu0  ;;  %v4117_v7 = vrot.slane %v4115_v11, 5  ;;  %v4123_v3 = vrot.slane %v4121_v12, 5 }
 0x202   : > { %v12101_v44 = vadd.f32 %v3274_v36, %v2681_v54  ;;  %v4100_v36 = vsel %vm11024_vm2, %v4095_v51, %v4099_v33  ;;  %v4044_v54 = vld [vmem:[#allocation2 + $0x2c] sm:$0x1]  ;;  %v4768_v33 = vrot.slane %v4766_v53, 4 }
 0x203   : > { %v4473_v8 = vunpack.c.l.b16 %v4100_v36  ;;  %v4769_v51 = vrot.slane %v4044_v54, 5  ;;  %v4128_v36 = vor.u32 %v4127_v32, %v4123_v3  ;;  %v4695_v32 = vld [vmem:[#allocation2 + $0x30] sm:$0xe] }
 0x204   : > { %10097 = vmatmul.msk.bf16.gmra.mxu3 %vm1667_vm13, %v10722_v19  ;;  %v4112_v19 = vshrl.u32 %v4042_v49, 16 }
 0x205   : > { %v12104_v24 = vpop.f32.mrf.mxu2  ;;  %v12106_v1 = vpop.f32.mrf.mxu1 }
 0x206   : > { %15137 = vst [vmem:[#allocation6_spill] sm:$0xff] %v12104_v24  ;;  %v4114_v43 = vrot.slane %v4112_v19, 4 }
 0x207   : > { %v2623_v63 = vpop.f32.mrf.mxu3  ;;  %15138 = vst [vmem:[#allocation16_spill] sm:$0xff] %v12106_v1 }
 0x208   : > { %v2682_v6 = vadd.f32 %v2623_v63, %v15139_v39  ;;  %v4474_v39 = vunpack.c.l.b16 %v4110_v58  ;;  %v4131_v58 = vshll.u32 %v4044_v54, 16  ;;  %v4136_v54 = vshrl.u32 %v4045_v18, 16 }
 0x209   : > { %v3282_v27 = vpop.f32.mrf.mxu0 }
 0x20a   : > { %v3336_v24 = vadd.f32 %v3277_v4, %v2682_v6  ;;  %v4505_v4 = vpack.c.b16 %v4474_v39, %v4473_v8  ;;  %v4767_v6 = vsel %vm10970_vm12, %v10247_v34, %v4766_v53  ;;  %v4129_v8 = vrot.slane %v4128_v36, 4 }
 0x20b   : > { %v4873_v11 = vunpack.c.l.b16 %v4767_v6  ;;  %v4133_v34 = vrot.slane %v4131_v58, 5 }
 0x20c   : > { %10263 = vmatmul.msk.bf16.vlgmr.msra.gmra.mxu0 %vm1667_vm13, %v4903_v50  ;;  %v3734_v63 = vadd.f32 %v12073_v2, %v3336_v24  ;;  %v4770_v2 = vsel %vm10970_vm12, %v4768_v33, %v4769_v51  ;;  %v4118_v24 = vor.u32 %v4117_v7, %v4114_v43  ;;  %v4139_v51 = vshll.u32 %v4045_v18, 16 }
 0x20d   : > { %v3967_v1 = vpop.f32.mrf.mxu2  ;;  %v12122_v31 = vpop.f32.mrf.mxu1  ;;  %v4134_v6 = vsel %vm11024_vm2, %v4129_v8, %v4133_v34 }
 0x20e   : > { %v12115_v13 = vadd.f32 %v3962_v30, %v3734_v63  ;;  %v4046_v30 = vld [vmem:[#allocation2 + $0x34] sm:$0xf]  ;;  %v4119_v53 = vrot.slane %v4118_v24, 4  ;;  %v4047_v63 = vld [vmem:[#allocation2 + $0x38] sm:$0x1]  ;;  %v10248_v24 = vrot.slane %v4695_v32, 9 }
 0x20f   : > { %v2625_v49 = vpop.f32.mrf.mxu3  ;;  %v4773_v39 = vrot.slane %v4046_v30, 5  ;;  %v4145_v43 = vshll.u32 %v4046_v30, 16  ;;  %v4776_v58 = vrot.slane %v4047_v63, 5  ;;  %v4141_v18 = vrot.slane %v4139_v51, 5 }
 0x210   : > { %15140 = vst [vmem:[#allocation7_spill] sm:$0xff] %v12115_v13  ;;  %v2683_v46 = vadd.f32 %v2625_v49, %v11708_v25  ;;  %v4874_v25 = vunpack.c.l.b16 %v4770_v2  ;;  %v4138_v13 = vrot.slane %v4136_v54, 4  ;;  %v4155_v54 = vshll.u32 %v4047_v63, 16 }
 0x211   : > { %v3284_v50 = vpop.f32.mrf.mxu0  ;;  %v4775_v36 = vrot.slane %v4773_v39, 4 }
 0x212   : > { %v12124_v19 = vadd.f32 %v3279_v26, %v2683_v46  ;;  %v4149_v26 = vshrl.u32 %v4046_v30, 16  ;;  %v4904_v49 = vpack.c.b16 %v4874_v25, %v4873_v11  ;;  %v4476_v25 = vunpack.c.l.b16 %v4134_v6 }
 0x213   : > { %v4777_v34 = vsel %vm10970_vm12, %v4775_v36, %v4776_v58  ;;  %v4157_v6 = vrot.slane %v4155_v54, 5  ;;  %v4050_v58 = vld [vmem:[#allocation2 + $0x44] sm:$0x1] }
 0x214   : > { %15141 = vst [vmem:[#allocation17_spill] sm:$0xff] %v12124_v19  ;;  %10230 = vmatmul.msk.bf16.vlgmr.msra.gmra.mxu3 %vm1667_vm13, %v4505_v4  ;;  %v4124_v4 = vsel %vm11024_vm2, %v4119_v53, %v4123_v3  ;;  %v4147_v19 = vrot.slane %v4145_v43, 5  ;;  %v4151_v30 = vrot.slane %v4149_v26, 4 }
 0x215   : > { %v12127_v12 = vpop.f32.mrf.mxu2  ;;  %v4475_v11 = vunpack.c.l.b16 %v4124_v4 }
 0x216   : > { %15142 = vst [vmem:[#allocation18_spill] sm:$0xff] %v12127_v12  ;;  %v12134_v12 = vpop.f32.mrf.mxu1  ;;  %v4152_v32 = vor.u32 %v4151_v30, %v4147_v19 }
 0x217   : > { %v2628_v33 = vpop.f32.mrf.mxu3  ;;  %v4506_v43 = vpack.c.b16 %v4476_v25, %v4475_v11  ;;  %v4696_v11 = vld [vmem:[#allocation2 + $0x3c] sm:$0xe] }
 0x218   : > { %v2684_v7 = vadd.f32 %v2628_v33, %v11716_v57  ;;  %v4142_v33 = vor.u32 %v4141_v18, %v4138_v13  ;;  %v4153_v4 = vrot.slane %v4152_v32, 4 }
 0x219   : > { %v3287_v46 = vpop.f32.mrf.mxu0 }
 0x21a   : > { %v3338_v2 = vadd.f32 %v3282_v27, %v2684_v7  ;;  %v4774_v27 = vsel %vm10970_vm12, %v10248_v24, %v4773_v39  ;;  %v4048_v24 = vld [vmem:[#allocation2 + $0x3c] sm:$0xf] }
 0x21b   : > { %v4875_v7 = vunpack.c.l.b16 %v4774_v27  ;;  %v4160_v30 = vshrl.u32 %v4048_v24, 16  ;;  %v4163_v25 = vshll.u32 %v4048_v24, 16 }
 0x21c   : > { %10264 = vmatmul.msk.bf16.gmra.mxu0 %vm1667_vm13, %v4904_v49  ;;  %v3736_v57 = vadd.f32 %v12098_v60, %v3338_v2  ;;  %v4876_v49 = vunpack.c.l.b16 %v4777_v34  ;;  %v4049_v2 = vld [vmem:[#allocation2 + $0x40] sm:$0xf] }
 0x21d   : > { %v3972_v3 = vpop.f32.mrf.mxu2  ;;  %v4780_v18 = vrot.slane %v4049_v2, 5  ;;  %v4169_v27 = vshll.u32 %v4049_v2, 16 }
 0x21e   : > { %v12138_v53 = vadd.f32 %v3967_v1, %v3736_v57  ;;  %v4143_v1 = vrot.slane %v4142_v33, 4  ;;  %v12150_v13 = vpop.f32.mrf.mxu1  ;;  %v4905_v63 = vpack.c.b16 %v4876_v49, %v4875_v7  ;;  %v4783_v7 = vrot.slane %v4050_v58, 5 }
 0x21f   : > { %v2630_v8 = vpop.f32.mrf.mxu3 }
 0x220   : > { %v2685_v51 = vadd.f32 %v2630_v8, %v11731_v47  ;;  %v4148_v47 = vsel %vm11024_vm2, %v4143_v1, %v4147_v19  ;;  %v4173_v8 = vshrl.u32 %v4049_v2, 16  ;;  %v4162_v19 = vrot.slane %v4160_v30, 4 }
 0x221   : > { %v3289_v26 = vpop.f32.mrf.mxu0  ;;  %v4477_v32 = vunpack.c.l.b16 %v4148_v47 }
 0x222   : > { %v12145_v60 = vadd.f32 %v3284_v50, %v2685_v51  ;;  %v4158_v50 = vsel %vm11024_vm2, %v4153_v4, %v4157_v6  ;;  %v10249_v51 = vrot.slane %v4696_v11, 9  ;;  %v4165_v4 = vrot.slane %v4163_v25, 5 }
 0x223   : > { %v4478_v54 = vunpack.c.l.b16 %v4158_v50  ;;  %v4171_v6 = vrot.slane %v4169_v27, 5 }
 0x224   : > { %10231 = vmatmul.msk.bf16.gmra.mxu3 %vm1667_vm13, %v4506_v43  ;;  %v4782_v43 = vrot.slane %v4780_v18, 4  ;;  %v4166_v30 = vor.u32 %v4165_v4, %v4162_v19  ;;  %v4053_v19 = vld [vmem:[#allocation2 + $0x50] sm:$0x1] }
 0x225   : > { %v12148_v39 = vpop.f32.mrf.mxu2  ;;  %v4507_v2 = vpack.c.b16 %v4478_v54, %v4477_v32  ;;  %v4052_v54 = vld [vmem:[#allocation2 + $0x4c] sm:$0xf] }
 0x226   : > { %15143 = vst [vmem:[#allocation19_spill] sm:$0xff] %v12148_v39  ;;  %v4784_v47 = vsel %vm10970_vm12, %v4782_v43, %v4783_v7  ;;  %v12165_v50 = vpop.f32.mrf.mxu1  ;;  %v4069_v39 = vld [vmem:[#allocation2 + $0x90] sm:$0xf] }
 0x227   : > { %v2633_v36 = vpop.f32.mrf.mxu3  ;;  %15145 = vst [vmem:[#allocation21_spill] sm:$0xff] %v12165_v50  ;;  %v4878_v27 = vunpack.c.l.b16 %v4784_v47  ;;  %v4193_v47 = vshll.u32 %v4052_v54, 16 }
 0x228   : > { %v2686_v57 = vadd.f32 %v2633_v36, %v11743_v5  ;;  %v4175_v5 = vrot.slane %v4173_v8, 4  ;;  %v4167_v8 = vrot.slane %v4166_v30, 4 }
 0x229   : > { %v3292_v34 = vpop.f32.mrf.mxu0 }
 0x22a   : > { %v3340_v33 = vadd.f32 %v3287_v46, %v2686_v57  ;;  %v4781_v46 = vsel %vm10970_vm12, %v10249_v51, %v4780_v18  ;;  %v4179_v57 = vshll.u32 %v4050_v58, 16  ;;  %v4051_v51 = vld [vmem:[#allocation2 + $0x48] sm:$0xf]  ;;  %v4172_v58 = vsel %vm11024_vm2, %v4167_v8, %v4171_v6 }
 0x22c   : > { %10265 = vmatmul.msk.bf16.gmra.mxu0 %vm1667_vm13, %v4905_v63  ;;  %v3738_v49 = vadd.f32 %v12122_v31, %v3340_v33  ;;  %v4176_v31 = vor.u32 %v4175_v5, %v4171_v6  ;;  %v4181_v18 = vrot.slane %v4179_v57, 5  ;;  %v4697_v5 = vld [vmem:[#allocation2 + $0x48] sm:$0xe] }
 0x22d   : > { %v3977_v1 = vpop.f32.mrf.mxu2  ;;  %v10250_v6 = vrot.slane %v4697_v5, 9  ;;  %v4203_v5 = vshll.u32 %v4053_v19, 16 }
 0x22e   : > { %v12159_v36 = vadd.f32 %v3972_v3, %v3738_v49  ;;  %v4877_v3 = vunpack.c.l.b16 %v4781_v46  ;;  %v4177_v33 = vrot.slane %v4176_v31, 4  ;;  %v4787_v49 = vrot.slane %v4052_v54, 5 }
 0x22f   : > { %v2635_v24 = vpop.f32.mrf.mxu3  ;;  %v4187_v46 = vshll.u32 %v4051_v51, 16  ;;  %v4479_v31 = vunpack.c.l.b16 %v4172_v58 }
 0x230   : > { %15144 = vst [vmem:[#allocation20_spill] sm:$0xff] %v12159_v36  ;;  %v2687_v63 = vadd.f32 %v2635_v24, %v11759_v15  ;;  %v4906_v7 = vpack.c.b16 %v4878_v27, %v4877_v3  ;;  %v3695_v24 = vpop.f32.mrf.mxu1  ;;  %v4789_v3 = vrot.slane %v4787_v49, 4  ;;  %v4790_v27 = vrot.slane %v4053_v19, 5 }
 0x231   : > { %v3294_v11 = vpop.f32.mrf.mxu0 }
 0x232   : > { %v12168_v25 = vadd.f32 %v3289_v26, %v2687_v63  ;;  %v4182_v26 = vsel %vm11024_vm2, %v4177_v33, %v4181_v18  ;;  %v4197_v63 = vshrl.u32 %v4052_v54, 16  ;;  %v4189_v18 = vrot.slane %v4187_v46, 5 }
 0x233   : > { %v4480_v57 = vunpack.c.l.b16 %v4182_v26 }
 0x234   : > { %10232 = vmatmul.msk.bf16.gmra.mxu3 %vm1667_vm13, %v4507_v2  ;;  %v4184_v2 = vshrl.u32 %v4051_v51, 16 }
 0x235   : > { %v12171_v32 = vpop.f32.mrf.mxu2 }
 0x236   : > { %15146 = vst [vmem:[#allocation22_spill] sm:$0xff] %v12171_v32  ;;  %v4186_v33 = vrot.slane %v4184_v2, 4  ;;  %v4199_v32 = vrot.slane %v4197_v63, 4  ;;  %v4054_v63 = vld [vmem:[#allocation2 + $0x54] sm:$0xf] }
 0x237   : > { %v2638_v43 = vpop.f32.mrf.mxu3  ;;  %v4208_v19 = vshrl.u32 %v4054_v63, 16 }
 0x238   : > { %v2688_v15 = vadd.f32 %v2638_v43, %v11768_v48  ;;  %v4195_v43 = vrot.slane %v4193_v47, 5  ;;  %v4190_v58 = vor.u32 %v4189_v18, %v4186_v33  ;;  %v12189_v46 = vpop.f32.mrf.mxu1 }
 0x239   : > { %v3297_v4 = vpop.f32.mrf.mxu0  ;;  %15149 = vst [vmem:[#allocation25_spill] sm:$0xff] %v12189_v46 }
 0x23a   : > { %v3342_v30 = vadd.f32 %v3292_v34, %v2688_v15  ;;  %v4508_v34 = vpack.c.b16 %v4480_v57, %v4479_v31  ;;  %v4788_v15 = vsel %vm10970_vm12, %v10250_v6, %v4787_v49  ;;  %v4200_v26 = vor.u32 %v4199_v32, %v4195_v43  ;;  %v4698_v32 = vld [vmem:[#allocation2 + $0x54] sm:$0xe] }
 0x23b   : > { %v4879_v47 = vunpack.c.l.b16 %v4788_v15  ;;  %v4205_v49 = vrot.slane %v4203_v5, 5 }
 0x23c   : > { %10266 = vmatmul.msk.bf16.gmra.mxu0 %vm1667_vm13, %v4906_v7  ;;  %v3740_v48 = vadd.f32 %v12150_v13, %v3342_v30  ;;  %v4791_v13 = vsel %vm10970_vm12, %v4789_v3, %v4790_v27  ;;  %v4191_v30 = vrot.slane %v4190_v58, 4  ;;  %v4201_v31 = vrot.slane %v4200_v26, 4 }
 0x23d   : > { %v3982_v8 = vpop.f32.mrf.mxu2  ;;  %v10251_v58 = vrot.slane %v4698_v32, 9 }
 0x23e   : > { %v12180_v50 = vadd.f32 %v3977_v1, %v3740_v48  ;;  %v4055_v1 = vld [vmem:[#allocation2 + $0x58] sm:$0xf]  ;;  %v4056_v48 = vld [vmem:[#allocation2 + $0x5c] sm:$0x1]  ;;  %v4206_v15 = vsel %vm11024_vm2, %v4201_v31, %v4205_v49 }
 0x23f   : > { %v2640_v51 = vpop.f32.mrf.mxu3  ;;  %v4794_v6 = vrot.slane %v4055_v1, 5  ;;  %v4217_v27 = vshll.u32 %v4055_v1, 16  ;;  %v4221_v33 = vshrl.u32 %v4055_v1, 16  ;;  %v4797_v5 = vrot.slane %v4056_v48, 5 }
 0x240   : > { %15147 = vst [vmem:[#allocation23_spill] sm:$0xff] %v12180_v50  ;;  %v2689_v54 = vadd.f32 %v2640_v51, %v11784_v14  ;;  %v4880_v14 = vunpack.c.l.b16 %v4791_v13 }
 0x241   : > { %v3299_v7 = vpop.f32.mrf.mxu0  ;;  %v4796_v26 = vrot.slane %v4794_v6, 4  ;;  %v4219_v50 = vrot.slane %v4217_v27, 5 }
 0x242   : > { %v12187_v2 = vadd.f32 %v3294_v11, %v2689_v54  ;;  %v4211_v11 = vshll.u32 %v4054_v63, 16  ;;  %v4907_v51 = vpack.c.b16 %v4880_v14, %v4879_v47  ;;  %v4223_v63 = vrot.slane %v4221_v33, 4  ;;  %v3700_v14 = vpop.f32.mrf.mxu1 }
 0x243   : > { %v4482_v47 = vunpack.c.l.b16 %v4206_v15 }
 0x244   : > { %15148 = vst [vmem:[#allocation24_spill] sm:$0xff] %v12187_v2  ;;  %10233 = vmatmul.msk.bf16.gmra.mxu3 %vm1667_vm13, %v4508_v34  ;;  %v4196_v34 = vsel %vm11024_vm2, %v4191_v30, %v4195_v43  ;;  %v4213_v46 = vrot.slane %v4211_v11, 5  ;;  %v4795_v43 = vsel %vm10970_vm12, %v10251_v58, %v4794_v6  ;;  %v4224_v32 = vor.u32 %v4223_v63, %v4219_v50  ;;  %v4058_v6 = vld [vmem:[#allocation2 + $0x64] sm:$0xf]  ;;  %v15154_v63 = vld [vmem:[#allocation8_spill] sm:$0xff] }
 0x245   : > { %v12192_v57 = vpop.f32.mrf.mxu2 }
 0x246   : > { %15150 = vst [vmem:[#allocation26_spill] sm:$0xff] %v12192_v57  ;;  %v4210_v57 = vrot.slane %v4208_v19, 4  ;;  %v4227_v19 = vshll.u32 %v4056_v48, 16  ;;  %v4801_v48 = vrot.slane %v4058_v6, 5 }
 0x247   : > { %v2643_v3 = vpop.f32.mrf.mxu3 }
 0x248   : > { %v2690_v18 = vadd.f32 %v2643_v3, %v11792_v56  ;;  %v4481_v56 = vunpack.c.l.b16 %v4196_v34  ;;  %v4214_v49 = vor.u32 %v4213_v46, %v4210_v57  ;;  %v4225_v34 = vrot.slane %v4224_v32, 4  ;;  %v4059_v57 = vld [vmem:[#allocation2 + $0x68] sm:$0x1] }
 0x249   : > { %v3302_v54 = vpop.f32.mrf.mxu0  ;;  %v4229_v15 = vrot.slane %v4227_v19, 5 }
 0x24a   : > { %v3344_v13 = vadd.f32 %v3297_v4, %v2690_v18  ;;  %v4798_v4 = vsel %vm10970_vm12, %v4796_v26, %v4797_v5  ;;  %v4509_v27 = vpack.c.b16 %v4482_v47, %v4481_v56  ;;  %v4881_v18 = vunpack.c.l.b16 %v4795_v43  ;;  %v12210_v46 = vpop.f32.mrf.mxu1  ;;  %v4699_v56 = vld [vmem:[#allocation2 + $0x60] sm:$0xe] }
 0x24b   : > { %15153 = vst [vmem:[#allocation29_spill] sm:$0xff] %v12210_v46  ;;  %v4241_v43 = vshll.u32 %v4058_v6, 16 }
 0x24c   : > { %10267 = vmatmul.msk.bf16.gmra.mxu0 %vm1667_vm13, %v4907_v51  ;;  %v3742_v1 = vadd.f32 %v3695_v24, %v3344_v13  ;;  %v4215_v51 = vrot.slane %v4214_v49, 4  ;;  %v4057_v13 = vld [vmem:[#allocation2 + $0x60] sm:$0xf] }
 0x24d   : > { %v3987_v31 = vpop.f32.mrf.mxu2  ;;  %v4232_v5 = vshrl.u32 %v4057_v13, 16  ;;  %v4235_v47 = vshll.u32 %v4057_v13, 16 }
 0x24e   : > { %v12200_v3 = vadd.f32 %v3982_v8, %v3742_v1  ;;  %v4882_v8 = vunpack.c.l.b16 %v4798_v4 }
 0x24f   : > { %v2645_v30 = vpop.f32.mrf.mxu3 }
 0x250   : > { %15151 = vst [vmem:[#allocation27_spill] sm:$0xff] %v12200_v3  ;;  %v2691_v11 = vadd.f32 %v2645_v30, %v11809_v52  ;;  %v4908_v58 = vpack.c.b16 %v4882_v8, %v4881_v18  ;;  %v4220_v52 = vsel %vm11024_vm2, %v4215_v51, %v4219_v50  ;;  %v4245_v30 = vshrl.u32 %v4058_v6, 16 }
 0x251   : > { %v3304_v24 = vpop.f32.mrf.mxu0  ;;  %v4483_v19 = vunpack.c.l.b16 %v4220_v52  ;;  %v4803_v50 = vrot.slane %v4801_v48, 4  ;;  %v4804_v18 = vrot.slane %v4059_v57, 5  ;;  %v4234_v8 = vrot.slane %v4232_v5, 4  ;;  %v15157_v52 = vld [vmem:[#allocation9_spill] sm:$0xff] }
 0x252   : > { %v12207_v33 = vadd.f32 %v3299_v7, %v2691_v11  ;;  %v4230_v7 = vsel %vm11024_vm2, %v4225_v34, %v4229_v15  ;;  %v4237_v34 = vrot.slane %v4235_v47, 5  ;;  %v4243_v15 = vrot.slane %v4241_v43, 5 }
 0x253   : > { %v4484_v11 = vunpack.c.l.b16 %v4230_v7 }
 0x254   : > { %15152 = vst [vmem:[#allocation28_spill] sm:$0xff] %v12207_v33  ;;  %10234 = vmatmul.msk.bf16.gmra.mxu3 %vm1667_vm13, %v4509_v27  ;;  %v10252_v27 = vrot.slane %v4699_v56, 9  ;;  %v4251_v56 = vshll.u32 %v4059_v57, 16 }
 0x255   : > { %v12217_v49 = vpop.f32.mrf.mxu2  ;;  %v4510_v6 = vpack.c.b16 %v4484_v11, %v4483_v19  ;;  %v4061_v11 = vld [vmem:[#allocation2 + $0x70] sm:$0xf] }
 0x256   : > { %15155 = vst [vmem:[#allocation8_spill] sm:$0xff] %v12217_v49  ;;  %v4802_v49 = vsel %vm10970_vm12, %v10252_v27, %v4801_v48  ;;  %v4253_v48 = vrot.slane %v4251_v56, 5  ;;  %v4060_v27 = vld [vmem:[#allocation2 + $0x6c] sm:$0xf] }
 0x257   : > { %v2648_v26 = vpop.f32.mrf.mxu3  ;;  %v4883_v43 = vunpack.c.l.b16 %v4802_v49  ;;  %v4062_v49 = vld [vmem:[#allocation2 + $0x74] sm:$0x1] }
 0x258   : > { %v2692_v1 = vadd.f32 %v2648_v26, %v15154_v63  ;;  %v4247_v26 = vrot.slane %v4245_v30, 4 }
 0x259   : > { %v3307_v4 = vpop.f32.mrf.mxu0 }
 0x25a   : > { %v3346_v32 = vadd.f32 %v3302_v54, %v2692_v1  ;;  %v4805_v54 = vsel %vm10970_vm12, %v4803_v50, %v4804_v18  ;;  %v4238_v1 = vor.u32 %v4237_v34, %v4234_v8  ;;  %v4248_v5 = vor.u32 %v4247_v26, %v4243_v15  ;;  %v4700_v26 = vld [vmem:[#allocation2 + $0x6c] sm:$0xe] }
 0x25c   : > { %10268 = vmatmul.msk.bf16.gmra.mxu0 %vm1667_vm13, %v4908_v58  ;;  %v3744_v51 = vadd.f32 %v3700_v14, %v3346_v32  ;;  %v3705_v14 = vpop.f32.mrf.mxu1  ;;  %v4239_v32 = vrot.slane %v4238_v1, 4  ;;  %v4249_v19 = vrot.slane %v4248_v5, 4 }
 0x25d   : > { %v3992_v30 = vpop.f32.mrf.mxu2 }
 0x25e   : > { %v12220_v63 = vadd.f32 %v3987_v31, %v3744_v51  ;;  %v4884_v31 = vunpack.c.l.b16 %v4805_v54  ;;  %v4244_v57 = vsel %vm11024_vm2, %v4239_v32, %v4243_v15  ;;  %v4808_v51 = vrot.slane %v4061_v11, 5 }
 0x25f   : > { %v2650_v13 = vpop.f32.mrf.mxu3  ;;  %v4265_v54 = vshll.u32 %v4061_v11, 16  ;;  %v4485_v5 = vunpack.c.l.b16 %v4244_v57  ;;  %v10253_v15 = vrot.slane %v4700_v26, 9 }
 0x260   : > { %15156 = vst [vmem:[#allocation30_spill] sm:$0xff] %v12220_v63  ;;  %v2693_v7 = vadd.f32 %v2650_v13, %v15157_v52  ;;  %v4909_v18 = vpack.c.b16 %v4884_v31, %v4883_v43  ;;  %v4256_v13 = vshrl.u32 %v4060_v27, 16  ;;  %v4269_v52 = vshrl.u32 %v4061_v11, 16 }
 0x261   : > { %v3309_v58 = vpop.f32.mrf.mxu0  ;;  %v4810_v43 = vrot.slane %v4808_v51, 4  ;;  %v4811_v31 = vrot.slane %v4062_v49, 5 }
 0x262   : > { %v12227_v47 = vadd.f32 %v3304_v24, %v2693_v7  ;;  %v4254_v24 = vsel %vm11024_vm2, %v4249_v19, %v4253_v48  ;;  %v4258_v19 = vrot.slane %v4256_v13, 4  ;;  %v4271_v63 = vrot.slane %v4269_v52, 4 }
 0x263   : > { %v4486_v56 = vunpack.c.l.b16 %v4254_v24  ;;  %v4812_v24 = vsel %vm10970_vm12, %v4810_v43, %v4811_v31  ;;  %v4701_v43 = vld [vmem:[#allocation2 + $0x78] sm:$0xe] }
 0x264   : > { %15158 = vst [vmem:[#allocation9_spill] sm:$0xff] %v12227_v47  ;;  %10235 = vmatmul.msk.bf16.gmra.mxu3 %vm1667_vm13, %v4510_v6  ;;  %v4259_v6 = vshll.u32 %v4060_v27, 16  ;;  %v12235_v1 = vpop.f32.mrf.mxu1 }
 0x265   : > { %15159 = vst [vmem:[#allocation31_spill] sm:$0xff] %v12235_v1  ;;  %v12238_v32 = vpop.f32.mrf.mxu2  ;;  %v4511_v57 = vpack.c.b16 %v4486_v56, %v4485_v5  ;;  %v4886_v5 = vunpack.c.l.b16 %v4812_v24  ;;  %v10254_v24 = vrot.slane %v4701_v43, 9 }
 0x266   : > { %15160 = vst [vmem:[#allocation32_spill] sm:$0xff] %v12238_v32  ;;  %v4261_v48 = vrot.slane %v4259_v6, 5  ;;  %v4275_v6 = vshll.u32 %v4062_v49, 16 }
 0x267   : > { %v2653_v50 = vpop.f32.mrf.mxu3 }
 0x268   : > { %v2694_v8 = vadd.f32 %v2653_v50, %v11763_v0  ;;  %v4267_v50 = vrot.slane %v4265_v54, 5  ;;  %v4262_v26 = vor.u32 %v4261_v48, %v4258_v19  ;;  %v4065_v19 = vld [vmem:[#allocation2 + $0x80] sm:$0x1] }
 0x269   : > { %v3312_v34 = vpop.f32.mrf.mxu0 }
 0x26a   : > { %v3348_v7 = vadd.f32 %v3307_v4, %v2694_v8  ;;  %v4063_v4 = vld [vmem:[#allocation2 + $0x78] sm:$0xf]  ;;  %v4272_v13 = vor.u32 %v4271_v63, %v4267_v50  ;;  %v4263_v56 = vrot.slane %v4262_v26, 4 }
 0x26b   : > { %v4280_v52 = vshrl.u32 %v4063_v4, 16 }
 0x26c   : > { %10269 = vmatmul.msk.bf16.gmra.mxu0 %vm1667_vm13, %v4909_v18  ;;  %v3746_v0 = vadd.f32 %v3705_v14, %v3348_v7  ;;  %v4809_v18 = vsel %vm10970_vm12, %v10253_v15, %v4808_v51  ;;  %v4283_v7 = vshll.u32 %v4063_v4, 16  ;;  %v3710_v51 = vpop.f32.mrf.mxu1  ;;  %v4273_v15 = vrot.slane %v4272_v13, 4  ;;  %v15163_v4 = vld [vmem:[#allocation10_spill] sm:$0xff] }
 0x26d   : > { %v4282_v31 = vrot.slane %v4280_v52, 4  ;;  %v15164_v13 = vmov 0 }
 0x26e   : > { %v12240_v27 = vadd.f32 %v3992_v30, %v3746_v0  ;;  %v4064_v30 = vld [vmem:[#allocation2 + $0x7c] sm:$0xf]  ;;  %v4285_v63 = vrot.slane %v4283_v7, 5  ;;  %v15165_v13 = vsel %vm12261_vm1, 4294967295, %v15164_v13 }
 0x26f   : > { %v2655_v11 = vpop.f32.mrf.mxu3  ;;  %v4289_v0 = vshll.u32 %v4064_v30, 16  ;;  %v4293_v32 = vshrl.u32 %v4064_v30, 16  ;;  %15166 = vst [vmem:[#allocation10_spill] sm:$0xff] %v15165_v13 }
 0x270   : > { %15161 = vst [vmem:[#allocation33_spill] sm:$0xff] %v12240_v27  ;;  %v2695_v8 = vadd.f32 %v2655_v11, %v11780_v9  ;;  %v4885_v9 = vunpack.c.l.b16 %v4809_v18  ;;  %v4277_v11 = vrot.slane %v4275_v6, 5  ;;  %v4815_v27 = vrot.slane %v4064_v30, 5 }
 0x271   : > { %v12245_v14 = vpop.f32.mrf.mxu0  ;;  %v4291_v48 = vrot.slane %v4289_v0, 5  ;;  %v4818_v30 = vrot.slane %v4065_v19, 5  ;;  %v4286_v52 = vor.u32 %v4285_v63, %v4282_v31 }
 0x272   : > { %v12249_v54 = vadd.f32 %v3309_v58, %v2695_v8  ;;  %v3997_v58 = vpop.f32.mrf.mxu2  ;;  %v4295_v8 = vrot.slane %v4293_v32, 4  ;;  %v4278_v18 = vsel %vm11024_vm2, %v4273_v15, %v4277_v11  ;;  %v4817_v26 = vrot.slane %v4815_v27, 4  ;;  %v470_v32 = vld [vmem:[#allocation3 + $0xc] sm:$0x1]  ;;  %v467_v11 = vld [vmem:[#allocation3] sm:$0x1] }
 0x273   : > { %v471_v7 = vsel %vm12261_vm1, 0, %v470_v32  ;;  %v4816_v15 = vsel %vm10970_vm12, %v10254_v24, %v4815_v27  ;;  %v468_v31 = vsel %vm12261_vm1, 0, %v467_v11  ;;  %v4067_v32 = vld [vmem:[#allocation2 + $0x88] sm:$0xf] }
 0x274   : > { %15162 = vst [vmem:[#allocation34_spill] sm:$0xff] %v12249_v54  ;;  %10236 = vmatmul.msk.bf16.gmra.mxu3 %vm1667_vm13, %v4511_v57  ;;  %v4910_v54 = vpack.c.b16 %v4886_v5, %v4885_v9  ;;  %v4268_v57 = vsel %vm11024_vm2, %v4263_v56, %v4267_v50  ;;  %v4296_v0 = vor.u32 %v4295_v8, %v4291_v48  ;;  %v4299_v50 = vshll.u32 %v4065_v19, 16  ;;  %v12282_v63 = vpop.f32.mrf.mxu1  ;;  %v15172_v19 = vld [vmem:[#allocation11_spill] sm:$0xff] }
 0x275   : > { %472 = vst [vmem:[#allocation3 + $0xc] sm:$0x1] %v471_v7  ;;  %v4487_v5 = vunpack.c.l.b16 %v4268_v57  ;;  %v4488_v56 = vunpack.c.l.b16 %v4278_v18  ;;  %v4887_v24 = vunpack.c.l.b16 %v4816_v15  ;;  %v4822_v15 = vrot.slane %v4067_v32, 5 }
 0x276   : > { %15171 = vst [vmem:[#allocation37_spill] sm:$0xff] %v12282_v63  ;;  %v4297_v27 = vrot.slane %v4296_v0, 4 }
 0x277   : > { %v2658_v49 = vpop.f32.mrf.mxu3  ;;  %469 = vst [vmem:[#allocation3] sm:$0x1] %v468_v31 }
 0x278   : > { %v2696_v1 = vadd.f32 %v2658_v49, %v15163_v4  ;;  %v4301_v49 = vrot.slane %v4299_v50, 5  ;;  %v4512_v4 = vpack.c.b16 %v4488_v56, %v4487_v5  ;;  %v4313_v5 = vshll.u32 %v4067_v32, 16 }
 0x279   : > { %v12253_v46 = vpop.f32.mrf.mxu0  ;;  %v4317_v56 = vshrl.u32 %v4067_v32, 16 }
 0x27a   : > { %v3350_v6 = vadd.f32 %v3312_v34, %v2696_v1  ;;  %v4819_v34 = vsel %vm10970_vm12, %v4817_v26, %v4818_v30  ;;  %v4287_v1 = vrot.slane %v4286_v52, 4  ;;  %v12287_v18 = vpop.f32.mrf.mxu2 }
 0x27b   : > { %15173 = vst [vmem:[#allocation11_spill] sm:$0xff] %v12287_v18  ;;  %v4888_v26 = vunpack.c.l.b16 %v4819_v34  ;;  %v4702_v34 = vld [vmem:[#allocation2 + $0x84] sm:$0xe]  ;;  %v15175_v18 = vld [vmem:[#allocation12_spill] sm:$0xff] }
 0x27c   : > { %10270 = vmatmul.msk.bf16.gmra.mxu0 %vm1667_vm13, %v4910_v54  ;;  %v3748_v9 = vadd.f32 %v3710_v51, %v3350_v6  ;;  %v15168_v54 = vmov 0  ;;  %v522_v6 = vld [vmem:[#allocation3 + $0x8] sm:$0x1]  ;;  %v4292_v50 = vsel %vm11024_vm2, %v4287_v1, %v4291_v48  ;;  %v5663_v48 = vld [vmem:[#allocation3 + $0x4] sm:$0xf]  ;;  %v10255_v32 = vrot.slane %v4702_v34, 9 }
 0x27d   : > { %v15169_v54 = vsel %vm12278_vm3, 4294967295, %v15168_v54  ;;  %v523_v0 = vsel %vm12278_vm3, 0, %v522_v6  ;;  %v4911_v11 = vpack.c.b16 %v4888_v26, %v4887_v24  ;;  %v12299_v31 = vunpack.c.l.b16 %v4292_v50  ;;  %v3715_v50 = vpop.f32.mrf.mxu1 }
 0x27e   : > { %v12270_v43 = vadd.f32 %v3997_v58, %v3748_v9  ;;  %15170 = vst [vmem:[#allocation36_spill] sm:$0xff] %v15169_v54  ;;  %v4066_v58 = vld [vmem:[#allocation2 + $0x84] sm:$0xf]  ;;  %v4302_v9 = vsel %vm11024_vm2, %v4297_v27, %v4301_v49  ;;  %v12303_v6 = vrot.slane %v4313_v5, 5  ;;  %v4319_v27 = vrot.slane %v4317_v56, 4 }
 0x27f   : > { %v2660_v51 = vpop.f32.mrf.mxu3  ;;  %v4304_v52 = vshrl.u32 %v4066_v58, 16  ;;  %v4307_v7 = vshll.u32 %v4066_v58, 16  ;;  %524 = vst [vmem:[#allocation3 + $0x8] sm:$0x1] %v523_v0  ;;  %v4824_v24 = vrot.slane %v4822_v15, 4  ;;  %v5721_v26 = vshll.u32 %v5663_v48, 16 }
 0x280   : > { %15167 = vst [vmem:[#allocation35_spill] sm:$0xff] %v12270_v43  ;;  %v2697_v8 = vadd.f32 %v2660_v51, %v15172_v19  ;;  %v12301_v51 = vunpack.c.l.b16 %v4302_v9 }
 0x281   : > { %v12285_v57 = vpop.f32.mrf.mxu0  ;;  %v4306_v58 = vrot.slane %v4304_v52, 4  ;;  %v4309_v19 = vrot.slane %v4307_v7, 5  ;;  %v5725_v7 = vshrl.u32 %v5663_v48, 16  ;;  %v5723_v56 = vrot.slane %v5721_v26, 5  ;;  %v15176_v26 = vld [vmem:[#allocation13_spill] sm:$0xff] }
 0x282   : > { %v12290_v30 = vadd.f32 %v12245_v14, %v2697_v8  ;;  %v4068_v14 = vld [vmem:[#allocation2 + $0x8c] sm:$0x1]  ;;  %v5662_v8 = vld [vmem:[#allocation3] sm:$0xf]  ;;  %v4002_v33 = vpop.f32.mrf.mxu2  ;;  %v4513_v48 = vpack.c.b16 %v12301_v51, %v12299_v31  ;;  %v4331_v31 = vshll.u32 %v4069_v39, 16 }
 0x283   : > { %v5712_v49 = vshrl.u32 %v5662_v8, 16  ;;  %v5715_v0 = vshll.u32 %v5662_v8, 16  ;;  %v4825_v9 = vrot.slane %v4068_v14, 5  ;;  %v4310_v47 = vor.u32 %v4309_v19, %v4306_v58  ;;  %v525_v8 = vld [vmem:[#allocation3 + $0x14] sm:$0x1]  ;;  %v10739_v19 = vld [vmem:[#allocation3] sm:$0xff] }
 0x284   : > { %15174 = vst [vmem:[#allocation38_spill] sm:$0xff] %v12290_v30  ;;  %10237 = vmatmul.msk.bf16.gmra.mxu3 %vm1667_vm13, %v4512_v4  ;;  %v4323_v5 = vshll.u32 %v4068_v14, 16  ;;  %v526_v14 = vsel %vm12278_vm3, 0, %v525_v8  ;;  %v4070_v58 = vld [vmem:[#allocation2 + $0x94] sm:$0xf]  ;;  %10360 = vmatmul.msk.bf16.vlgmr.msra.gmra.mxu2 %vm6145_vm6, %v10739_v19 }
 0x285   : > { %v5714_v63 = vrot.slane %v5712_v49, 4  ;;  %v5717_v52 = vrot.slane %v5715_v0, 5  ;;  %527 = vst [vmem:[#allocation3 + $0x14] sm:$0x1] %v526_v14  ;;  %v4337_v8 = vshll.u32 %v4070_v58, 16 }
 0x286   : > { %v5695_v3 = vld [vmem:[#allocation3 + $0x8] sm:$0x1] }
 0x287   : > { %v2663_v1 = vpop.f32.mrf.mxu3  ;;  %v5718_v34 = vor.u32 %v5717_v52, %v5714_v63  ;;  %v5731_v2 = vshll.u32 %v5695_v3, 16  ;;  %v4826_v52 = vsel %vm10970_vm12, %v4824_v24, %v4825_v9 }
 0x288   : > { %v2698_v4 = vadd.f32 %v2663_v1, %v15175_v18  ;;  %v4320_v18 = vor.u32 %v4319_v27, %v12303_v6  ;;  %v5727_v1 = vrot.slane %v5725_v7, 4  ;;  %v4703_v7 = vld [vmem:[#allocation2 + $0x90] sm:$0xe]  ;;  %v4890_v19 = vunpack.c.l.b16 %v4826_v52 }
 0x289   : > { %v12306_v43 = vpop.f32.mrf.mxu0  ;;  %v5719_v63 = vrot.slane %v5718_v34, 4  ;;  %v5733_v3 = vrot.slane %v5731_v2, 5  ;;  %v4829_v2 = vrot.slane %v4070_v58, 5 }
 0x28a   : > { %v3352_v30 = vadd.f32 %v12253_v46, %v2698_v4  ;;  %v4823_v46 = vsel %vm10970_vm12, %v10255_v32, %v4822_v15  ;;  %v5728_v27 = vor.u32 %v5727_v1, %v5723_v56  ;;  %v4321_v0 = vrot.slane %v4320_v18, 4 }
 0x28b   : > { %v4325_v15 = vrot.slane %v4323_v5, 5  ;;  %v5724_v4 = vsel %vm11024_vm2, %v5719_v63, %v5723_v56  ;;  %v4341_v5 = vshrl.u32 %v4070_v58, 16  ;;  %v4333_v1 = vrot.slane %v4331_v31, 5  ;;  %v473_v63 = vld [vmem:[#allocation3 + $0x18] sm:$0x1] }
 0x28c   : > { %10271 = vmatmul.msk.bf16.gmra.mxu0 %vm1667_vm13, %v4911_v11  ;;  %v3750_v36 = vadd.f32 %v3715_v50, %v3352_v30  ;;  %v4311_v11 = vrot.slane %v4310_v47, 4  ;;  %v4328_v30 = vshrl.u32 %v4069_v39, 16  ;;  %v5729_v32 = vrot.slane %v5728_v27, 4  ;;  %v4071_v47 = vld [vmem:[#allocation2 + $0x98] sm:$0x1] }
 0x28d   : > { %v4889_v14 = vunpack.c.l.b16 %v4823_v46  ;;  %v4326_v9 = vsel %vm11024_vm2, %v4321_v0, %v4325_v15  ;;  %v10256_v27 = vrot.slane %v4703_v7, 9  ;;  %v4831_v58 = vrot.slane %v4829_v2, 4  ;;  %v12351_v15 = vld [vmem:[%s15099_s4] ss:$0 sm:$0xff] }
 0x28e   : > { %v12317_v49 = vadd.f32 %v4002_v33, %v3750_v36  ;;  %v6097_v36 = vunpack.c.l.b16 %v5724_v4  ;;  %v5734_v39 = vsel %vm11024_vm2, %v5729_v32, %v5733_v3  ;;  %v4330_v34 = vrot.slane %v4328_v30, 4 }
 0x28f   : > { %v2665_v51 = vpop.f32.mrf.mxu3  ;;  %v6098_v56 = vunpack.c.l.b16 %v5734_v39  ;;  %v4316_v24 = vsel %vm11024_vm2, %v4311_v11, %v12303_v6  ;;  %v4832_v3 = vrot.slane %v4071_v47, 5  ;;  %v474_v30 = vsel %vm12261_vm1, 0, %v473_v63  ;;  %v4073_v11 = vld [vmem:[#allocation2 + $0xa0] sm:$0xf] }
 0x290   : > { %v2699_v50 = vadd.f32 %v2665_v51, %v15176_v26  ;;  %v12340_v31 = vrot.slane %v4337_v8, 5  ;;  %v4343_v46 = vrot.slane %v4341_v5, 4  ;;  %v12342_v51 = vunpack.c.l.b16 %v4316_v24  ;;  %475 = vst [vmem:[#allocation3 + $0x18] sm:$0x1] %v474_v30  ;;  %v528_v24 = vld [vmem:[#allocation3 + $0x20] sm:$0x1] }
 0x291   : > { %v12325_v33 = vpop.f32.mrf.mxu0  ;;  %v12344_v4 = vunpack.c.l.b16 %v4326_v9  ;;  %v4334_v6 = vor.u32 %v4333_v1, %v4330_v34  ;;  %v4912_v32 = vpack.c.b16 %v4890_v19, %v4889_v14  ;;  %v4830_v26 = vsel %vm10970_vm12, %v10256_v27, %v4829_v2  ;;  %v4704_v2 = vld [vmem:[#allocation2 + $0x9c] sm:$0xe]  ;;  %v10392_v19 = vld [vmem:[%s15101_s6 + $0x8] sm:$0xf] }
 0x292   : > { %v12330_v18 = vadd.f32 %v12285_v57, %v2699_v50  ;;  %v6129_v57 = vpack.c.b16 %v6098_v56, %v6097_v36  ;;  %v4833_v50 = vsel %vm10970_vm12, %v4831_v58, %v4832_v3  ;;  %v12362_v36 = vld [vmem:[%s15100_s5] ss:$0 sm:$0xff]  ;;  %v4347_v7 = vshll.u32 %v4071_v47, 16  ;;  %v4072_v34 = vld [vmem:[#allocation2 + $0x9c] sm:$0xf] }
 0x293   : > { %v4514_v8 = vpack.c.b16 %v12344_v4, %v12342_v51  ;;  %v4335_v5 = vrot.slane %v4334_v6, 4  ;;  %v4836_v56 = vrot.slane %v4073_v11, 5  ;;  %v4891_v1 = vunpack.c.l.b16 %v4830_v26  ;;  %v4074_v58 = vld [vmem:[#allocation2 + $0xa4] sm:$0x1] }
 0x294   : > { %10238 = vmatmul.msk.bf16.gmra.mxu3 %vm1667_vm13, %v4513_v48  ;;  %10280 = vmatmul.msk.bf16.vlgmr.msra.gmra.mxu1 %vm6145_vm6, %v6129_v57  ;;  %v4892_v14 = vunpack.c.l.b16 %v4833_v50  ;;  %v4352_v9 = vshrl.u32 %v4072_v34, 16  ;;  %v4355_v63 = vshll.u32 %v4072_v34, 16  ;;  %v529_v27 = vsel %vm12278_vm3, 0, %v528_v24 }
 0x295   : > { %v4361_v3 = vshll.u32 %v4073_v11, 16  ;;  %530 = vst [vmem:[#allocation3 + $0x20] sm:$0x1] %v529_v27  ;;  %v4349_v30 = vrot.slane %v4347_v7, 5  ;;  %v10257_v6 = vrot.slane %v4704_v2, 9  ;;  %v4340_v26 = vsel %vm11024_vm2, %v4335_v5, %v12340_v31 }
 0x296   : > { %v4357_v51 = vrot.slane %v4355_v63, 5  ;;  %v4838_v50 = vrot.slane %v4836_v56, 4  ;;  %v4371_v24 = vshll.u32 %v4074_v58, 16  ;;  %v3731_v2 = vadd.f32 %v12033_v40, %v12080_v17  ;;  %v12395_v27 = vld [vmem:[#allocation2 + $0xac] sm:$0xf] }
 0x297   : > { %v4581_v48 = vpop.f32.mrf.mxu3  ;;  %v4913_v63 = vpack.c.b16 %v4892_v14, %v4891_v1  ;;  %v4843_v17 = vrot.slane %v12395_v27, 5 }
 0x298   : > { %v4661_v0 = vadd.f32 %v4581_v48, %v11867_v22  ;;  %v4344_v22 = vor.u32 %v4343_v46, %v12340_v31  ;;  %v4354_v46 = vrot.slane %v4352_v9, 4  ;;  %v12377_v48 = vrot.slane %v4361_v3, 5 }
 0x299   : > { %v12357_v52 = vpop.f32.mrf.mxu0  ;;  %v3729_v9 = vadd.f32 %v11991_v23, %v12053_v59  ;;  %v12397_v23 = vunpack.c.l.b16 %v4340_v26  ;;  %v12419_v26 = vld [vmem:[#allocation2 + $0xb0] sm:$0x1] }
 0x29a   : > { %v5059_v39 = vadd.f32 %v12306_v43, %v4661_v0  ;;  %v6766_v43 = vsel %vm6194_vm11, %v10392_v19, 0  ;;  %v4345_v57 = vrot.slane %v4344_v22, 4  ;;  %v4365_v0 = vshrl.u32 %v4073_v11, 16 }
 0x29b   : > { %6775 = vmatpush.bf16.msrb.mxu3 %v6766_v43  ;;  %v4358_v34 = vor.u32 %v4357_v51, %v4354_v46  ;;  %v476_v46 = vld [vmem:[#allocation3 + $0x24] sm:$0x1] }
 0x29c   : > { %v5095_v47 = vmul.f32 %v12351_v15, %v5059_v39  ;;  %10272 = vmatmul.msk.bf16.gmra.mxu0 %vm1667_vm13, %v4912_v32  ;;  %v4839_v39 = vrot.slane %v4074_v58, 5  ;;  %v4367_v7 = vrot.slane %v4365_v0, 4  ;;  %v4350_v31 = vsel %vm11024_vm2, %v4345_v57, %v4349_v30  ;;  %v10409_v30 = vld [vmem:[%s15101_s6 + $0xc] sm:$0xf] }
 0x29d   : > { %v4359_v59 = vrot.slane %v4358_v34, 4  ;;  %v12407_v3 = vunpack.c.l.b16 %v4350_v31  ;;  %v7052_v0 = vsel %vm6194_vm11, %v10409_v30, 0 }
 0x29e   : > { %v5131_v4 = vadd.f32 %v12362_v36, %v5095_v47  ;;  %v4368_v43 = vor.u32 %v4367_v7, %v12377_v48  ;;  %v4840_v40 = vsel %vm10970_vm12, %v4838_v50, %v4839_v39  ;;  %v5550_v39 = vld [vmem:[#allocation3 + $0xc] sm:$0xf]  ;;  %7061 = vmatpush.bf16.msrb.mxu0 %v7052_v0  ;;  %v4845_v7 = vrot.slane %v4843_v17, 4 }
 0x29f   : > { %v4583_v32 = vpop.f32.mrf.mxu3 }
 0x2a0   : > { %v5163_v19 = vmax.f32 %v5131_v4, 0.0  ;;  %v4662_v22 = vadd.f32 %v4583_v32, %v11886_v41  ;;  %v4837_v41 = vsel %vm10970_vm12, %v10257_v6, %v4836_v56  ;;  %v4373_v56 = vrot.slane %v4371_v24, 5 }
 0x2a1   : > { %v12387_v11 = vpop.f32.mrf.mxu0  ;;  %v4893_v51 = vunpack.c.l.b16 %v4837_v41  ;;  %v4369_v4 = vrot.slane %v4368_v43, 4  ;;  %v477_v32 = vsel %vm12261_vm1, 0, %v476_v46  ;;  %v4846_v24 = vrot.slane %v12419_v26, 5 }
 0x2a2   : > { %v5195_v5 = vpack.c.bf16 %v5163_v19, %v5163_v19  ;;  %v5060_v47 = vadd.f32 %v12325_v33, %v4662_v22  ;;  %v10523_v33 = vld [vmem:[%s15101_s6 + $0x14] sm:$0xf]  ;;  %478 = vst [vmem:[#allocation3 + $0x24] sm:$0x1] %v477_v32  ;;  %v4894_v19 = vunpack.c.l.b16 %v4840_v40  ;;  %v4364_v22 = vsel %vm11024_vm2, %v4359_v59, %v12377_v48 }
 0x2a3   : > { %v8104_v57 = vsel %vm6194_vm11, %v10523_v33, 0  ;;  %v4374_v41 = vsel %vm11024_vm2, %v4369_v4, %v4373_v56  ;;  %v12438_v43 = vadd.f32 %v12028_v38, %v3729_v9  ;;  %v12441_v40 = vadd.f32 %v12057_v45, %v3731_v2  ;;  %v4075_v45 = vld [vmem:[#allocation2 + $0xa8] sm:$0xf]  ;;  %v10490_v9 = vld [vmem:[%s15101_s6 + $0x10] sm:$0xf] }
 0x2a4   : > { %v5228_v1 = vshrl.u32 %v5195_v5, 16  ;;  %v5231_v14 = vshll.u32 %v5195_v5, 16  ;;  %v5096_v58 = vmul.f32 %v12351_v15, %v5060_v47  ;;  %10239 = vmatmul.msk.bf16.gmra.mxu3 %vm1667_vm13, %v4514_v8  ;;  %8113 = vmatpush.bf16.msrb.mxu2 %v8104_v57  ;;  %v12445_v48 = vadd.f32 %v12061_v61, %v12101_v44  ;;  %v531_v2 = vld [vmem:[#allocation3 + $0x2c] sm:$0x1] }
 0x2a5   : > { %v12455_v38 = vsel %vm10970_vm12, %v4845_v7, %v4846_v24  ;;  %v4515_v61 = vpack.c.b16 %v12407_v3, %v12397_v23  ;;  %v12459_v44 = vpack.c.b16 %v4894_v19, %v4893_v51  ;;  %v12464_v56 = vunpack.c.l.b16 %v4364_v22 }
 0x2a6   : > { %v12413_v6 = vrot.slane %v5228_v1, 7  ;;  %v5132_v8 = vadd.f32 %v12362_v36, %v5096_v58  ;;  %v12466_v57 = vunpack.c.l.b16 %v4374_v41  ;;  %v7706_v46 = vsel %vm6194_vm11, %v10490_v9, 0 }
 0x2a7   : > { %v4586_v34 = vpop.f32.mrf.mxu3  ;;  %7715 = vmatpush.bf16.msrb.mxu1 %v7706_v46  ;;  %v532_v23 = vsel %vm12278_vm3, 0, %v531_v2  ;;  %v4896_v3 = vunpack.c.l.b16 %v12455_v38  ;;  %v4376_v51 = vshrl.u32 %v4075_v45, 16  ;;  %v4389_v24 = vshrl.u32 %v12395_v27, 16 }
 0x2a8   : > { %v5233_v31 = vor.u32 %v5231_v14, %v12413_v6  ;;  %v5164_v5 = vmax.f32 %v5132_v8, 0.0  ;;  %v4663_v47 = vadd.f32 %v4586_v34, %v11909_v29  ;;  %v5234_v59 = vrot.slane %v12413_v6, 4  ;;  %v4705_v14 = vld [vmem:[#allocation2 + $0xa8] sm:$0xe]  ;;  %533 = vst [vmem:[#allocation3 + $0x2c] sm:$0x1] %v532_v23 }
 0x2a9   : > { %v12448_v1 = vpop.f32.mrf.mxu0  ;;  %v10258_v4 = vrot.slane %v4705_v14, 9  ;;  %v4379_v6 = vshll.u32 %v4075_v45, 16  ;;  %v5554_v34 = vld [vmem:[#allocation3 + $0x14] sm:$0x1]  ;;  %v4516_v19 = vpack.c.b16 %v12466_v57, %v12464_v56  ;;  %v4378_v22 = vrot.slane %v4376_v51, 4 }
 0x2aa   : > { %v5551_v29 = vsel %vm12423_vm7, %v5233_v31, %v5550_v39  ;;  %v5196_v58 = vpack.c.bf16 %v5164_v5, %v5164_v5  ;;  %v5061_v33 = vadd.f32 %v12357_v52, %v4663_v47  ;;  %v4385_v39 = vshll.u32 %v12395_v27, 16  ;;  %v12488_v23 = vld [vmem:[#allocation2 + $0xb8] sm:$0xf]  ;;  %v5564_v56 = vld [vmem:[#allocation3 + $0x24] sm:$0xf] }
 0x2ab   : > { %5552 = vst [vmem:[#allocation3 + $0xc] sm:$0xf] %v5551_v29  ;;  %v4381_v7 = vrot.slane %v4379_v6, 5  ;;  %v4395_v45 = vshll.u32 %v12419_v26, 16 }
 0x2ac   : > { %v5236_v52 = vshrl.u32 %v5196_v58, 16  ;;  %v5097_v30 = vmul.f32 %v12351_v15, %v5061_v33  ;;  %10273 = vmatmul.msk.bf16.gmra.mxu0 %vm1667_vm13, %v4913_v63  ;;  %v5239_v0 = vshll.u32 %v5196_v58, 16  ;;  %v4387_v58 = vrot.slane %v4385_v39, 5 }
 0x2ad   : > { %v4382_v29 = vor.u32 %v4381_v7, %v4378_v22  ;;  %v4391_v33 = vrot.slane %v4389_v24, 4 }
 0x2ae   : > { %v5238_v8 = vrot.slane %v5236_v52, 7  ;;  %v5133_v32 = vadd.f32 %v12362_v36, %v5097_v30 }
 0x2af   : > { %v4588_v63 = vpop.f32.mrf.mxu3  ;;  %v4383_v6 = vrot.slane %v4382_v29, 4  ;;  %v4850_v29 = vrot.slane %v12488_v23, 5 }
 0x2b0   : > { %v5241_v31 = vor.u32 %v5239_v0, %v5238_v8  ;;  %v5243_v5 = vrot.slane %v5238_v8, 4  ;;  %v5165_v47 = vmax.f32 %v5133_v32, 0.0  ;;  %v4664_v41 = vadd.f32 %v4588_v63, %v11930_v21  ;;  %v479_v32 = vld [vmem:[#allocation3 + $0x30] sm:$0x1] }
 0x2b1   : > { %v12480_v14 = vpop.f32.mrf.mxu0  ;;  %v4392_v8 = vor.u32 %v4391_v33, %v4387_v58  ;;  %v480_v39 = vsel %vm12261_vm1, 0, %v479_v32  ;;  %v4388_v22 = vsel %vm11024_vm2, %v4383_v6, %v4387_v58  ;;  %v12523_v32 = vld [vmem:[#allocation2 + $0xb4] sm:$0xf] }
 0x2b2   : > { %v5242_v9 = vsel %vm11053_vm9, %v5234_v59, %v5241_v31  ;;  %v5555_v2 = vsel %vm12261_vm1, %v5243_v5, %v5554_v34  ;;  %v5197_v52 = vpack.c.bf16 %v5165_v47, %v5165_v47  ;;  %v5062_v30 = vadd.f32 %v12387_v11, %v4664_v41  ;;  %v5664_v46 = vld [vmem:[#allocation3 + $0xc] sm:$0xf]  ;;  %481 = vst [vmem:[#allocation3 + $0x30] sm:$0x1] %v480_v39  ;;  %v5557_v5 = vld [vmem:[#allocation3 + $0x18] sm:$0xf] }
 0x2b3   : > { %5553 = vst.msk [vmem:[#allocation3 + $0x10] sm:$0xf] %vm456_vm4, %v5242_v9  ;;  %v5736_v21 = vshrl.u32 %v5664_v46, 16  ;;  %v5739_v51 = vshll.u32 %v5664_v46, 16  ;;  %v4844_v11 = vsel %vm10970_vm12, %v10258_v4, %v4843_v17  ;;  %v4397_v31 = vrot.slane %v4395_v45, 5 }
 0x2b4   : > { %5556 = vst [vmem:[#allocation3 + $0x14] sm:$0x1] %v5555_v2  ;;  %v5245_v26 = vshrl.u32 %v5197_v52, 16  ;;  %v5248_v0 = vshll.u32 %v5197_v52, 16  ;;  %v5098_v59 = vmul.f32 %v12351_v15, %v5062_v30  ;;  %10240 = vmatmul.msk.bf16.gmra.mxu3 %vm1667_vm13, %v4515_v61  ;;  %v4393_v61 = vrot.slane %v4392_v8, 4 }
 0x2b5   : > { %v5738_v34 = vrot.slane %v5736_v21, 4  ;;  %v5741_v63 = vrot.slane %v5739_v51, 5  ;;  %v4895_v47 = vunpack.c.l.b16 %v4844_v11  ;;  %v12504_v17 = vunpack.c.l.b16 %v4388_v22  ;;  %v4706_v4 = vld [vmem:[#allocation2 + $0xb4] sm:$0xe]  ;;  %v12514_v46 = vld [vmem:[#allocation2 + $0xbc] sm:$0x1] }
 0x2b6   : > { %v12501_v7 = vrot.slane %v5245_v26, 7  ;;  %v5134_v24 = vadd.f32 %v12362_v36, %v5098_v59  ;;  %v4398_v45 = vsel %vm11024_vm2, %v4393_v61, %v4397_v31  ;;  %v10259_v21 = vrot.slane %v4706_v4, 9 }
 0x2b7   : > { %v4591_v27 = vpop.f32.mrf.mxu3  ;;  %v5742_v41 = vor.u32 %v5741_v63, %v5738_v34  ;;  %v4852_v51 = vrot.slane %v4850_v29, 4  ;;  %v12527_v11 = vpack.c.b16 %v4896_v3, %v4895_v47  ;;  %v534_v3 = vld [vmem:[#allocation3 + $0x38] sm:$0x1] }
 0x2b8   : > { %v5250_v33 = vor.u32 %v5248_v0, %v12501_v7  ;;  %v5251_v58 = vrot.slane %v12501_v7, 4  ;;  %v5166_v9 = vmax.f32 %v5134_v24, 0.0  ;;  %v4665_v2 = vadd.f32 %v4591_v27, %v11963_v35 }
 0x2b9   : > { %v12510_v52 = vpop.f32.mrf.mxu0  ;;  %v5743_v30 = vrot.slane %v5742_v41, 4  ;;  %v12521_v35 = vunpack.c.l.b16 %v4398_v45 }
 0x2ba   : > { %v5558_v6 = vsel %vm12423_vm7, %v5250_v33, %v5557_v5  ;;  %v5198_v8 = vpack.c.bf16 %v5166_v9, %v5166_v9  ;;  %v5063_v26 = vadd.f32 %v12448_v1, %v4665_v2  ;;  %v10740_v0 = vld [vmem:[#allocation3 + $0xc] sm:$0xff]  ;;  %v4851_v1 = vsel %vm10970_vm12, %v10259_v21, %v4850_v29  ;;  %v5561_v29 = vld [vmem:[#allocation3 + $0x20] sm:$0x1] }
 0x2bb   : > { %v12519_v59 = vld [vmem:[#allocation3 + $0x10] sm:$0xf]  ;;  %5559 = vst [vmem:[#allocation3 + $0x18] sm:$0xf] %v5558_v6  ;;  %v12529_v39 = vld [vmem:[#allocation3 + $0x14] sm:$0x1]  ;;  %10361 = vmatmul.msk.bf16.gmra.mxu2 %vm6145_vm6, %v10740_v0  ;;  %v4517_v27 = vpack.c.b16 %v12521_v35, %v12504_v17  ;;  %v4897_v45 = vunpack.c.l.b16 %v4851_v1 }
 0x2bc   : > { %v5745_v34 = vshll.u32 %v12519_v59, 16  ;;  %v5749_v63 = vshrl.u32 %v12519_v59, 16  ;;  %v5253_v22 = vshrl.u32 %v5198_v8, 16  ;;  %v5256_v7 = vshll.u32 %v5198_v8, 16  ;;  %10274 = vmatmul.msk.bf16.gmra.mxu0 %vm1667_vm13, %v12459_v44  ;;  %v5571_v35 = vld [vmem:[#allocation3 + $0x30] sm:$0xf] }
 0x2bd   : > { %v5099_v24 = vmul.f32 %v12351_v15, %v5063_v26  ;;  %v5755_v38 = vshll.u32 %v12529_v39, 16  ;;  %v535_v5 = vsel %vm12278_vm3, 0, %v534_v3  ;;  %v4853_v44 = vrot.slane %v12514_v46, 5 }
 0x2be   : > { %v5747_v61 = vrot.slane %v5745_v34, 5  ;;  %v5751_v31 = vrot.slane %v5749_v63, 4  ;;  %v5255_v47 = vrot.slane %v5253_v22, 7  ;;  %536 = vst [vmem:[#allocation3 + $0x38] sm:$0x1] %v535_v5  ;;  %v4400_v21 = vshrl.u32 %v12523_v32, 16 }
 0x2bf   : > { %v5135_v41 = vadd.f32 %v12362_v36, %v5099_v24  ;;  %v5757_v4 = vrot.slane %v5755_v38, 5  ;;  %v4593_v33 = vpop.f32.mrf.mxu3  ;;  %v4854_v24 = vsel %vm10970_vm12, %v4852_v51, %v4853_v44  ;;  %v482_v44 = vld [vmem:[#allocation3 + $0x3c] sm:$0x1] }
 0x2c0   : > { %v5748_v9 = vsel %vm11024_vm2, %v5743_v30, %v5747_v61  ;;  %v5752_v2 = vor.u32 %v5751_v31, %v5747_v61  ;;  %v5258_v6 = vor.u32 %v5256_v7, %v5255_v47  ;;  %v5260_v8 = vrot.slane %v5255_v47, 4 }
 0x2c1   : > { %v5167_v26 = vmax.f32 %v5135_v41, 0.0  ;;  %v4666_v0 = vadd.f32 %v4593_v33, %v11987_v28  ;;  %v12550_v34 = vpop.f32.mrf.mxu0  ;;  %v6099_v22 = vunpack.c.l.b16 %v5748_v9  ;;  %v12554_v38 = vrot.slane %v4400_v21, 4 }
 0x2c2   : > { %v5753_v63 = vrot.slane %v5752_v2, 4  ;;  %v5259_v30 = vsel %vm11053_vm9, %v5251_v58, %v5258_v6  ;;  %v5562_v1 = vsel %vm12261_vm1, %v5260_v8, %v5561_v29  ;;  %v5666_v61 = vld [vmem:[#allocation3 + $0x18] sm:$0xf]  ;;  %v4898_v31 = vunpack.c.l.b16 %v4854_v24 }
 0x2c3   : > { %v5199_v7 = vpack.c.bf16 %v5167_v26, %v5167_v26  ;;  %v5064_v3 = vadd.f32 %v12480_v14, %v4666_v0  ;;  %5560 = vst.msk [vmem:[#allocation3 + $0x1c] sm:$0xf] %vm456_vm4, %v5259_v30  ;;  %v5760_v5 = vshrl.u32 %v5666_v61, 16  ;;  %v5763_v51 = vshll.u32 %v5666_v61, 16 }
 0x2c4   : > { %v5758_v28 = vsel %vm11024_vm2, %v5753_v63, %v5757_v4  ;;  %5563 = vst [vmem:[#allocation3 + $0x20] sm:$0x1] %v5562_v1  ;;  %10241 = vmatmul.msk.bf16.gmra.mxu3 %vm1667_vm13, %v4516_v19  ;;  %v483_v29 = vsel %vm12261_vm1, 0, %v482_v44  ;;  %v12571_v33 = vpack.c.b16 %v4898_v31, %v4897_v45  ;;  %v4403_v8 = vshll.u32 %v12523_v32, 16 }
 0x2c5   : > { %v5262_v47 = vshrl.u32 %v5199_v7, 16  ;;  %v5265_v41 = vshll.u32 %v5199_v7, 16  ;;  %v5100_v58 = vmul.f32 %v12351_v15, %v5064_v3  ;;  %v6100_v14 = vunpack.c.l.b16 %v5758_v28  ;;  %484 = vst [vmem:[#allocation3 + $0x3c] sm:$0x1] %v483_v29 }
 0x2c6   : > { %v5762_v4 = vrot.slane %v5760_v5, 4  ;;  %v5765_v9 = vrot.slane %v5763_v51, 5  ;;  %v4409_v26 = vshll.u32 %v12488_v23, 16  ;;  %v4413_v0 = vshrl.u32 %v12488_v23, 16 }
 0x2c7   : > { %v12573_v2 = vrot.slane %v5262_v47, 7  ;;  %v5136_v21 = vadd.f32 %v12362_v36, %v5100_v58  ;;  %v6130_v6 = vpack.c.b16 %v6100_v14, %v6099_v22  ;;  %v4596_v57 = vpop.f32.mrf.mxu3  ;;  %v4419_v45 = vshll.u32 %v12514_v46, 16  ;;  %v4707_v47 = vld [vmem:[#allocation2 + $0xc0] sm:$0xe] }
 0x2c8   : > { %v5766_v19 = vor.u32 %v5765_v9, %v5762_v4  ;;  %v4667_v1 = vadd.f32 %v4596_v57, %v12013_v55  ;;  %v4405_v7 = vrot.slane %v4403_v8, 5  ;;  %v4411_v3 = vrot.slane %v4409_v26, 5 }
 0x2c9   : > { %v5267_v63 = vor.u32 %v5265_v41, %v12573_v2  ;;  %v5268_v24 = vrot.slane %v12573_v2, 4  ;;  %v5168_v30 = vmax.f32 %v5136_v21, 0.0  ;;  %10281 = vmatmul.msk.bf16.gmra.mxu1 %vm6145_vm6, %v6130_v6  ;;  %v12584_v22 = vpop.f32.mrf.mxu0  ;;  %v4415_v61 = vrot.slane %v4413_v0, 4  ;;  %v537_v2 = vld [vmem:[#allocation3 + $0x44] sm:$0x1] }
 0x2ca   : > { %v5767_v32 = vrot.slane %v5766_v19, 4  ;;  %v5065_v46 = vadd.f32 %v12510_v52, %v4667_v1  ;;  %v10741_v31 = vld [vmem:[#allocation3 + $0x18] sm:$0xff]  ;;  %v4421_v51 = vrot.slane %v4419_v45, 5  ;;  %v4406_v14 = vor.u32 %v4405_v7, %v12554_v38  ;;  %v5568_v0 = vld [vmem:[#allocation3 + $0x2c] sm:$0x1] }
 0x2cb   : > { %v5565_v23 = vsel %vm12423_vm7, %v5267_v63, %v5564_v56  ;;  %v5200_v28 = vpack.c.bf16 %v5168_v30, %v5168_v30  ;;  %v12589_v5 = vld [vmem:[#allocation3 + $0x1c] sm:$0xf]  ;;  %v12591_v55 = vld [vmem:[#allocation3 + $0x20] sm:$0x1]  ;;  %v4416_v44 = vor.u32 %v4415_v61, %v4411_v3  ;;  %10362 = vmatmul.msk.bf16.gmra.mxu2 %vm6145_vm6, %v10741_v31  ;;  %v538_v8 = vsel %vm12278_vm3, 0, %v537_v2 }
 0x2cc   : > { %5566 = vst [vmem:[#allocation3 + $0x24] sm:$0xf] %v5565_v23  ;;  %v5769_v41 = vshll.u32 %v12589_v5, 16  ;;  %v5773_v58 = vshrl.u32 %v12589_v5, 16  ;;  %v5101_v9 = vmul.f32 %v12351_v15, %v5065_v46  ;;  %10275 = vmatmul.msk.bf16.gmra.mxu0 %vm1667_vm13, %v12527_v11  ;;  %v5779_v52 = vshll.u32 %v12591_v55, 16 }
 0x2cd   : > { %v5270_v29 = vshrl.u32 %v5200_v28, 16  ;;  %v5273_v4 = vshll.u32 %v5200_v28, 16  ;;  %v4407_v56 = vrot.slane %v4406_v14, 4  ;;  %539 = vst [vmem:[#allocation3 + $0x44] sm:$0x1] %v538_v8  ;;  %v4417_v26 = vrot.slane %v4416_v44, 4 }
 0x2ce   : > { %v5771_v21 = vrot.slane %v5769_v41, 5  ;;  %v5775_v6 = vrot.slane %v5773_v58, 4  ;;  %v5137_v57 = vadd.f32 %v12362_v36, %v5101_v9  ;;  %v5781_v19 = vrot.slane %v5779_v52, 5  ;;  %v12609_v46 = vld [vmem:[#allocation2 + $0xc4] sm:$0xf] }
 0x2cf   : > { %v5272_v38 = vrot.slane %v5270_v29, 7  ;;  %v4598_v45 = vpop.f32.mrf.mxu3  ;;  %v4412_v30 = vsel %vm11024_vm2, %v4407_v56, %v4411_v3  ;;  %v10260_v1 = vrot.slane %v4707_v47, 9  ;;  %v12611_v31 = vld [vmem:[#allocation2 + $0xc8] sm:$0x1]  ;;  %v485_v56 = vld [vmem:[#allocation3 + $0x48] sm:$0x1] }
 0x2d0   : > { %v5772_v11 = vsel %vm11024_vm2, %v5767_v32, %v5771_v21  ;;  %v5776_v63 = vor.u32 %v5775_v6, %v5771_v21  ;;  %v5169_v23 = vmax.f32 %v5137_v57, 0.0  ;;  %v4668_v28 = vadd.f32 %v4598_v45, %v12031_v16 }
 0x2d1   : > { %v5275_v7 = vor.u32 %v5273_v4, %v5272_v38  ;;  %v5277_v61 = vrot.slane %v5272_v38, 4  ;;  %v12613_v41 = vpop.f32.mrf.mxu0  ;;  %v6101_v14 = vunpack.c.l.b16 %v5772_v11  ;;  %v4422_v32 = vsel %vm11024_vm2, %v4417_v26, %v4421_v51  ;;  %v12624_v4 = vld [vmem:[#allocation2 + $0xc0] sm:$0xf] }
 0x2d2   : > { %v5777_v58 = vrot.slane %v5776_v63, 4  ;;  %v12617_v44 = vunpack.c.l.b16 %v4412_v30  ;;  %v5201_v16 = vpack.c.bf16 %v5169_v23, %v5169_v23  ;;  %v5066_v29 = vadd.f32 %v12550_v34, %v4668_v28 }
 0x2d3   : > { %v5276_v3 = vsel %vm11053_vm9, %v5268_v24, %v5275_v7  ;;  %v5569_v47 = vsel %vm12261_vm1, %v5277_v61, %v5568_v0  ;;  %v12629_v52 = vunpack.c.l.b16 %v4422_v32  ;;  %v4857_v51 = vrot.slane %v12609_v46, 5  ;;  %v5668_v24 = vld [vmem:[#allocation3 + $0x24] sm:$0xf] }
 0x2d4   : > { %5567 = vst.msk [vmem:[#allocation3 + $0x28] sm:$0xf] %vm456_vm4, %v5276_v3  ;;  %v5782_v9 = vsel %vm11024_vm2, %v5777_v58, %v5781_v19  ;;  %v4860_v2 = vrot.slane %v12611_v31, 5  ;;  %v5279_v21 = vshrl.u32 %v5201_v16, 16  ;;  %v5282_v6 = vshll.u32 %v5201_v16, 16  ;;  %10242 = vmatmul.msk.bf16.gmra.mxu3 %vm1667_vm13, %v4517_v27 }
 0x2d5   : > { %5570 = vst [vmem:[#allocation3 + $0x2c] sm:$0x1] %v5569_v47  ;;  %v5102_v8 = vmul.f32 %v12351_v15, %v5066_v29  ;;  %v6102_v34 = vunpack.c.l.b16 %v5782_v9  ;;  %v4518_v38 = vpack.c.b16 %v12629_v52, %v12617_v44  ;;  %v486_v57 = vsel %vm12261_vm1, 0, %v485_v56  ;;  %v5578_v52 = vld [vmem:[#allocation3 + $0x3c] sm:$0xf] }
 0x2d6   : > { %v4858_v19 = vsel %vm10970_vm12, %v10260_v1, %v4857_v51  ;;  %v4859_v26 = vrot.slane %v4857_v51, 4  ;;  %v12644_v0 = vrot.slane %v5279_v21, 7  ;;  %487 = vst [vmem:[#allocation3 + $0x48] sm:$0x1] %v486_v57  ;;  %v5784_v30 = vshrl.u32 %v5668_v24, 16 }
 0x2d7   : > { %v5138_v45 = vadd.f32 %v12362_v36, %v5102_v8  ;;  %v6131_v11 = vpack.c.b16 %v6102_v34, %v6101_v14  ;;  %v4899_v17 = vunpack.c.l.b16 %v4858_v19  ;;  %v4601_v27 = vpop.f32.mrf.mxu3  ;;  %v5787_v7 = vshll.u32 %v5668_v24, 16 }
 0x2d8   : > { %v4861_v63 = vsel %vm10970_vm12, %v4859_v26, %v4860_v2  ;;  %v4424_v61 = vshrl.u32 %v12624_v4, 16  ;;  %v5284_v23 = vor.u32 %v5282_v6, %v12644_v0  ;;  %v5285_v1 = vrot.slane %v12644_v0, 4 }
 0x2d9   : > { %v5170_v28 = vmax.f32 %v5138_v45, 0.0  ;;  %v4669_v58 = vadd.f32 %v4601_v27, %v12044_v37  ;;  %10282 = vmatmul.msk.bf16.gmra.mxu1 %vm6145_vm6, %v6131_v11  ;;  %v12654_v14 = vpop.f32.mrf.mxu0  ;;  %v4900_v32 = vunpack.c.l.b16 %v4861_v63  ;;  %v5786_v3 = vrot.slane %v5784_v30, 4 }
 0x2da   : > { %v5789_v47 = vrot.slane %v5787_v7, 5  ;;  %v4426_v16 = vrot.slane %v4424_v61, 4  ;;  %v5572_v29 = vsel %vm12423_vm7, %v5284_v23, %v5571_v35  ;;  %v4427_v21 = vshll.u32 %v12624_v4, 16  ;;  %v540_v4 = vld [vmem:[#allocation3 + $0x50] sm:$0x1] }
 0x2db   : > { %v5202_v9 = vpack.c.bf16 %v5170_v28, %v5170_v28  ;;  %v5067_v51 = vadd.f32 %v12584_v22, %v4669_v58  ;;  %v10742_v2 = vld [vmem:[#allocation3 + $0x24] sm:$0xff]  ;;  %5573 = vst [vmem:[#allocation3 + $0x30] sm:$0xf] %v5572_v29  ;;  %v12662_v37 = vpack.c.b16 %v4900_v32, %v4899_v17  ;;  %v541_v17 = vsel %vm12278_vm3, 0, %v540_v4  ;;  %v5575_v7 = vld [vmem:[#allocation3 + $0x38] sm:$0x1] }
 0x2dc   : > { %v12659_v24 = vld [vmem:[#allocation3 + $0x28] sm:$0xf]  ;;  %v12664_v6 = vld [vmem:[#allocation3 + $0x2c] sm:$0x1]  ;;  %v5790_v8 = vor.u32 %v5789_v47, %v5786_v3  ;;  %10276 = vmatmul.msk.bf16.gmra.mxu0 %vm1667_vm13, %v12571_v33  ;;  %10363 = vmatmul.msk.bf16.gmra.mxu2 %vm6145_vm6, %v10742_v2  ;;  %542 = vst [vmem:[#allocation3 + $0x50] sm:$0x1] %v541_v17 }
 0x2dd   : > { %v5793_v34 = vshll.u32 %v12659_v24, 16  ;;  %v5797_v56 = vshrl.u32 %v12659_v24, 16  ;;  %v5287_v57 = vshrl.u32 %v5202_v9, 16  ;;  %v5290_v19 = vshll.u32 %v5202_v9, 16  ;;  %v488_v17 = vld [vmem:[#allocation3 + $0x54] sm:$0x1] }
 0x2de   : > { %v5103_v26 = vmul.f32 %v12351_v15, %v5067_v51  ;;  %v5803_v22 = vshll.u32 %v12664_v6, 16  ;;  %v5791_v0 = vrot.slane %v5790_v8, 4  ;;  %v4429_v30 = vrot.slane %v4427_v21, 5  ;;  %v7182_v54 = vld [vmem:[#allocation3 + $0x28] sm:$0xf] }
 0x2df   : > { %v5795_v45 = vrot.slane %v5793_v34, 5  ;;  %v5799_v11 = vrot.slane %v5797_v56, 4  ;;  %v5289_v35 = vrot.slane %v5287_v57, 7  ;;  %v4603_v61 = vpop.f32.mrf.mxu3  ;;  %v4433_v28 = vshll.u32 %v12609_v46, 16 }
 0x2e0   : > { %v5139_v27 = vadd.f32 %v12362_v36, %v5103_v26  ;;  %v5805_v63 = vrot.slane %v5803_v22, 5  ;;  %v4437_v58 = vshrl.u32 %v12609_v46, 16  ;;  %v4670_v29 = vadd.f32 %v4603_v61, %v12438_v43  ;;  %v12688_v26 = vld [vmem:[#allocation2 + $0xd0] sm:$0xf]  ;;  %v4708_v22 = vld [vmem:[#allocation2 + $0xcc] sm:$0xe] }
 0x2e1   : > { %v5796_v33 = vsel %vm11024_vm2, %v5791_v0, %v5795_v45  ;;  %v5800_v23 = vor.u32 %v5799_v11, %v5795_v45  ;;  %v5292_v32 = vor.u32 %v5290_v19, %v5289_v35  ;;  %v5294_v3 = vrot.slane %v5289_v35, 4  ;;  %v12681_v9 = vpop.f32.mrf.mxu0  ;;  %v453_v19 = vld [vmem:[#allocation2 + $0xd4] sm:$0x1] }
 0x2e2   : > { %v5171_v47 = vmax.f32 %v5139_v27, 0.0  ;;  %v6103_v2 = vunpack.c.l.b16 %v5796_v33  ;;  %v4430_v21 = vor.u32 %v4429_v30, %v4426_v16  ;;  %v4435_v8 = vrot.slane %v4433_v28, 5  ;;  %v5670_v44 = vld [vmem:[#allocation3 + $0x30] sm:$0xf] }
 0x2e3   : > { %v5801_v51 = vrot.slane %v5800_v23, 4  ;;  %v5293_v34 = vsel %vm11053_vm9, %v5285_v1, %v5292_v32  ;;  %v5576_v56 = vsel %vm12261_vm1, %v5294_v3, %v5575_v7  ;;  %v5068_v46 = vadd.f32 %v12613_v41, %v4670_v29 }
 0x2e4   : > { %v5203_v57 = vpack.c.bf16 %v5171_v47, %v5171_v47  ;;  %5574 = vst.msk [vmem:[#allocation3 + $0x34] sm:$0xf] %vm456_vm4, %v5293_v34  ;;  %v4431_v16 = vrot.slane %v4430_v21, 4  ;;  %v4439_v4 = vrot.slane %v4437_v58, 4  ;;  %v4443_v0 = vshll.u32 %v12611_v31, 16  ;;  %10243 = vmatmul.msk.bf16.gmra.mxu3 %vm1667_vm13, %v4518_v38 }
 0x2e5   : > { %v5806_v43 = vsel %vm11024_vm2, %v5801_v51, %v5805_v63  ;;  %5577 = vst [vmem:[#allocation3 + $0x38] sm:$0x1] %v5576_v56  ;;  %v5104_v11 = vmul.f32 %v12351_v15, %v5068_v46  ;;  %v489_v31 = vsel %vm12261_vm1, 0, %v488_v17  ;;  %v454_v28 = vsel %vm10957_vm10, 0, %v453_v19  ;;  %v15179_v51 = vld [vmem:[#allocation14_spill] sm:$0xff] }
 0x2e6   : > { %v5296_v1 = vshrl.u32 %v5203_v57, 16  ;;  %v5299_v45 = vshll.u32 %v5203_v57, 16  ;;  %v6104_v41 = vunpack.c.l.b16 %v5806_v43  ;;  %v4436_v35 = vsel %vm11024_vm2, %v4431_v16, %v4435_v8  ;;  %490 = vst [vmem:[#allocation3 + $0x54] sm:$0x1] %v489_v31 }
 0x2e7   : > { %v4440_v27 = vor.u32 %v4439_v4, %v4435_v8  ;;  %v4445_v63 = vrot.slane %v4443_v0, 5  ;;  %v5140_v7 = vadd.f32 %v12362_v36, %v5104_v11  ;;  %v12706_v33 = vunpack.c.l.b16 %v4436_v35  ;;  %v4606_v38 = vpop.f32.mrf.mxu3  ;;  %455 = vst [vmem:[#allocation2 + $0xd4] sm:$0x1] %v454_v28  ;;  %v4084_v4 = vld [vmem:[#allocation2 + $0xcc] sm:$0xf]  ;;  %v15180_v0 = vld [vmem:[#allocation4_spill] sm:$0xff] }
 0x2e8   : > { %v12703_v30 = vrot.slane %v5296_v1, 7  ;;  %v6132_v61 = vpack.c.b16 %v6104_v41, %v6103_v2  ;;  %v10261_v58 = vrot.slane %v4708_v22, 9  ;;  %v4864_v32 = vrot.slane %v12688_v26, 5 }
 0x2e9   : > { %v4441_v23 = vrot.slane %v4440_v27, 4  ;;  %v5172_v29 = vmax.f32 %v5140_v7, 0.0  ;;  %v4671_v2 = vadd.f32 %v4606_v38, %v15179_v51  ;;  %v12715_v21 = vpop.f32.mrf.mxu0  ;;  %v5808_v56 = vshrl.u32 %v5670_v44, 16 }
 0x2ea   : > { %v5301_v3 = vor.u32 %v5299_v45, %v12703_v30  ;;  %v5302_v47 = vrot.slane %v12703_v30, 4  ;;  %10283 = vmatmul.msk.bf16.gmra.mxu1 %vm6145_vm6, %v6132_v61  ;;  %v12721_v10 = vsel %vm10970_vm12, %v10261_v58, %v4864_v32  ;;  %v4866_v34 = vrot.slane %v4864_v32, 4 }
 0x2eb   : > { %v4446_v8 = vsel %vm11024_vm2, %v4441_v23, %v4445_v63  ;;  %v5204_v46 = vpack.c.bf16 %v5172_v29, %v5172_v29  ;;  %v5069_v19 = vadd.f32 %v12654_v14, %v4671_v2  ;;  %v10743_v22 = vld [vmem:[#allocation3 + $0x30] sm:$0xff]  ;;  %v12730_v1 = vadd.f32 %v15180_v0, %v12445_v48  ;;  %v543_v48 = vld [vmem:[#allocation3 + $0x5c] sm:$0x1] }
 0x2ec   : > { %v5579_v57 = vsel %vm12423_vm7, %v5301_v3, %v5578_v52  ;;  %v4502_v43 = vunpack.c.l.b16 %v4446_v8  ;;  %v12726_v16 = vld [vmem:[#allocation3 + $0x34] sm:$0xf]  ;;  %v4901_v45 = vunpack.c.l.b16 %v12721_v10  ;;  %v12733_v11 = vld [vmem:[#allocation3 + $0x38] sm:$0x1]  ;;  %v5810_v41 = vrot.slane %v5808_v56, 4  ;;  %10277 = vmatmul.msk.bf16.gmra.mxu0 %vm1667_vm13, %v12662_v37  ;;  %10364 = vmatmul.msk.bf16.gmra.mxu2 %vm6145_vm6, %v10743_v22 }
 0x2ed   : > { %5580 = vst [vmem:[#allocation3 + $0x3c] sm:$0xf] %v5579_v57  ;;  %v5811_v17 = vshll.u32 %v5670_v44, 16  ;;  %v5304_v35 = vshrl.u32 %v5204_v46, 16  ;;  %v5307_v27 = vshll.u32 %v5204_v46, 16  ;;  %v5105_v14 = vmul.f32 %v12351_v15, %v5069_v19 }
 0x2ee   : > { %v4519_v63 = vpack.c.b16 %v4502_v43, %v12706_v33  ;;  %v5817_v30 = vshll.u32 %v12726_v16, 16  ;;  %v5821_v7 = vshrl.u32 %v12726_v16, 16  ;;  %v5827_v61 = vshll.u32 %v12733_v11, 16  ;;  %v5582_v52 = vld [vmem:[#allocation3 + $0x44] sm:$0x1] }
 0x2ef   : > { %v5813_v31 = vrot.slane %v5811_v17, 5  ;;  %v5306_v44 = vrot.slane %v5304_v35, 7  ;;  %v5141_v38 = vadd.f32 %v12362_v36, %v5105_v14  ;;  %v544_v23 = vsel %vm12278_vm3, 0, %v543_v48  ;;  %v4608_v28 = vpop.f32.mrf.mxu3  ;;  %v4086_v58 = vld [vmem:[#allocation2 + $0xd4] sm:$0x1] }
 0x2f0   : > { %v4448_v37 = vshrl.u32 %v4084_v4, 16  ;;  %v5819_v33 = vrot.slane %v5817_v30, 5  ;;  %v5823_v3 = vrot.slane %v5821_v7, 4  ;;  %v5829_v29 = vrot.slane %v5827_v61, 5  ;;  %545 = vst [vmem:[#allocation3 + $0x5c] sm:$0x1] %v544_v23 }
 0x2f1   : > { %v5814_v32 = vor.u32 %v5813_v31, %v5810_v41  ;;  %v5309_v51 = vor.u32 %v5307_v27, %v5306_v44  ;;  %v5311_v2 = vrot.slane %v5306_v44, 4  ;;  %v5173_v8 = vmax.f32 %v5141_v38, 0.0  ;;  %v12747_v56 = vpop.f32.mrf.mxu0 }
 0x2f2   : > { %v4672_v10 = vadd.f32 %v4608_v28, %v12441_v40  ;;  %v4867_v57 = vrot.slane %v4086_v58, 5  ;;  %v5824_v19 = vor.u32 %v5823_v3, %v5819_v33  ;;  %v4450_v22 = vrot.slane %v4448_v37, 4 }
 0x2f3   : > { %v5815_v46 = vrot.slane %v5814_v32, 4  ;;  %v5310_v43 = vsel %vm11053_vm9, %v5302_v47, %v5309_v51  ;;  %v5583_v0 = vsel %vm12261_vm1, %v5311_v2, %v5582_v52  ;;  %v5205_v41 = vpack.c.bf16 %v5173_v8, %v5173_v8  ;;  %v5585_v52 = vld [vmem:[#allocation3 + $0x48] sm:$0xf]  ;;  %v15181_v2 = vld [vmem:[#allocation5_spill] sm:$0xff] }
 0x2f4   : > { %v5070_v17 = vadd.f32 %v12681_v9, %v4672_v10  ;;  %5581 = vst.msk [vmem:[#allocation3 + $0x40] sm:$0xf] %vm456_vm4, %v5310_v43  ;;  %v4868_v40 = vsel %vm10970_vm12, %v4866_v34, %v4867_v57  ;;  %v5825_v27 = vrot.slane %v5824_v19, 4  ;;  %v4451_v14 = vshll.u32 %v4084_v4, 16  ;;  %10244 = vmatmul.msk.bf16.gmra.mxu3 %vm1667_vm13, %v4519_v63  ;;  %v5672_v10 = vld [vmem:[#allocation3 + $0x3c] sm:$0xf] }
 0x2f5   : > { %v5820_v35 = vsel %vm11024_vm2, %v5815_v46, %v5819_v33  ;;  %5584 = vst [vmem:[#allocation3 + $0x44] sm:$0x1] %v5583_v0  ;;  %v5313_v48 = vshrl.u32 %v5205_v41, 16  ;;  %v5316_v31 = vshll.u32 %v5205_v41, 16  ;;  %v4902_v30 = vunpack.c.l.b16 %v4868_v40  ;;  %v491_v33 = vld [vmem:[#allocation3 + $0x60] sm:$0x1] }
 0x2f6   : > { %v5106_v47 = vmul.f32 %v12351_v15, %v5070_v17  ;;  %v5830_v9 = vsel %vm11024_vm2, %v5825_v27, %v5829_v29  ;;  %v6105_v7 = vunpack.c.l.b16 %v5820_v35  ;;  %v4453_v61 = vrot.slane %v4451_v14, 5 }
 0x2f7   : > { %v4457_v34 = vshll.u32 %v12688_v26, 16  ;;  %v12764_v44 = vrot.slane %v5313_v48, 7  ;;  %v4918_v38 = vpack.c.b16 %v4902_v30, %v4901_v45  ;;  %v6106_v23 = vunpack.c.l.b16 %v5830_v9  ;;  %v4611_v37 = vpop.f32.mrf.mxu3  ;;  %v546_v9 = vld [vmem:[#allocation3 + $0x68] sm:$0x1] }
 0x2f8   : > { %v5142_v4 = vadd.f32 %v12362_v36, %v5106_v47  ;;  %v4454_v28 = vor.u32 %v4453_v61, %v4450_v22  ;;  %v4461_v63 = vshrl.u32 %v12688_v26, 16  ;;  %v4467_v32 = vshll.u32 %v4086_v58, 16 }
 0x2f9   : > { %v4459_v15 = vrot.slane %v4457_v34, 5  ;;  %v5318_v3 = vor.u32 %v5316_v31, %v12764_v44  ;;  %v5319_v29 = vrot.slane %v12764_v44, 4  ;;  %v4673_v8 = vadd.f32 %v4611_v37, %v15181_v2  ;;  %v12771_v57 = vpop.f32.mrf.mxu0 }
 0x2fa   : > { %v5174_v51 = vmax.f32 %v5142_v4, 0.0  ;;  %v6133_v36 = vpack.c.b16 %v6106_v23, %v6105_v7  ;;  %v4455_v45 = vrot.slane %v4454_v28, 4  ;;  %v4463_v46 = vrot.slane %v4461_v63, 4  ;;  %v12797_v4 = vld [vmem:[%s15100_s5] ss:$0 sm:$0xff] }
 0x2fb   : > { %v4469_v19 = vrot.slane %v4467_v32, 5  ;;  %v5586_v22 = vsel %vm12423_vm7, %v5318_v3, %v5585_v52  ;;  %v5071_v58 = vadd.f32 %v12715_v21, %v4673_v8  ;;  %v10744_v43 = vld [vmem:[#allocation3 + $0x3c] sm:$0xff]  ;;  %v492_v0 = vsel %vm12261_vm1, 0, %v491_v33  ;;  %v12788_v21 = vld [vmem:[%s15099_s4] ss:$0 sm:$0xff] }
 0x2fc   : > { %v5206_v26 = vpack.c.bf16 %v5174_v51, %v5174_v51  ;;  %v12778_v41 = vld [vmem:[#allocation3 + $0x40] sm:$0xf]  ;;  %5587 = vst [vmem:[#allocation3 + $0x48] sm:$0xf] %v5586_v22  ;;  %10284 = vmatmul.msk.bf16.gmra.mxu1 %vm6145_vm6, %v6133_v36  ;;  %v4460_v17 = vsel %vm11024_vm2, %v4455_v45, %v4459_v15  ;;  %v4464_v40 = vor.u32 %v4463_v46, %v4459_v15  ;;  %v12783_v35 = vld [vmem:[#allocation3 + $0x44] sm:$0x1] }
 0x2fd   : > { %v5832_v27 = vshrl.u32 %v5672_v10, 16  ;;  %v5835_v14 = vshll.u32 %v5672_v10, 16  ;;  %v5107_v47 = vmul.f32 %v12788_v21, %v5071_v58  ;;  %10278 = vmatmul.msk.bf16.gmra.mxu0 %vm1667_vm13, %v4918_v38  ;;  %10365 = vmatmul.msk.bf16.gmra.mxu2 %vm6145_vm6, %v10744_v43  ;;  %v4503_v30 = vunpack.c.l.b16 %v4460_v17  ;;  %493 = vst [vmem:[#allocation3 + $0x60] sm:$0x1] %v492_v0  ;;  %v5589_v28 = vld [vmem:[#allocation3 + $0x50] sm:$0x1] }
 0x2fe   : > { %v5321_v48 = vshrl.u32 %v5206_v26, 16  ;;  %v5324_v31 = vshll.u32 %v5206_v26, 16  ;;  %v4465_v7 = vrot.slane %v4464_v40, 4  ;;  %v5841_v44 = vshll.u32 %v12778_v41, 16  ;;  %v6507_v26 = vld [vmem:[#allocation3] sm:$0xe] }
 0x2ff   : > { %v5834_v61 = vrot.slane %v5832_v27, 4  ;;  %v5837_v34 = vrot.slane %v5835_v14, 5  ;;  %v5143_v23 = vadd.f32 %v12797_v4, %v5107_v47  ;;  %v5845_v38 = vshrl.u32 %v12778_v41, 16  ;;  %v4613_v15 = vpop.f32.mrf.mxu3  ;;  %v494_v47 = vld [vmem:[#allocation3 + $0x6c] sm:$0x1] }
 0x300   : > { %v5323_v52 = vrot.slane %v5321_v48, 7  ;;  %v5851_v37 = vshll.u32 %v12783_v35, 16  ;;  %v4470_v63 = vsel %vm11024_vm2, %v4465_v7, %v4469_v19  ;;  %v5843_v33 = vrot.slane %v5841_v44, 5 }
 0x301   : > { %v5838_v32 = vor.u32 %v5837_v34, %v5834_v61  ;;  %v547_v3 = vsel %vm12278_vm3, 0, %v546_v9  ;;  %v5175_v8 = vmax.f32 %v5143_v23, 0.0  ;;  %v4674_v10 = vadd.f32 %v4613_v15, %v12730_v1  ;;  %v12807_v36 = vpop.f32.mrf.mxu0 }
 0x302   : > { %v5326_v51 = vor.u32 %v5324_v31, %v5323_v52  ;;  %v5328_v2 = vrot.slane %v5323_v52, 4  ;;  %548 = vst [vmem:[#allocation3 + $0x68] sm:$0x1] %v547_v3  ;;  %v4504_v45 = vunpack.c.l.b16 %v4470_v63  ;;  %v5847_v22 = vrot.slane %v5845_v38, 4  ;;  %v10819_v52 = vld [vmem:[#allocation3 + $0x8] sm:$0x1] }
 0x303   : > { %v5839_v46 = vrot.slane %v5838_v32, 4  ;;  %v5207_v43 = vpack.c.bf16 %v5175_v8, %v5175_v8  ;;  %v5072_v0 = vadd.f32 %v12747_v56, %v4674_v10  ;;  %v5853_v40 = vrot.slane %v5851_v37, 5  ;;  %v5674_v27 = vld [vmem:[#allocation3 + $0x48] sm:$0xf]  ;;  %v10818_v56 = vld [vmem:[#allocation3 + $0x4] sm:$0xf] }
 0x304   : > { %v5327_v19 = vsel %vm11053_vm9, %v5319_v29, %v5326_v51  ;;  %v5590_v58 = vsel %vm12261_vm1, %v5328_v2, %v5589_v28  ;;  %v4520_v17 = vpack.c.b16 %v4504_v45, %v4503_v30  ;;  %v5848_v1 = vor.u32 %v5847_v22, %v5843_v33  ;;  %v5592_v37 = vld [vmem:[#allocation3 + $0x54] sm:$0xf] }
 0x305   : > { %5588 = vst.msk [vmem:[#allocation3 + $0x4c] sm:$0xf] %vm456_vm4, %v5327_v19  ;;  %v5330_v14 = vshrl.u32 %v5207_v43, 16  ;;  %v5108_v48 = vmul.f32 %v12788_v21, %v5072_v0  ;;  %v5844_v31 = vsel %vm11024_vm2, %v5839_v46, %v5843_v33  ;;  %v10376_v29 = vrot.slane %v6507_v26, 9  ;;  %v15182_v33 = vld [vmem:[#allocation17_spill] sm:$0xff]  ;;  %v15183_v3 = vld [vmem:[#allocation15_spill] sm:$0xff] }
 0x306   : > { %5591 = vst [vmem:[#allocation3 + $0x50] sm:$0x1] %v5590_v58  ;;  %v5333_v9 = vshll.u32 %v5207_v43, 16  ;;  %10245 = vmatmul.msk.bf16.gmra.mxu3 %vm1667_vm13, %v4520_v17  ;;  %v5849_v7 = vrot.slane %v5848_v1, 4  ;;  %v6557_v61 = vrot.slane %v10818_v56, 5  ;;  %v495_v30 = vsel %vm12261_vm1, 0, %v494_v47 }
 0x307   : > { %v12821_v34 = vrot.slane %v5330_v14, 7  ;;  %v5144_v44 = vadd.f32 %v12797_v4, %v5108_v48  ;;  %v6560_v23 = vrot.slane %v10819_v52, 5  ;;  %496 = vst [vmem:[#allocation3 + $0x6c] sm:$0x1] %v495_v30  ;;  %v5856_v38 = vshrl.u32 %v5674_v27, 16  ;;  %v4616_v28 = vpop.f32.mrf.mxu3  ;;  %v15184_v10 = vld [vmem:[#allocation7_spill] sm:$0xff] }
 0x308   : > { %v5854_v15 = vsel %vm11024_vm2, %v5849_v7, %v5853_v40  ;;  %v6559_v63 = vrot.slane %v6557_v61, 4  ;;  %v5859_v32 = vshll.u32 %v5674_v27, 16  ;;  %v3735_v51 = vadd.f32 %v15183_v3, %v15182_v33  ;;  %v10755_v1 = vld [vmem:[#allocation3 + $0xc] sm:$0xff] }
 0x309   : > { %v5335_v2 = vor.u32 %v5333_v9, %v12821_v34  ;;  %v5176_v8 = vmax.f32 %v5144_v44, 0.0  ;;  %v4675_v45 = vadd.f32 %v4616_v28, %v15184_v10  ;;  %v12830_v46 = vpop.f32.mrf.mxu0  ;;  %v6107_v22 = vunpack.c.l.b16 %v5844_v31  ;;  %v15185_v9 = vld [vmem:[#allocation6_spill] sm:$0xff]  ;;  %v549_v44 = vld [vmem:[#allocation3 + $0x74] sm:$0x1] }
 0x30a   : > { %v6108_v26 = vunpack.c.l.b16 %v5854_v15  ;;  %v6558_v19 = vsel %vm10970_vm12, %v10376_v29, %v6557_v61  ;;  %v5858_v58 = vrot.slane %v5856_v38, 4  ;;  %v6561_v27 = vsel %vm10970_vm12, %v6559_v63, %v6560_v23  ;;  %v5596_v15 = vld [vmem:[#allocation3 + $0x5c] sm:$0x1] }
 0x30b   : > { %v5593_v43 = vsel %vm12423_vm7, %v5335_v2, %v5592_v37  ;;  %v5208_v0 = vpack.c.bf16 %v5176_v8, %v5176_v8  ;;  %v5073_v17 = vadd.f32 %v12771_v57, %v4675_v45  ;;  %v5861_v31 = vrot.slane %v5859_v32, 5 }
 0x30c   : > { %v10745_v40 = vld [vmem:[#allocation3 + $0x48] sm:$0xff]  ;;  %5594 = vst [vmem:[#allocation3 + $0x54] sm:$0xf] %v5593_v43  ;;  %v6134_v48 = vpack.c.b16 %v6108_v26, %v6107_v22  ;;  %v6564_v29 = vrot.slane %v12519_v59, 5  ;;  %v4022_v7 = vadd.f32 %v15185_v9, %v3735_v51  ;;  %v6669_v57 = vunpack.c.l.b16 %v6558_v19 }
 0x30d   : > { %v12839_v14 = vld [vmem:[#allocation3 + $0x4c] sm:$0xf]  ;;  %v5338_v56 = vshrl.u32 %v5208_v0, 16  ;;  %v5109_v61 = vmul.f32 %v12788_v21, %v5073_v17  ;;  %10474 = vmatmul.msk.bf16.vlgmr.msrb.gmra.mxu0 %vm6145_vm6, %v10755_v1  ;;  %10366 = vmatmul.msk.bf16.gmra.mxu2 %vm6145_vm6, %v10745_v40  ;;  %v12847_v30 = vld [vmem:[#allocation3 + $0x50] sm:$0x1]  ;;  %v6670_v52 = vunpack.c.l.b16 %v6561_v27  ;;  %v5862_v23 = vor.u32 %v5861_v31, %v5858_v58 }
 0x30e   : > { %v5865_v47 = vshll.u32 %v12839_v14, 16  ;;  %10285 = vmatmul.msk.bf16.gmra.mxu1 %vm6145_vm6, %v6134_v48  ;;  %v5869_v59 = vshrl.u32 %v12839_v14, 16  ;;  %v5341_v28 = vshll.u32 %v5208_v0, 16  ;;  %v550_v32 = vsel %vm12278_vm3, 0, %v549_v44  ;;  %v6508_v19 = vld [vmem:[#allocation3 + $0xc] sm:$0xe]  ;;  %v12870_v44 = vpop.f32.mrf.mxu1 }
 0x30f   : > { %v5340_v37 = vrot.slane %v5338_v56, 7  ;;  %v5145_v63 = vadd.f32 %v12797_v4, %v5109_v61  ;;  %v5336_v33 = vrot.slane %v12821_v34, 4  ;;  %v4618_v3 = vpop.f32.mrf.mxu3  ;;  %v5875_v2 = vshll.u32 %v12847_v30, 16  ;;  %551 = vst [vmem:[#allocation3 + $0x74] sm:$0x1] %v550_v32 }
 0x310   : > { %v5867_v38 = vrot.slane %v5865_v47, 5  ;;  %v5871_v51 = vrot.slane %v5869_v59, 4  ;;  %v6566_v8 = vrot.slane %v6564_v29, 4  ;;  %v4676_v26 = vadd.f32 %v4618_v3, %v4022_v7 }
 0x311   : > { %v5343_v10 = vor.u32 %v5341_v28, %v5340_v37  ;;  %v5345_v45 = vrot.slane %v5340_v37, 4  ;;  %v5177_v22 = vmax.f32 %v5145_v63, 0.0  ;;  %v12856_v58 = vpop.f32.mrf.mxu0  ;;  %v6701_v43 = vpack.c.b16 %v6670_v52, %v6669_v57  ;;  %v497_v57 = vld [vmem:[#allocation3 + $0x78] sm:$0x1]  ;;  %v12872_v52 = vpop.f32.mrf.mxu2  ;;  %v6509_v63 = vld [vmem:[#allocation3 + $0x18] sm:$0xe] }
 0x312   : > { %v5863_v0 = vrot.slane %v5862_v23, 4  ;;  %v5872_v17 = vor.u32 %v5871_v51, %v5867_v38  ;;  %v6567_v1 = vrot.slane %v12529_v39, 5  ;;  %v5074_v48 = vadd.f32 %v12807_v36, %v4676_v26  ;;  %v5599_v51 = vld [vmem:[#allocation3 + $0x60] sm:$0xf] }
 0x313   : > { %v5344_v34 = vsel %vm11053_vm9, %v5336_v33, %v5343_v10  ;;  %v5597_v40 = vsel %vm12261_vm1, %v5345_v45, %v5596_v15  ;;  %v5209_v27 = vpack.c.bf16 %v5177_v22, %v5177_v22  ;;  %v5877_v47 = vrot.slane %v5875_v2, 5  ;;  %v15186_v33 = vld [vmem:[#allocation16_spill] sm:$0xff] }
 0x314   : > { %5595 = vst.msk [vmem:[#allocation3 + $0x58] sm:$0xf] %vm456_vm4, %v5344_v34  ;;  %v5873_v31 = vrot.slane %v5872_v17, 4  ;;  %v10377_v9 = vrot.slane %v6508_v19, 9  ;;  %v5110_v56 = vmul.f32 %v12788_v21, %v5074_v48  ;;  %v5868_v39 = vsel %vm11024_vm2, %v5863_v0, %v5867_v38  ;;  %v10756_v34 = vld [vmem:[#allocation3 + $0x18] sm:$0xff]  ;;  %v15187_v48 = vld [vmem:[#allocation18_spill] sm:$0xff] }
 0x315   : > { %5598 = vst [vmem:[#allocation3 + $0x5c] sm:$0x1] %v5597_v40  ;;  %v5347_v7 = vshrl.u32 %v5209_v27, 16  ;;  %v6568_v61 = vsel %vm10970_vm12, %v6566_v8, %v6567_v1  ;;  %v5350_v36 = vshll.u32 %v5209_v27, 16  ;;  %v498_v38 = vsel %vm12261_vm1, 0, %v497_v57 }
 0x316   : > { %10393 = vmatmul.msk.bf16.vlgmr.msrb.gmra.mxu3 %vm6145_vm6, %v6701_v43  ;;  %v5878_v23 = vsel %vm11024_vm2, %v5873_v31, %v5877_v47  ;;  %v6565_v59 = vsel %vm10970_vm12, %v10377_v9, %v6564_v29  ;;  %v5146_v28 = vadd.f32 %v12797_v4, %v5110_v56  ;;  %499 = vst [vmem:[#allocation3 + $0x78] sm:$0x1] %v498_v38  ;;  %v6571_v32 = vrot.slane %v12589_v5, 5  ;;  %v5676_v9 = vld [vmem:[#allocation3 + $0x54] sm:$0xf] }
 0x317   : > { %v12881_v37 = vrot.slane %v5347_v7, 7  ;;  %v6110_v15 = vunpack.c.l.b16 %v5878_v23  ;;  %v3737_v3 = vadd.f32 %v15186_v33, %v12145_v60  ;;  %v4621_v2 = vpop.f32.mrf.mxu3  ;;  %v6109_v8 = vunpack.c.l.b16 %v5868_v39  ;;  %v5603_v33 = vld [vmem:[#allocation3 + $0x68] sm:$0x1] }
 0x318   : > { %v6672_v10 = vunpack.c.l.b16 %v6568_v61  ;;  %v5178_v45 = vmax.f32 %v5146_v28, 0.0  ;;  %v4677_v22 = vadd.f32 %v4621_v2, %v12138_v53  ;;  %v6671_v43 = vunpack.c.l.b16 %v6565_v59  ;;  %v6207_v59 = vpop.f32.mrf.mxu1 }
 0x319   : > { %v5352_v29 = vor.u32 %v5350_v36, %v12881_v37  ;;  %v12889_v26 = vpop.f32.mrf.mxu0  ;;  %v6135_v19 = vpack.c.b16 %v6110_v15, %v6109_v8  ;;  %v10378_v0 = vrot.slane %v6509_v63, 9  ;;  %v6574_v17 = vrot.slane %v12591_v55, 5  ;;  %v6427_v38 = vpop.f32.mrf.mxu2 }
 0x31a   : > { %v5210_v60 = vpack.c.bf16 %v5178_v45, %v5178_v45  ;;  %v5075_v1 = vadd.f32 %v12830_v46, %v4677_v22  ;;  %v6573_v27 = vrot.slane %v6571_v32, 4  ;;  %v4024_v31 = vadd.f32 %v15187_v48, %v3737_v3 }
 0x31b   : > { %v5600_v5 = vsel %vm12423_vm7, %v5352_v29, %v5599_v51  ;;  %v10746_v40 = vld [vmem:[#allocation3 + $0x54] sm:$0xff]  ;;  %v12898_v53 = vadd.f32 %v12134_v12, %v12168_v25  ;;  %v6702_v47 = vpack.c.b16 %v6672_v10, %v6671_v43  ;;  %v12904_v55 = vsel %vm10970_vm12, %v10378_v0, %v6571_v32  ;;  %v552_v32 = vld [vmem:[#allocation3 + $0x80] sm:$0x1] }
 0x31c   : > { %5601 = vst [vmem:[#allocation3 + $0x60] sm:$0xf] %v5600_v5  ;;  %v12900_v7 = vld [vmem:[#allocation3 + $0x58] sm:$0xf]  ;;  %v5353_v46 = vrot.slane %v12881_v37, 4  ;;  %v5355_v56 = vshrl.u32 %v5210_v60, 16  ;;  %v5111_v39 = vmul.f32 %v12788_v21, %v5075_v1  ;;  %v12916_v63 = vadd.f32 %v6427_v38, %v6207_v59 }
 0x31d   : > { %10475 = vmatmul.msk.bf16.gmra.mxu0 %vm6145_vm6, %v10756_v34  ;;  %10367 = vmatmul.msk.bf16.gmra.mxu2 %vm6145_vm6, %v10746_v40  ;;  %v12910_v12 = vld [vmem:[#allocation3 + $0x5c] sm:$0x1]  ;;  %v5880_v25 = vshrl.u32 %v5676_v9, 16  ;;  %v5358_v61 = vshll.u32 %v5210_v60, 16  ;;  %v5883_v57 = vshll.u32 %v5676_v9, 16  ;;  %v5889_v36 = vshll.u32 %v12900_v7, 16 }
 0x31e   : > { %10286 = vmatmul.msk.bf16.gmra.mxu1 %vm6145_vm6, %v6135_v19  ;;  %v5893_v23 = vshrl.u32 %v12900_v7, 16  ;;  %v5357_v37 = vrot.slane %v5355_v56, 7  ;;  %v5147_v28 = vadd.f32 %v12797_v4, %v5111_v39  ;;  %v5899_v10 = vshll.u32 %v12910_v12, 16  ;;  %v12925_v34 = vld [vmem:[#allocation3 + $0x24] sm:$0xe] }
 0x31f   : > { %v5882_v15 = vrot.slane %v5880_v25, 4  ;;  %v4623_v3 = vpop.f32.mrf.mxu3  ;;  %v5885_v51 = vrot.slane %v5883_v57, 5  ;;  %v5891_v2 = vrot.slane %v5889_v36, 5  ;;  %v553_v60 = vsel %vm12278_vm3, 0, %v552_v32  ;;  %v6511_v56 = vld [vmem:[#allocation3 + $0x30] sm:$0xe] }
 0x320   : > { %v5895_v8 = vrot.slane %v5893_v23, 4  ;;  %v5360_v29 = vor.u32 %v5358_v61, %v5357_v37  ;;  %v5362_v45 = vrot.slane %v5357_v37, 4  ;;  %v5179_v22 = vmax.f32 %v5147_v28, 0.0  ;;  %554 = vst [vmem:[#allocation3 + $0x80] sm:$0x1] %v553_v60 }
 0x321   : > { %v4678_v19 = vadd.f32 %v4623_v3, %v4024_v31  ;;  %v12919_v43 = vpop.f32.mrf.mxu0  ;;  %v5886_v0 = vor.u32 %v5885_v51, %v5882_v15  ;;  %v6575_v1 = vsel %vm10970_vm12, %v6573_v27, %v6574_v17  ;;  %v5901_v61 = vrot.slane %v5899_v10, 5  ;;  %v500_v36 = vld [vmem:[#allocation3 + $0x84] sm:$0x1] }
 0x322   : > { %v5896_v5 = vor.u32 %v5895_v8, %v5891_v2  ;;  %v5361_v40 = vsel %vm11053_vm9, %v5353_v46, %v5360_v29  ;;  %v5604_v48 = vsel %vm12261_vm1, %v5362_v45, %v5603_v33  ;;  %v5211_v9 = vpack.c.bf16 %v5179_v22, %v5179_v22  ;;  %v5606_v33 = vld [vmem:[#allocation3 + $0x6c] sm:$0xf]  ;;  %v15188_v45 = vld [vmem:[#allocation20_spill] sm:$0xff] }
 0x323   : > { %v5076_v31 = vadd.f32 %v12856_v58, %v4678_v19  ;;  %5602 = vst.msk [vmem:[#allocation3 + $0x64] sm:$0xf] %vm456_vm4, %v5361_v40  ;;  %v5887_v39 = vrot.slane %v5886_v0, 4  ;;  %v6578_v17 = vrot.slane %v12659_v24, 5  ;;  %v6673_v46 = vunpack.c.l.b16 %v12904_v55 }
 0x324   : > { %v5897_v25 = vrot.slane %v5896_v5, 4  ;;  %5605 = vst [vmem:[#allocation3 + $0x68] sm:$0x1] %v5604_v48  ;;  %v5364_v27 = vshrl.u32 %v5211_v9, 16  ;;  %v10379_v23 = vrot.slane %v12925_v34, 9  ;;  %v6674_v38 = vunpack.c.l.b16 %v6575_v1 }
 0x325   : > { %v5112_v57 = vmul.f32 %v12788_v21, %v5076_v31  ;;  %v5892_v58 = vsel %vm11024_vm2, %v5887_v39, %v5891_v2  ;;  %v501_v37 = vsel %vm12261_vm1, 0, %v500_v36  ;;  %v5367_v15 = vshll.u32 %v5211_v9, 16 }
 0x326   : > { %10394 = vmatmul.msk.bf16.gmra.mxu3 %vm6145_vm6, %v6702_v47  ;;  %v5902_v59 = vsel %vm11024_vm2, %v5897_v25, %v5901_v61  ;;  %v12944_v28 = vrot.slane %v5364_v27, 7  ;;  %502 = vst [vmem:[#allocation3 + $0x84] sm:$0x1] %v501_v37  ;;  %v6111_v47 = vunpack.c.l.b16 %v5892_v58  ;;  %v12949_v51 = vrot.slane %v6578_v17, 4  ;;  %v15189_v25 = vld [vmem:[#allocation19_spill] sm:$0xff]  ;;  %v15190_v27 = vld [vmem:[#allocation24_spill] sm:$0xff] }
 0x327   : > { %v5148_v55 = vadd.f32 %v12797_v4, %v5112_v57  ;;  %v6112_v32 = vunpack.c.l.b16 %v5902_v59  ;;  %v4626_v3 = vpop.f32.mrf.mxu3  ;;  %v10380_v2 = vrot.slane %v6511_v56, 9  ;;  %v6585_v8 = vrot.slane %v12726_v16, 5  ;;  %v10757_v56 = vld [vmem:[#allocation3 + $0x24] sm:$0xff] }
 0x328   : > { %v5369_v10 = vor.u32 %v5367_v15, %v12944_v28  ;;  %v4679_v22 = vadd.f32 %v4626_v3, %v15188_v45  ;;  %v6581_v19 = vrot.slane %v12664_v6, 5  ;;  %v6588_v40 = vrot.slane %v12733_v11, 5  ;;  %v15191_v57 = vld [vmem:[#allocation21_spill] sm:$0xff] }
 0x329   : > { %v5180_v29 = vmax.f32 %v5148_v55, 0.0  ;;  %v12955_v0 = vpop.f32.mrf.mxu0  ;;  %v6136_v5 = vpack.c.b16 %v6112_v32, %v6111_v47  ;;  %v6586_v60 = vsel %vm10970_vm12, %v10380_v2, %v6585_v8  ;;  %v6587_v1 = vrot.slane %v6585_v8, 4  ;;  %v5678_v11 = vld [vmem:[#allocation3 + $0x60] sm:$0xf]  ;;  %v555_v8 = vld [vmem:[#allocation3 + $0x8c] sm:$0x1] }
 0x32a   : > { %v5370_v48 = vrot.slane %v12944_v28, 4  ;;  %v5607_v16 = vsel %vm12423_vm7, %v5369_v10, %v5606_v33  ;;  %v5077_v31 = vadd.f32 %v12889_v26, %v4679_v22  ;;  %v10747_v39 = vld [vmem:[#allocation3 + $0x60] sm:$0xff]  ;;  %v4026_v61 = vadd.f32 %v15189_v25, %v12898_v53 }
 0x32b   : > { %v5212_v9 = vpack.c.bf16 %v5180_v29, %v5180_v29  ;;  %v12968_v36 = vadd.f32 %v15191_v57, %v15190_v27  ;;  %5608 = vst [vmem:[#allocation3 + $0x6c] sm:$0xf] %v5607_v16  ;;  %v6703_v58 = vpack.c.b16 %v6674_v38, %v6673_v46  ;;  %v12970_v59 = vld [vmem:[#allocation3 + $0x64] sm:$0xf]  ;;  %v6589_v37 = vsel %vm10970_vm12, %v6587_v1, %v6588_v40  ;;  %v12977_v53 = vld [vmem:[#allocation3 + $0x68] sm:$0x1] }
 0x32c   : > { %v5113_v26 = vmul.f32 %v12788_v21, %v5077_v31  ;;  %v5904_v15 = vshrl.u32 %v5678_v11, 16  ;;  %v6677_v55 = vunpack.c.l.b16 %v6586_v60  ;;  %v5907_v46 = vshll.u32 %v5678_v11, 16  ;;  %v5610_v29 = vld [vmem:[#allocation3 + $0x74] sm:$0x1] }
 0x32d   : > { %v5372_v28 = vshrl.u32 %v5212_v9, 16  ;;  %10476 = vmatmul.msk.bf16.gmra.mxu0 %vm6145_vm6, %v10757_v56  ;;  %10368 = vmatmul.msk.bf16.gmra.mxu2 %vm6145_vm6, %v10747_v39  ;;  %v5375_v32 = vshll.u32 %v5212_v9, 16  ;;  %v5913_v38 = vshll.u32 %v12970_v59, 16  ;;  %v5917_v33 = vshrl.u32 %v12970_v59, 16 }
 0x32e   : > { %10287 = vmatmul.msk.bf16.gmra.mxu1 %vm6145_vm6, %v6136_v5  ;;  %v5149_v47 = vadd.f32 %v12797_v4, %v5113_v26  ;;  %v5906_v2 = vrot.slane %v5904_v15, 4  ;;  %v6678_v10 = vunpack.c.l.b16 %v6589_v37  ;;  %v5909_v22 = vrot.slane %v5907_v46, 5 }
 0x32f   : > { %v5374_v3 = vrot.slane %v5372_v28, 7  ;;  %v4628_v45 = vpop.f32.mrf.mxu3  ;;  %v5915_v1 = vrot.slane %v5913_v38, 5  ;;  %v5919_v40 = vrot.slane %v5917_v33, 4  ;;  %v5923_v60 = vshll.u32 %v12977_v53, 16 }
 0x330   : > { %v5181_v9 = vmax.f32 %v5149_v47, 0.0  ;;  %v4680_v31 = vadd.f32 %v4628_v45, %v4026_v61  ;;  %v5910_v39 = vor.u32 %v5909_v22, %v5906_v2  ;;  %v556_v27 = vsel %vm12278_vm3, 0, %v555_v8  ;;  %v6512_v61 = vld [vmem:[#allocation3 + $0x3c] sm:$0xe] }
 0x331   : > { %v5377_v16 = vor.u32 %v5375_v32, %v5374_v3  ;;  %v5379_v5 = vrot.slane %v5374_v3, 4  ;;  %v12984_v56 = vpop.f32.mrf.mxu0  ;;  %v5920_v25 = vor.u32 %v5919_v40, %v5915_v1  ;;  %v12988_v57 = vpack.c.b16 %v6678_v10, %v6677_v55  ;;  %557 = vst [vmem:[#allocation3 + $0x8c] sm:$0x1] %v556_v27  ;;  %v503_v3 = vld [vmem:[#allocation3 + $0x90] sm:$0x1] }
 0x332   : > { %v5213_v28 = vpack.c.bf16 %v5181_v9, %v5181_v9  ;;  %v5078_v26 = vadd.f32 %v12919_v43, %v4680_v31  ;;  %v5911_v15 = vrot.slane %v5910_v39, 4  ;;  %v5925_v46 = vrot.slane %v5923_v60, 5  ;;  %v15192_v60 = vld [vmem:[#allocation23_spill] sm:$0xff] }
 0x333   : > { %v5378_v11 = vsel %vm11053_vm9, %v5370_v48, %v5377_v16  ;;  %v5611_v37 = vsel %vm12261_vm1, %v5379_v5, %v5610_v29  ;;  %v5921_v32 = vrot.slane %v5920_v25, 4  ;;  %v6592_v38 = vrot.slane %v12778_v41, 5 }
 0x334   : > { %5609 = vst.msk [vmem:[#allocation3 + $0x70] sm:$0xf] %vm456_vm4, %v5378_v11  ;;  %v5381_v55 = vshrl.u32 %v5213_v28, 16  ;;  %v5114_v33 = vmul.f32 %v12788_v21, %v5078_v26  ;;  %v6579_v43 = vsel %vm10970_vm12, %v10379_v23, %v6578_v17  ;;  %v6582_v48 = vsel %vm10970_vm12, %v12949_v51, %v6581_v19  ;;  %v13019_v51 = vld [vmem:[#allocation3 + $0x48] sm:$0xe] }
 0x335   : > { %5612 = vst [vmem:[#allocation3 + $0x74] sm:$0x1] %v5611_v37  ;;  %v5916_v41 = vsel %vm11024_vm2, %v5911_v15, %v5915_v1  ;;  %v5926_v24 = vsel %vm11024_vm2, %v5921_v32, %v5925_v46  ;;  %v504_v34 = vsel %vm12261_vm1, 0, %v503_v3  ;;  %v10381_v47 = vrot.slane %v6512_v61, 9  ;;  %v5613_v19 = vld [vmem:[#allocation3 + $0x78] sm:$0xf] }
 0x336   : > { %10395 = vmatmul.msk.bf16.gmra.mxu3 %vm6145_vm6, %v6703_v58  ;;  %v13016_v17 = vrot.slane %v5381_v55, 7  ;;  %v5384_v6 = vshll.u32 %v5213_v28, 16  ;;  %v5150_v23 = vadd.f32 %v12797_v4, %v5114_v33  ;;  %v6114_v2 = vunpack.c.l.b16 %v5926_v24  ;;  %505 = vst [vmem:[#allocation3 + $0x90] sm:$0x1] %v504_v34  ;;  %v13021_v58 = vpop.f32.mrf.mxu2  ;;  %v10758_v28 = vld [vmem:[#allocation3 + $0x30] sm:$0xff]  ;;  %v15193_v15 = vld [vmem:[#allocation22_spill] sm:$0xff] }
 0x337   : > { %v4631_v8 = vpop.f32.mrf.mxu3  ;;  %v6113_v10 = vunpack.c.l.b16 %v5916_v41  ;;  %v6676_v29 = vunpack.c.l.b16 %v6582_v48  ;;  %v6594_v45 = vrot.slane %v6592_v38, 4  ;;  %v6595_v22 = vrot.slane %v12783_v35, 5 }
 0x338   : > { %v5386_v1 = vor.u32 %v5384_v6, %v13016_v17  ;;  %v5182_v40 = vmax.f32 %v5150_v23, 0.0  ;;  %v4681_v16 = vadd.f32 %v4631_v8, %v15192_v60  ;;  %v6593_v5 = vsel %vm10970_vm12, %v10381_v47, %v6592_v38  ;;  %v5680_v38 = vld [vmem:[#allocation3 + $0x6c] sm:$0xf]  ;;  %v5617_v8 = vld [vmem:[#allocation3 + $0x80] sm:$0x1] }
 0x339   : > { %v13028_v9 = vpop.f32.mrf.mxu0  ;;  %v6137_v31 = vpack.c.b16 %v6114_v2, %v6113_v10  ;;  %v6675_v39 = vunpack.c.l.b16 %v6579_v43  ;;  %v6596_v25 = vsel %vm10970_vm12, %v6594_v45, %v6595_v22  ;;  %v10382_v27 = vrot.slane %v13019_v51, 9  ;;  %v558_v51 = vld [vmem:[#allocation3 + $0x98] sm:$0x1] }
 0x33a   : > { %v5614_v35 = vsel %vm12423_vm7, %v5386_v1, %v5613_v19  ;;  %v5214_v11 = vpack.c.bf16 %v5182_v40, %v5182_v40  ;;  %v5079_v37 = vadd.f32 %v12955_v0, %v4681_v16  ;;  %v6680_v61 = vunpack.c.l.b16 %v6596_v25 }
 0x33b   : > { %v10748_v26 = vld [vmem:[#allocation3 + $0x6c] sm:$0xff]  ;;  %v4028_v32 = vadd.f32 %v15193_v15, %v12968_v36  ;;  %5615 = vst [vmem:[#allocation3 + $0x78] sm:$0xf] %v5614_v35  ;;  %v6704_v46 = vpack.c.b16 %v6676_v29, %v6675_v39  ;;  %v6679_v33 = vunpack.c.l.b16 %v6593_v5  ;;  %v5387_v43 = vrot.slane %v13016_v17, 4  ;;  %v13046_v36 = vpop.f32.mrf.mxu1 }
 0x33c   : > { %v13038_v55 = vld [vmem:[#allocation3 + $0x70] sm:$0xf]  ;;  %v5389_v48 = vshrl.u32 %v5214_v11, 16  ;;  %v5115_v3 = vmul.f32 %v12788_v21, %v5079_v37  ;;  %v13044_v0 = vld [vmem:[#allocation3 + $0x74] sm:$0x1]  ;;  %v5928_v41 = vshrl.u32 %v5680_v38, 16 }
 0x33d   : > { %10477 = vmatmul.msk.bf16.gmra.mxu0 %vm6145_vm6, %v10758_v28  ;;  %10369 = vmatmul.msk.bf16.gmra.mxu2 %vm6145_vm6, %v10748_v26  ;;  %v5392_v24 = vshll.u32 %v5214_v11, 16  ;;  %v5931_v34 = vshll.u32 %v5680_v38, 16  ;;  %v5937_v47 = vshll.u32 %v13038_v55, 16  ;;  %v5941_v17 = vshrl.u32 %v13038_v55, 16 }
 0x33e   : > { %10288 = vmatmul.msk.bf16.gmra.mxu1 %vm6145_vm6, %v6137_v31  ;;  %v5391_v6 = vrot.slane %v5389_v48, 7  ;;  %v5151_v23 = vadd.f32 %v12797_v4, %v5115_v3  ;;  %v5930_v2 = vrot.slane %v5928_v41, 4  ;;  %v13052_v19 = vpack.c.b16 %v6680_v61, %v6679_v33  ;;  %v6432_v29 = vpop.f32.mrf.mxu2  ;;  %v506_v41 = vld [vmem:[#allocation3 + $0x9c] sm:$0x1] }
 0x33f   : > { %v4633_v10 = vpop.f32.mrf.mxu3  ;;  %v5933_v45 = vrot.slane %v5931_v34, 5  ;;  %v5939_v22 = vrot.slane %v5937_v47, 5  ;;  %v5943_v1 = vrot.slane %v5941_v17, 4  ;;  %v5947_v40 = vshll.u32 %v13044_v0, 16 }
 0x340   : > { %v5394_v60 = vor.u32 %v5392_v24, %v5391_v6  ;;  %v5396_v16 = vrot.slane %v5391_v6, 4  ;;  %v5183_v5 = vmax.f32 %v5151_v23, 0.0  ;;  %v4682_v31 = vadd.f32 %v4633_v10, %v4028_v32  ;;  %v5620_v10 = vld [vmem:[#allocation3 + $0x84] sm:$0xf] }
 0x341   : > { %v13055_v39 = vpop.f32.mrf.mxu0  ;;  %v5934_v25 = vor.u32 %v5933_v45, %v5930_v2  ;;  %v5944_v35 = vor.u32 %v5943_v1, %v5939_v22  ;;  %v559_v11 = vsel %vm12278_vm3, 0, %v558_v51  ;;  %v6599_v37 = vrot.slane %v12839_v14, 5  ;;  %v15195_v51 = vld [vmem:[#allocation25_spill] sm:$0xff] }
 0x342   : > { %v5395_v28 = vsel %vm11053_vm9, %v5387_v43, %v5394_v60  ;;  %v5618_v26 = vsel %vm12261_vm1, %v5396_v16, %v5617_v8  ;;  %v5215_v61 = vpack.c.bf16 %v5183_v5, %v5183_v5  ;;  %v5080_v15 = vadd.f32 %v12984_v56, %v4682_v31  ;;  %560 = vst [vmem:[#allocation3 + $0x98] sm:$0x1] %v559_v11  ;;  %v15196_v31 = vld [vmem:[#allocation27_spill] sm:$0xff] }
 0x343   : > { %5616 = vst.msk [vmem:[#allocation3 + $0x7c] sm:$0xf] %vm456_vm4, %v5395_v28  ;;  %v5935_v32 = vrot.slane %v5934_v25, 4  ;;  %v5945_v38 = vrot.slane %v5944_v35, 4  ;;  %v5949_v33 = vrot.slane %v5947_v40, 5  ;;  %v6601_v48 = vrot.slane %v6599_v37, 4 }
 0x344   : > { %5619 = vst [vmem:[#allocation3 + $0x80] sm:$0x1] %v5618_v26  ;;  %v5398_v3 = vshrl.u32 %v5215_v61, 16  ;;  %v5116_v14 = vmul.f32 %v12788_v21, %v5080_v15  ;;  %v6600_v43 = vsel %vm10970_vm12, %v10382_v27, %v6599_v37  ;;  %v507_v47 = vsel %vm12261_vm1, 0, %v506_v41  ;;  %v10759_v15 = vld [vmem:[#allocation3 + $0x3c] sm:$0xff] }
 0x345   : > { %v5940_v56 = vsel %vm11024_vm2, %v5935_v32, %v5939_v22  ;;  %v5950_v34 = vsel %vm11024_vm2, %v5945_v38, %v5949_v33  ;;  %v6602_v17 = vrot.slane %v12847_v30, 5  ;;  %v5401_v23 = vshll.u32 %v5215_v61, 16  ;;  %508 = vst [vmem:[#allocation3 + $0x9c] sm:$0x1] %v507_v47  ;;  %v13086_v30 = vld [vmem:[#allocation3 + $0x54] sm:$0xe] }
 0x346   : > { %10396 = vmatmul.msk.bf16.gmra.mxu3 %vm6145_vm6, %v6704_v46  ;;  %v6212_v24 = vpop.f32.mrf.mxu1  ;;  %v13077_v6 = vrot.slane %v5398_v3, 7  ;;  %v5152_v2 = vadd.f32 %v12797_v4, %v5116_v14  ;;  %v15194_v46 = vld [vmem:[#allocation28_spill] sm:$0xff]  ;;  %v6115_v22 = vunpack.c.l.b16 %v5940_v56  ;;  %v6116_v1 = vunpack.c.l.b16 %v5950_v34  ;;  %v6434_v40 = vpop.f32.mrf.mxu2  ;;  %v15197_v33 = vld [vmem:[#allocation26_spill] sm:$0xff] }
 0x347   : > { %v13080_v27 = vadd.f32 %v6432_v29, %v6212_v24  ;;  %v3743_v8 = vadd.f32 %v15195_v51, %v15194_v46  ;;  %v4636_v45 = vpop.f32.mrf.mxu3  ;;  %v6603_v60 = vsel %vm10970_vm12, %v6601_v48, %v6602_v17  ;;  %v6681_v11 = vunpack.c.l.b16 %v6600_v43  ;;  %v5682_v3 = vld [vmem:[#allocation3 + $0x78] sm:$0xf] }
 0x348   : > { %v5403_v16 = vor.u32 %v5401_v23, %v13077_v6  ;;  %v5184_v5 = vmax.f32 %v5152_v2, 0.0  ;;  %v4683_v29 = vadd.f32 %v4636_v45, %v15196_v31  ;;  %v6138_v35 = vpack.c.b16 %v6116_v1, %v6115_v22  ;;  %v561_v45 = vld [vmem:[#allocation3 + $0xa4] sm:$0x1]  ;;  %v5624_v22 = vld [vmem:[#allocation3 + $0x8c] sm:$0x1] }
 0x349   : > { %v13090_v25 = vpop.f32.mrf.mxu0  ;;  %v6682_v37 = vunpack.c.l.b16 %v6603_v60  ;;  %v10383_v38 = vrot.slane %v13086_v30, 9  ;;  %v4030_v48 = vadd.f32 %v15197_v33, %v3743_v8  ;;  %v5404_v43 = vrot.slane %v13077_v6, 4 }
 0x34a   : > { %v5621_v28 = vsel %vm12423_vm7, %v5403_v16, %v5620_v10  ;;  %v5216_v26 = vpack.c.bf16 %v5184_v5, %v5184_v5  ;;  %v5081_v61 = vadd.f32 %v13028_v9, %v4683_v29  ;;  %v10749_v32 = vld [vmem:[#allocation3 + $0x78] sm:$0xff]  ;;  %v5952_v34 = vshrl.u32 %v5682_v3, 16 }
 0x34b   : > { %5622 = vst [vmem:[#allocation3 + $0x84] sm:$0xf] %v5621_v28  ;;  %v13097_v14 = vld [vmem:[#allocation3 + $0x7c] sm:$0xf]  ;;  %v13099_v41 = vpack.c.b16 %v6682_v37, %v6681_v11  ;;  %v13105_v9 = vld [vmem:[#allocation3 + $0x80] sm:$0x1] }
 0x34c   : > { %v5406_v24 = vshrl.u32 %v5216_v26, 16  ;;  %v5117_v56 = vmul.f32 %v12788_v21, %v5081_v61  ;;  %v5409_v47 = vshll.u32 %v5216_v26, 16  ;;  %v5955_v23 = vshll.u32 %v5682_v3, 16 }
 0x34d   : > { %10478 = vmatmul.msk.bf16.gmra.mxu0 %vm6145_vm6, %v10759_v15  ;;  %10370 = vmatmul.msk.bf16.gmra.mxu2 %vm6145_vm6, %v10749_v32  ;;  %v5961_v2 = vshll.u32 %v13097_v14, 16  ;;  %v5965_v46 = vshrl.u32 %v13097_v14, 16  ;;  %v5954_v10 = vrot.slane %v5952_v34, 4  ;;  %v5971_v31 = vshll.u32 %v13105_v9, 16 }
 0x34e   : > { %10289 = vmatmul.msk.bf16.gmra.mxu1 %vm6145_vm6, %v6138_v35  ;;  %v6214_v17 = vpop.f32.mrf.mxu1  ;;  %v5408_v6 = vrot.slane %v5406_v24, 7  ;;  %v5153_v51 = vadd.f32 %v12797_v4, %v5117_v56  ;;  %v6437_v60 = vpop.f32.mrf.mxu2  ;;  %v5957_v30 = vrot.slane %v5955_v23, 5  ;;  %v6606_v15 = vrot.slane %v12900_v7, 5  ;;  %v509_v23 = vld [vmem:[#allocation3 + $0xa8] sm:$0x1] }
 0x34f   : > { %v13111_v8 = vadd.f32 %v6434_v40, %v6214_v17  ;;  %v4638_v1 = vpop.f32.mrf.mxu3  ;;  %v5963_v16 = vrot.slane %v5961_v2, 5  ;;  %v5967_v5 = vrot.slane %v5965_v46, 4  ;;  %v562_v40 = vsel %vm12278_vm3, 0, %v561_v45 }
 0x350   : > { %v5411_v29 = vor.u32 %v5409_v47, %v5408_v6  ;;  %v5413_v35 = vrot.slane %v5408_v6, 4  ;;  %v5185_v11 = vmax.f32 %v5153_v51, 0.0  ;;  %v4684_v37 = vadd.f32 %v4638_v1, %v4030_v48  ;;  %563 = vst [vmem:[#allocation3 + $0xa4] sm:$0x1] %v562_v40 }
 0x351   : > { %v13114_v28 = vpop.f32.mrf.mxu0  ;;  %v5958_v26 = vor.u32 %v5957_v30, %v5954_v10  ;;  %v5968_v61 = vor.u32 %v5967_v5, %v5963_v16  ;;  %v5973_v34 = vrot.slane %v5971_v31, 5  ;;  %v6608_v47 = vrot.slane %v6606_v15, 4  ;;  %v5627_v30 = vld [vmem:[#allocation3 + $0x90] sm:$0xf] }
 0x352   : > { %v5412_v32 = vsel %vm11053_vm9, %v5404_v43, %v5411_v29  ;;  %v5625_v33 = vsel %vm12261_vm1, %v5413_v35, %v5624_v22  ;;  %v5217_v3 = vpack.c.bf16 %v5185_v11, %v5185_v11  ;;  %v5082_v24 = vadd.f32 %v13055_v39, %v4684_v37  ;;  %v15199_v22 = vld [vmem:[#allocation29_spill] sm:$0xff] }
 0x353   : > { %5623 = vst.msk [vmem:[#allocation3 + $0x88] sm:$0xf] %vm456_vm4, %v5412_v32  ;;  %v5959_v48 = vrot.slane %v5958_v26, 4  ;;  %v5969_v56 = vrot.slane %v5968_v61, 4  ;;  %v6607_v43 = vsel %vm10970_vm12, %v10383_v38, %v6606_v15  ;;  %v510_v6 = vsel %vm12261_vm1, 0, %v509_v23 }
 0x354   : > { %5626 = vst [vmem:[#allocation3 + $0x8c] sm:$0x1] %v5625_v33  ;;  %v5415_v17 = vshrl.u32 %v5217_v3, 16  ;;  %v5118_v7 = vmul.f32 %v12788_v21, %v5082_v24  ;;  %v6609_v51 = vrot.slane %v12910_v12, 5  ;;  %v5418_v10 = vshll.u32 %v5217_v3, 16  ;;  %v10760_v24 = vld [vmem:[#allocation3 + $0x48] sm:$0xff] }
 0x355   : > { %v5964_v39 = vsel %vm11024_vm2, %v5959_v48, %v5963_v16  ;;  %v5974_v46 = vsel %vm11024_vm2, %v5969_v56, %v5973_v34  ;;  %511 = vst [vmem:[#allocation3 + $0xa8] sm:$0x1] %v510_v6  ;;  %v13146_v12 = vld [vmem:[#allocation3 + $0x60] sm:$0xe]  ;;  %v6683_v40 = vunpack.c.l.b16 %v6607_v43  ;;  %v15201_v34 = vld [vmem:[#allocation8_spill] sm:$0xff] }
 0x356   : > { %10397 = vmatmul.msk.bf16.gmra.mxu3 %vm6145_vm6, %v12988_v57  ;;  %v6217_v2 = vpop.f32.mrf.mxu1  ;;  %v13137_v21 = vrot.slane %v5415_v17, 7  ;;  %v5154_v38 = vadd.f32 %v12797_v4, %v5118_v7  ;;  %v15198_v57 = vld [vmem:[#allocation9_spill] sm:$0xff]  ;;  %v6117_v5 = vunpack.c.l.b16 %v5964_v39  ;;  %v6118_v31 = vunpack.c.l.b16 %v5974_v46  ;;  %v6439_v29 = vpop.f32.mrf.mxu2  ;;  %v15200_v4 = vld [vmem:[#allocation30_spill] sm:$0xff] }
 0x357   : > { %v13140_v45 = vadd.f32 %v6437_v60, %v6217_v2  ;;  %v3745_v1 = vadd.f32 %v15199_v22, %v15198_v57  ;;  %v4641_v16 = vpop.f32.mrf.mxu3  ;;  %v6610_v35 = vsel %vm10970_vm12, %v6608_v47, %v6609_v51  ;;  %v10384_v56 = vrot.slane %v13146_v12, 9  ;;  %v5684_v17 = vld [vmem:[#allocation3 + $0x84] sm:$0xf]  ;;  %v13165_v39 = vld [vmem:[%s15099_s4] ss:$0 sm:$0xff] }
 0x358   : > { %v5420_v11 = vor.u32 %v5418_v10, %v13137_v21  ;;  %v5186_v37 = vmax.f32 %v5154_v38, 0.0  ;;  %v4685_v60 = vadd.f32 %v4641_v16, %v15200_v4  ;;  %v6139_v61 = vpack.c.b16 %v6118_v31, %v6117_v5  ;;  %v564_v31 = vld [vmem:[#allocation3 + $0xb0] sm:$0x1] }
 0x359   : > { %v13150_v26 = vpop.f32.mrf.mxu0  ;;  %v6684_v15 = vunpack.c.l.b16 %v6610_v35  ;;  %v4032_v47 = vadd.f32 %v15201_v34, %v3745_v1  ;;  %v5421_v43 = vrot.slane %v13137_v21, 4  ;;  %v5976_v6 = vshrl.u32 %v5684_v17, 16  ;;  %v13178_v1 = vld [vmem:[%s15100_s5] ss:$0 sm:$0xff]  ;;  %v5631_v35 = vld [vmem:[#allocation3 + $0x98] sm:$0x1] }
 0x35a   : > { %v5628_v32 = vsel %vm12423_vm7, %v5420_v11, %v5627_v30  ;;  %v5218_v33 = vpack.c.bf16 %v5186_v37, %v5186_v37  ;;  %v5083_v3 = vadd.f32 %v13090_v25, %v4685_v60  ;;  %v10750_v48 = vld [vmem:[#allocation3 + $0x84] sm:$0xff]  ;;  %v5979_v21 = vshll.u32 %v5684_v17, 16 }
 0x35b   : > { %5629 = vst [vmem:[#allocation3 + $0x90] sm:$0xf] %v5628_v32  ;;  %v13157_v7 = vld [vmem:[#allocation3 + $0x88] sm:$0xf]  ;;  %v13159_v23 = vpack.c.b16 %v6684_v15, %v6683_v40  ;;  %v13170_v46 = vld [vmem:[#allocation3 + $0x8c] sm:$0x1] }
 0x35c   : > { %v5423_v2 = vshrl.u32 %v5218_v33, 16  ;;  %v5119_v25 = vmul.f32 %v13165_v39, %v5083_v3  ;;  %v5426_v51 = vshll.u32 %v5218_v33, 16  ;;  %v5985_v38 = vshll.u32 %v13157_v7, 16 }
 0x35d   : > { %10479 = vmatmul.msk.bf16.gmra.mxu0 %vm6145_vm6, %v10760_v24  ;;  %10371 = vmatmul.msk.bf16.gmra.mxu2 %vm6145_vm6, %v10750_v48  ;;  %v5989_v57 = vshrl.u32 %v13157_v7, 16  ;;  %v5978_v5 = vrot.slane %v5976_v6, 4  ;;  %v5981_v37 = vrot.slane %v5979_v21, 5  ;;  %v6613_v34 = vrot.slane %v12970_v59, 5 }
 0x35e   : > { %10290 = vmatmul.msk.bf16.gmra.mxu1 %vm6145_vm6, %v6139_v61  ;;  %v6219_v10 = vpop.f32.mrf.mxu1  ;;  %v5425_v22 = vrot.slane %v5423_v2, 7  ;;  %v5155_v30 = vadd.f32 %v13178_v1, %v5119_v25  ;;  %v5987_v4 = vrot.slane %v5985_v38, 5  ;;  %v5995_v61 = vshll.u32 %v13170_v46, 16 }
 0x35f   : > { %v13181_v16 = vadd.f32 %v6439_v29, %v6219_v10  ;;  %v4643_v12 = vpop.f32.mrf.mxu3  ;;  %v6442_v11 = vpop.f32.mrf.mxu2  ;;  %v5991_v60 = vrot.slane %v5989_v57, 4  ;;  %v5982_v24 = vor.u32 %v5981_v37, %v5978_v5  ;;  %v565_v29 = vsel %vm12278_vm3, 0, %v564_v31  ;;  %v512_v57 = vld [vmem:[#allocation3 + $0xb4] sm:$0x1] }
 0x360   : > { %v5428_v40 = vor.u32 %v5426_v51, %v5425_v22  ;;  %v5430_v15 = vrot.slane %v5425_v22, 4  ;;  %v5187_v32 = vmax.f32 %v5155_v30, 0.0  ;;  %v4686_v33 = vadd.f32 %v4643_v12, %v4032_v47  ;;  %566 = vst [vmem:[#allocation3 + $0xb0] sm:$0x1] %v565_v29 }
 0x361   : > { %v13184_v3 = vpop.f32.mrf.mxu0  ;;  %v5992_v48 = vor.u32 %v5991_v60, %v5987_v4  ;;  %v5983_v47 = vrot.slane %v5982_v24, 4  ;;  %v5997_v10 = vrot.slane %v5995_v61, 5  ;;  %v6615_v21 = vrot.slane %v6613_v34, 4  ;;  %v15203_v60 = vld [vmem:[#allocation31_spill] sm:$0xff] }
 0x362   : > { %v5429_v17 = vsel %vm11053_vm9, %v5421_v43, %v5428_v40  ;;  %v5632_v2 = vsel %vm12261_vm1, %v5430_v15, %v5631_v35  ;;  %v5219_v25 = vpack.c.bf16 %v5187_v32, %v5187_v32  ;;  %v5084_v6 = vadd.f32 %v13114_v28, %v4686_v33 }
 0x363   : > { %5630 = vst.msk [vmem:[#allocation3 + $0x94] sm:$0xf] %vm456_vm4, %v5429_v17  ;;  %v5993_v51 = vrot.slane %v5992_v48, 4  ;;  %v6614_v43 = vsel %vm10970_vm12, %v10384_v56, %v6613_v34  ;;  %v5988_v28 = vsel %vm11024_vm2, %v5983_v47, %v5987_v4  ;;  %v513_v5 = vsel %vm12261_vm1, 0, %v512_v57  ;;  %v5634_v4 = vld [vmem:[#allocation3 + $0x9c] sm:$0xf] }
 0x364   : > { %5633 = vst [vmem:[#allocation3 + $0x98] sm:$0x1] %v5632_v2  ;;  %v5432_v38 = vshrl.u32 %v5219_v25, 16  ;;  %v5120_v59 = vmul.f32 %v13165_v39, %v5084_v6  ;;  %v6616_v31 = vrot.slane %v12977_v53, 5  ;;  %v5435_v12 = vshll.u32 %v5219_v25, 16  ;;  %v15204_v34 = vld [vmem:[#allocation33_spill] sm:$0xff] }
 0x365   : > { %v5998_v30 = vsel %vm11024_vm2, %v5993_v51, %v5997_v10  ;;  %514 = vst [vmem:[#allocation3 + $0xb4] sm:$0x1] %v513_v5  ;;  %v6119_v15 = vunpack.c.l.b16 %v5988_v28  ;;  %v13216_v53 = vld [vmem:[#allocation3 + $0x6c] sm:$0xe]  ;;  %v6685_v25 = vunpack.c.l.b16 %v6614_v43  ;;  %v15205_v57 = vld [vmem:[#allocation32_spill] sm:$0xff] }
 0x366   : > { %10398 = vmatmul.msk.bf16.gmra.mxu3 %vm6145_vm6, %v13052_v19  ;;  %v13207_v35 = vrot.slane %v5432_v38, 7  ;;  %v5156_v56 = vadd.f32 %v13178_v1, %v5120_v59  ;;  %v15202_v19 = vld [vmem:[#allocation34_spill] sm:$0xff]  ;;  %v6120_v32 = vunpack.c.l.b16 %v5998_v30  ;;  %v6617_v24 = vsel %vm10970_vm12, %v6615_v21, %v6616_v31  ;;  %v10761_v38 = vld [vmem:[#allocation3 + $0x54] sm:$0xff]  ;;  %v5686_v28 = vld [vmem:[#allocation3 + $0x90] sm:$0xf] }
 0x367   : > { %v6222_v22 = vpop.f32.mrf.mxu1  ;;  %v3747_v61 = vadd.f32 %v15203_v60, %v15202_v19  ;;  %v4646_v40 = vpop.f32.mrf.mxu3  ;;  %v6686_v6 = vunpack.c.l.b16 %v6617_v24  ;;  %v10385_v59 = vrot.slane %v13216_v53, 9  ;;  %v567_v53 = vld [vmem:[#allocation3 + $0xbc] sm:$0x1] }
 0x368   : > { %v13210_v37 = vadd.f32 %v6442_v11, %v6222_v22  ;;  %v6444_v33 = vpop.f32.mrf.mxu2  ;;  %v5437_v48 = vor.u32 %v5435_v12, %v13207_v35  ;;  %v5188_v29 = vmax.f32 %v5156_v56, 0.0  ;;  %v4687_v11 = vadd.f32 %v4646_v40, %v15204_v34 }
 0x369   : > { %v13220_v17 = vpop.f32.mrf.mxu0  ;;  %v6140_v2 = vpack.c.b16 %v6120_v32, %v6119_v15  ;;  %v4034_v22 = vadd.f32 %v15205_v57, %v3747_v61  ;;  %v13229_v5 = vpack.c.b16 %v6686_v6, %v6685_v25  ;;  %v5438_v43 = vrot.slane %v13207_v35, 4 }
 0x36a   : > { %v5635_v47 = vsel %vm12423_vm7, %v5437_v48, %v5634_v4  ;;  %v5220_v51 = vpack.c.bf16 %v5188_v29, %v5188_v29  ;;  %v5085_v10 = vadd.f32 %v13150_v26, %v4687_v11  ;;  %v10751_v21 = vld [vmem:[#allocation3 + $0x90] sm:$0xff]  ;;  %v6000_v56 = vshrl.u32 %v5686_v28, 16  ;;  %v5638_v48 = vld [vmem:[#allocation3 + $0xa4] sm:$0x1] }
 0x36b   : > { %5636 = vst [vmem:[#allocation3 + $0x9c] sm:$0xf] %v5635_v47  ;;  %v13227_v30 = vld [vmem:[#allocation3 + $0x94] sm:$0xf]  ;;  %v13235_v26 = vld [vmem:[#allocation3 + $0x98] sm:$0x1] }
 0x36c   : > { %v5440_v31 = vshrl.u32 %v5220_v51, 16  ;;  %v5121_v12 = vmul.f32 %v13165_v39, %v5085_v10  ;;  %v5443_v19 = vshll.u32 %v5220_v51, 16  ;;  %v6003_v61 = vshll.u32 %v5686_v28, 16 }
 0x36d   : > { %10480 = vmatmul.msk.bf16.gmra.mxu0 %vm6145_vm6, %v10761_v38  ;;  %10372 = vmatmul.msk.bf16.gmra.mxu2 %vm6145_vm6, %v10751_v21  ;;  %v6009_v4 = vshll.u32 %v13227_v30, 16  ;;  %v6013_v40 = vshrl.u32 %v13227_v30, 16  ;;  %v6002_v24 = vrot.slane %v6000_v56, 4 }
 0x36e   : > { %10291 = vmatmul.msk.bf16.gmra.mxu1 %vm6145_vm6, %v6140_v2  ;;  %v5442_v35 = vrot.slane %v5440_v31, 7  ;;  %v5157_v15 = vadd.f32 %v13178_v1, %v5121_v12  ;;  %v6005_v11 = vrot.slane %v6003_v61, 5  ;;  %v6019_v2 = vshll.u32 %v13235_v26, 16 }
 0x36f   : > { %v6224_v60 = vpop.f32.mrf.mxu1  ;;  %v4648_v29 = vpop.f32.mrf.mxu3  ;;  %v6011_v25 = vrot.slane %v6009_v4, 5  ;;  %v6015_v6 = vrot.slane %v6013_v40, 4  ;;  %v6620_v31 = vrot.slane %v13038_v55, 5 }
 0x370   : > { %v13241_v32 = vadd.f32 %v6444_v33, %v6224_v60  ;;  %v6447_v34 = vpop.f32.mrf.mxu2  ;;  %v5445_v47 = vor.u32 %v5443_v19, %v5442_v35  ;;  %v5447_v51 = vrot.slane %v5442_v35, 4  ;;  %v5189_v10 = vmax.f32 %v5157_v15, 0.0  ;;  %v515_v15 = vld [vmem:[#allocation3 + $0xc0] sm:$0x1] }
 0x371   : > { %v4688_v38 = vadd.f32 %v4648_v29, %v4034_v22  ;;  %v13244_v21 = vpop.f32.mrf.mxu0  ;;  %v6006_v57 = vor.u32 %v6005_v11, %v6002_v24  ;;  %v6016_v28 = vor.u32 %v6015_v6, %v6011_v25  ;;  %v568_v33 = vsel %vm12278_vm3, 0, %v567_v53 }
 0x372   : > { %v5446_v12 = vsel %vm11053_vm9, %v5438_v43, %v5445_v47  ;;  %v5639_v56 = vsel %vm12261_vm1, %v5447_v51, %v5638_v48  ;;  %v5221_v60 = vpack.c.bf16 %v5189_v10, %v5189_v10  ;;  %569 = vst [vmem:[#allocation3 + $0xbc] sm:$0x1] %v568_v33  ;;  %v6021_v4 = vrot.slane %v6019_v2, 5  ;;  %v5641_v2 = vld [vmem:[#allocation3 + $0xa8] sm:$0xf] }
 0x373   : > { %v5086_v19 = vadd.f32 %v13184_v3, %v4688_v38  ;;  %5637 = vst.msk [vmem:[#allocation3 + $0xa0] sm:$0xf] %vm456_vm4, %v5446_v12  ;;  %v6007_v22 = vrot.slane %v6006_v57, 4  ;;  %v6017_v61 = vrot.slane %v6016_v28, 4  ;;  %v6622_v40 = vrot.slane %v6620_v31, 4  ;;  %v15206_v10 = vld [vmem:[#allocation38_spill] sm:$0xff] }
 0x374   : > { %5640 = vst [vmem:[#allocation3 + $0xa4] sm:$0x1] %v5639_v56  ;;  %v5449_v35 = vshrl.u32 %v5221_v60, 16  ;;  %v6621_v43 = vsel %vm10970_vm12, %v10385_v59, %v6620_v31  ;;  %v516_v53 = vsel %vm12261_vm1, 0, %v515_v15  ;;  %v6623_v48 = vrot.slane %v13044_v0, 5  ;;  %v15207_v38 = vld [vmem:[#allocation37_spill] sm:$0xff] }
 0x375   : > { %v5122_v55 = vmul.f32 %v13165_v39, %v5086_v19  ;;  %v6012_v3 = vsel %vm11024_vm2, %v6007_v22, %v6011_v25  ;;  %v6022_v24 = vsel %vm11024_vm2, %v6017_v61, %v6021_v4  ;;  %v5452_v11 = vshll.u32 %v5221_v60, 16  ;;  %517 = vst [vmem:[#allocation3 + $0xc0] sm:$0x1] %v516_v53  ;;  %v15208_v31 = vld [vmem:[#allocation35_spill] sm:$0xff] }
 0x376   : > { %10399 = vmatmul.msk.bf16.gmra.mxu3 %vm6145_vm6, %v13099_v41  ;;  %v13267_v29 = vrot.slane %v5449_v35, 7  ;;  %v6122_v59 = vunpack.c.l.b16 %v6022_v24  ;;  %v6121_v47 = vunpack.c.l.b16 %v6012_v3  ;;  %v6624_v25 = vsel %vm10970_vm12, %v6622_v40, %v6623_v48  ;;  %v15209_v24 = vld [vmem:[#allocation11_spill] sm:$0xff] }
 0x377   : > { %v5158_v6 = vadd.f32 %v13178_v1, %v5122_v55  ;;  %v4651_v41 = vpop.f32.mrf.mxu3  ;;  %v3749_v57 = vadd.f32 %v15207_v38, %v15206_v10  ;;  %v6687_v22 = vunpack.c.l.b16 %v6621_v43  ;;  %v6688_v61 = vunpack.c.l.b16 %v6624_v25  ;;  %v10762_v55 = vld [vmem:[#allocation3 + $0x60] sm:$0xff]  ;;  %v5688_v43 = vld [vmem:[#allocation3 + $0x9c] sm:$0xf] }
 0x378   : > { %v6449_v51 = vpop.f32.mrf.mxu2  ;;  %v5454_v28 = vor.u32 %v5452_v11, %v13267_v29  ;;  %v4689_v12 = vadd.f32 %v4651_v41, %v15208_v31  ;;  %v6141_v19 = vpack.c.b16 %v6122_v59, %v6121_v47  ;;  %v6027_v41 = vshll.u32 %v5688_v43, 16 }
 0x379   : > { %v5190_v0 = vmax.f32 %v5158_v6, 0.0  ;;  %v6227_v33 = vpop.f32.mrf.mxu1  ;;  %v13283_v3 = vpack.c.b16 %v6688_v61, %v6687_v22  ;;  %v4036_v53 = vadd.f32 %v15209_v24, %v3749_v57  ;;  %v5455_v6 = vrot.slane %v13267_v29, 4  ;;  %v570_v57 = vld [vmem:[#allocation3 + $0xc8] sm:$0x1] }
 0x37a   : > { %v13276_v56 = vpop.f32.mrf.mxu0  ;;  %v13278_v60 = vadd.f32 %v6447_v34, %v6227_v33  ;;  %v5642_v4 = vsel %vm12423_vm7, %v5454_v28, %v5641_v2  ;;  %v5087_v35 = vadd.f32 %v13220_v17, %v4689_v12  ;;  %v10752_v15 = vld [vmem:[#allocation3 + $0x9c] sm:$0xff]  ;;  %v6024_v2 = vshrl.u32 %v5688_v43, 16  ;;  %v5645_v28 = vld [vmem:[#allocation3 + $0xb0] sm:$0x1] }
 0x37b   : > { %v5222_v40 = vpack.c.bf16 %v5190_v0, %v5190_v0  ;;  %5643 = vst [vmem:[#allocation3 + $0xa8] sm:$0xf] %v5642_v4  ;;  %v13289_v11 = vld [vmem:[#allocation3 + $0xa0] sm:$0xf]  ;;  %v13293_v59 = vld [vmem:[#allocation3 + $0xa4] sm:$0x1] }
 0x37c   : > { %v5123_v34 = vmul.f32 %v13165_v39, %v5087_v35  ;;  %v6033_v10 = vshll.u32 %v13289_v11, 16  ;;  %v6037_v38 = vshrl.u32 %v13289_v11, 16  ;;  %v6026_v31 = vrot.slane %v6024_v2, 4 }
 0x37d   : > { %v5457_v48 = vshrl.u32 %v5222_v40, 16  ;;  %10481 = vmatmul.msk.bf16.gmra.mxu0 %vm6145_vm6, %v10762_v55  ;;  %10373 = vmatmul.msk.bf16.gmra.mxu2 %vm6145_vm6, %v10752_v15  ;;  %v5460_v17 = vshll.u32 %v5222_v40, 16  ;;  %v6029_v29 = vrot.slane %v6027_v41, 5  ;;  %v6043_v12 = vshll.u32 %v13293_v59, 16 }
 0x37e   : > { %10292 = vmatmul.msk.bf16.gmra.mxu1 %vm6145_vm6, %v6141_v19  ;;  %v5159_v25 = vadd.f32 %v13178_v1, %v5123_v34  ;;  %v571_v19 = vsel %vm12278_vm3, 0, %v570_v57  ;;  %v6039_v34 = vrot.slane %v6037_v38, 4 }
 0x37f   : > { %v5459_v47 = vrot.slane %v5457_v48, 7  ;;  %v4653_v0 = vpop.f32.mrf.mxu3  ;;  %572 = vst [vmem:[#allocation3 + $0xc8] sm:$0x1] %v571_v19  ;;  %v6030_v24 = vor.u32 %v6029_v29, %v6026_v31  ;;  %v6035_v48 = vrot.slane %v6033_v10, 5  ;;  %v6045_v38 = vrot.slane %v6043_v12, 5 }
 0x380   : > { %v6452_v33 = vpop.f32.mrf.mxu2  ;;  %v5191_v4 = vmax.f32 %v5159_v25, 0.0  ;;  %v4690_v35 = vadd.f32 %v4653_v0, %v4036_v53  ;;  %v5648_v29 = vld [vmem:[#allocation3 + $0xb4] sm:$0xf] }
 0x381   : > { %v5462_v22 = vor.u32 %v5460_v17, %v5459_v47  ;;  %v5464_v61 = vrot.slane %v5459_v47, 4  ;;  %v6229_v40 = vpop.f32.mrf.mxu1  ;;  %v6031_v53 = vrot.slane %v6030_v24, 4  ;;  %v6040_v47 = vor.u32 %v6039_v34, %v6035_v48 }
 0x382   : > { %v13301_v55 = vpop.f32.mrf.mxu0  ;;  %v13303_v15 = vadd.f32 %v6449_v51, %v6229_v40  ;;  %v5223_v41 = vpack.c.bf16 %v5191_v4, %v5191_v4  ;;  %v5088_v17 = vadd.f32 %v13244_v21, %v4690_v35  ;;  %v5690_v57 = vld [vmem:[#allocation3 + $0xa8] sm:$0xf] }
 0x383   : > { %v5463_v43 = vsel %vm11053_vm9, %v5455_v6, %v5462_v22  ;;  %v5646_v2 = vsel %vm12261_vm1, %v5464_v61, %v5645_v28  ;;  %v6036_v6 = vsel %vm11024_vm2, %v6031_v53, %v6035_v48  ;;  %v6041_v10 = vrot.slane %v6040_v47, 4  ;;  %v10763_v47 = vld [vmem:[#allocation3 + $0x6c] sm:$0xff] }
 0x384   : > { %5644 = vst.msk [vmem:[#allocation3 + $0xac] sm:$0xf] %vm456_vm4, %v5463_v43  ;;  %v5466_v25 = vshrl.u32 %v5223_v41, 16  ;;  %v5124_v51 = vmul.f32 %v13165_v39, %v5088_v17  ;;  %v5469_v0 = vshll.u32 %v5223_v41, 16  ;;  %v6048_v31 = vshrl.u32 %v5690_v57, 16 }
 0x385   : > { %5647 = vst [vmem:[#allocation3 + $0xb0] sm:$0x1] %v5646_v2  ;;  %v6046_v19 = vsel %vm11024_vm2, %v6041_v10, %v6045_v38  ;;  %v6051_v61 = vshll.u32 %v5690_v57, 16  ;;  %v6123_v35 = vunpack.c.l.b16 %v6036_v6  ;;  %v3751_v6 = vadd.f32 %v12870_v44, %v12330_v18 }
 0x386   : > { %10400 = vmatmul.msk.bf16.gmra.mxu3 %vm6145_vm6, %v13159_v23  ;;  %v5468_v28 = vrot.slane %v5466_v25, 7  ;;  %v5160_v21 = vadd.f32 %v13178_v1, %v5124_v51  ;;  %v6124_v24 = vunpack.c.l.b16 %v6046_v19  ;;  %v6050_v34 = vrot.slane %v6048_v31, 4 }
 0x387   : > { %v6053_v43 = vrot.slane %v6051_v61, 5  ;;  %v4038_v61 = vadd.f32 %v12872_v52, %v3751_v6 }
 0x388   : > { %v6454_v22 = vpop.f32.mrf.mxu2  ;;  %v5471_v4 = vor.u32 %v5469_v0, %v5468_v28  ;;  %v5192_v40 = vmax.f32 %v5160_v21, 0.0  ;;  %v6142_v53 = vpack.c.b16 %v6124_v24, %v6123_v35  ;;  %v5472_v35 = vrot.slane %v5468_v28, 4 }
 0x389   : > { %v4656_v23 = vpop.f32.mrf.mxu3  ;;  %v6054_v18 = vor.u32 %v6053_v43, %v6050_v34 }
 0x38a   : > { %v13319_v48 = vpop.f32.mrf.mxu0  ;;  %v4691_v12 = vadd.f32 %v4656_v23, %v12317_v49  ;;  %v5649_v2 = vsel %vm12423_vm7, %v5471_v4, %v5648_v29  ;;  %v5224_v41 = vpack.c.bf16 %v5192_v40, %v5192_v40  ;;  %v5652_v4 = vld [vmem:[#allocation3 + $0xbc] sm:$0x1] }
 0x38b   : > { %v6232_v17 = vpop.f32.mrf.mxu1  ;;  %v10753_v25 = vld [vmem:[#allocation3 + $0xa8] sm:$0xff]  ;;  %5650 = vst [vmem:[#allocation3 + $0xb4] sm:$0xf] %v5649_v2  ;;  %v6055_v43 = vrot.slane %v6054_v18, 4 }
 0x38c   : > { %v13324_v51 = vld [vmem:[#allocation3 + $0xac] sm:$0xf]  ;;  %v13328_v10 = vadd.f32 %v6452_v33, %v6232_v17  ;;  %v5089_v49 = vadd.f32 %v13276_v56, %v4691_v12  ;;  %v13331_v38 = vld [vmem:[#allocation3 + $0xb0] sm:$0x1]  ;;  %v5474_v0 = vshrl.u32 %v5224_v41, 16  ;;  %v5477_v29 = vshll.u32 %v5224_v41, 16 }
 0x38d   : > { %v6057_v57 = vshll.u32 %v13324_v51, 16  ;;  %10482 = vmatmul.msk.bf16.gmra.mxu0 %vm6145_vm6, %v10763_v47  ;;  %10374 = vmatmul.msk.bf16.gmra.mxu2 %vm6145_vm6, %v10753_v25  ;;  %v6061_v21 = vshrl.u32 %v13324_v51, 16  ;;  %v6067_v19 = vshll.u32 %v13331_v38, 16 }
 0x38e   : > { %v5125_v31 = vmul.f32 %v13165_v39, %v5089_v49  ;;  %10293 = vmatmul.msk.bf16.gmra.mxu1 %vm6145_vm6, %v6142_v53  ;;  %v5476_v33 = vrot.slane %v5474_v0, 7 }
 0x38f   : > { %v6059_v44 = vrot.slane %v6057_v57, 5  ;;  %v6063_v56 = vrot.slane %v6061_v21, 4  ;;  %v6069_v49 = vrot.slane %v6067_v19, 5  ;;  %v13363_v19 = vld [vmem:[#allocation3 + $0x10] sm:$0xf] }
 0x390   : > { %v5161_v40 = vadd.f32 %v13178_v1, %v5125_v31  ;;  %v6457_v23 = vpop.f32.mrf.mxu2  ;;  %v5479_v24 = vor.u32 %v5477_v29, %v5476_v33  ;;  %v5481_v12 = vrot.slane %v5476_v33, 4  ;;  %v10540_v31 = vld [vmem:[%s15101_s6 + $0x18] sm:$0xf] }
 0x391   : > { %v4658_v2 = vpop.f32.mrf.mxu3  ;;  %v6064_v17 = vor.u32 %v6063_v56, %v6059_v44  ;;  %v6060_v18 = vsel %vm11024_vm2, %v6055_v43, %v6059_v44  ;;  %v8391_v29 = vsel %vm6194_vm11, %v10540_v31, 0 }
 0x392   : > { %v5193_v47 = vmax.f32 %v5161_v40, 0.0  ;;  %v13342_v53 = vpop.f32.mrf.mxu0  ;;  %v4692_v34 = vadd.f32 %v4658_v2, %v4038_v61  ;;  %v5480_v41 = vsel %vm11053_vm9, %v5472_v35, %v5479_v24  ;;  %v5653_v52 = vsel %vm12261_vm1, %v5481_v12, %v5652_v4  ;;  %v5692_v21 = vld [vmem:[#allocation3 + $0xb4] sm:$0xf]  ;;  %v9583_v61 = vld [vmem:[%s15103_s8] sm:$0x3]  ;;  %8400 = vmatpush.bf16.msra.mxu3 %v8391_v29 }
 0x393   : > { %v6234_v25 = vpop.f32.mrf.mxu1  ;;  %v6065_v6 = vrot.slane %v6064_v17, 4  ;;  %5651 = vst.msk [vmem:[#allocation3 + $0xb8] sm:$0xf] %vm456_vm4, %v5480_v41  ;;  %v6072_v4 = vshrl.u32 %v5692_v21, 16  ;;  %v6075_v44 = vshll.u32 %v5692_v21, 16  ;;  %v6125_v12 = vunpack.c.l.b16 %v6060_v18 }
 0x394   : > { %v5225_v28 = vpack.c.bf16 %v5193_v47, %v5193_v47  ;;  %v13349_v57 = vadd.f32 %v6454_v22, %v6234_v25  ;;  %v5090_v0 = vadd.f32 %v13301_v55, %v4692_v34  ;;  %5654 = vst [vmem:[#allocation3 + $0xbc] sm:$0x1] %v5653_v52  ;;  %v5655_v2 = vld [vmem:[#allocation3 + $0xc0] sm:$0xf]  ;;  %v15105_v17 = vrot.slane %v13363_v19, 5 }
 0x395   : > { %v6070_v33 = vsel %vm11024_vm2, %v6065_v6, %v6069_v49  ;;  %v9633_v47 = vsel %vm1716_vm0, %v9583_v61, 0  ;;  %v13381_v6 = vld [vmem:[#allocation3 + $0x14] sm:$0x1]  ;;  %v10764_v49 = vld [vmem:[#allocation3 + $0x78] sm:$0xff]  ;;  %v6074_v21 = vrot.slane %v6072_v4, 4  ;;  %v6077_v31 = vrot.slane %v6075_v44, 5 }
 0x396   : > { %v5483_v56 = vshrl.u32 %v5225_v28, 16  ;;  %v5126_v22 = vmul.f32 %v13165_v39, %v5090_v0  ;;  %10401 = vmatmul.msk.bf16.gmra.mxu3 %vm6145_vm6, %v13229_v5  ;;  %v6126_v55 = vunpack.c.l.b16 %v6070_v33  ;;  %v5486_v35 = vshll.u32 %v5225_v28, 16  ;;  %9642 = vmatpush.bf16.msra.mxu2 %v9633_v47 }
 0x398   : > { %v13368_v40 = vrot.slane %v5483_v56, 7  ;;  %v5162_v24 = vadd.f32 %v13178_v1, %v5126_v22  ;;  %v13371_v39 = vpop.f32.mrf.mxu2  ;;  %v6143_v25 = vpack.c.b16 %v6126_v55, %v6125_v12  ;;  %v7829_v22 = vld [vmem:[#allocation3 + $0xc] sm:$0xe]  ;;  %v10621_v55 = vld [vmem:[%s15101_s6 + $0x1c] sm:$0xf]  ;;  %v6078_v12 = vor.u32 %v6077_v31, %v6074_v21 }
 0x399   : > { %v6777_v5 = vpop.f32.mrf.mxu3  ;;  %v9045_v61 = vsel %vm6194_vm11, %v10621_v55, 0 }
 0x39a   : > { %v5488_v34 = vor.u32 %v5486_v35, %v13368_v40  ;;  %v5194_v43 = vmax.f32 %v5162_v24, 0.0  ;;  %v13376_v41 = vpop.f32.mrf.mxu0  ;;  %v13379_v52 = vadd.f32 %v6777_v5, %v12916_v63  ;;  %v10754_v28 = vld [vmem:[#allocation3 + $0xb4] sm:$0xff]  ;;  %v7898_v35 = vrot.slane %v13381_v6, 5  ;;  %9054 = vmatpush.bf16.msra.mxu0 %v9045_v61  ;;  %v10654_v24 = vld [vmem:[%s15101_s6 + $0x20] sm:$0xf] }
 0x39b   : > { %15210 = vst [vmem:[#allocation12_spill] sm:$0xff] %v13376_v41  ;;  %v6237_v1 = vpop.f32.mrf.mxu1  ;;  %v13383_v0 = vld [vmem:[#allocation3 + $0xb8] sm:$0xf]  ;;  %v13389_v56 = vld [vmem:[#allocation3 + $0xbc] sm:$0x1]  ;;  %v9443_v47 = vsel %vm6194_vm11, %v10654_v24, 0 }
 0x39c   : > { %v5656_v18 = vsel %vm12423_vm7, %v5488_v34, %v5655_v2  ;;  %v5226_v33 = vpack.c.bf16 %v5194_v43, %v5194_v43  ;;  %v13387_v29 = vadd.f32 %v6457_v23, %v6237_v1  ;;  %v6081_v63 = vshll.u32 %v13383_v0, 16  ;;  %9452 = vmatpush.bf16.msra.mxu1 %v9443_v47 }
 0x39d   : > { %5657 = vst [vmem:[#allocation3 + $0xc0] sm:$0xf] %v5656_v18  ;;  %10483 = vmatmul.msk.bf16.gmra.mxu0 %vm6145_vm6, %v10764_v49  ;;  %10375 = vmatmul.msk.bf16.gmra.mxu2 %vm6145_vm6, %v10754_v28  ;;  %v6085_v50 = vshrl.u32 %v13383_v0, 16  ;;  %v7897_v23 = vrot.slane %v15105_v17, 4  ;;  %v6091_v5 = vshll.u32 %v13389_v56, 16  ;;  %v10507_v18 = vrot.slane %v7829_v22, 9 }
 0x39e   : > { %v5491_v4 = vshrl.u32 %v5226_v33, 16  ;;  %10294 = vmatmul.msk.bf16.gmra.mxu1 %vm6145_vm6, %v6143_v25  ;;  %v6083_v44 = vrot.slane %v6081_v63, 5  ;;  %v5494_v43 = vshll.u32 %v5226_v33, 16  ;;  %v5659_v49 = vld [vmem:[#allocation3 + $0xc8] sm:$0x1]  ;;  %v5489_v55 = vrot.slane %v13368_v40, 4 }
 0x39f   : > { %v6087_v2 = vrot.slane %v6085_v50, 4  ;;  %v7899_v63 = vsel %vm10970_vm12, %v7897_v23, %v7898_v35  ;;  %v7233_v61 = vshll.u32 %v13363_v19, 16  ;;  %v6079_v33 = vrot.slane %v6078_v12, 4  ;;  %v7175_v35 = vld [vmem:[#allocation3 + $0xc] sm:$0xf] }
 0x3a0   : > { %v5493_v34 = vrot.slane %v5491_v4, 7  ;;  %v6462_v1 = vpop.f32.mrf.mxu2  ;;  %v6093_v47 = vrot.slane %v6091_v5, 5  ;;  %v7237_v17 = vshrl.u32 %v13363_v19, 16  ;;  %v15212_v5 = vrot.slane %v13363_v19, 5 }
 0x3a1   : > { %v13408_v25 = vpop.f32.mrf.mxu3  ;;  %v6088_v28 = vor.u32 %v6087_v2, %v6083_v44  ;;  %v6084_v2 = vsel %vm11024_vm2, %v6079_v33, %v6083_v44 }
 0x3a2   : > { %v5496_v21 = vor.u32 %v5494_v43, %v5493_v34  ;;  %v5498_v31 = vrot.slane %v5493_v34, 4  ;;  %v13413_v50 = vpop.f32.mrf.mxu0  ;;  %v7896_v42 = vsel %vm10970_vm12, %v10507_v18, %v15212_v5  ;;  %v6627_v34 = vrot.slane %v13097_v14, 5 }
 0x3a3   : > { %15211 = vst [vmem:[#allocation13_spill] sm:$0xff] %v13413_v50  ;;  %v6239_v4 = vpop.f32.mrf.mxu1  ;;  %v6089_v24 = vrot.slane %v6088_v28, 4  ;;  %v8008_v43 = vunpack.c.l.b16 %v7899_v63  ;;  %v7227_v28 = vshll.u32 %v7175_v35, 16  ;;  %v7239_v44 = vrot.slane %v7237_v17, 4  ;;  %v10765_v63 = vld [vmem:[#allocation3 + $0x84] sm:$0xff]  ;;  %v10769_v50 = vld [vmem:[#allocation3 + $0xb4] sm:$0xff] }
 0x3a4   : > { %v5497_v22 = vsel %vm11053_vm9, %v5489_v55, %v5496_v21  ;;  %v5660_v23 = vsel %vm12261_vm1, %v5498_v31, %v5659_v49  ;;  %v13422_v40 = vadd.f32 %v13371_v39, %v6239_v4  ;;  %v7224_v49 = vshrl.u32 %v7175_v35, 16 }
 0x3a5   : > { %5658 = vst.msk [vmem:[#allocation3 + $0xc4] sm:$0xf] %vm456_vm4, %v5497_v22  ;;  %v6094_v12 = vsel %vm11024_vm2, %v6089_v24, %v6093_v47  ;;  %v7235_v55 = vrot.slane %v7233_v61, 5  ;;  %v6127_v21 = vunpack.c.l.b16 %v6084_v2  ;;  %v8007_v4 = vunpack.c.l.b16 %v7896_v42  ;;  %v7179_v24 = vld [vmem:[#allocation3 + $0x1c] sm:$0xf] }
 0x3a6   : > { %5661 = vst [vmem:[#allocation3 + $0xc8] sm:$0x1] %v5660_v23  ;;  %10402 = vmatmul.msk.bf16.gmra.mxu3 %vm6145_vm6, %v13283_v3  ;;  %v6128_v39 = vunpack.c.l.b16 %v6094_v12  ;;  %v6629_v19 = vrot.slane %v6627_v34, 4  ;;  %v6517_v3 = vld [vmem:[#allocation3 + $0x78] sm:$0xe]  ;;  %v6630_v35 = vrot.slane %v13105_v9, 5 }
 0x3a7   : > { %v8039_v22 = vpack.c.b16 %v8008_v43, %v8007_v4  ;;  %v7226_v61 = vrot.slane %v7224_v49, 4  ;;  %v7229_v17 = vrot.slane %v7227_v28, 5  ;;  %v7240_v2 = vor.u32 %v7239_v44, %v7235_v55 }
 0x3a8   : > { %v6464_v31 = vpop.f32.mrf.mxu2  ;;  %v6144_v18 = vpack.c.b16 %v6128_v39, %v6127_v21  ;;  %v7902_v5 = vrot.slane %v7179_v24, 5  ;;  %v10386_v42 = vrot.slane %v6517_v3, 9  ;;  %v7243_v39 = vshll.u32 %v13381_v6, 16  ;;  %v7830_v21 = vld [vmem:[#allocation3 + $0x18] sm:$0xe] }
 0x3a9   : > { %v6782_v33 = vpop.f32.mrf.mxu3  ;;  %v7230_v43 = vor.u32 %v7229_v17, %v7226_v61  ;;  %v7241_v49 = vrot.slane %v7240_v2, 4 }
 0x3aa   : > { %v13436_v47 = vpop.f32.mrf.mxu0  ;;  %v13439_v14 = vadd.f32 %v6782_v33, %v13080_v27  ;;  %v6631_v27 = vsel %vm10970_vm12, %v6629_v19, %v6630_v35  ;;  %v6628_v9 = vsel %vm10970_vm12, %v10386_v42, %v6627_v34  ;;  %v7904_v4 = vrot.slane %v7902_v5, 4 }
 0x3ab   : > { %15213 = vst [vmem:[#allocation14_spill] sm:$0xff] %v13436_v47  ;;  %v6242_v23 = vpop.f32.mrf.mxu1  ;;  %v6690_v44 = vunpack.c.l.b16 %v6631_v27  ;;  %v6689_v6 = vunpack.c.l.b16 %v6628_v9  ;;  %v7231_v34 = vrot.slane %v7230_v43, 4  ;;  %v10508_v35 = vrot.slane %v7830_v21, 9  ;;  %v7178_v27 = vld [vmem:[#allocation3 + $0x18] sm:$0xf] }
 0x3ac   : > { %15214 = vst [vmem:[#allocation4_spill] sm:$0xff] %v13439_v14  ;;  %v13442_v12 = vadd.f32 %v6462_v1, %v6242_v23  ;;  %v13452_v1 = vld [vmem:[#allocation3 + $0x20] sm:$0x1]  ;;  %v6634_v42 = vrot.slane %v13157_v7, 5  ;;  %v13610_v47 = vld [vmem:[#allocation3 + $0x4c] sm:$0xf] }
 0x3ad   : > { %10484 = vmatmul.msk.bf16.gmra.mxu0 %vm6145_vm6, %v10765_v63  ;;  %10524 = vmatmul.msk.bf16.vlgmr.msrb.gmra.mxu2 %vm6145_vm6, %v8039_v22  ;;  %v7245_v22 = vrot.slane %v7243_v39, 5  ;;  %v6711_v17 = vpack.c.b16 %v6690_v44, %v6689_v6  ;;  %v7261_v39 = vshrl.u32 %v7179_v24, 16  ;;  %v7236_v9 = vsel %vm11024_vm2, %v7231_v34, %v7235_v55 }
 0x3ae   : > { %10295 = vmatmul.msk.bf16.gmra.mxu1 %vm6145_vm6, %v6144_v18  ;;  %v7905_v18 = vrot.slane %v13452_v1, 5  ;;  %v7903_v43 = vsel %vm10970_vm12, %v10508_v35, %v7902_v5  ;;  %v6636_v44 = vrot.slane %v6634_v42, 4  ;;  %v7609_v6 = vunpack.c.l.b16 %v7236_v9 }
 0x3af   : > { %v7246_v63 = vsel %vm11024_vm2, %v7241_v49, %v7245_v22  ;;  %v7251_v22 = vshll.u32 %v7178_v27, 16  ;;  %v8009_v7 = vunpack.c.l.b16 %v7903_v43  ;;  %v6637_v5 = vrot.slane %v13170_v46, 5 }
 0x3b0   : > { %v6467_v28 = vpop.f32.mrf.mxu2  ;;  %v7906_v2 = vsel %vm10970_vm12, %v7904_v4, %v7905_v18  ;;  %v7610_v49 = vunpack.c.l.b16 %v7246_v63  ;;  %v6518_v18 = vld [vmem:[#allocation3 + $0x84] sm:$0xe]  ;;  %v10766_v63 = vld [vmem:[#allocation3 + $0x90] sm:$0xff] }
 0x3b1   : > { %v6784_v33 = vpop.f32.mrf.mxu3  ;;  %v6638_v9 = vsel %vm10970_vm12, %v6636_v44, %v6637_v5  ;;  %v7831_v44 = vld [vmem:[#allocation3 + $0x24] sm:$0xe] }
 0x3b2   : > { %v13454_v3 = vpop.f32.mrf.mxu0  ;;  %v13457_v19 = vadd.f32 %v6784_v33, %v13111_v8  ;;  %v7257_v8 = vshll.u32 %v7179_v24, 16  ;;  %v7248_v33 = vshrl.u32 %v7178_v27, 16  ;;  %v7263_v24 = vrot.slane %v7261_v39, 4 }
 0x3b3   : > { %15215 = vst [vmem:[#allocation5_spill] sm:$0xff] %v13454_v3  ;;  %v6244_v23 = vpop.f32.mrf.mxu1  ;;  %v7641_v35 = vpack.c.b16 %v7610_v49, %v7609_v6  ;;  %v10387_v27 = vrot.slane %v6518_v18, 9  ;;  %v6692_v49 = vunpack.c.l.b16 %v6638_v9  ;;  %v7181_v9 = vld [vmem:[#allocation3 + $0x24] sm:$0xf] }
 0x3b4   : > { %15216 = vst [vmem:[#allocation17_spill] sm:$0xff] %v13457_v19  ;;  %v13462_v61 = vadd.f32 %v6464_v31, %v6244_v23  ;;  %v8010_v31 = vunpack.c.l.b16 %v7906_v2  ;;  %v7259_v23 = vrot.slane %v7257_v8, 5  ;;  %v7909_v8 = vrot.slane %v7182_v54, 5 }
 0x3b5   : > { %v7250_v39 = vrot.slane %v7248_v33, 4  ;;  %v6635_v46 = vsel %vm10970_vm12, %v10387_v27, %v6634_v42 }
 0x3b6   : > { %10403 = vmatmul.msk.bf16.gmra.mxu3 %vm6145_vm6, %v6711_v17  ;;  %v8040_v2 = vpack.c.b16 %v8010_v31, %v8009_v7  ;;  %v7264_v43 = vor.u32 %v7263_v24, %v7259_v23  ;;  %v13488_v31 = vld [vmem:[#allocation3 + $0x2c] sm:$0x1]  ;;  %v7911_v6 = vrot.slane %v7909_v8, 4  ;;  %v6691_v18 = vunpack.c.l.b16 %v6635_v46 }
 0x3b7   : > { %v7912_v24 = vrot.slane %v13488_v31, 5  ;;  %v7281_v46 = vshll.u32 %v7182_v54, 16 }
 0x3b8   : > { %v6469_v21 = vpop.f32.mrf.mxu2 }
 0x3b9   : > { %v6787_v4 = vpop.f32.mrf.mxu3  ;;  %v7913_v27 = vsel %vm10970_vm12, %v7911_v6, %v7912_v24  ;;  %v7275_v6 = vshll.u32 %v7181_v9, 16 }
 0x3ba   : > { %v13472_v17 = vpop.f32.mrf.mxu0  ;;  %v13475_v55 = vadd.f32 %v6787_v4, %v13140_v45  ;;  %v7253_v45 = vrot.slane %v7251_v22, 5 }
 0x3bb   : > { %15217 = vst [vmem:[#allocation15_spill] sm:$0xff] %v13472_v17  ;;  %v6247_v34 = vpop.f32.mrf.mxu1  ;;  %v7277_v17 = vrot.slane %v7275_v6, 5 }
 0x3bc   : > { %15218 = vst [vmem:[#allocation7_spill] sm:$0xff] %v13475_v55  ;;  %v13478_v13 = vadd.f32 %v6467_v28, %v6247_v34  ;;  %v7267_v28 = vshll.u32 %v13452_v1, 16  ;;  %v7254_v5 = vor.u32 %v7253_v45, %v7250_v39  ;;  %v7265_v34 = vrot.slane %v7264_v43, 4 }
 0x3bd   : > { %10485 = vmatmul.msk.bf16.gmra.mxu0 %vm6145_vm6, %v10766_v63  ;;  %10525 = vmatmul.msk.bf16.gmra.mxu2 %vm6145_vm6, %v8040_v2  ;;  %v6712_v63 = vpack.c.b16 %v6692_v49, %v6691_v18  ;;  %v10509_v1 = vrot.slane %v7831_v44, 9  ;;  %v7285_v39 = vshrl.u32 %v7182_v54, 16  ;;  %v7272_v44 = vshrl.u32 %v7181_v9, 16  ;;  %v10767_v9 = vld [vmem:[#allocation3 + $0x9c] sm:$0xff] }
 0x3be   : > { %10491 = vmatmul.msk.bf16.vlgmr.msrb.gmra.mxu1 %vm6145_vm6, %v7641_v35  ;;  %v7269_v35 = vrot.slane %v7267_v28, 5  ;;  %v7255_v45 = vrot.slane %v7254_v5, 4  ;;  %v8012_v28 = vunpack.c.l.b16 %v7913_v27  ;;  %v13508_v5 = vrot.slane %v7281_v46, 5 }
 0x3bf   : > { %v7910_v49 = vsel %vm10970_vm12, %v10509_v1, %v7909_v8  ;;  %v7287_v24 = vrot.slane %v7285_v39, 4  ;;  %v6519_v8 = vld [vmem:[#allocation3 + $0x90] sm:$0xe]  ;;  %v7274_v46 = vrot.slane %v7272_v44, 4 }
 0x3c0   : > { %v6472_v4 = vpop.f32.mrf.mxu2  ;;  %v7270_v43 = vsel %vm11024_vm2, %v7265_v34, %v7269_v35 }
 0x3c1   : > { %v6789_v7 = vpop.f32.mrf.mxu3  ;;  %v7612_v54 = vunpack.c.l.b16 %v7270_v43  ;;  %v6644_v43 = vrot.slane %v13235_v26, 5  ;;  %v7288_v3 = vor.u32 %v7287_v24, %v13508_v5  ;;  %v7278_v24 = vor.u32 %v7277_v17, %v7274_v46 }
 0x3c2   : > { %v13490_v33 = vpop.f32.mrf.mxu0  ;;  %v13493_v22 = vadd.f32 %v6789_v7, %v13181_v16  ;;  %v6641_v16 = vrot.slane %v13227_v30, 5  ;;  %v7185_v7 = vld [vmem:[#allocation3 + $0x34] sm:$0xf] }
 0x3c3   : > { %15219 = vst [vmem:[#allocation6_spill] sm:$0xff] %v13490_v33  ;;  %v6249_v42 = vpop.f32.mrf.mxu1  ;;  %v7916_v1 = vrot.slane %v7185_v7, 5  ;;  %v7184_v33 = vld [vmem:[#allocation3 + $0x30] sm:$0xf]  ;;  %v7279_v46 = vrot.slane %v7278_v24, 4 }
 0x3c4   : > { %15220 = vst [vmem:[#allocation16_spill] sm:$0xff] %v13493_v22  ;;  %v13496_v2 = vadd.f32 %v6469_v21, %v6249_v42  ;;  %v7260_v21 = vsel %vm11024_vm2, %v7255_v45, %v7259_v23  ;;  %v8011_v42 = vunpack.c.l.b16 %v7910_v49  ;;  %v6643_v30 = vrot.slane %v6641_v16, 4 }
 0x3c5   : > { %v7611_v35 = vunpack.c.l.b16 %v7260_v21  ;;  %v7296_v26 = vshrl.u32 %v7184_v33, 16  ;;  %v7918_v44 = vrot.slane %v7916_v1, 4  ;;  %v7299_v6 = vshll.u32 %v7184_v33, 16 }
 0x3c6   : > { %10404 = vmatmul.msk.bf16.gmra.mxu3 %vm6145_vm6, %v6712_v63  ;;  %v8041_v45 = vpack.c.b16 %v8012_v28, %v8011_v42  ;;  %v6645_v21 = vsel %vm10970_vm12, %v6643_v30, %v6644_v43  ;;  %v13524_v28 = vld [vmem:[#allocation3 + $0x38] sm:$0x1]  ;;  %v7305_v42 = vshll.u32 %v7185_v7, 16 }
 0x3c7   : > { %v7642_v49 = vpack.c.b16 %v7612_v54, %v7611_v35  ;;  %v7309_v35 = vshrl.u32 %v7185_v7, 16  ;;  %v7919_v30 = vrot.slane %v13524_v28, 5 }
 0x3c8   : > { %v6474_v18 = vpop.f32.mrf.mxu2 }
 0x3c9   : > { %v6792_v34 = vpop.f32.mrf.mxu3  ;;  %v7920_v17 = vsel %vm10970_vm12, %v7918_v44, %v7919_v30 }
 0x3ca   : > { %v13511_v63 = vadd.f32 %v6792_v34, %v13210_v37  ;;  %v13513_v27 = vpop.f32.mrf.mxu0  ;;  %v10388_v37 = vrot.slane %v6519_v8, 9  ;;  %v7291_v34 = vshll.u32 %v13488_v31, 16  ;;  %v8014_v44 = vunpack.c.l.b16 %v7920_v17 }
 0x3cb   : > { %v6252_v23 = vpop.f32.mrf.mxu1  ;;  %15222 = vst [vmem:[#allocation20_spill] sm:$0xff] %v13513_v27  ;;  %v7298_v27 = vrot.slane %v7296_v26, 4 }
 0x3cc   : > { %15221 = vst [vmem:[#allocation18_spill] sm:$0xff] %v13511_v63  ;;  %v13516_v39 = vadd.f32 %v6472_v4, %v6252_v23  ;;  %v7832_v4 = vld [vmem:[#allocation3 + $0x30] sm:$0xe]  ;;  %v6642_v54 = vsel %vm10970_vm12, %v10388_v37, %v6641_v16  ;;  %v6694_v23 = vunpack.c.l.b16 %v6645_v21  ;;  %v13530_v63 = vld [vmem:[#allocation3 + $0x40] sm:$0xf]  ;;  %v7301_v16 = vrot.slane %v7299_v6, 5 }
 0x3cd   : > { %10486 = vmatmul.msk.bf16.gmra.mxu0 %vm6145_vm6, %v10767_v9  ;;  %10526 = vmatmul.msk.bf16.gmra.mxu2 %vm6145_vm6, %v8041_v45  ;;  %v7289_v9 = vrot.slane %v7288_v3, 4  ;;  %v7293_v45 = vrot.slane %v7291_v34, 5  ;;  %v10510_v43 = vrot.slane %v7832_v4, 9  ;;  %v6693_v33 = vunpack.c.l.b16 %v6642_v54 }
 0x3ce   : > { %10492 = vmatmul.msk.bf16.gmra.mxu1 %vm6145_vm6, %v7642_v49  ;;  %v13539_v37 = vrot.slane %v7305_v42, 5  ;;  %v7311_v21 = vrot.slane %v7309_v35, 4  ;;  %v7923_v4 = vrot.slane %v13530_v63, 5  ;;  %v6648_v6 = vrot.slane %v13289_v11, 5 }
 0x3cf   : > { %v7917_v3 = vsel %vm10970_vm12, %v10510_v43, %v7916_v1  ;;  %v6713_v26 = vpack.c.b16 %v6694_v23, %v6693_v33  ;;  %v7284_v1 = vsel %vm11024_vm2, %v7279_v46, %v13508_v5  ;;  %v7302_v24 = vor.u32 %v7301_v16, %v7298_v27  ;;  %v6520_v33 = vld [vmem:[#allocation3 + $0x9c] sm:$0xe] }
 0x3d0   : > { %v6477_v8 = vpop.f32.mrf.mxu2  ;;  %v8013_v35 = vunpack.c.l.b16 %v7917_v3  ;;  %v7312_v23 = vor.u32 %v7311_v21, %v13539_v37  ;;  %v7613_v43 = vunpack.c.l.b16 %v7284_v1  ;;  %v6650_v17 = vrot.slane %v6648_v6, 4  ;;  %v9168_v3 = vld [vmem:[#allocation3 + $0x18] sm:$0xe] }
 0x3d1   : > { %v6794_v31 = vpop.f32.mrf.mxu3  ;;  %v7303_v27 = vrot.slane %v7302_v24, 4  ;;  %v7315_v16 = vshll.u32 %v13524_v28, 16  ;;  %v6651_v1 = vrot.slane %v13293_v59, 5  ;;  %v7329_v28 = vshll.u32 %v13530_v63, 16 }
 0x3d2   : > { %v13533_v49 = vadd.f32 %v6794_v31, %v13241_v32  ;;  %v7294_v32 = vsel %vm11024_vm2, %v7289_v9, %v7293_v45  ;;  %v13546_v54 = vpop.f32.mrf.mxu0  ;;  %v13554_v9 = vld [vmem:[#allocation3 + $0x44] sm:$0x1]  ;;  %v7925_v31 = vrot.slane %v7923_v4, 4  ;;  %v8042_v11 = vpack.c.b16 %v8014_v44, %v8013_v35  ;;  %v7187_v35 = vld [vmem:[#allocation3 + $0x3c] sm:$0xf] }
 0x3d3   : > { %v6254_v7 = vpop.f32.mrf.mxu1  ;;  %15224 = vst [vmem:[#allocation24_spill] sm:$0xff] %v13546_v54  ;;  %v7614_v42 = vunpack.c.l.b16 %v7294_v32  ;;  %v7926_v46 = vrot.slane %v13554_v9, 5  ;;  %v10768_v32 = vld [vmem:[#allocation3 + $0xa8] sm:$0xff]  ;;  %v7313_v44 = vrot.slane %v7312_v23, 4  ;;  %v6652_v59 = vsel %vm10970_vm12, %v6650_v17, %v6651_v1 }
 0x3d4   : > { %15223 = vst [vmem:[#allocation19_spill] sm:$0xff] %v13533_v49  ;;  %v13541_v34 = vadd.f32 %v6474_v18, %v6254_v7  ;;  %v7833_v18 = vld [vmem:[#allocation3 + $0x3c] sm:$0xe]  ;;  %v13589_v17 = vld [vmem:[#allocation3 + $0x28] sm:$0xf]  ;;  %v13598_v1 = vrot.slane %v7329_v28, 5 }
 0x3d5   : > { %v10511_v7 = vrot.slane %v7833_v18, 9  ;;  %v7643_v54 = vpack.c.b16 %v7614_v42, %v7613_v43  ;;  %v7927_v24 = vsel %vm10970_vm12, %v7925_v31, %v7926_v46  ;;  %v10638_v42 = vrot.slane %v9168_v3, 9  ;;  %v9169_v28 = vld [vmem:[#allocation3 + $0x24] sm:$0xe] }
 0x3d6   : > { %10405 = vmatmul.msk.bf16.gmra.mxu3 %vm6145_vm6, %v6713_v26  ;;  %v13558_v26 = vld [vmem:[#allocation3 + $0x1c] sm:$0xf]  ;;  %v7308_v31 = vsel %vm11024_vm2, %v7303_v27, %v13539_v37  ;;  %v7317_v43 = vrot.slane %v7315_v16, 5  ;;  %v8016_v27 = vunpack.c.l.b16 %v7927_v24 }
 0x3d7   : > { %v7924_v18 = vsel %vm10970_vm12, %v10511_v7, %v7923_v4  ;;  %v7333_v4 = vshrl.u32 %v13530_v63, 16  ;;  %v7323_v7 = vshll.u32 %v7187_v35, 16 }
 0x3d8   : > { %v13556_v30 = vpop.f32.mrf.mxu2  ;;  %v8015_v37 = vunpack.c.l.b16 %v7924_v18 }
 0x3d9   : > { %v6797_v45 = vpop.f32.mrf.mxu3  ;;  %v7325_v24 = vrot.slane %v7323_v7, 5  ;;  %v13619_v7 = vld [vmem:[#allocation3 + $0x34] sm:$0xf] }
 0x3da   : > { %v13561_v5 = vadd.f32 %v6797_v45, %v13278_v60  ;;  %v10389_v60 = vrot.slane %v6520_v33, 9  ;;  %v13573_v45 = vld [vmem:[#allocation3 + $0x20] sm:$0x1]  ;;  %v7320_v33 = vshrl.u32 %v7187_v35, 16  ;;  %v7335_v35 = vrot.slane %v7333_v4, 4 }
 0x3db   : > { %v6257_v21 = vpop.f32.mrf.mxu1 }
 0x3dc   : > { %15225 = vst [vmem:[#allocation21_spill] sm:$0xff] %v13561_v5  ;;  %v13568_v49 = vadd.f32 %v6477_v8, %v6257_v21  ;;  %v9234_v8 = vrot.slane %v13558_v26, 5  ;;  %v6649_v23 = vsel %vm10970_vm12, %v10389_v60, %v6648_v6  ;;  %v6696_v6 = vunpack.c.l.b16 %v6652_v59  ;;  %v7190_v60 = vld [vmem:[#allocation3 + $0x48] sm:$0xf] }
 0x3dd   : > { %10487 = vmatmul.msk.bf16.gmra.mxu0 %vm6145_vm6, %v10768_v32  ;;  %10527 = vmatmul.msk.bf16.gmra.mxu2 %vm6145_vm6, %v8042_v11  ;;  %v13587_v11 = vpop.f32.mrf.mxu0  ;;  %v7318_v21 = vsel %vm11024_vm2, %v7313_v44, %v7317_v43  ;;  %v6695_v32 = vunpack.c.l.b16 %v6649_v23  ;;  %v9241_v59 = vrot.slane %v13589_v17, 5  ;;  %v7322_v18 = vrot.slane %v7320_v33, 4  ;;  %v13617_v33 = vld [vmem:[#allocation3 + $0x2c] sm:$0x1] }
 0x3de   : > { %10493 = vmatmul.msk.bf16.gmra.mxu1 %vm6145_vm6, %v7643_v54  ;;  %15226 = vst [vmem:[#allocation23_spill] sm:$0xff] %v13587_v11  ;;  %v9235_v63 = vsel %vm10970_vm12, %v10638_v42, %v9234_v8  ;;  %v9236_v46 = vrot.slane %v9234_v8, 4  ;;  %v9237_v54 = vrot.slane %v13573_v45, 5  ;;  %v7616_v44 = vunpack.c.l.b16 %v7318_v21 }
 0x3df   : > { %v9346_v11 = vunpack.c.l.b16 %v9235_v63  ;;  %v7339_v23 = vshll.u32 %v13554_v9, 16  ;;  %v6714_v43 = vpack.c.b16 %v6696_v6, %v6695_v32  ;;  %v7347_v21 = vshll.u32 %v7190_v60, 16 }
 0x3e0   : > { %v13594_v3 = vpop.f32.mrf.mxu2  ;;  %v9238_v42 = vsel %vm10970_vm12, %v9236_v46, %v9237_v54  ;;  %v13612_v46 = vld [vmem:[#allocation3 + $0x48] sm:$0xe]  ;;  %v7615_v54 = vunpack.c.l.b16 %v7308_v31  ;;  %v7336_v9 = vor.u32 %v7335_v35, %v13598_v1  ;;  %v10639_v6 = vrot.slane %v9169_v28, 9  ;;  %v13636_v31 = vld [vmem:[#allocation3 + $0x38] sm:$0x1] }
 0x3e1   : > { %v6799_v16 = vpop.f32.mrf.mxu3  ;;  %v9347_v5 = vunpack.c.l.b16 %v9238_v42  ;;  %v9243_v32 = vrot.slane %v9241_v59, 4 }
 0x3e2   : > { %v13603_v8 = vadd.f32 %v6799_v16, %v13303_v15  ;;  %v7344_v15 = vshrl.u32 %v7190_v60, 16  ;;  %v6655_v16 = vrot.slane %v13324_v51, 5  ;;  %v7644_v42 = vpack.c.b16 %v7616_v44, %v7615_v54 }
 0x3e3   : > { %v6259_v22 = vpop.f32.mrf.mxu1  ;;  %v13614_v63 = vpack.c.b16 %v9347_v5, %v9346_v11  ;;  %v7326_v5 = vor.u32 %v7325_v24, %v7322_v18  ;;  %v9170_v11 = vld [vmem:[#allocation3 + $0x30] sm:$0xe]  ;;  %v7349_v24 = vrot.slane %v7347_v21, 5 }
 0x3e4   : > { %15227 = vst [vmem:[#allocation22_spill] sm:$0xff] %v13603_v8  ;;  %v13608_v4 = vadd.f32 %v13556_v30, %v6259_v22  ;;  %v8043_v22 = vpack.c.b16 %v8016_v27, %v8015_v37  ;;  %v13623_v30 = vld [vmem:[#allocation3 + $0x18] sm:$0xf]  ;;  %v9244_v37 = vrot.slane %v13617_v33, 5  ;;  %v9248_v27 = vrot.slane %v13619_v7, 5 }
 0x3e5   : > { %15228 = vst [vmem:[#allocation28_spill] sm:$0xff] %v13614_v63  ;;  %v7341_v63 = vrot.slane %v7339_v23, 5  ;;  %v13633_v35 = vpop.f32.mrf.mxu0  ;;  %v6657_v44 = vrot.slane %v6655_v16, 4  ;;  %v7346_v18 = vrot.slane %v7344_v15, 4  ;;  %v8563_v54 = vshrl.u32 %v13623_v30, 16 }
 0x3e6   : > { %10406 = vmatmul.msk.bf16.gmra.mxu3 %vm6145_vm6, %v6714_v43  ;;  %v9242_v43 = vsel %vm10970_vm12, %v10639_v6, %v9241_v59  ;;  %15229 = vst [vmem:[#allocation25_spill] sm:$0xff] %v13633_v35  ;;  %v6521_v23 = vld [vmem:[#allocation3 + $0xa8] sm:$0xe]  ;;  %v7337_v8 = vrot.slane %v7336_v9, 4  ;;  %v9245_v59 = vsel %vm10970_vm12, %v9243_v32, %v9244_v37  ;;  %v10640_v6 = vrot.slane %v9170_v11, 9 }
 0x3e7   : > { %v6658_v35 = vrot.slane %v13331_v38, 5  ;;  %v15230_v15 = vrot.slane %v13610_v47, 5  ;;  %v9348_v19 = vunpack.c.l.b16 %v9242_v43  ;;  %v9349_v41 = vunpack.c.l.b16 %v9245_v59 }
 0x3e8   : > { %v13627_v60 = vpop.f32.mrf.mxu2  ;;  %v9249_v9 = vsel %vm10970_vm12, %v10640_v6, %v9248_v27  ;;  %v9251_v32 = vrot.slane %v13636_v31, 5  ;;  %v10390_v38 = vrot.slane %v6521_v23, 9  ;;  %v7353_v43 = vshll.u32 %v13610_v47, 16 }
 0x3e9   : > { %v6802_v28 = vpop.f32.mrf.mxu3  ;;  %v7932_v21 = vrot.slane %v15230_v15, 4  ;;  %v6659_v11 = vsel %vm10970_vm12, %v6657_v44, %v6658_v35  ;;  %v13657_v37 = vpack.c.b16 %v9349_v41, %v9348_v19  ;;  %v9350_v59 = vunpack.c.l.b16 %v9249_v9 }
 0x3ea   : > { %v13639_v51 = vadd.f32 %v6802_v28, %v13328_v10  ;;  %v7192_v10 = vld [vmem:[#allocation3 + $0x50] sm:$0x1]  ;;  %v9250_v28 = vrot.slane %v9248_v27, 4  ;;  %v8566_v27 = vshll.u32 %v13623_v30, 16  ;;  %v6698_v6 = vunpack.c.l.b16 %v6659_v11 }
 0x3eb   : > { %v6262_v55 = vpop.f32.mrf.mxu1  ;;  %15231 = vst [vmem:[#allocation27_spill] sm:$0xff] %v13657_v37  ;;  %v7933_v23 = vrot.slane %v7192_v10, 5  ;;  %v7342_v19 = vsel %vm11024_vm2, %v7337_v8, %v7341_v63  ;;  %v8572_v30 = vshll.u32 %v13558_v26, 16  ;;  %v7350_v15 = vor.u32 %v7349_v24, %v7346_v18  ;;  %v13684_v37 = vld [vmem:[#allocation3 + $0x40] sm:$0xf] }
 0x3ec   : > { %v13647_v14 = vadd.f32 %v13594_v3, %v6262_v55  ;;  %v7327_v55 = vrot.slane %v7326_v5, 4  ;;  %v7357_v3 = vshrl.u32 %v13610_v47, 16 }
 0x3ed   : > { %10488 = vmatmul.msk.bf16.gmra.mxu0 %vm6145_vm6, %v10769_v50  ;;  %10528 = vmatmul.msk.bf16.gmra.mxu2 %vm6145_vm6, %v8043_v22  ;;  %v9252_v50 = vsel %vm10970_vm12, %v9250_v28, %v9251_v32  ;;  %v6656_v22 = vsel %vm10970_vm12, %v10390_v38, %v6655_v16  ;;  %v7934_v5 = vsel %vm10970_vm12, %v7932_v21, %v7933_v23  ;;  %v13674_v16 = vrot.slane %v7353_v43, 5  ;;  %v13682_v11 = vpop.f32.mrf.mxu0 }
 0x3ee   : > { %10494 = vmatmul.msk.bf16.gmra.mxu1 %vm6145_vm6, %v7644_v42  ;;  %v9351_v35 = vunpack.c.l.b16 %v9252_v50  ;;  %v7332_v41 = vsel %vm11024_vm2, %v7327_v55, %v13598_v1  ;;  %v6697_v32 = vunpack.c.l.b16 %v6656_v22  ;;  %v7359_v38 = vrot.slane %v7357_v3, 4  ;;  %15233 = vst [vmem:[#allocation9_spill] sm:$0xff] %v13682_v11  ;;  %v8517_v3 = vld [vmem:[#allocation3 + $0x24] sm:$0xf] }
 0x3ef   : > { %v8576_v1 = vshrl.u32 %v13558_v26, 16  ;;  %v7617_v63 = vunpack.c.l.b16 %v7332_v41  ;;  %v7618_v55 = vunpack.c.l.b16 %v7342_v19  ;;  %v8565_v50 = vrot.slane %v8563_v54, 4 }
 0x3f0   : > { %v6487_v44 = vpop.f32.mrf.mxu2  ;;  %v13676_v9 = vpack.c.b16 %v9351_v35, %v9350_v59  ;;  %v6715_v24 = vpack.c.b16 %v6698_v6, %v6697_v32  ;;  %v15234_v21 = vrot.slane %v13610_v47, 5  ;;  %v7363_v26 = vshll.u32 %v7192_v10, 16 }
 0x3f1   : > { %v6804_v42 = vpop.f32.mrf.mxu3  ;;  %v8018_v22 = vunpack.c.l.b16 %v7934_v5  ;;  %v6662_v23 = vrot.slane %v13383_v0, 5  ;;  %v7351_v59 = vrot.slane %v7350_v15, 4  ;;  %v8568_v54 = vrot.slane %v8566_v27, 5  ;;  %v13711_v15 = vld [vmem:[#allocation3 + $0x44] sm:$0x1] }
 0x3f2   : > { %15232 = vst [vmem:[#allocation26_spill] sm:$0xff] %v13676_v9  ;;  %v13679_v28 = vadd.f32 %v6804_v42, %v13349_v57  ;;  %v15235_v57 = vrot.slane %v13612_v46, 9  ;;  %v13698_v35 = vrot.slane %v8572_v30, 5  ;;  %v8578_v6 = vrot.slane %v8576_v1, 4 }
 0x3f3   : > { %v6264_v8 = vpop.f32.mrf.mxu1  ;;  %v9255_v47 = vrot.slane %v13684_v37, 5  ;;  %v8587_v41 = vshrl.u32 %v8517_v3, 16  ;;  %v8596_v19 = vshll.u32 %v13589_v17, 16  ;;  %v8600_v10 = vshrl.u32 %v13589_v17, 16 }
 0x3f4   : > { %v13687_v18 = vadd.f32 %v13627_v60, %v6264_v8  ;;  %v7931_v43 = vsel %vm10970_vm12, %v15235_v57, %v15234_v21  ;;  %v7360_v60 = vor.u32 %v7359_v38, %v13674_v16  ;;  %v7645_v0 = vpack.c.b16 %v7618_v55, %v7617_v63  ;;  %v9171_v21 = vld [vmem:[#allocation3 + $0x3c] sm:$0xe]  ;;  %v6522_v55 = vld [vmem:[#allocation3 + $0xb4] sm:$0xe] }
 0x3f5   : > { %v8017_v46 = vunpack.c.l.b16 %v7931_v43  ;;  %v7356_v27 = vsel %vm11024_vm2, %v7351_v59, %v13674_v16  ;;  %v13708_v5 = vrot.slane %v7363_v26, 5  ;;  %v8582_v30 = vshll.u32 %v13573_v45, 16  ;;  %v10770_v45 = vld [vmem:[#allocation3 + $0xc0] sm:$0xff] }
 0x3f6   : > { %10407 = vmatmul.msk.bf16.gmra.mxu3 %vm6145_vm6, %v6715_v24  ;;  %v6664_v1 = vrot.slane %v6662_v23, 4  ;;  %v8569_v8 = vor.u32 %v8568_v54, %v8565_v50  ;;  %v13713_v24 = vld [vmem:[#allocation3 + $0x58] sm:$0xf]  ;;  %v8590_v17 = vshll.u32 %v8517_v3, 16  ;;  %v7361_v57 = vrot.slane %v7360_v60, 4 }
 0x3f7   : > { %v8044_v38 = vpack.c.b16 %v8018_v22, %v8017_v46  ;;  %v8579_v16 = vor.u32 %v8578_v6, %v13698_v35  ;;  %v9257_v43 = vrot.slane %v9255_v47, 4  ;;  %v6665_v59 = vrot.slane %v13389_v56, 5 }
 0x3f8   : > { %v13703_v42 = vpop.f32.mrf.mxu2  ;;  %v8589_v9 = vrot.slane %v8587_v41, 4  ;;  %v13720_v22 = vrot.slane %v8596_v19, 5  ;;  %v8602_v50 = vrot.slane %v8600_v10, 4  ;;  %v7937_v3 = vrot.slane %v13713_v24, 5 }
 0x3f9   : > { %v6807_v32 = vpop.f32.mrf.mxu3  ;;  %v10641_v46 = vrot.slane %v9171_v21, 9  ;;  %v10391_v60 = vrot.slane %v6522_v55, 9  ;;  %v6666_v56 = vsel %vm10970_vm12, %v6664_v1, %v6665_v59  ;;  %v8592_v6 = vrot.slane %v8590_v17, 5 }
 0x3fa   : > { %v13716_v63 = vadd.f32 %v6807_v32, %v13387_v29  ;;  %v9258_v29 = vrot.slane %v13711_v15, 5  ;;  %v13726_v32 = vpop.f32.mrf.mxu0  ;;  %v8606_v41 = vshll.u32 %v13617_v33, 16  ;;  %v8580_v19 = vrot.slane %v8579_v16, 4  ;;  %v7835_v16 = vld [vmem:[#allocation3 + $0x54] sm:$0xe] }
 0x3fb   : > { %v6267_v26 = vpop.f32.mrf.mxu1  ;;  %15236 = vst [vmem:[#allocation29_spill] sm:$0xff] %v13726_v32  ;;  %v9256_v10 = vsel %vm10970_vm12, %v10641_v46, %v9255_v47  ;;  %v13740_v55 = vunpack.c.l.b16 %v7356_v27  ;;  %v8603_v1 = vor.u32 %v8602_v50, %v13720_v22  ;;  %v8593_v27 = vor.u32 %v8592_v6, %v8589_v9 }
 0x3fc   : > { %v13722_v54 = vadd.f32 %v6487_v44, %v6267_v26  ;;  %v8570_v44 = vrot.slane %v8569_v8, 4  ;;  %v9259_v21 = vsel %vm10970_vm12, %v9257_v43, %v9258_v29  ;;  %v13742_v26 = vld [vmem:[#allocation3 + $0x5c] sm:$0x1]  ;;  %v8584_v8 = vrot.slane %v8582_v30, 5 }
 0x3fd   : > { %10489 = vmatmul.msk.bf16.gmra.mxu0 %vm6145_vm6, %v10770_v45  ;;  %10529 = vmatmul.msk.bf16.gmra.mxu2 %vm6145_vm6, %v8044_v38  ;;  %v6663_v38 = vsel %vm10970_vm12, %v10391_v60, %v6662_v23  ;;  %v9353_v33 = vunpack.c.l.b16 %v9259_v21  ;;  %v7939_v43 = vrot.slane %v7937_v3, 4  ;;  %v8520_v45 = vld [vmem:[#allocation3 + $0x30] sm:$0xf]  ;;  %v7366_v23 = vsel %vm11024_vm2, %v7361_v57, %v13708_v5 }
 0x3fe   : > { %10495 = vmatmul.msk.bf16.gmra.mxu1 %vm6145_vm6, %v7645_v0  ;;  %v6700_v0 = vunpack.c.l.b16 %v6666_v56  ;;  %v8575_v47 = vsel %vm11024_vm2, %v8570_v44, %v13698_v35  ;;  %v8608_v46 = vrot.slane %v8606_v41, 5  ;;  %v9352_v50 = vunpack.c.l.b16 %v9256_v10 }
 0x3ff   : > { %v6699_v60 = vunpack.c.l.b16 %v6663_v38  ;;  %v8585_v56 = vsel %vm11024_vm2, %v8580_v19, %v8584_v8  ;;  %v7940_v35 = vrot.slane %v13742_v26, 5  ;;  %v10513_v44 = vrot.slane %v7835_v16, 9  ;;  %v13770_v38 = vld [vmem:[#allocation3 + $0x4c] sm:$0xf] }
 0x400   : > { %v13745_v17 = vpop.f32.mrf.mxu2  ;;  %v8604_v21 = vrot.slane %v8603_v1, 4  ;;  %v8611_v32 = vshrl.u32 %v8520_v45, 16  ;;  %v13759_v11 = vpack.c.b16 %v9353_v33, %v9352_v50  ;;  %v8614_v57 = vshll.u32 %v8520_v45, 16  ;;  %v7193_v33 = vld [vmem:[#allocation3 + $0x54] sm:$0xf] }
 0x401   : > { %v6809_v59 = vpop.f32.mrf.mxu3  ;;  %v6716_v9 = vpack.c.b16 %v6700_v0, %v6699_v60  ;;  %v7938_v6 = vsel %vm10970_vm12, %v10513_v44, %v7937_v3  ;;  %v7377_v41 = vshll.u32 %v13713_v24, 16  ;;  %v7381_v19 = vshrl.u32 %v13713_v24, 16  ;;  %v13787_v44 = vld [vmem:[#allocation3 + $0x64] sm:$0xf] }
 0x402   : > { %v13754_v29 = vadd.f32 %v6809_v59, %v13422_v40  ;;  %15238 = vst [vmem:[#allocation8_spill] sm:$0xff] %v13759_v11  ;;  %v7941_v40 = vsel %vm10970_vm12, %v7939_v43, %v7940_v35  ;;  %v8594_v10 = vrot.slane %v8593_v27, 4  ;;  %v7620_v1 = vunpack.c.l.b16 %v7366_v23  ;;  %v13775_v16 = vpop.f32.mrf.mxu0  ;;  %v7836_v11 = vld [vmem:[#allocation3 + $0x60] sm:$0xe] }
 0x403   : > { %v6269_v30 = vpop.f32.mrf.mxu1  ;;  %v8620_v0 = vshll.u32 %v13619_v7, 16  ;;  %v8624_v8 = vshrl.u32 %v13619_v7, 16  ;;  %15239 = vst [vmem:[#allocation34_spill] sm:$0xff] %v13775_v16  ;;  %v8949_v43 = vunpack.c.l.b16 %v8585_v56  ;;  %v8020_v3 = vunpack.c.l.b16 %v7941_v40 }
 0x404   : > { %15237 = vst [vmem:[#allocation30_spill] sm:$0xff] %v13754_v29  ;;  %v13762_v5 = vadd.f32 %v13703_v42, %v6269_v30  ;;  %v8948_v42 = vunpack.c.l.b16 %v8575_v47  ;;  %v8599_v24 = vsel %vm11024_vm2, %v8594_v10, %v13720_v22  ;;  %v8609_v45 = vsel %vm11024_vm2, %v8604_v21, %v8608_v46 }
 0x405   : > { %v8019_v23 = vunpack.c.l.b16 %v7938_v6  ;;  %v8613_v47 = vrot.slane %v8611_v32, 4  ;;  %v8616_v27 = vrot.slane %v8614_v57, 5  ;;  %v9262_v50 = vrot.slane %v13770_v38, 5  ;;  %v8523_v32 = vld [vmem:[#allocation3 + $0x3c] sm:$0xf] }
 0x406   : > { %10408 = vmatmul.msk.bf16.gmra.mxu3 %vm6145_vm6, %v6716_v9  ;;  %v7368_v7 = vshrl.u32 %v7193_v33, 16  ;;  %v7371_v35 = vshll.u32 %v7193_v33, 16  ;;  %v13785_v30 = vrot.slane %v7377_v41, 5  ;;  %v7383_v56 = vrot.slane %v7381_v19, 4  ;;  %v13799_v41 = vld [vmem:[#allocation3 + $0x50] sm:$0x1] }
 0x407   : > { %v13792_v9 = vunpack.c.l.b16 %v8609_v45  ;;  %v13794_v46 = vrot.slane %v8620_v0, 5  ;;  %v8626_v21 = vrot.slane %v8624_v8, 4  ;;  %v7646_v57 = vpack.c.b16 %v7620_v1, %v13740_v55 }
 0x408   : > { %v13782_v59 = vpop.f32.mrf.mxu2  ;;  %v8980_v6 = vpack.c.b16 %v8949_v43, %v8948_v42  ;;  %v8045_v10 = vpack.c.b16 %v8020_v3, %v8019_v23  ;;  %v13797_v33 = vunpack.c.l.b16 %v8599_v24  ;;  %v8617_v45 = vor.u32 %v8616_v27, %v8613_v47  ;;  %v13814_v47 = vld [vmem:[#allocation3 + $0x68] sm:$0x1] }
 0x409   : > { %v6812_v60 = vpop.f32.mrf.mxu3  ;;  %v9264_v0 = vrot.slane %v9262_v50, 4  ;;  %v7370_v8 = vrot.slane %v7368_v7, 4  ;;  %v7373_v55 = vrot.slane %v7371_v35, 5  ;;  %v7384_v1 = vor.u32 %v7383_v56, %v13785_v30 }
 0x40a   : > { %v13790_v22 = vadd.f32 %v6812_v60, %v13442_v12  ;;  %v7944_v12 = vrot.slane %v13787_v44, 5  ;;  %v9172_v60 = vld [vmem:[#allocation3 + $0x48] sm:$0xe]  ;;  %v8635_v42 = vshrl.u32 %v8523_v32, 16  ;;  %v8627_v43 = vor.u32 %v8626_v21, %v13794_v46 }
 0x40b   : > { %v6272_v40 = vpop.f32.mrf.mxu1  ;;  %v8638_v3 = vshll.u32 %v8523_v32, 16  ;;  %v9265_v24 = vrot.slane %v13799_v41, 5  ;;  %v7387_v23 = vshll.u32 %v13742_v26, 16  ;;  %v8644_v27 = vshll.u32 %v13684_v37, 16  ;;  %v13825_v32 = vpop.f32.mrf.mxu0 }
 0x40c   : > { %15240 = vst [vmem:[#allocation31_spill] sm:$0xff] %v13790_v22  ;;  %v13802_v19 = vadd.f32 %v13745_v17, %v6272_v40  ;;  %v8648_v7 = vshrl.u32 %v13684_v37, 16  ;;  %v10642_v35 = vrot.slane %v9172_v60, 9  ;;  %v7946_v40 = vrot.slane %v7944_v12, 4 }
 0x40d   : > { %10622 = vmatmul.msk.bf16.vlgmr.msra.gmra.mxu0 %vm6145_vm6, %v8980_v6  ;;  %10530 = vmatmul.msk.bf16.gmra.mxu2 %vm6145_vm6, %v8045_v10  ;;  %v8630_v6 = vshll.u32 %v13636_v31, 16  ;;  %v9266_v21 = vsel %vm10970_vm12, %v9264_v0, %v9265_v24  ;;  %15241 = vst [vmem:[#allocation33_spill] sm:$0xff] %v13825_v32  ;;  %v7374_v10 = vor.u32 %v7373_v55, %v7370_v8  ;;  %v7385_v17 = vrot.slane %v7384_v1, 4  ;;  %v7196_v32 = vld [vmem:[#allocation3 + $0x60] sm:$0xf] }
 0x40e   : > { %10496 = vmatmul.msk.bf16.gmra.mxu1 %vm6145_vm6, %v7646_v57  ;;  %v13820_v57 = vrot.slane %v8617_v45, 4  ;;  %v13827_v16 = vrot.slane %v8635_v42, 4  ;;  %v9263_v37 = vsel %vm10970_vm12, %v10642_v35, %v9262_v50  ;;  %v7947_v45 = vrot.slane %v13814_v47, 5  ;;  %v10771_v42 = vld [vmem:[#allocation3 + $0x18] sm:$0xff] }
 0x40f   : > { %v8628_v31 = vrot.slane %v8627_v43, 4  ;;  %v13835_v22 = vrot.slane %v8638_v3, 5  ;;  %v7389_v24 = vrot.slane %v7387_v23, 5  ;;  %v13837_v29 = vrot.slane %v8644_v27, 5 }
 0x410   : > { %v13818_v56 = vpop.f32.mrf.mxu2  ;;  %v8650_v8 = vrot.slane %v8648_v7, 4  ;;  %v9355_v55 = vunpack.c.l.b16 %v9266_v21  ;;  %v10514_v50 = vrot.slane %v7836_v11, 9  ;;  %v9354_v35 = vunpack.c.l.b16 %v9263_v37 }
 0x411   : > { %v6814_v26 = vpop.f32.mrf.mxu3  ;;  %v7390_v43 = vsel %vm11024_vm2, %v7385_v17, %v7389_v24  ;;  %v7401_v3 = vshll.u32 %v13787_v44, 16  ;;  %v7405_v23 = vshrl.u32 %v13787_v44, 16  ;;  %v7392_v27 = vshrl.u32 %v7196_v32, 16 }
 0x412   : > { %v13832_v60 = vadd.f32 %v6814_v26, %v13462_v61  ;;  %v7948_v61 = vsel %vm10970_vm12, %v7946_v40, %v7947_v45  ;;  %v7375_v26 = vrot.slane %v7374_v10, 4  ;;  %v7395_v7 = vshll.u32 %v7196_v32, 16 }
 0x413   : > { %v6274_v0 = vpop.f32.mrf.mxu1  ;;  %v13851_v11 = vpack.c.b16 %v9355_v55, %v9354_v35  ;;  %v8022_v21 = vunpack.c.l.b16 %v7948_v61  ;;  %v8632_v10 = vrot.slane %v8630_v6, 5  ;;  %v8651_v17 = vor.u32 %v8650_v8, %v13837_v29 }
 0x414   : > { %v13840_v1 = vadd.f32 %v13782_v59, %v6274_v0  ;;  %v7945_v59 = vsel %vm10970_vm12, %v10514_v50, %v7944_v12  ;;  %v7380_v40 = vsel %vm11024_vm2, %v7375_v26, %v13785_v30  ;;  %v7622_v44 = vunpack.c.l.b16 %v7390_v43  ;;  %v8526_v0 = vld [vmem:[#allocation3 + $0x48] sm:$0xf]  ;;  %v13872_v50 = vld [vmem:[#allocation3 + $0x58] sm:$0xf] }
 0x415   : > { %15242 = vst [vmem:[#allocation32_spill] sm:$0xff] %v13851_v11  ;;  %v8623_v12 = vsel %vm11024_vm2, %v13820_v57, %v13794_v46  ;;  %v8641_v32 = vor.u32 %v13835_v22, %v13827_v16  ;;  %v8654_v45 = vshll.u32 %v13711_v15, 16  ;;  %v8021_v30 = vunpack.c.l.b16 %v7945_v59  ;;  %v13877_v15 = vpop.f32.mrf.mxu0 }
 0x416   : > { %10605 = vmatmul.msk.bf16.vlgmr.msra.gmra.mxu3 %vm6145_vm6, %v10771_v42  ;;  %v13866_v55 = vrot.slane %v7401_v3, 5  ;;  %v7407_v6 = vrot.slane %v7405_v23, 4  ;;  %v8633_v8 = vsel %vm11024_vm2, %v8628_v31, %v8632_v10  ;;  %v13870_v42 = vld [vmem:[#allocation3 + $0x70] sm:$0xf]  ;;  %v7621_v57 = vunpack.c.l.b16 %v7380_v40  ;;  %15244 = vst [vmem:[#allocation37_spill] sm:$0xff] %v13877_v15 }
 0x417   : > { %v7394_v16 = vrot.slane %v7392_v27, 4  ;;  %v7397_v22 = vrot.slane %v7395_v7, 5  ;;  %v8046_v35 = vpack.c.b16 %v8022_v21, %v8021_v30  ;;  %v13879_v26 = vrot.slane %v8651_v17, 4  ;;  %v9173_v10 = vld [vmem:[#allocation3 + $0x54] sm:$0xe] }
 0x418   : > { %v13857_v37 = vpop.f32.mrf.mxu2  ;;  %v8659_v43 = vshrl.u32 %v8526_v0, 16  ;;  %v8662_v3 = vshll.u32 %v8526_v0, 16  ;;  %v7647_v23 = vpack.c.b16 %v7622_v44, %v7621_v57  ;;  %v7951_v59 = vrot.slane %v13870_v42, 5  ;;  %v13898_v0 = vld [vmem:[#allocation3 + $0x74] sm:$0x1] }
 0x419   : > { %v6817_v24 = vpop.f32.mrf.mxu3  ;;  %v15245_v27 = vpack.c.b16 %v13792_v9, %v13797_v33  ;;  %v7408_v7 = vor.u32 %v7407_v6, %v13866_v55  ;;  %v8656_v40 = vrot.slane %v8654_v45, 5  ;;  %v7398_v21 = vor.u32 %v7397_v22, %v7394_v16  ;;  %v7837_v16 = vld [vmem:[#allocation3 + $0x6c] sm:$0xe] }
 0x41a   : > { %v13875_v46 = vadd.f32 %v6817_v24, %v13478_v13  ;;  %v9269_v13 = vrot.slane %v13872_v50, 5  ;;  %v7411_v17 = vshll.u32 %v13814_v47, 16  ;;  %v13896_v44 = vunpack.c.l.b16 %v8633_v8  ;;  %v13905_v24 = vld [vmem:[#allocation3 + $0x5c] sm:$0x1] }
 0x41b   : > { %v6277_v61 = vpop.f32.mrf.mxu1  ;;  %v13900_v9 = vrot.slane %v8641_v32, 4  ;;  %v8657_v33 = vsel %vm11024_vm2, %v13879_v26, %v8656_v40  ;;  %v7953_v30 = vrot.slane %v7951_v59, 4  ;;  %v13907_v6 = vrot.slane %v8659_v43, 4  ;;  %v7199_v40 = vld [vmem:[#allocation3 + $0x6c] sm:$0xf] }
 0x41c   : > { %15243 = vst [vmem:[#allocation38_spill] sm:$0xff] %v13875_v46  ;;  %v13882_v31 = vadd.f32 %v13818_v56, %v6277_v61  ;;  %v13893_v56 = vunpack.c.l.b16 %v8623_v12  ;;  %v13909_v12 = vrot.slane %v8662_v3, 5  ;;  %v9271_v57 = vrot.slane %v9269_v13, 4  ;;  %v7208_v46 = vld [vmem:[#allocation3 + $0x90] sm:$0xf] }
 0x41d   : > { %10623 = vmatmul.msk.bf16.gmra.mxu0 %vm6145_vm6, %v15245_v27  ;;  %10531 = vmatmul.msk.bf16.gmra.mxu2 %vm6145_vm6, %v8046_v35  ;;  %v7409_v8 = vrot.slane %v7408_v7, 4  ;;  %v8668_v22 = vshll.u32 %v13770_v38, 16  ;;  %v8672_v32 = vshrl.u32 %v13770_v38, 16  ;;  %v10643_v61 = vrot.slane %v9173_v10, 9 }
 0x41e   : > { %10497 = vmatmul.msk.bf16.gmra.mxu1 %vm6145_vm6, %v7647_v23  ;;  %v7399_v26 = vrot.slane %v7398_v21, 4  ;;  %v7954_v23 = vrot.slane %v13898_v0, 5  ;;  %v9272_v43 = vrot.slane %v13905_v24, 5  ;;  %v7413_v3 = vrot.slane %v7411_v17, 5  ;;  %v13929_v17 = vpop.f32.mrf.mxu0 }
 0x41f   : > { %v7425_v11 = vshll.u32 %v13870_v42, 16  ;;  %v7429_v7 = vshrl.u32 %v13870_v42, 16  ;;  %v9270_v15 = vsel %vm10970_vm12, %v10643_v61, %v9269_v13  ;;  %v10515_v10 = vrot.slane %v7837_v16, 9  ;;  %15247 = vst [vmem:[#allocation11_spill] sm:$0xff] %v13929_v17 }
 0x420   : > { %v6502_v45 = vpop.f32.mrf.mxu2  ;;  %v7955_v21 = vsel %vm10970_vm12, %v7953_v30, %v7954_v23  ;;  %v7404_v42 = vsel %vm11024_vm2, %v7399_v26, %v13866_v55  ;;  %v7414_v13 = vsel %vm11024_vm2, %v7409_v8, %v7413_v3  ;;  %v13936_v61 = vrot.slane %v8668_v22, 5 }
 0x421   : > { %v6819_v47 = vpop.f32.mrf.mxu3  ;;  %v7952_v30 = vsel %vm10970_vm12, %v10515_v10, %v7951_v59  ;;  %v7416_v16 = vshrl.u32 %v7199_v40, 16  ;;  %v9356_v23 = vunpack.c.l.b16 %v9270_v15  ;;  %v13941_v17 = vrot.slane %v7425_v11, 5 }
 0x422   : > { %v13914_v35 = vadd.f32 %v6819_v47, %v13496_v2  ;;  %v10772_v2 = vld [vmem:[#allocation3 + $0x24] sm:$0xff]  ;;  %v9273_v47 = vsel %vm10970_vm12, %v9271_v57, %v9272_v43  ;;  %v8024_v43 = vunpack.c.l.b16 %v7955_v21  ;;  %v7624_v26 = vunpack.c.l.b16 %v7414_v13 }
 0x423   : > { %v6279_v27 = vpop.f32.mrf.mxu1  ;;  %v9357_v57 = vunpack.c.l.b16 %v9273_v47  ;;  %v8982_v8 = vpack.c.b16 %v13896_v44, %v13893_v56  ;;  %v8023_v3 = vunpack.c.l.b16 %v7952_v30  ;;  %v8647_v15 = vsel %vm11024_vm2, %v13900_v9, %v13837_v29 }
 0x424   : > { %15246 = vst [vmem:[#allocation35_spill] sm:$0xff] %v13914_v35  ;;  %v13923_v38 = vadd.f32 %v13857_v37, %v6279_v27  ;;  %v8674_v37 = vrot.slane %v8672_v32, 4  ;;  %v7419_v27 = vshll.u32 %v7199_v40, 16  ;;  %v7431_v35 = vrot.slane %v7429_v7, 4  ;;  %v13953_v40 = vld [vmem:[#allocation3 + $0x7c] sm:$0xf] }
 0x425   : > { %v13945_v22 = vpack.c.b16 %v9357_v57, %v9356_v23  ;;  %v13951_v59 = vunpack.c.l.b16 %v8657_v33  ;;  %v8665_v11 = vor.u32 %v13909_v12, %v13907_v6  ;;  %v13957_v7 = vld [vmem:[#allocation3 + $0x64] sm:$0xf]  ;;  %v7623_v44 = vunpack.c.l.b16 %v7404_v42 }
 0x426   : > { %10606 = vmatmul.msk.bf16.gmra.mxu3 %vm6145_vm6, %v10772_v2  ;;  %v8675_v2 = vor.u32 %v8674_v37, %v13936_v61  ;;  %v8678_v10 = vshll.u32 %v13799_v41, 16  ;;  %v8047_v47 = vpack.c.b16 %v8024_v43, %v8023_v3  ;;  %v7418_v29 = vrot.slane %v7416_v16, 4  ;;  %v9174_v37 = vld [vmem:[#allocation3 + $0x60] sm:$0xe]  ;;  %v13981_v16 = vpop.f32.mrf.mxu0 }
 0x427   : > { %15248 = vst [vmem:[#allocation39_spill] sm:$0xff] %v13945_v22  ;;  %v7421_v9 = vrot.slane %v7419_v27, 5  ;;  %v7432_v33 = vor.u32 %v7431_v35, %v13941_v17  ;;  %v7648_v30 = vpack.c.b16 %v7624_v26, %v7623_v44  ;;  %v7958_v6 = vrot.slane %v13953_v40, 5  ;;  %v8529_v35 = vld [vmem:[#allocation3 + $0x54] sm:$0xf] }
 0x428   : > { %v6504_v55 = vpop.f32.mrf.mxu2  ;;  %v9276_v12 = vrot.slane %v13957_v7, 5  ;;  %v13972_v41 = vunpack.c.l.b16 %v8647_v15  ;;  %v13976_v42 = vadd.f32 %v13021_v58, %v13046_v36  ;;  %15250 = vst [vmem:[#allocation41_spill] sm:$0xff] %v13981_v16  ;;  %v8680_v27 = vrot.slane %v8678_v10, 5  ;;  %v13987_v26 = vld [vmem:[#allocation3 + $0x68] sm:$0x1] }
 0x429   : > { %v6822_v32 = vpop.f32.mrf.mxu3  ;;  %v7422_v23 = vor.u32 %v7421_v9, %v7418_v29  ;;  %v7433_v57 = vrot.slane %v7432_v33, 4  ;;  %v7960_v36 = vrot.slane %v7958_v6, 4  ;;  %v7838_v44 = vld [vmem:[#allocation3 + $0x78] sm:$0xe]  ;;  %v10644_v29 = vrot.slane %v9174_v37, 9 }
 0x42a   : > { %v13960_v56 = vadd.f32 %v6822_v32, %v13516_v39  ;;  %v7435_v39 = vshll.u32 %v13898_v0, 16  ;;  %v13985_v0 = vld [vmem:[#allocation3 + $0x80] sm:$0x1]  ;;  %v8676_v32 = vrot.slane %v8675_v2, 4  ;;  %v9278_v3 = vrot.slane %v9276_v12, 4 }
 0x42b   : > { %v6282_v21 = vpop.f32.mrf.mxu1  ;;  %v7961_v9 = vrot.slane %v13985_v0, 5  ;;  %v8692_v33 = vshll.u32 %v13872_v50, 16  ;;  %v7423_v22 = vrot.slane %v7422_v23, 4  ;;  %v7449_v23 = vshll.u32 %v13953_v40, 16 }
 0x42c   : > { %15249 = vst [vmem:[#allocation40_spill] sm:$0xff] %v13960_v56  ;;  %v13965_v13 = vadd.f32 %v6502_v45, %v6282_v21  ;;  %v13979_v45 = vrot.slane %v8665_v11, 4  ;;  %v7437_v11 = vrot.slane %v7435_v39, 5  ;;  %v8683_v21 = vshrl.u32 %v8529_v35, 16 }
 0x42d   : > { %10624 = vmatmul.msk.bf16.gmra.mxu0 %vm6145_vm6, %v8982_v8  ;;  %10532 = vmatmul.msk.bf16.gmra.mxu2 %vm6145_vm6, %v8047_v47  ;;  %v8686_v47 = vshll.u32 %v8529_v35, 16  ;;  %v8696_v39 = vshrl.u32 %v13872_v50, 16  ;;  %v9277_v35 = vsel %vm10970_vm12, %v10644_v29, %v9276_v12  ;;  %v7962_v8 = vsel %vm10970_vm12, %v7960_v36, %v7961_v9 }
 0x42e   : > { %10498 = vmatmul.msk.bf16.gmra.mxu1 %vm6145_vm6, %v7648_v30  ;;  %v9279_v30 = vrot.slane %v13987_v26, 5  ;;  %v7438_v2 = vsel %vm11024_vm2, %v7433_v57, %v7437_v11  ;;  %v7453_v57 = vshrl.u32 %v13953_v40, 16  ;;  %v8685_v11 = vrot.slane %v8683_v21, 4 }
 0x42f   : > { %v8688_v50 = vrot.slane %v8686_v47, 5  ;;  %v8026_v29 = vunpack.c.l.b16 %v7962_v8  ;;  %v8681_v9 = vsel %vm11024_vm2, %v8676_v32, %v8680_v27  ;;  %v14024_v47 = vrot.slane %v8692_v33, 5 }
 0x430   : > { %v13989_v58 = vpop.f32.mrf.mxu2  ;;  %v9280_v16 = vsel %vm10970_vm12, %v9278_v3, %v9279_v30  ;;  %v8698_v30 = vrot.slane %v8696_v39, 4  ;;  %v7455_v8 = vrot.slane %v7453_v57, 4  ;;  %v7143_v27 = vadd.f32 %v13319_v48, %v13379_v52  ;;  %v8532_v39 = vld [vmem:[#allocation3 + $0x60] sm:$0xf] }
 0x431   : > { %v6824_v15 = vpop.f32.mrf.mxu3  ;;  %v9359_v36 = vunpack.c.l.b16 %v9280_v16  ;;  %v14030_v16 = vrot.slane %v7449_v23, 5  ;;  %v8689_v33 = vor.u32 %v8688_v50, %v8685_v11  ;;  %v8702_v57 = vshll.u32 %v13905_v24, 16 }
 0x432   : > { %v13996_v10 = vadd.f32 %v6824_v15, %v13541_v34  ;;  %v10773_v34 = vld [vmem:[#allocation3 + $0x30] sm:$0xff]  ;;  %v10516_v15 = vrot.slane %v7838_v44, 9  ;;  %v7626_v44 = vunpack.c.l.b16 %v7438_v2  ;;  %v14032_v2 = vld [vmem:[#allocation3 + $0x88] sm:$0xf]  ;;  %v15255_v52 = vpack.c.b16 %v13951_v59, %v13972_v41  ;;  %v9175_v41 = vld [vmem:[#allocation3 + $0x6c] sm:$0xe] }
 0x433   : > { %v6284_v43 = vpop.f32.mrf.mxu1  ;;  %v15256_v24 = vsel %vm11024_vm2, %v13979_v45, %v13936_v61  ;;  %v8699_v50 = vor.u32 %v8698_v30, %v14024_v47  ;;  %v14065_v59 = vrot.slane %v8689_v33, 4  ;;  %v8710_v61 = vshll.u32 %v8532_v39, 16  ;;  %v14072_v45 = vld [vmem:[#allocation3 + $0x74] sm:$0x1] }
 0x434   : > { %15251 = vst [vmem:[#allocation42_spill] sm:$0xff] %v13996_v10  ;;  %v14006_v37 = vadd.f32 %v6504_v55, %v6284_v43  ;;  %v7202_v10 = vld [vmem:[#allocation3 + $0x78] sm:$0xf]  ;;  %v7428_v55 = vsel %vm11024_vm2, %v7423_v22, %v13941_v17  ;;  %v7959_v12 = vsel %vm10970_vm12, %v10516_v15, %v7958_v6  ;;  %v9358_v43 = vunpack.c.l.b16 %v9277_v35  ;;  %v14028_v17 = vpop.f32.mrf.mxu0  ;;  %v14034_v15 = vld [vmem:[#allocation3 + $0x70] sm:$0xf] }
 0x435   : > { %v7440_v3 = vshrl.u32 %v7202_v10, 16  ;;  %v7443_v21 = vshll.u32 %v7202_v10, 16  ;;  %15253 = vst [vmem:[#allocation44_spill] sm:$0xff] %v14028_v17  ;;  %v7625_v6 = vunpack.c.l.b16 %v7428_v55  ;;  %v8025_v35 = vunpack.c.l.b16 %v7959_v12 }
 0x436   : > { %10607 = vmatmul.msk.bf16.gmra.mxu3 %vm6145_vm6, %v10773_v34  ;;  %v14026_v34 = vpack.c.b16 %v9359_v36, %v9358_v43  ;;  %v14041_v10 = vunpack.c.l.b16 %v8681_v9  ;;  %v7965_v17 = vrot.slane %v14032_v2, 5  ;;  %v9283_v48 = vrot.slane %v14034_v15, 5 }
 0x437   : > { %v7649_v55 = vpack.c.b16 %v7626_v44, %v7625_v6  ;;  %v8048_v12 = vpack.c.b16 %v8026_v29, %v8025_v35  ;;  %v7442_v23 = vrot.slane %v7440_v3, 4  ;;  %v14059_v11 = vunpack.c.l.b16 %v15256_v24  ;;  %v7839_v6 = vld [vmem:[#allocation3 + $0x84] sm:$0xe] }
 0x438   : > { %v14022_v40 = vpop.f32.mrf.mxu2  ;;  %15252 = vst [vmem:[#allocation43_spill] sm:$0xff] %v14026_v34  ;;  %v7445_v34 = vrot.slane %v7443_v21, 5  ;;  %v8707_v44 = vshrl.u32 %v8532_v39, 16  ;;  %v6858_v29 = vadd.f32 %v13408_v25, %v13976_v42  ;;  %v7459_v3 = vshll.u32 %v13985_v0, 16  ;;  %v14070_v21 = vld [vmem:[#allocation3 + $0x8c] sm:$0x1] }
 0x439   : > { %v6827_v22 = vpop.f32.mrf.mxu3  ;;  %v7967_v25 = vrot.slane %v7965_v17, 4  ;;  %v8704_v42 = vrot.slane %v8702_v57, 5  ;;  %v9285_v35 = vrot.slane %v9283_v48, 4  ;;  %v8700_v33 = vrot.slane %v8699_v50, 4 }
 0x43a   : > { %v14039_v32 = vadd.f32 %v6827_v22, %v13568_v49  ;;  %v7456_v49 = vor.u32 %v7455_v8, %v14030_v16  ;;  %v7446_v22 = vor.u32 %v7445_v34, %v7442_v23  ;;  %v10645_v0 = vrot.slane %v9175_v41, 9 }
 0x43b   : > { %v7717_v43 = vpop.f32.mrf.mxu1  ;;  %v7968_v39 = vrot.slane %v14070_v21, 5  ;;  %v7461_v57 = vrot.slane %v7459_v3, 5  ;;  %v10517_v24 = vrot.slane %v7839_v6, 9  ;;  %v8712_v9 = vrot.slane %v8710_v61, 5  ;;  %v7205_v6 = vld [vmem:[#allocation3 + $0x84] sm:$0xf] }
 0x43c   : > { %15254 = vst [vmem:[#allocation45_spill] sm:$0xff] %v14039_v32  ;;  %v14044_v36 = vadd.f32 %v7717_v43, %v7143_v27  ;;  %v7457_v27 = vrot.slane %v7456_v49, 4  ;;  %v14076_v43 = vrot.slane %v8707_v44, 4  ;;  %v14084_v34 = vpop.f32.mrf.mxu0  ;;  %v9284_v49 = vsel %vm10970_vm12, %v10645_v0, %v9283_v48  ;;  %v10774_v44 = vld [vmem:[#allocation3 + $0x3c] sm:$0xff] }
 0x43d   : > { %10625 = vmatmul.msk.bf16.gmra.mxu0 %vm6145_vm6, %v15255_v52  ;;  %10533 = vmatmul.msk.bf16.gmra.mxu2 %vm6145_vm6, %v8048_v12  ;;  %v9286_v52 = vrot.slane %v14072_v45, 5  ;;  %15258 = vst [vmem:[#allocation47_spill] sm:$0xff] %v14084_v34  ;;  %v7966_v3 = vsel %vm10970_vm12, %v10517_v24, %v7965_v17  ;;  %v7473_v61 = vshll.u32 %v14032_v2, 16  ;;  %v7477_v48 = vshrl.u32 %v14032_v2, 16 }
 0x43e   : > { %10499 = vmatmul.msk.bf16.gmra.mxu1 %vm6145_vm6, %v7649_v55  ;;  %v7144_v55 = vadd.f32 %v13342_v53, %v6858_v29  ;;  %v7447_v53 = vrot.slane %v7446_v22, 4  ;;  %v7462_v41 = vsel %vm11024_vm2, %v7457_v27, %v7461_v57  ;;  %v8695_v22 = vsel %vm11024_vm2, %v14065_v59, %v14024_v47  ;;  %v14115_v59 = vld [vmem:[#allocation3 + $0x7c] sm:$0xf] }
 0x43f   : > { %v9287_v29 = vsel %vm10970_vm12, %v9285_v35, %v9286_v52  ;;  %v9360_v35 = vunpack.c.l.b16 %v9284_v49  ;;  %v8716_v2 = vshll.u32 %v13957_v7, 16  ;;  %v8720_v0 = vshrl.u32 %v13957_v7, 16  ;;  %v14121_v49 = vld [vmem:[#allocation3 + $0x94] sm:$0xf]  ;;  %v15261_v7 = vld [vmem:[#allocation12_spill] sm:$0xff] }
 0x440   : > { %v14074_v30 = vpop.f32.mrf.mxu2  ;;  %v7452_v17 = vsel %vm11024_vm2, %v7447_v53, %v14030_v16  ;;  %v8027_v52 = vunpack.c.l.b16 %v7966_v3  ;;  %v8713_v47 = vor.u32 %v8712_v9, %v14076_v43  ;;  %v7467_v57 = vshll.u32 %v7205_v6, 16 }
 0x441   : > { %v6829_v8 = vpop.f32.mrf.mxu3  ;;  %v14119_v24 = vrot.slane %v7473_v61, 5  ;;  %v7479_v16 = vrot.slane %v7477_v48, 4  ;;  %v8726_v9 = vshll.u32 %v13987_v26, 16  ;;  %v14133_v61 = vrot.slane %v8720_v0, 4 }
 0x442   : > { %v14080_v12 = vadd.f32 %v6829_v8, %v13608_v4  ;;  %v7969_v4 = vsel %vm10970_vm12, %v7967_v25, %v7968_v39  ;;  %v8705_v25 = vsel %vm11024_vm2, %v8700_v33, %v8704_v42  ;;  %v9361_v8 = vunpack.c.l.b16 %v9287_v29 }
 0x443   : > { %v7719_v23 = vpop.f32.mrf.mxu1  ;;  %v8028_v27 = vunpack.c.l.b16 %v7969_v4  ;;  %v7627_v29 = vunpack.c.l.b16 %v7452_v17  ;;  %v14129_v3 = vunpack.c.l.b16 %v8705_v25  ;;  %v15264_v26 = vpack.c.b16 %v14041_v10, %v14059_v11  ;;  %v14159_v11 = vld [vmem:[#allocation3 + $0x98] sm:$0x1] }
 0x444   : > { %15257 = vst [vmem:[#allocation46_spill] sm:$0xff] %v14080_v12  ;;  %v14088_v50 = vadd.f32 %v7719_v23, %v7144_v55  ;;  %v7628_v55 = vunpack.c.l.b16 %v7462_v41  ;;  %v14117_v42 = vpack.c.b16 %v9361_v8, %v9360_v35  ;;  %v7464_v23 = vshrl.u32 %v7205_v6, 16  ;;  %v14141_v17 = vpop.f32.mrf.mxu0 }
 0x445   : > { %v8049_v41 = vpack.c.b16 %v8028_v27, %v8027_v52  ;;  %v14131_v35 = vrot.slane %v8716_v2, 5  ;;  %v7972_v8 = vrot.slane %v14121_v49, 5  ;;  %15263 = vst [vmem:[#allocation12_spill] sm:$0xff] %v14141_v17  ;;  %v7469_v27 = vrot.slane %v7467_v57, 5 }
 0x446   : > { %10608 = vmatmul.msk.bf16.gmra.mxu3 %vm6145_vm6, %v10774_v44  ;;  %15259 = vst [vmem:[#allocation48_spill] sm:$0xff] %v14117_v42  ;;  %v15260_v44 = vld [vmem:[#allocation4_spill] sm:$0xff]  ;;  %v7650_v6 = vpack.c.b16 %v7628_v55, %v7627_v29  ;;  %v7466_v25 = vrot.slane %v7464_v23, 4  ;;  %v7480_v2 = vor.u32 %v7479_v16, %v14119_v24  ;;  %v14149_v0 = vunpack.c.l.b16 %v8695_v22  ;;  %v14165_v16 = vld [vmem:[#allocation3 + $0x80] sm:$0x1] }
 0x447   : > { %v7145_v53 = vadd.f32 %v15261_v7, %v15260_v44  ;;  %v14138_v44 = vld [vmem:[#allocation3 + $0x6c] sm:$0xf]  ;;  %v7483_v55 = vshll.u32 %v14070_v21, 16  ;;  %v14153_v52 = vrot.slane %v8713_v47, 4  ;;  %v9176_v7 = vld [vmem:[#allocation3 + $0x78] sm:$0xe]  ;;  %v8723_v23 = vor.u32 %v14133_v61, %v14131_v35 }
 0x448   : > { %v14112_v39 = vpop.f32.mrf.mxu2  ;;  %v8731_v22 = vshrl.u32 %v14138_v44, 16  ;;  %v8734_v57 = vshll.u32 %v14138_v44, 16  ;;  %v7840_v47 = vld [vmem:[#allocation3 + $0x90] sm:$0xe]  ;;  %v8740_v29 = vshll.u32 %v14034_v15, 16  ;;  %v7470_v61 = vor.u32 %v7469_v27, %v7466_v25 }
 0x449   : > { %v6832_v33 = vpop.f32.mrf.mxu3  ;;  %v7481_v42 = vrot.slane %v7480_v2, 4  ;;  %v7485_v17 = vrot.slane %v7483_v55, 5  ;;  %v7975_v12 = vrot.slane %v14159_v11, 5  ;;  %v9293_v34 = vrot.slane %v14165_v16, 5  ;;  %v10775_v2 = vld [vmem:[#allocation3 + $0x48] sm:$0xff] }
 0x44a   : > { %v14126_v4 = vadd.f32 %v6832_v33, %v13647_v14  ;;  %v9290_v14 = vrot.slane %v14115_v59, 5  ;;  %v14155_v33 = vrot.slane %v8726_v9, 5  ;;  %v8744_v9 = vshrl.u32 %v14034_v15, 16 }
 0x44b   : > { %v7722_v43 = vpop.f32.mrf.mxu1  ;;  %v10518_v56 = vrot.slane %v7840_v47, 9  ;;  %v7497_v15 = vshll.u32 %v14121_v49, 16  ;;  %v14186_v55 = vrot.slane %v8740_v29, 5  ;;  %v7486_v47 = vsel %vm11024_vm2, %v7481_v42, %v7485_v17 }
 0x44c   : > { %15262 = vst [vmem:[#allocation4_spill] sm:$0xff] %v14126_v4  ;;  %v14135_v48 = vadd.f32 %v7722_v43, %v7145_v53  ;;  %v7974_v53 = vrot.slane %v7972_v8, 4  ;;  %v9292_v43 = vrot.slane %v9290_v14, 4  ;;  %v10646_v4 = vrot.slane %v9176_v7, 9 }
 0x44d   : > { %10626 = vmatmul.msk.bf16.gmra.mxu0 %vm6145_vm6, %v15264_v26  ;;  %10534 = vmatmul.msk.bf16.gmra.mxu2 %vm6145_vm6, %v8049_v41  ;;  %v15266_v41 = vld [vmem:[#allocation17_spill] sm:$0xff]  ;;  %v14200_v29 = vrot.slane %v7497_v15, 5  ;;  %v7630_v17 = vunpack.c.l.b16 %v7486_v47  ;;  %v14211_v15 = vld [vmem:[#allocation3 + $0x88] sm:$0xf] }
 0x44e   : > { %10500 = vmatmul.msk.bf16.gmra.mxu1 %vm6145_vm6, %v7650_v6  ;;  %v15267_v6 = vld [vmem:[#allocation13_spill] sm:$0xff]  ;;  %v9291_v25 = vsel %vm10970_vm12, %v10646_v4, %v9290_v14  ;;  %v9294_v7 = vsel %vm10970_vm12, %v9292_v43, %v9293_v34  ;;  %v7491_v4 = vshll.u32 %v7208_v46, 16 }
 0x44f   : > { %v7146_v26 = vadd.f32 %v15267_v6, %v15266_v41  ;;  %v8746_v41 = vrot.slane %v8744_v9, 4  ;;  %v9362_v14 = vunpack.c.l.b16 %v9291_v25  ;;  %v9363_v6 = vunpack.c.l.b16 %v9294_v7 }
 0x450   : > { %v14167_v21 = vpop.f32.mrf.mxu2  ;;  %v8733_v9 = vrot.slane %v8731_v22, 4 }
 0x451   : > { %15265 = vst [vmem:[#allocation49_spill] sm:$0xff] %v14167_v21  ;;  %v6834_v10 = vpop.f32.mrf.mxu3  ;;  %v7501_v21 = vshrl.u32 %v14121_v49, 16  ;;  %v7973_v49 = vsel %vm10970_vm12, %v10518_v56, %v7972_v8  ;;  %v8724_v56 = vrot.slane %v8723_v23, 4  ;;  %v14204_v8 = vld [vmem:[#allocation3 + $0xa0] sm:$0xf] }
 0x452   : > { %v14174_v44 = vadd.f32 %v6834_v10, %v13687_v18  ;;  %v7976_v18 = vsel %vm10970_vm12, %v7974_v53, %v7975_v12  ;;  %v7471_v10 = vrot.slane %v7470_v61, 4  ;;  %v14195_v12 = vpop.f32.mrf.mxu0  ;;  %v15272_v61 = vld [vmem:[#allocation14_spill] sm:$0xff]  ;;  %v8029_v7 = vunpack.c.l.b16 %v7973_v49 }
 0x453   : > { %v7724_v32 = vpop.f32.mrf.mxu1  ;;  %15269 = vst [vmem:[#allocation13_spill] sm:$0xff] %v14195_v12  ;;  %v8030_v53 = vunpack.c.l.b16 %v7976_v18  ;;  %v7503_v42 = vrot.slane %v7501_v21, 4 }
 0x454   : > { %15268 = vst [vmem:[#allocation17_spill] sm:$0xff] %v14174_v44  ;;  %v14182_v27 = vadd.f32 %v7724_v32, %v7146_v26  ;;  %v7488_v32 = vshrl.u32 %v7208_v46, 16  ;;  %v7476_v34 = vsel %vm11024_vm2, %v7471_v10, %v14119_v24  ;;  %v14206_v46 = vpack.c.b16 %v9363_v6, %v9362_v14  ;;  %v15271_v26 = vld [vmem:[#allocation7_spill] sm:$0xff] }
 0x455   : > { %v7147_v25 = vadd.f32 %v15272_v61, %v15271_v26  ;;  %v8736_v44 = vrot.slane %v8734_v57, 5  ;;  %v8747_v24 = vor.u32 %v8746_v41, %v14186_v55  ;;  %v7629_v18 = vunpack.c.l.b16 %v7476_v34 }
 0x456   : > { %10609 = vmatmul.msk.bf16.gmra.mxu3 %vm6145_vm6, %v10775_v2  ;;  %15270 = vst [vmem:[#allocation50_spill] sm:$0xff] %v14206_v46  ;;  %v7490_v23 = vrot.slane %v7488_v32, 4  ;;  %v7493_v10 = vrot.slane %v7491_v4, 5  ;;  %v8050_v22 = vpack.c.b16 %v8030_v53, %v8029_v7  ;;  %v7504_v14 = vor.u32 %v7503_v42, %v14200_v29 }
 0x457   : > { %v7979_v6 = vrot.slane %v14204_v8, 5  ;;  %v8750_v26 = vshll.u32 %v14072_v45, 16  ;;  %v7651_v57 = vpack.c.b16 %v7630_v17, %v7629_v18  ;;  %v9297_v41 = vrot.slane %v14211_v15, 5 }
 0x458   : > { %v14202_v43 = vpop.f32.mrf.mxu2  ;;  %v15274_v32 = vpack.c.b16 %v14129_v3, %v14149_v0  ;;  %v7507_v4 = vshll.u32 %v14159_v11, 16  ;;  %v8729_v45 = vsel %vm11024_vm2, %v8724_v56, %v14155_v33  ;;  %v8737_v34 = vor.u32 %v8736_v44, %v8733_v9  ;;  %v14238_v0 = vld [vmem:[#allocation3 + $0x8c] sm:$0x1]  ;;  %v9177_v33 = vld [vmem:[#allocation3 + $0x84] sm:$0xe] }
 0x459   : > { %v6837_v2 = vpop.f32.mrf.mxu3  ;;  %v8748_v53 = vrot.slane %v8747_v24, 4  ;;  %v7505_v42 = vrot.slane %v7504_v14, 4  ;;  %v7981_v17 = vrot.slane %v7979_v6, 4  ;;  %v8752_v3 = vrot.slane %v8750_v26, 5 }
 0x45a   : > { %v14214_v21 = vadd.f32 %v6837_v2, %v13722_v54  ;;  %v8719_v54 = vsel %vm11024_vm2, %v14153_v52, %v14131_v35  ;;  %v7494_v35 = vor.u32 %v7493_v10, %v7490_v23  ;;  %v14236_v52 = vld [vmem:[#allocation3 + $0xa4] sm:$0x1]  ;;  %v14244_v11 = vunpack.c.l.b16 %v8729_v45  ;;  %v7841_v2 = vld [vmem:[#allocation3 + $0x9c] sm:$0xe]  ;;  %v14246_v56 = vpop.f32.mrf.mxu0 }
 0x45b   : > { %v7727_v47 = vpop.f32.mrf.mxu1  ;;  %v9299_v44 = vrot.slane %v9297_v41, 4  ;;  %15276 = vst [vmem:[#allocation51_spill] sm:$0xff] %v14246_v56  ;;  %v7509_v7 = vrot.slane %v7507_v4, 5  ;;  %v7982_v24 = vrot.slane %v14236_v52, 5  ;;  %v14249_v18 = vrot.slane %v8737_v34, 4  ;;  %v15277_v10 = vld [vmem:[#allocation16_spill] sm:$0xff] }
 0x45c   : > { %15273 = vst [vmem:[#allocation7_spill] sm:$0xff] %v14214_v21  ;;  %v14219_v49 = vadd.f32 %v7727_v47, %v7147_v25  ;;  %v14242_v25 = vunpack.c.l.b16 %v8719_v54  ;;  %v8753_v23 = vsel %vm11024_vm2, %v8748_v53, %v8752_v3  ;;  %v15278_v47 = vld [vmem:[#allocation5_spill] sm:$0xff]  ;;  %v7495_v26 = vrot.slane %v7494_v35, 4  ;;  %v8538_v34 = vld [vmem:[#allocation3 + $0x78] sm:$0xf] }
 0x45d   : > { %10627 = vmatmul.msk.bf16.gmra.mxu0 %vm6145_vm6, %v15274_v32  ;;  %10535 = vmatmul.msk.bf16.gmra.mxu2 %vm6145_vm6, %v8050_v22  ;;  %v7148_v22 = vadd.f32 %v15278_v47, %v15277_v10  ;;  %v7510_v32 = vsel %vm11024_vm2, %v7505_v42, %v7509_v7  ;;  %v10519_v4 = vrot.slane %v7841_v2, 9  ;;  %v7983_v45 = vsel %vm10970_vm12, %v7981_v17, %v7982_v24  ;;  %v10776_v3 = vld [vmem:[#allocation3 + $0x54] sm:$0xff]  ;;  %v7211_v10 = vld [vmem:[#allocation3 + $0x9c] sm:$0xf] }
 0x45e   : > { %10501 = vmatmul.msk.bf16.gmra.mxu1 %vm6145_vm6, %v7651_v57  ;;  %v9300_v57 = vrot.slane %v14238_v0, 5  ;;  %v10647_v46 = vrot.slane %v9177_v33, 9  ;;  %v7525_v35 = vshrl.u32 %v14204_v8, 16  ;;  %v8986_v42 = vpack.c.b16 %v14244_v11, %v14242_v25  ;;  %v14285_v11 = vld [vmem:[#allocation3 + $0x94] sm:$0xf] }
 0x45f   : > { %v8743_v17 = vsel %vm11024_vm2, %v14249_v18, %v14186_v55  ;;  %v7980_v33 = vsel %vm10970_vm12, %v10519_v4, %v7979_v6  ;;  %v8755_v25 = vshrl.u32 %v8538_v34, 16  ;;  %v7632_v7 = vunpack.c.l.b16 %v7510_v32  ;;  %v14291_v6 = vld [vmem:[#allocation3 + $0xac] sm:$0xf] }
 0x460   : > { %v14240_v61 = vpop.f32.mrf.mxu2  ;;  %v9298_v2 = vsel %vm10970_vm12, %v10647_v46, %v9297_v41  ;;  %v8032_v24 = vunpack.c.l.b16 %v7983_v45  ;;  %v7512_v55 = vshrl.u32 %v7211_v10, 16  ;;  %v7515_v18 = vshll.u32 %v7211_v10, 16  ;;  %v15281_v45 = vld [vmem:[#allocation18_spill] sm:$0xff] }
 0x461   : > { %15275 = vst [vmem:[#allocation14_spill] sm:$0xff] %v14240_v61  ;;  %v6839_v9 = vpop.f32.mrf.mxu3  ;;  %v7527_v41 = vrot.slane %v7525_v35, 4  ;;  %v8764_v4 = vshll.u32 %v14115_v59, 16  ;;  %v9304_v32 = vrot.slane %v14285_v11, 5  ;;  %v14300_v35 = vld [vmem:[#allocation3 + $0x98] sm:$0x1] }
 0x462   : > { %v14256_v14 = vadd.f32 %v6839_v9, %v13762_v5  ;;  %v7521_v5 = vshll.u32 %v14204_v8, 16  ;;  %v9301_v9 = vsel %vm10970_vm12, %v9299_v44, %v9300_v57  ;;  %v7500_v8 = vsel %vm11024_vm2, %v7495_v26, %v14200_v29  ;;  %v9178_v29 = vld [vmem:[#allocation3 + $0x90] sm:$0xe] }
 0x463   : > { %v7729_v54 = vpop.f32.mrf.mxu1  ;;  %v14283_v44 = vunpack.c.l.b16 %v8753_v23  ;;  %v9365_v57 = vunpack.c.l.b16 %v9301_v9  ;;  %v8758_v23 = vshll.u32 %v8538_v34, 16  ;;  %v7514_v34 = vrot.slane %v7512_v55, 4 }
 0x464   : > { %15279 = vst [vmem:[#allocation16_spill] sm:$0xff] %v14256_v14  ;;  %v14263_v53 = vadd.f32 %v7729_v54, %v7148_v22  ;;  %v14289_v46 = vrot.slane %v7521_v5, 5  ;;  %v9364_v22 = vunpack.c.l.b16 %v9298_v2  ;;  %v8031_v54 = vunpack.c.l.b16 %v7980_v33  ;;  %v14304_v2 = vpop.f32.mrf.mxu0 }
 0x465   : > { %v7631_v5 = vunpack.c.l.b16 %v7500_v8  ;;  %15285 = vst [vmem:[#allocation52_spill] sm:$0xff] %v14304_v2  ;;  %v7517_v56 = vrot.slane %v7515_v18, 5  ;;  %v10648_v12 = vrot.slane %v9178_v29, 9  ;;  %v8768_v8 = vshrl.u32 %v14115_v59, 16 }
 0x466   : > { %10610 = vmatmul.msk.bf16.gmra.mxu3 %vm6145_vm6, %v10776_v3  ;;  %v15282_v3 = vld [vmem:[#allocation15_spill] sm:$0xff]  ;;  %v14302_v9 = vpack.c.b16 %v9365_v57, %v9364_v22  ;;  %v8051_v21 = vpack.c.b16 %v8032_v24, %v8031_v54  ;;  %v9306_v24 = vrot.slane %v9304_v32, 4  ;;  %v9307_v55 = vrot.slane %v14300_v35, 5 }
 0x467   : > { %v7149_v10 = vadd.f32 %v15282_v3, %v15281_v45  ;;  %v7652_v61 = vpack.c.b16 %v7632_v7, %v7631_v5  ;;  %v7528_v45 = vor.u32 %v7527_v41, %v14289_v46  ;;  %v9305_v22 = vsel %vm10970_vm12, %v10648_v12, %v9304_v32  ;;  %v14320_v57 = vld [vmem:[#allocation3 + $0xb0] sm:$0x1] }
 0x468   : > { %v14287_v47 = vpop.f32.mrf.mxu2  ;;  %15284 = vst [vmem:[#allocation15_spill] sm:$0xff] %v14302_v9  ;;  %v7531_v7 = vshll.u32 %v14236_v52, 16  ;;  %v14318_v18 = vunpack.c.l.b16 %v8743_v17  ;;  %v7518_v41 = vor.u32 %v7517_v56, %v7514_v34  ;;  %v9308_v59 = vsel %vm10970_vm12, %v9306_v24, %v9307_v55  ;;  %v15288_v32 = vld [vmem:[#allocation19_spill] sm:$0xff]  ;;  %v15289_v56 = vld [vmem:[#allocation6_spill] sm:$0xff] }
 0x469   : > { %15280 = vst [vmem:[#allocation5_spill] sm:$0xff] %v14287_v47  ;;  %v6842_v26 = vpop.f32.mrf.mxu3  ;;  %v7529_v29 = vrot.slane %v7528_v45, 4  ;;  %v9366_v52 = vunpack.c.l.b16 %v9305_v22  ;;  %v9367_v17 = vunpack.c.l.b16 %v9308_v59  ;;  %v7150_v3 = vadd.f32 %v15289_v56, %v15288_v32 }
 0x46a   : > { %v14298_v14 = vadd.f32 %v6842_v26, %v13802_v19  ;;  %v7986_v19 = vrot.slane %v14291_v6, 5  ;;  %v7842_v26 = vld [vmem:[#allocation3 + $0xa8] sm:$0xe]  ;;  %v8770_v5 = vrot.slane %v8768_v8, 4  ;;  %v7533_v34 = vrot.slane %v7531_v7, 5 }
 0x46b   : > { %v7732_v33 = vpop.f32.mrf.mxu1  ;;  %v7989_v45 = vrot.slane %v14320_v57, 5  ;;  %v14342_v24 = vpack.c.b16 %v9367_v17, %v9366_v52  ;;  %v10520_v55 = vrot.slane %v7842_v26, 9  ;;  %v8774_v32 = vshll.u32 %v14165_v16, 16  ;;  %v9179_v26 = vld [vmem:[#allocation3 + $0x9c] sm:$0xe] }
 0x46c   : > { %15283 = vst [vmem:[#allocation18_spill] sm:$0xff] %v14298_v14  ;;  %v14306_v47 = vadd.f32 %v7732_v33, %v7149_v10  ;;  %v7988_v54 = vrot.slane %v7986_v19, 4  ;;  %v7534_v7 = vsel %vm11024_vm2, %v7529_v29, %v7533_v34  ;;  %v14356_v17 = vpop.f32.mrf.mxu0  ;;  %v7549_v56 = vshrl.u32 %v14291_v6, 16  ;;  %v14378_v14 = vld [vmem:[#allocation3 + $0xb8] sm:$0xf] }
 0x46d   : > { %10628 = vmatmul.msk.bf16.gmra.mxu0 %vm6145_vm6, %v8986_v42  ;;  %10536 = vmatmul.msk.bf16.gmra.mxu2 %vm6145_vm6, %v8051_v21  ;;  %v14322_v42 = vrot.slane %v8755_v25, 4  ;;  %v14324_v21 = vrot.slane %v8758_v23, 5  ;;  %v8987_v25 = vpack.c.b16 %v14283_v44, %v14318_v18  ;;  %v14336_v23 = vrot.slane %v8764_v4, 5  ;;  %15291 = vst [vmem:[#allocation6_spill] sm:$0xff] %v14342_v24  ;;  %v14348_v4 = vld [vmem:[#allocation3 + $0xa0] sm:$0xf] }
 0x46e   : > { %15286 = vst [vmem:[#allocation53_spill] sm:$0xff] %v14306_v47  ;;  %10502 = vmatmul.msk.bf16.gmra.mxu1 %vm6145_vm6, %v7652_v61  ;;  %v14330_v61 = vld [vmem:[#allocation3 + $0x84] sm:$0xf]  ;;  %v7519_v18 = vrot.slane %v7518_v41, 4  ;;  %v7990_v52 = vsel %vm10970_vm12, %v7988_v54, %v7989_v45  ;;  %v7987_v16 = vsel %vm10970_vm12, %v10520_v55, %v7986_v19  ;;  %v8788_v54 = vshll.u32 %v14211_v15, 16 }
 0x46f   : > { %v8761_v59 = vor.u32 %v14324_v21, %v14322_v42  ;;  %v8779_v44 = vshrl.u32 %v14330_v61, 16  ;;  %15293 = vst [vmem:[#allocation56_spill] sm:$0xff] %v14356_v17  ;;  %v7214_v42 = vld [vmem:[#allocation3 + $0xa8] sm:$0xf]  ;;  %v7545_v21 = vshll.u32 %v14291_v6, 16  ;;  %v8782_v29 = vshll.u32 %v14330_v61, 16 }
 0x470   : > { %v14328_v12 = vpop.f32.mrf.mxu2  ;;  %v14363_v41 = vld [vmem:[#allocation3 + $0xa4] sm:$0x1]  ;;  %v9311_v34 = vrot.slane %v14348_v4, 5  ;;  %v7524_v19 = vsel %vm11024_vm2, %v7519_v18, %v14289_v46  ;;  %v7634_v45 = vunpack.c.l.b16 %v7534_v7  ;;  %v8034_v6 = vunpack.c.l.b16 %v7990_v52  ;;  %v15296_v7 = vld [vmem:[#allocation20_spill] sm:$0xff] }
 0x471   : > { %15287 = vst [vmem:[#allocation54_spill] sm:$0xff] %v14328_v12  ;;  %v6844_v10 = vpop.f32.mrf.mxu3  ;;  %v8033_v55 = vunpack.c.l.b16 %v7987_v16  ;;  %v7536_v12 = vshrl.u32 %v7214_v42, 16  ;;  %v9314_v61 = vrot.slane %v14363_v41, 5  ;;  %v7539_v9 = vshll.u32 %v7214_v42, 16  ;;  %v15295_v18 = vld [vmem:[#allocation21_spill] sm:$0xff] }
 0x472   : > { %v14339_v33 = vadd.f32 %v6844_v10, %v13840_v1  ;;  %v10777_v1 = vld [vmem:[#allocation3 + $0x60] sm:$0xff]  ;;  %v8792_v10 = vshrl.u32 %v14211_v15, 16  ;;  %v7551_v15 = vrot.slane %v7549_v56, 4  ;;  %v7151_v52 = vadd.f32 %v15296_v7, %v15295_v18 }
 0x473   : > { %v7734_v22 = vpop.f32.mrf.mxu1  ;;  %v7633_v16 = vunpack.c.l.b16 %v7524_v19  ;;  %v8052_v42 = vpack.c.b16 %v8034_v6, %v8033_v55  ;;  %v8784_v55 = vrot.slane %v8782_v29, 5  ;;  %v8798_v7 = vshll.u32 %v14238_v0, 16 }
 0x474   : > { %15290 = vst [vmem:[#allocation19_spill] sm:$0xff] %v14339_v33  ;;  %v14350_v8 = vadd.f32 %v7734_v22, %v7150_v3  ;;  %v8771_v3 = vor.u32 %v8770_v5, %v14336_v23  ;;  %v10649_v22 = vrot.slane %v9179_v26, 9  ;;  %v14376_v33 = vrot.slane %v7545_v21, 5 }
 0x475   : > { %v14389_v21 = vrot.slane %v8788_v54, 5  ;;  %v8794_v56 = vrot.slane %v8792_v10, 4  ;;  %v7653_v47 = vpack.c.b16 %v7634_v45, %v7633_v16  ;;  %v8762_v54 = vrot.slane %v8761_v59, 4 }
 0x476   : > { %15292 = vst [vmem:[#allocation55_spill] sm:$0xff] %v14350_v8  ;;  %10611 = vmatmul.msk.bf16.gmra.mxu3 %vm6145_vm6, %v10777_v1  ;;  %v9313_v1 = vrot.slane %v9311_v34, 4  ;;  %v9312_v46 = vsel %vm10970_vm12, %v10649_v22, %v9311_v34  ;;  %v7993_v34 = vrot.slane %v14378_v14, 5  ;;  %v7552_v19 = vor.u32 %v7551_v15, %v14376_v33 }
 0x477   : > { %v9368_v22 = vunpack.c.l.b16 %v9312_v46  ;;  %v8776_v10 = vrot.slane %v8774_v32, 5  ;;  %v7555_v45 = vshll.u32 %v14320_v57, 16  ;;  %v15298_v32 = vld [vmem:[#allocation22_spill] sm:$0xff]  ;;  %v15299_v46 = vld [vmem:[#allocation24_spill] sm:$0xff] }
 0x478   : > { %v14373_v5 = vpop.f32.mrf.mxu2  ;;  %v7553_v59 = vrot.slane %v7552_v19, 4  ;;  %v7569_v19 = vshll.u32 %v14378_v14, 16 }
 0x479   : > { %15294 = vst [vmem:[#allocation57_spill] sm:$0xff] %v14373_v5  ;;  %v6847_v24 = vpop.f32.mrf.mxu3  ;;  %v9315_v5 = vsel %vm10970_vm12, %v9313_v1, %v9314_v61  ;;  %v8772_v1 = vrot.slane %v8771_v3, 4  ;;  %v7843_v61 = vld [vmem:[#allocation3 + $0xb4] sm:$0xe]  ;;  %v7995_v3 = vrot.slane %v7993_v34, 4  ;;  %v7557_v16 = vrot.slane %v7555_v45, 5 }
 0x47a   : > { %v14385_v26 = vadd.f32 %v6847_v24, %v13882_v31  ;;  %v9369_v2 = vunpack.c.l.b16 %v9315_v5  ;;  %v7538_v31 = vrot.slane %v7536_v12, 4  ;;  %v7541_v24 = vrot.slane %v7539_v9, 5  ;;  %v14403_v5 = vld [vmem:[#allocation3 + $0xbc] sm:$0x1]  ;;  %v7217_v45 = vld [vmem:[#allocation3 + $0xb4] sm:$0xf] }
 0x47b   : > { %v7737_v17 = vpop.f32.mrf.mxu1  ;;  %v8795_v12 = vor.u32 %v8794_v56, %v14389_v21  ;;  %v8777_v57 = vsel %vm11024_vm2, %v8772_v1, %v8776_v10  ;;  %v7996_v18 = vrot.slane %v14403_v5, 5 }
 0x47c   : > { %v14391_v8 = vadd.f32 %v7737_v17, %v7151_v52  ;;  %v14398_v6 = vpack.c.b16 %v9369_v2, %v9368_v22  ;;  %v14400_v17 = vpop.f32.mrf.mxu0  ;;  %v8767_v2 = vsel %vm11024_vm2, %v8762_v54, %v14336_v23  ;;  %v10778_v23 = vld [vmem:[#allocation3 + $0x6c] sm:$0xff]  ;;  %v7558_v54 = vsel %vm11024_vm2, %v7553_v59, %v7557_v16 }
 0x47d   : > { %10629 = vmatmul.msk.bf16.gmra.mxu0 %vm6145_vm6, %v8987_v25  ;;  %10537 = vmatmul.msk.bf16.gmra.mxu2 %vm6145_vm6, %v8052_v42  ;;  %v8781_v25 = vrot.slane %v8779_v44, 4  ;;  %v7152_v44 = vadd.f32 %v15299_v46, %v15298_v32  ;;  %v10521_v42 = vrot.slane %v7843_v61, 9  ;;  %v8796_v22 = vrot.slane %v8795_v12, 4 }
 0x47e   : > { %10503 = vmatmul.msk.bf16.gmra.mxu1 %vm6145_vm6, %v7653_v47  ;;  %v7542_v47 = vor.u32 %v7541_v24, %v7538_v31  ;;  %v7997_v24 = vsel %vm10970_vm12, %v7995_v3, %v7996_v18  ;;  %v8964_v0 = vunpack.c.l.b16 %v8767_v2  ;;  %v8965_v12 = vunpack.c.l.b16 %v8777_v57 }
 0x47f   : > { %v8785_v56 = vor.u32 %v8784_v55, %v8781_v25  ;;  %v7994_v10 = vsel %vm10970_vm12, %v10521_v42, %v7993_v34  ;;  %v8800_v25 = vrot.slane %v8798_v7, 5  ;;  %v8036_v61 = vunpack.c.l.b16 %v7997_v24  ;;  %v14447_v7 = vld [vmem:[#allocation3 + $0xc4] sm:$0xf] }
 0x480   : > { %v14406_v9 = vpop.f32.mrf.mxu2  ;;  %v7543_v1 = vrot.slane %v7542_v47, 4  ;;  %v14438_v59 = vrot.slane %v7569_v19, 5  ;;  %v7560_v18 = vshrl.u32 %v7217_v45, 16  ;;  %v8988_v19 = vpack.c.b16 %v8965_v12, %v8964_v0 }
 0x481   : > { %15297 = vst [vmem:[#allocation21_spill] sm:$0xff] %v14406_v9  ;;  %v6849_v15 = vpop.f32.mrf.mxu3  ;;  %v8786_v3 = vrot.slane %v8785_v56, 4  ;;  %v8801_v34 = vsel %vm11024_vm2, %v8796_v22, %v8800_v25 }
 0x482   : > { %v14416_v29 = vadd.f32 %v6849_v15, %v13923_v38  ;;  %v7573_v38 = vshrl.u32 %v14378_v14, 16  ;;  %v7548_v55 = vsel %vm11024_vm2, %v7543_v1, %v14376_v33  ;;  %v14434_v14 = vld [vmem:[#allocation3 + $0x90] sm:$0xf]  ;;  %v7636_v15 = vunpack.c.l.b16 %v7558_v54 }
 0x483   : > { %v7739_v52 = vpop.f32.mrf.mxu1  ;;  %v7563_v33 = vshll.u32 %v7217_v45, 16  ;;  %v8791_v57 = vsel %vm11024_vm2, %v8786_v3, %v14389_v21  ;;  %v7635_v56 = vunpack.c.l.b16 %v7548_v55  ;;  %v8803_v22 = vshrl.u32 %v14434_v14, 16  ;;  %v9180_v3 = vld [vmem:[#allocation3 + $0xa8] sm:$0xe] }
 0x484   : > { %v14420_v31 = vadd.f32 %v7739_v52, %v7152_v44  ;;  %v7575_v2 = vrot.slane %v7573_v38, 4  ;;  %v14442_v32 = vpop.f32.mrf.mxu0  ;;  %v8035_v44 = vunpack.c.l.b16 %v7994_v10  ;;  %v15302_v52 = vld [vmem:[#allocation23_spill] sm:$0xff]  ;;  %v14457_v1 = vunpack.c.l.b16 %v8801_v34  ;;  %v7844_v34 = vld [vmem:[#allocation3 + $0xc0] sm:$0xe] }
 0x485   : > { %v7153_v16 = vadd.f32 %v15302_v52, %v13639_v51  ;;  %v7654_v21 = vpack.c.b16 %v7636_v15, %v7635_v56  ;;  %v8000_v51 = vrot.slane %v14447_v7, 5  ;;  %v7565_v45 = vrot.slane %v7563_v33, 5 }
 0x486   : > { %15300 = vst [vmem:[#allocation20_spill] sm:$0xff] %v14420_v31  ;;  %10612 = vmatmul.msk.bf16.gmra.mxu3 %vm6145_vm6, %v10778_v23  ;;  %v14455_v23 = vld [vmem:[#allocation3 + $0xac] sm:$0xf]  ;;  %v8053_v38 = vpack.c.b16 %v8036_v61, %v8035_v44  ;;  %v7576_v10 = vor.u32 %v7575_v2, %v14438_v59  ;;  %v14465_v25 = vunpack.c.l.b16 %v8791_v57  ;;  %v7579_v55 = vshll.u32 %v14403_v5, 16  ;;  %v14472_v61 = vld [vmem:[#allocation3 + $0xb0] sm:$0x1] }
 0x487   : > { %v9318_v0 = vrot.slane %v14455_v23, 5  ;;  %v14470_v12 = vrot.slane %v8803_v22, 4  ;;  %v14476_v2 = vld [vmem:[#allocation3 + $0xc8] sm:$0x1]  ;;  %v8816_v44 = vshrl.u32 %v14285_v11, 16  ;;  %v8002_v52 = vrot.slane %v8000_v51, 4 }
 0x488   : > { %v14436_v47 = vpop.f32.mrf.mxu2  ;;  %v7577_v5 = vrot.slane %v7576_v10, 4  ;;  %v7581_v15 = vrot.slane %v7579_v55, 5 }
 0x489   : > { %15301 = vst [vmem:[#allocation22_spill] sm:$0xff] %v14436_v47  ;;  %v6852_v46 = vpop.f32.mrf.mxu3  ;;  %v8003_v47 = vrot.slane %v14476_v2, 5 }
 0x48a   : > { %v14452_v42 = vadd.f32 %v6852_v46, %v13965_v13  ;;  %v7562_v13 = vrot.slane %v7560_v18, 4  ;;  %v8812_v46 = vshll.u32 %v14285_v11, 16  ;;  %v15304_v18 = vld [vmem:[#allocation25_spill] sm:$0xff]  ;;  %v10522_v11 = vrot.slane %v7844_v34, 9 }
 0x48b   : > { %v7742_v24 = vpop.f32.mrf.mxu1  ;;  %v7154_v33 = vadd.f32 %v15304_v18, %v13679_v28  ;;  %v7582_v55 = vsel %vm11024_vm2, %v7577_v5, %v7581_v15  ;;  %v7220_v15 = vld [vmem:[#allocation3 + $0xc0] sm:$0xf] }
 0x48c   : > { %v14459_v54 = vadd.f32 %v7742_v24, %v7153_v16  ;;  %v8806_v16 = vshll.u32 %v14434_v14, 16  ;;  %v7566_v22 = vor.u32 %v7565_v45, %v7562_v13  ;;  %v10650_v24 = vrot.slane %v9180_v3, 9  ;;  %v14490_v28 = vpop.f32.mrf.mxu0  ;;  %v9181_v45 = vld [vmem:[#allocation3 + $0xb4] sm:$0xe] }
 0x48d   : > { %10630 = vmatmul.msk.bf16.gmra.mxu0 %vm6145_vm6, %v8988_v19  ;;  %10538 = vmatmul.msk.bf16.gmra.mxu2 %vm6145_vm6, %v8053_v38  ;;  %v9320_v19 = vrot.slane %v9318_v0, 4  ;;  %v9321_v38 = vrot.slane %v14472_v61, 5  ;;  %v14492_v10 = vrot.slane %v8812_v46, 5  ;;  %v8001_v34 = vsel %vm10970_vm12, %v10522_v11, %v8000_v51 }
 0x48e   : > { %15303 = vst [vmem:[#allocation24_spill] sm:$0xff] %v14459_v54  ;;  %10504 = vmatmul.msk.bf16.gmra.mxu1 %vm6145_vm6, %v7654_v21  ;;  %v9319_v14 = vsel %vm10970_vm12, %v10650_v24, %v9318_v0  ;;  %v8004_v46 = vsel %vm10970_vm12, %v8002_v52, %v8003_v47  ;;  %v8195_v0 = vadd.f32 %v13989_v58, %v14044_v36  ;;  %v7593_v24 = vshll.u32 %v14447_v7, 16 }
 0x48f   : > { %v9322_v13 = vsel %vm10970_vm12, %v9320_v19, %v9321_v38  ;;  %v14512_v19 = vld [vmem:[#allocation3 + $0xbc] sm:$0x1]  ;;  %v9370_v5 = vunpack.c.l.b16 %v9319_v14  ;;  %v10651_v38 = vrot.slane %v9181_v45, 9  ;;  %v7638_v58 = vunpack.c.l.b16 %v7582_v55 }
 0x490   : > { %v14482_v57 = vpop.f32.mrf.mxu2  ;;  %v9371_v51 = vunpack.c.l.b16 %v9322_v13  ;;  %v8037_v36 = vunpack.c.l.b16 %v8001_v34  ;;  %v9328_v14 = vrot.slane %v14512_v19, 5  ;;  %v7584_v45 = vshrl.u32 %v7220_v15, 16 }
 0x491   : > { %15305 = vst [vmem:[#allocation23_spill] sm:$0xff] %v14482_v57  ;;  %v6854_v56 = vpop.f32.mrf.mxu3  ;;  %v8818_v57 = vrot.slane %v8816_v44, 4  ;;  %v14506_v44 = vld [vmem:[#allocation3 + $0xb8] sm:$0xf]  ;;  %v14526_v9 = vrot.slane %v7593_v24, 5 }
 0x492   : > { %v14487_v21 = vadd.f32 %v6854_v56, %v14006_v37  ;;  %v10779_v37 = vld [vmem:[#allocation3 + $0x78] sm:$0xff]  ;;  %v7567_v56 = vrot.slane %v7566_v22, 4  ;;  %v9325_v47 = vrot.slane %v14506_v44, 5  ;;  %v8038_v22 = vunpack.c.l.b16 %v8004_v46 }
 0x493   : > { %v7744_v18 = vpop.f32.mrf.mxu1 }
 0x494   : > { %v14498_v3 = vadd.f32 %v7744_v18, %v7154_v33  ;;  %v7597_v33 = vshrl.u32 %v14447_v7, 16  ;;  %v7572_v52 = vsel %vm11024_vm2, %v7567_v56, %v14438_v59  ;;  %v14521_v7 = vpack.c.b16 %v9371_v51, %v9370_v5  ;;  %v15309_v59 = vld [vmem:[#allocation9_spill] sm:$0xff]  ;;  %v14538_v31 = vpop.f32.mrf.mxu0 }
 0x495   : > { %v9326_v18 = vsel %vm10970_vm12, %v10651_v38, %v9325_v47  ;;  %v7155_v55 = vadd.f32 %v15309_v59, %v13716_v63  ;;  %v7637_v46 = vunpack.c.l.b16 %v7572_v52  ;;  %v8054_v51 = vpack.c.b16 %v8038_v22, %v8037_v36 }
 0x496   : > { %15306 = vst [vmem:[#allocation25_spill] sm:$0xff] %v14498_v3  ;;  %10613 = vmatmul.msk.bf16.gmra.mxu3 %vm6145_vm6, %v10779_v37  ;;  %v9327_v37 = vrot.slane %v9325_v47, 4  ;;  %v7587_v3 = vshll.u32 %v7220_v15, 16  ;;  %v7599_v54 = vrot.slane %v7597_v33, 4  ;;  %v8819_v38 = vor.u32 %v8818_v57, %v14492_v10 }
 0x497   : > { %15308 = vst [vmem:[#allocation59_spill] sm:$0xff] %v14521_v7  ;;  %v9372_v47 = vunpack.c.l.b16 %v9326_v18  ;;  %v7655_v24 = vpack.c.b16 %v7638_v58, %v7637_v46  ;;  %v8808_v15 = vrot.slane %v8806_v16, 5  ;;  %v8822_v33 = vshll.u32 %v14300_v35, 16 }
 0x498   : > { %v14519_v11 = vpop.f32.mrf.mxu2  ;;  %v9329_v56 = vsel %vm10970_vm12, %v9327_v37, %v9328_v14  ;;  %v15310_v63 = vpack.c.b16 %v14457_v1, %v14465_v25  ;;  %v7589_v52 = vrot.slane %v7587_v3, 5  ;;  %v7600_v57 = vor.u32 %v7599_v54, %v14526_v9  ;;  %v15311_v14 = vld [vmem:[#allocation30_spill] sm:$0xff]  ;;  %v15312_v54 = vld [vmem:[#allocation29_spill] sm:$0xff] }
 0x499   : > { %15307 = vst [vmem:[#allocation58_spill] sm:$0xff] %v14519_v11  ;;  %v8402_v13 = vpop.f32.mrf.mxu3  ;;  %v9373_v11 = vunpack.c.l.b16 %v9329_v56  ;;  %v7603_v16 = vshll.u32 %v14476_v2, 16  ;;  %v8820_v35 = vrot.slane %v8819_v38, 4  ;;  %v8196_v58 = vadd.f32 %v14022_v40, %v14088_v50  ;;  %v10780_v56 = vld [vmem:[#allocation3 + $0x84] sm:$0xff] }
 0x49a   : > { %v14530_v34 = vadd.f32 %v8402_v13, %v8195_v0  ;;  %v7586_v0 = vrot.slane %v7584_v45, 4  ;;  %v8809_v1 = vor.u32 %v8808_v15, %v14470_v12  ;;  %v7601_v37 = vrot.slane %v7600_v57, 4  ;;  %v8547_v45 = vld [vmem:[#allocation3 + $0x9c] sm:$0xf]  ;;  %v9182_v12 = vld [vmem:[#allocation3 + $0xc0] sm:$0xe] }
 0x49b   : > { %v7747_v5 = vpop.f32.mrf.mxu1  ;;  %v14546_v36 = vpack.c.b16 %v9373_v11, %v9372_v47  ;;  %v8824_v3 = vrot.slane %v8822_v33, 5  ;;  %v7156_v11 = vadd.f32 %v15312_v54, %v15311_v14  ;;  %v7605_v2 = vrot.slane %v7603_v16, 5  ;;  %v14569_v15 = vld [vmem:[#allocation3 + $0xc8] sm:$0x1] }
 0x49c   : > { %v14535_v7 = vadd.f32 %v7747_v5, %v7155_v55  ;;  %v7590_v18 = vor.u32 %v7589_v52, %v7586_v0  ;;  %v8836_v40 = vshll.u32 %v14348_v4, 16  ;;  %v8840_v50 = vshrl.u32 %v14348_v4, 16  ;;  %v14576_v57 = vpop.f32.mrf.mxu0 }
 0x49d   : > { %10631 = vmatmul.msk.bf16.gmra.mxu0 %vm6145_vm6, %v15310_v63  ;;  %10539 = vmatmul.msk.bf16.gmra.mxu2 %vm6145_vm6, %v8054_v51  ;;  %v8825_v55 = vsel %vm11024_vm2, %v8820_v35, %v8824_v3  ;;  %v8810_v5 = vrot.slane %v8809_v1, 4  ;;  %v14565_v51 = vld [vmem:[#allocation3 + $0xc4] sm:$0xf]  ;;  %v7606_v47 = vsel %vm11024_vm2, %v7601_v37, %v7605_v2  ;;  %v8830_v0 = vshll.u32 %v8547_v45, 16  ;;  %v15314_v2 = vld [vmem:[#allocation34_spill] sm:$0xff] }
 0x49e   : > { %10505 = vmatmul.msk.bf16.gmra.mxu1 %vm6145_vm6, %v7655_v24  ;;  %v7591_v38 = vrot.slane %v7590_v18, 4  ;;  %v8827_v24 = vshrl.u32 %v8547_v45, 16  ;;  %v9332_v33 = vrot.slane %v14565_v51, 5  ;;  %v8969_v63 = vunpack.c.l.b16 %v8825_v55  ;;  %v10823_v45 = vld [vmem:[%s10984_s20 + $0x8] sm:$0xff] }
 0x49f   : > { %v8815_v4 = vsel %vm11024_vm2, %v8810_v5, %v14492_v10  ;;  %v10652_v52 = vrot.slane %v9182_v12, 9  ;;  %v8197_v16 = vadd.f32 %v14074_v30, %v14135_v48  ;;  %v8842_v1 = vrot.slane %v8840_v50, 4 }
 0x4a0   : > { %v14552_v22 = vpop.f32.mrf.mxu2  ;;  %v7596_v35 = vsel %vm11024_vm2, %v7591_v38, %v14526_v9  ;;  %v9334_v37 = vrot.slane %v9332_v33, 4  ;;  %v9335_v3 = vrot.slane %v14569_v15, 5  ;;  %v8968_v54 = vunpack.c.l.b16 %v8815_v4 }
 0x4a1   : > { %v8404_v25 = vpop.f32.mrf.mxu3  ;;  %v9333_v10 = vsel %vm10970_vm12, %v10652_v52, %v9332_v33  ;;  %v8829_v48 = vrot.slane %v8827_v24, 4  ;;  %v8832_v5 = vrot.slane %v8830_v0, 5 }
 0x4a2   : > { %v14557_v13 = vadd.f32 %v8404_v25, %v8196_v58  ;;  %v8838_v58 = vrot.slane %v8836_v40, 5  ;;  %v7640_v25 = vunpack.c.l.b16 %v7606_v47  ;;  %v7639_v40 = vunpack.c.l.b16 %v7596_v35 }
 0x4a3   : > { %v7749_v59 = vpop.f32.mrf.mxu1  ;;  %v9336_v50 = vsel %vm10970_vm12, %v9334_v37, %v9335_v3  ;;  %v9374_v38 = vunpack.c.l.b16 %v9333_v10  ;;  %v8833_v35 = vor.u32 %v8832_v5, %v8829_v48  ;;  %v8860_v48 = vshll.u32 %v14455_v23, 16 }
 0x4a4   : > { %v14563_v46 = vadd.f32 %v7749_v59, %v7156_v11  ;;  %v10822_v11 = vld [vmem:[%s10984_s20] sm:$0xff]  ;;  %v15313_v59 = vld [vmem:[#allocation31_spill] sm:$0xff]  ;;  %v9375_v47 = vunpack.c.l.b16 %v9336_v50  ;;  %v7656_v4 = vpack.c.b16 %v7640_v25, %v7639_v40  ;;  %v8843_v52 = vor.u32 %v8842_v1, %v8838_v58  ;;  %v14608_v37 = vpop.f32.mrf.mxu0  ;;  %v15315_v25 = vld [vmem:[#allocation33_spill] sm:$0xff] }
 0x4a5   : > { %v9567_v30 = vpack.c.bf16 %v10823_v45, %v10822_v11  ;;  %v7157_v9 = vadd.f32 %v15314_v2, %v15313_v59  ;;  %v7158_v3 = vadd.f32 %v15315_v25, %v13832_v60  ;;  %v8834_v45 = vrot.slane %v8833_v35, 4  ;;  %v15316_v50 = vld [vmem:[#allocation49_spill] sm:$0xff]  ;;  %v15317_v35 = vld [vmem:[#allocation38_spill] sm:$0xff] }
 0x4a6   : > { %10614 = vmatmul.msk.bf16.gmra.mxu3 %vm6145_vm6, %v10780_v56  ;;  %v8990_v56 = vpack.c.b16 %v8969_v63, %v8968_v54  ;;  %v14600_v24 = vpack.c.b16 %v9375_v47, %v9374_v38  ;;  %v8198_v63 = vadd.f32 %v14112_v39, %v14182_v27  ;;  %v8844_v10 = vrot.slane %v8843_v52, 4  ;;  %v8550_v27 = vld [vmem:[#allocation3 + $0xa8] sm:$0xf]  ;;  %v10824_v52 = vld [vmem:[%s10984_s20 + $0x10] sm:$0xff] }
 0x4a7   : > { %v8864_v59 = vshrl.u32 %v14455_v23, 16  ;;  %v8839_v60 = vsel %vm11024_vm2, %v8834_v45, %v8838_v58  ;;  %v8854_v40 = vshll.u32 %v8550_v27, 16  ;;  %v8862_v5 = vrot.slane %v8860_v48, 5 }
 0x4a8   : > { %v14583_v18 = vpop.f32.mrf.mxu2  ;;  %v8200_v48 = vadd.f32 %v14202_v43, %v14263_v53  ;;  %v8553_v43 = vld [vmem:[#allocation3 + $0xb4] sm:$0xf]  ;;  %v8884_v53 = vshll.u32 %v14506_v44, 16 }
 0x4a9   : > { %v8407_v14 = vpop.f32.mrf.mxu3  ;;  %v8866_v38 = vrot.slane %v8864_v59, 4 }
 0x4aa   : > { %v14592_v55 = vadd.f32 %v8407_v14, %v8197_v16  ;;  %v8846_v16 = vshll.u32 %v14363_v41, 16  ;;  %v10781_v41 = vld [vmem:[#allocation3 + $0x90] sm:$0xff] }
 0x4ab   : > { %v7752_v12 = vpop.f32.mrf.mxu1  ;;  %v8867_v45 = vor.u32 %v8866_v38, %v8862_v5 }
 0x4ac   : > { %v14596_v33 = vadd.f32 %v7752_v12, %v7157_v9  ;;  %v8848_v54 = vrot.slane %v8846_v16, 5  ;;  %v8851_v9 = vshrl.u32 %v8550_v27, 16  ;;  %v8199_v12 = vadd.f32 %v15316_v50, %v14219_v49  ;;  %v10825_v16 = vld [vmem:[%s10984_s20 + $0x18] sm:$0xff]  ;;  %v14633_v58 = vpop.f32.mrf.mxu0 }
 0x4ad   : > { %10632 = vmatmul.msk.bf16.gmra.mxu0 %vm6145_vm6, %v8990_v56  ;;  %10671 = vmatmul.msk.bf16.vlgmr.msra.gmra.mxu2 %vm1667_vm13, %v9567_v30  ;;  %v9568_v23 = vpack.c.bf16 %v10825_v16, %v10824_v52  ;;  %v8856_v49 = vrot.slane %v8854_v40, 5  ;;  %v15321_v40 = vld [vmem:[#allocation11_spill] sm:$0xff]  ;;  %v10782_v16 = vld [vmem:[#allocation3 + $0x9c] sm:$0xff] }
 0x4ae   : > { %10506 = vmatmul.msk.bf16.gmra.mxu1 %vm6145_vm6, %v7656_v4  ;;  %v8849_v39 = vsel %vm11024_vm2, %v8844_v10, %v8848_v54  ;;  %v8970_v4 = vunpack.c.l.b16 %v8839_v60  ;;  %v8853_v54 = vrot.slane %v8851_v9, 4  ;;  %v8868_v60 = vrot.slane %v8867_v45, 4  ;;  %v15320_v9 = vld [vmem:[#allocation35_spill] sm:$0xff] }
 0x4af   : > { %v8971_v2 = vunpack.c.l.b16 %v8849_v39  ;;  %v8870_v39 = vshll.u32 %v14472_v61, 16  ;;  %v7160_v50 = vadd.f32 %v15321_v40, %v15320_v9  ;;  %v15325_v40 = vld [vmem:[#allocation40_spill] sm:$0xff] }
 0x4b0   : > { %v14606_v0 = vpop.f32.mrf.mxu2  ;;  %v8857_v27 = vor.u32 %v8856_v49, %v8853_v54  ;;  %v15322_v54 = vld [vmem:[#allocation53_spill] sm:$0xff]  ;;  %v15323_v49 = vld [vmem:[#allocation14_spill] sm:$0xff] }
 0x4b1   : > { %v8409_v1 = vpop.f32.mrf.mxu3  ;;  %v8872_v38 = vrot.slane %v8870_v39, 5  ;;  %v8201_v45 = vadd.f32 %v15323_v49, %v15322_v54  ;;  %v8886_v39 = vrot.slane %v8884_v53, 5  ;;  %v15327_v53 = vld [vmem:[#allocation27_spill] sm:$0xff] }
 0x4b2   : > { %v14612_v14 = vadd.f32 %v8409_v1, %v8198_v63  ;;  %v15318_v63 = vld [vmem:[#allocation37_spill] sm:$0xff] }
 0x4b3   : > { %v7754_v11 = vpop.f32.mrf.mxu1  ;;  %v7159_v10 = vadd.f32 %v15318_v63, %v15317_v35  ;;  %v8873_v61 = vsel %vm11024_vm2, %v8868_v60, %v8872_v38 }
 0x4b4   : > { %v14614_v30 = vadd.f32 %v7754_v11, %v7158_v3  ;;  %v8991_v3 = vpack.c.b16 %v8971_v2, %v8970_v4  ;;  %v8858_v4 = vrot.slane %v8857_v27, 4  ;;  %v14656_v35 = vpop.f32.mrf.mxu0 }
 0x4b6   : > { %10615 = vmatmul.msk.bf16.gmra.mxu3 %vm6145_vm6, %v10781_v41  ;;  %v15319_v41 = vld [vmem:[#allocation28_spill] sm:$0xff]  ;;  %v8863_v63 = vsel %vm11024_vm2, %v8858_v4, %v8862_v5 }
 0x4b7   : > { %v8972_v60 = vunpack.c.l.b16 %v8863_v63 }
 0x4b8   : > { %v14625_v56 = vpop.f32.mrf.mxu2 }
 0x4b9   : > { %v8412_v47 = vpop.f32.mrf.mxu3 }
 0x4ba   : > { %v14631_v1 = vadd.f32 %v8412_v47, %v8199_v12 }
 0x4bb   : > { %v7757_v25 = vpop.f32.mrf.mxu1 }
 0x4bc   : > { %v14635_v11 = vadd.f32 %v7757_v25, %v7159_v10  ;;  %v8973_v10 = vunpack.c.l.b16 %v8873_v61  ;;  %v8875_v25 = vshrl.u32 %v8553_v43, 16  ;;  %v14678_v63 = vpop.f32.mrf.mxu0 }
 0x4bd   : > { %10633 = vmatmul.msk.bf16.gmra.mxu0 %vm6145_vm6, %v8991_v3  ;;  %10672 = vmatmul.msk.bf16.gmra.mxu2 %vm1667_vm13, %v9568_v23  ;;  %v8888_v23 = vshrl.u32 %v14506_v44, 16  ;;  %v8878_v3 = vshll.u32 %v8553_v43, 16  ;;  %v10826_v44 = vld [vmem:[%s10984_s20 + $0x20] sm:$0xff] }
 0x4be   : > { %10655 = vmatmul.msk.bf16.vlgmr.msra.gmra.mxu1 %vm6145_vm6, %v15319_v41  ;;  %v8992_v4 = vpack.c.b16 %v8973_v10, %v8972_v60 }
 0x4bf   : > { %v8890_v27 = vrot.slane %v8888_v23, 4  ;;  %v8880_v61 = vrot.slane %v8878_v3, 5  ;;  %v8894_v23 = vshll.u32 %v14512_v19, 16  ;;  %v10783_v19 = vld [vmem:[#allocation3 + $0xa8] sm:$0xff] }
 0x4c0   : > { %v14644_v59 = vpop.f32.mrf.mxu2 }
 0x4c1   : > { %v8414_v2 = vpop.f32.mrf.mxu3  ;;  %v8891_v54 = vor.u32 %v8890_v27, %v8886_v39  ;;  %v15331_v27 = vld [vmem:[#allocation42_spill] sm:$0xff] }
 0x4c2   : > { %v14648_v12 = vadd.f32 %v8414_v2, %v8200_v48  ;;  %v10827_v2 = vld [vmem:[%s10984_s20 + $0x28] sm:$0xff] }
 0x4c3   : > { %v7759_v47 = vpop.f32.mrf.mxu1  ;;  %v9569_v9 = vpack.c.bf16 %v10827_v2, %v10826_v44  ;;  %v8892_v3 = vrot.slane %v8891_v54, 4  ;;  %v15332_v44 = vld [vmem:[#allocation44_spill] sm:$0xff]  ;;  %v8556_v54 = vld [vmem:[#allocation3 + $0xc0] sm:$0xf] }
 0x4c4   : > { %v14650_v52 = vadd.f32 %v7759_v47, %v7160_v50  ;;  %v15326_v50 = vld [vmem:[#allocation41_spill] sm:$0xff]  ;;  %v7162_v2 = vadd.f32 %v15332_v44, %v15331_v27  ;;  %v14699_v27 = vpop.f32.mrf.mxu0  ;;  %v10828_v44 = vld [vmem:[%s10984_s20 + $0x30] sm:$0xff] }
 0x4c5   : > { %v7161_v38 = vadd.f32 %v15326_v50, %v15325_v40 }
 0x4c6   : > { %10616 = vmatmul.msk.bf16.gmra.mxu3 %vm6145_vm6, %v10782_v16  ;;  %v8877_v16 = vrot.slane %v8875_v25, 4 }
 0x4c8   : > { %v14663_v41 = vpop.f32.mrf.mxu2  ;;  %v8881_v49 = vor.u32 %v8880_v61, %v8877_v16  ;;  %v8908_v16 = vshll.u32 %v14565_v51, 16  ;;  %v8912_v61 = vshrl.u32 %v14565_v51, 16  ;;  %v15335_v51 = vld [vmem:[#allocation45_spill] sm:$0xff] }
 0x4c9   : > { %15324 = vst [vmem:[#allocation9_spill] sm:$0xff] %v14663_v41  ;;  %v8417_v48 = vpop.f32.mrf.mxu3 }
 0x4ca   : > { %v14669_v47 = vadd.f32 %v8417_v48, %v8201_v45  ;;  %v15328_v45 = vld [vmem:[#allocation55_spill] sm:$0xff]  ;;  %v15329_v48 = vld [vmem:[#allocation5_spill] sm:$0xff] }
 0x4cb   : > { %v7762_v5 = vpop.f32.mrf.mxu1  ;;  %v8202_v10 = vadd.f32 %v15329_v48, %v15328_v45  ;;  %v8899_v45 = vshrl.u32 %v8556_v54, 16  ;;  %v8902_v48 = vshll.u32 %v8556_v54, 16 }
 0x4cc   : > { %v14671_v43 = vadd.f32 %v7762_v5, %v7161_v38  ;;  %v8882_v38 = vrot.slane %v8881_v49, 4 }
 0x4cd   : > { %10634 = vmatmul.msk.bf16.gmra.mxu0 %vm6145_vm6, %v8992_v4  ;;  %10673 = vmatmul.msk.bf16.gmra.mxu2 %vm1667_vm13, %v9569_v9  ;;  %v8896_v9 = vrot.slane %v8894_v23, 5 }
 0x4ce   : > { %10656 = vmatmul.msk.bf16.gmra.mxu1 %vm6145_vm6, %v15327_v53  ;;  %v8887_v53 = vsel %vm11024_vm2, %v8882_v38, %v8886_v39  ;;  %v8901_v39 = vrot.slane %v8899_v45, 4  ;;  %v8904_v38 = vrot.slane %v8902_v48, 5  ;;  %v14716_v48 = vpop.f32.mrf.mxu0 }
 0x4cf   : > { %v8897_v4 = vsel %vm11024_vm2, %v8892_v3, %v8896_v9  ;;  %v8974_v3 = vunpack.c.l.b16 %v8887_v53 }
 0x4d0   : > { %v14682_v25 = vpop.f32.mrf.mxu2  ;;  %v8975_v23 = vunpack.c.l.b16 %v8897_v4  ;;  %v8905_v53 = vor.u32 %v8904_v38, %v8901_v39 }
 0x4d1   : > { %15330 = vst [vmem:[#allocation30_spill] sm:$0xff] %v14682_v25  ;;  %v8419_v60 = vpop.f32.mrf.mxu3 }
 0x4d2   : > { %v14686_v40 = vadd.f32 %v8419_v60, %v8202_v10  ;;  %v8910_v10 = vrot.slane %v8908_v16, 5  ;;  %v8914_v60 = vrot.slane %v8912_v61, 4  ;;  %v8993_v41 = vpack.c.b16 %v8975_v23, %v8974_v3  ;;  %v15337_v16 = vld [vmem:[#allocation26_spill] sm:$0xff]  ;;  %v15340_v23 = vld [vmem:[#allocation12_spill] sm:$0xff] }
 0x4d3   : > { %v7764_v50 = vpop.f32.mrf.mxu1  ;;  %v8918_v61 = vshll.u32 %v14569_v15, 16  ;;  %v10784_v3 = vld [vmem:[#allocation3 + $0xb4] sm:$0xff] }
 0x4d4   : > { %v14688_v5 = vadd.f32 %v7764_v50, %v7162_v2  ;;  %v10829_v2 = vld [vmem:[%s10984_s20 + $0x38] sm:$0xff]  ;;  %v15336_v50 = vld [vmem:[#allocation47_spill] sm:$0xff]  ;;  %v8915_v4 = vor.u32 %v8914_v60, %v8910_v10 }
 0x4d5   : > { %v9570_v9 = vpack.c.bf16 %v10829_v2, %v10828_v44  ;;  %v7163_v25 = vadd.f32 %v15336_v50, %v15335_v51  ;;  %v15339_v2 = vld [vmem:[#allocation46_spill] sm:$0xff]  ;;  %v8920_v45 = vrot.slane %v8918_v61, 5 }
 0x4d6   : > { %15333 = vst [vmem:[#allocation29_spill] sm:$0xff] %v14688_v5  ;;  %10617 = vmatmul.msk.bf16.gmra.mxu3 %vm6145_vm6, %v10783_v19  ;;  %v8916_v44 = vrot.slane %v8915_v4, 4  ;;  %v518_v51 = vld [vmem:[#allocation3 + $0xcc] sm:$0x1] }
 0x4d7   : > { %v10830_v61 = vld [vmem:[%s10984_s20 + $0x40] sm:$0xff] }
 0x4d8   : > { %v14697_v49 = vpop.f32.mrf.mxu2  ;;  %v8921_v15 = vsel %vm11024_vm2, %v8916_v44, %v8920_v45 }
 0x4d9   : > { %15334 = vst [vmem:[#allocation31_spill] sm:$0xff] %v14697_v49  ;;  %v8977_v38 = vunpack.c.l.b16 %v8921_v15  ;;  %v14741_v15 = vld [vmem:[#allocation3 + $0xd0] sm:$0xf] }
 0x4db   : > { %v7767_v19 = vpop.f32.mrf.mxu1 }
 0x4dc   : > { %v14705_v5 = vadd.f32 %v7767_v19, %v7163_v25  ;;  %v7164_v25 = vadd.f32 %v15340_v23, %v15339_v2  ;;  %v519_v19 = vsel %vm12261_vm1, 0, %v518_v51  ;;  %v10831_v2 = vld [vmem:[%s10984_s20 + $0x48] sm:$0xff]  ;;  %v15343_v23 = vld [vmem:[#allocation4_spill] sm:$0xff]  ;;  %v14735_v51 = vpop.f32.mrf.mxu0 }
 0x4dd   : > { %10635 = vmatmul.msk.bf16.gmra.mxu0 %vm6145_vm6, %v8993_v41  ;;  %10674 = vmatmul.msk.bf16.gmra.mxu2 %vm1667_vm13, %v9570_v9  ;;  %v8906_v9 = vrot.slane %v8905_v53, 4  ;;  %520 = vst [vmem:[#allocation3 + $0xcc] sm:$0x1] %v519_v19  ;;  %v9571_v53 = vpack.c.bf16 %v10831_v2, %v10830_v61 }
 0x4de   : > { %10657 = vmatmul.msk.bf16.gmra.mxu1 %vm6145_vm6, %v15337_v16 }
 0x4df   : > { %v8911_v39 = vsel %vm11024_vm2, %v8906_v9, %v8910_v10  ;;  %v15346_v10 = vld [vmem:[#allocation8_spill] sm:$0xff] }
 0x4e0   : > { %v14712_v54 = vpop.f32.mrf.mxu2  ;;  %v8976_v16 = vunpack.c.l.b16 %v8911_v39 }
 0x4e1   : > { %15338 = vst [vmem:[#allocation34_spill] sm:$0xff] %v14712_v54 }
 0x4e3   : > { %v7769_v41 = vpop.f32.mrf.mxu1 }
 0x4e4   : > { %v14718_v60 = vadd.f32 %v7769_v41, %v7164_v25  ;;  %v15344_v25 = vld [vmem:[#allocation13_spill] sm:$0xff]  ;;  %v8994_v41 = vpack.c.b16 %v8977_v38, %v8976_v16  ;;  %v8559_v9 = vld [vmem:[#allocation3 + $0xcc] sm:$0xf]  ;;  %v8932_v16 = vshll.u32 %v14741_v15, 16 }
 0x4e5   : > { %v7165_v44 = vadd.f32 %v15344_v25, %v15343_v23  ;;  %v8923_v61 = vshrl.u32 %v8559_v9, 16  ;;  %v8926_v38 = vshll.u32 %v8559_v9, 16  ;;  %v8936_v23 = vshrl.u32 %v14741_v15, 16  ;;  %v10785_v9 = vld [vmem:[#allocation3 + $0xc0] sm:$0xff] }
 0x4e6   : > { %10618 = vmatmul.msk.bf16.gmra.mxu3 %vm6145_vm6, %v10784_v3  ;;  %v573_v3 = vld [vmem:[#allocation3 + $0xd4] sm:$0x1] }
 0x4e7   : > { %v574_v39 = vsel %vm12278_vm3, 0, %v573_v3  ;;  %v8928_v25 = vrot.slane %v8926_v38, 5 }
 0x4e8   : > { %v14727_v4 = vpop.f32.mrf.mxu2  ;;  %575 = vst [vmem:[#allocation3 + $0xd4] sm:$0x1] %v574_v39  ;;  %v14754_v39 = vpop.f32.mrf.mxu0 }
 0x4e9   : > { %15342 = vst [vmem:[#allocation33_spill] sm:$0xff] %v14727_v4  ;;  %v8938_v4 = vrot.slane %v8936_v23, 4 }
 0x4eb   : > { %v7772_v45 = vpop.f32.mrf.mxu1 }
 0x4ec   : > { %v14733_v50 = vadd.f32 %v7772_v45, %v7165_v44  ;;  %v8934_v44 = vrot.slane %v8932_v16, 5  ;;  %v15349_v45 = vld [vmem:[#allocation17_spill] sm:$0xff] }
 0x4ed   : > { %10636 = vmatmul.msk.bf16.gmra.mxu0 %vm6145_vm6, %v8994_v41  ;;  %10675 = vmatmul.msk.bf16.gmra.mxu2 %vm1667_vm13, %v9571_v53  ;;  %v8925_v53 = vrot.slane %v8923_v61, 4  ;;  %v15350_v41 = vld [vmem:[#allocation51_spill] sm:$0xff] }
 0x4ee   : > { %15345 = vst [vmem:[#allocation49_spill] sm:$0xff] %v14733_v50  ;;  %10658 = vmatmul.msk.bf16.gmra.mxu1 %vm6145_vm6, %v15346_v10  ;;  %v7166_v10 = vadd.f32 %v15350_v41, %v15349_v45  ;;  %v8939_v50 = vor.u32 %v8938_v4, %v8934_v44  ;;  %v15354_v4 = vld [vmem:[#allocation52_spill] sm:$0xff] }
 0x4ef   : > { %v8929_v3 = vor.u32 %v8928_v25, %v8925_v53  ;;  %v14756_v61 = vld [vmem:[#allocation3 + $0xd4] sm:$0x1]  ;;  %v10832_v53 = vld [vmem:[%s10984_s20 + $0x50] sm:$0xff]  ;;  %v10833_v25 = vld [vmem:[%s10984_s20 + $0x58] sm:$0xff] }
 0x4f0   : > { %v14746_v2 = vpop.f32.mrf.mxu2  ;;  %v8940_v45 = vrot.slane %v8939_v50, 4  ;;  %v8942_v23 = vshll.u32 %v14756_v61, 16  ;;  %v9572_v41 = vpack.c.bf16 %v10833_v25, %v10832_v53  ;;  %v15355_v50 = vld [vmem:[#allocation32_spill] sm:$0xff]  ;;  %v14776_v25 = vpop.f32.mrf.mxu0 }
 0x4f1   : > { %15348 = vst [vmem:[#allocation38_spill] sm:$0xff] %v14746_v2  ;;  %v8930_v49 = vrot.slane %v8929_v3, 4 }
 0x4f2   : > { %v8944_v3 = vrot.slane %v8942_v23, 5  ;;  %v15357_v23 = vld [vmem:[#allocation56_spill] sm:$0xff] }
 0x4f3   : > { %v7774_v19 = vpop.f32.mrf.mxu1  ;;  %v8935_v16 = vsel %vm11024_vm2, %v8930_v49, %v8934_v44 }
 0x4f4   : > { %v14751_v54 = vadd.f32 %v7774_v19, %v7166_v10  ;;  %v15353_v10 = vld [vmem:[#allocation7_spill] sm:$0xff]  ;;  %v8978_v2 = vunpack.c.l.b16 %v8935_v16  ;;  %v15356_v16 = vld [vmem:[#allocation16_spill] sm:$0xff] }
 0x4f5   : > { %v7167_v19 = vadd.f32 %v15354_v4, %v15353_v10  ;;  %v7168_v10 = vadd.f32 %v15357_v23, %v15356_v16  ;;  %v10786_v4 = vld [vmem:[#allocation3 + $0xcc] sm:$0xff] }
 0x4f6   : > { %15351 = vst [vmem:[#allocation37_spill] sm:$0xff] %v14751_v54  ;;  %10619 = vmatmul.msk.bf16.gmra.mxu3 %vm6145_vm6, %v10785_v9  ;;  %v15360_v23 = vld [vmem:[#allocation19_spill] sm:$0xff] }
 0x4f8   : > { %v14758_v38 = vpop.f32.mrf.mxu2 }
 0x4f9   : > { %15352 = vst [vmem:[#allocation28_spill] sm:$0xff] %v14758_v38  ;;  %v8945_v38 = vsel %vm11024_vm2, %v8940_v45, %v8944_v3  ;;  %v10835_v45 = vld [vmem:[%s10984_s20 + $0x68] sm:$0xff]  ;;  %v15358_v3 = vld [vmem:[#allocation18_spill] sm:$0xff] }
 0x4fa   : > { %v8979_v49 = vunpack.c.l.b16 %v8945_v38 }
 0x4fb   : > { %v7777_v9 = vpop.f32.mrf.mxu1 }
 0x4fc   : > { %v14767_v54 = vadd.f32 %v7777_v9, %v7167_v19  ;;  %v8995_v44 = vpack.c.b16 %v8979_v49, %v8978_v2  ;;  %v10834_v2 = vld [vmem:[%s10984_s20 + $0x60] sm:$0xff]  ;;  %v7169_v9 = vadd.f32 %v14400_v17, %v15358_v3  ;;  %v10836_v17 = vld [vmem:[%s10984_s20 + $0x70] sm:$0xff] }
 0x4fd   : > { %10676 = vmatmul.msk.bf16.gmra.mxu2 %vm1667_vm13, %v9572_v41  ;;  %v9573_v41 = vpack.c.bf16 %v10835_v45, %v10834_v2  ;;  %v10837_v45 = vld [vmem:[%s10984_s20 + $0x78] sm:$0xff] }
 0x4fe   : > { %10659 = vmatmul.msk.bf16.gmra.mxu1 %vm6145_vm6, %v15355_v50  ;;  %10637 = vmatmul.msk.bf16.gmra.mxu0 %vm6145_vm6, %v8995_v44  ;;  %v15359_v44 = vld [vmem:[#allocation39_spill] sm:$0xff]  ;;  %v9574_v3 = vpack.c.bf16 %v10837_v45, %v10836_v17 }
 0x500   : > { %v14774_v53 = vpop.f32.mrf.mxu2 }
 0x503   : > { %v7779_v62 = vpop.f32.mrf.mxu1 }
 0x504   : > { %v14781_v19 = vadd.f32 %v7779_v62, %v7168_v10  ;;  %v7170_v10 = vadd.f32 %v14442_v32, %v15360_v23  ;;  %v7172_v23 = vadd.f32 %v14538_v31, %v14416_v29  ;;  %v7174_v31 = vadd.f32 %v14608_v37, %v14487_v21  ;;  %v15364_v37 = vld [vmem:[#allocation50_spill] sm:$0xff] }
 0x506   : > { %10620 = vmatmul.msk.bf16.gmra.mxu3 %vm6145_vm6, %v10786_v4 }
 0x508   : > { %v14784_v38 = vpop.f32.mrf.mxu2 }
 0x50b   : > { %v7782_v49 = vpop.f32.mrf.mxu1 }
 0x50c   : > { %v14790_v50 = vadd.f32 %v7782_v49, %v7169_v9 }
 0x50d   : > { %10677 = vmatmul.msk.bf16.gmra.mxu2 %vm1667_vm13, %v9573_v41  ;;  %v7171_v41 = vadd.f32 %v14490_v28, %v14385_v26  ;;  %v10838_v26 = vld [vmem:[%s10984_s20 + $0x80] sm:$0xff]  ;;  %v10839_v28 = vld [vmem:[%s10984_s20 + $0x88] sm:$0xff] }
 0x50e   : > { %10660 = vmatmul.msk.bf16.gmra.mxu1 %vm6145_vm6, %v15359_v44  ;;  %v15361_v44 = vld [vmem:[#allocation43_spill] sm:$0xff]  ;;  %v9575_v45 = vpack.c.bf16 %v10839_v28, %v10838_v26  ;;  %v10840_v28 = vld [vmem:[%s10984_s20 + $0x90] sm:$0xff] }
 0x510   : > { %v14795_v16 = vpop.f32.mrf.mxu2 }
 0x513   : > { %v7784_v4 = vpop.f32.mrf.mxu1 }
 0x514   : > { %v14799_v62 = vadd.f32 %v7784_v4, %v7170_v10 }
 0x518   : > { %v14801_v2 = vpop.f32.mrf.mxu2 }
 0x51b   : > { %v7787_v9 = vpop.f32.mrf.mxu1 }
 0x51c   : > { %v14807_v49 = vadd.f32 %v7787_v9, %v7171_v41 }
 0x51d   : > { %10678 = vmatmul.msk.bf16.gmra.mxu2 %vm1667_vm13, %v9574_v3  ;;  %v7173_v3 = vadd.f32 %v14576_v57, %v14452_v42  ;;  %v9136_v57 = vadd.f32 %v14633_v58, %v14530_v34 }
 0x51e   : > { %10661 = vmatmul.msk.bf16.gmra.mxu1 %vm6145_vm6, %v15361_v44  ;;  %v15363_v44 = vld [vmem:[#allocation48_spill] sm:$0xff] }
 0x520   : > { %v14812_v32 = vpop.f32.mrf.mxu2 }
 0x523   : > { %v7789_v10 = vpop.f32.mrf.mxu1 }
 0x524   : > { %v14816_v4 = vadd.f32 %v7789_v10, %v7172_v23 }
 0x528   : > { %v14818_v17 = vpop.f32.mrf.mxu2 }
 0x529   : > { %15362 = vst [vmem:[#allocation35_spill] sm:$0xff] %v14818_v17  ;;  %v10841_v17 = vld [vmem:[%s10984_s20 + $0x98] sm:$0xff] }
 0x52a   : > { %v9576_v42 = vpack.c.bf16 %v10841_v17, %v10840_v28  ;;  %v9137_v17 = vadd.f32 %v14656_v35, %v14557_v13 }
 0x52b   : > { %v7792_v41 = vpop.f32.mrf.mxu1 }
 0x52c   : > { %v14824_v9 = vadd.f32 %v7792_v41, %v7173_v3  ;;  %v14840_v41 = vld [vmem:[%s15102_s7] ss:$0 sm:$0xff] }
 0x52d   : > { %10679 = vmatmul.msk.bf16.gmra.mxu2 %vm1667_vm13, %v9575_v45 }
 0x52e   : > { %10662 = vmatmul.msk.bf16.gmra.mxu1 %vm6145_vm6, %v15363_v44 }
 0x530   : > { %v9644_v29 = vpop.f32.mrf.mxu2 }
 0x533   : > { %v7794_v23 = vpop.f32.mrf.mxu1 }
 0x534   : > { %v14831_v10 = vadd.f32 %v7794_v23, %v7174_v31 }
 0x538   : > { %v9646_v26 = vpop.f32.mrf.mxu2 }
 0x53b   : > { %v9454_v3 = vpop.f32.mrf.mxu1 }
 0x53c   : > { %v9534_v45 = vadd.f32 %v9454_v3, %v9136_v57  ;;  %v10842_v57 = vld [vmem:[%s10984_s20 + $0xa0] sm:$0xff]  ;;  %v10843_v3 = vld [vmem:[%s10984_s20 + $0xa8] sm:$0xff] }
 0x53d   : > { %10680 = vmatmul.msk.bf16.gmra.mxu2 %vm1667_vm13, %v9576_v42 }
 0x53e   : > { %v9724_v21 = vadd.f32 %v9644_v29, %v9534_v45  ;;  %10663 = vmatmul.msk.bf16.gmra.mxu1 %vm6145_vm6, %v15364_v37  ;;  %v14857_v29 = vpop.f32.mrf.mxu3  ;;  %v9577_v45 = vpack.c.bf16 %v10843_v3, %v10842_v57  ;;  %v14866_v37 = vpop.f32.mrf.mxu0 }
 0x540   : > { %v9759_v34 = vadd.f32 %v14840_v41, %v9724_v21  ;;  %v9649_v58 = vpop.f32.mrf.mxu2  ;;  %v9138_v21 = vadd.f32 %v14678_v63, %v14592_v55  ;;  %v9139_v55 = vadd.f32 %v14699_v27, %v14612_v14 }
 0x542   : > { %9791 = vst.msk [vmem:[%s14850_s11] sm:$0xff] %vm6145_vm6, %v9759_v34 }
 0x543   : > { %v9456_v44 = vpop.f32.mrf.mxu1 }
 0x544   : > { %v9535_v31 = vadd.f32 %v9456_v44, %v9137_v17  ;;  %v15365_v17 = vld [vmem:[#allocation15_spill] sm:$0xff] }
 0x546   : > { %v9725_v23 = vadd.f32 %v9646_v26, %v9535_v31  ;;  %v14869_v26 = vpop.f32.mrf.mxu3 }
 0x548   : > { %v9760_v28 = vadd.f32 %v14840_v41, %v9725_v23  ;;  %v9651_v42 = vpop.f32.mrf.mxu2 }
 0x54a   : > { %9792 = vst.msk [vmem:[%s14850_s11 + $0x8] sm:$0xff] %vm6145_vm6, %v9760_v28  ;;  %v14878_v28 = vpop.f32.mrf.mxu0 }
 0x54b   : > { %v9459_v13 = vpop.f32.mrf.mxu1 }
 0x54c   : > { %v9536_v35 = vadd.f32 %v9459_v13, %v9138_v21  ;;  %v10844_v21 = vld [vmem:[%s10984_s20 + $0xb0] sm:$0xff]  ;;  %v10845_v13 = vld [vmem:[%s10984_s20 + $0xb8] sm:$0xff] }
 0x54d   : > { %10681 = vmatmul.msk.bf16.gmra.mxu2 %vm1667_vm13, %v9577_v45 }
 0x54e   : > { %v9726_v34 = vadd.f32 %v9649_v58, %v9536_v35  ;;  %10664 = vmatmul.msk.bf16.gmra.mxu1 %vm6145_vm6, %v15365_v17  ;;  %v14880_v3 = vpop.f32.mrf.mxu3  ;;  %v9578_v35 = vpack.c.bf16 %v10845_v13, %v10844_v21  ;;  %v15366_v17 = vld [vmem:[#allocation6_spill] sm:$0xff] }
 0x550   : > { %v9761_v44 = vadd.f32 %v14840_v41, %v9726_v34  ;;  %v9654_v31 = vpop.f32.mrf.mxu2  ;;  %v9140_v34 = vadd.f32 %v14716_v48, %v14631_v1  ;;  %v9141_v1 = vadd.f32 %v14735_v51, %v14648_v12 }
 0x552   : > { %9793 = vst.msk [vmem:[%s14850_s11 + $0x10] sm:$0xff] %vm6145_vm6, %v9761_v44  ;;  %v14892_v44 = vpop.f32.mrf.mxu0 }
 0x553   : > { %v9461_v63 = vpop.f32.mrf.mxu1 }
 0x554   : > { %v9537_v23 = vadd.f32 %v9461_v63, %v9139_v55 }
 0x556   : > { %v9727_v57 = vadd.f32 %v9651_v42, %v9537_v23  ;;  %v14895_v23 = vpop.f32.mrf.mxu3 }
 0x558   : > { %v9762_v58 = vadd.f32 %v14840_v41, %v9727_v57  ;;  %v9656_v45 = vpop.f32.mrf.mxu2 }
 0x55a   : > { %9794 = vst.msk [vmem:[%s14850_s11 + $0x18] sm:$0xff] %vm6145_vm6, %v9762_v58  ;;  %v14902_v13 = vpop.f32.mrf.mxu0 }
 0x55b   : > { %v9464_v14 = vpop.f32.mrf.mxu1 }
 0x55c   : > { %v9538_v27 = vadd.f32 %v9464_v14, %v9140_v34  ;;  %v10847_v34 = vld [vmem:[%s10984_s20 + $0xc8] sm:$0xff] }
 0x55d   : > { %10682 = vmatmul.msk.bf16.gmra.mxu2 %vm1667_vm13, %v9578_v35  ;;  %v10846_v35 = vld [vmem:[%s10984_s20 + $0xc0] sm:$0xff] }
 0x55e   : > { %v9728_v42 = vadd.f32 %v9654_v31, %v9538_v27  ;;  %10665 = vmatmul.msk.bf16.gmra.mxu1 %vm6145_vm6, %v15366_v17  ;;  %v9579_v14 = vpack.c.bf16 %v10847_v34, %v10846_v35  ;;  %v9142_v27 = vadd.f32 %v14754_v39, %v14669_v47  ;;  %v14910_v17 = vpop.f32.mrf.mxu3  ;;  %v9143_v47 = vadd.f32 %v14776_v25, %v14686_v40 }
 0x560   : > { %v9763_v55 = vadd.f32 %v14840_v41, %v9728_v42  ;;  %v9659_v63 = vpop.f32.mrf.mxu2 }
 0x562   : > { %9795 = vst.msk [vmem:[%s14850_s11 + $0x20] sm:$0xff] %vm6145_vm6, %v9763_v55  ;;  %v14920_v39 = vpop.f32.mrf.mxu0 }
 0x563   : > { %v9466_v48 = vpop.f32.mrf.mxu1 }
 0x564   : > { %v9539_v57 = vadd.f32 %v9466_v48, %v9141_v1  ;;  %v15367_v48 = vld [vmem:[#allocation54_spill] sm:$0xff] }
 0x566   : > { %v9729_v58 = vadd.f32 %v9656_v45, %v9539_v57  ;;  %v8203_v57 = vadd.f32 %v15367_v48, %v14391_v8  ;;  %v15369_v8 = vld [vmem:[#allocation57_spill] sm:$0xff] }
 0x568   : > { %v9764_v31 = vadd.f32 %v14840_v41, %v9729_v58  ;;  %v9661_v21 = vpop.f32.mrf.mxu2  ;;  %v8490_v58 = vadd.f32 %v14857_v29, %v8203_v57 }
 0x56a   : > { %9796 = vst.msk [vmem:[%s14850_s11 + $0x28] sm:$0xff] %vm6145_vm6, %v9764_v31  ;;  %v14925_v31 = vpop.f32.mrf.mxu3  ;;  %v9144_v40 = vadd.f32 %v14866_v37, %v8490_v58  ;;  %v14935_v29 = vpop.f32.mrf.mxu0 }
 0x56b   : > { %v9469_v42 = vpop.f32.mrf.mxu1 }
 0x56c   : > { %v9540_v12 = vadd.f32 %v9469_v42, %v9142_v27  ;;  %v10849_v27 = vld [vmem:[%s10984_s20 + $0xd8] sm:$0xff] }
 0x56d   : > { %10683 = vmatmul.msk.bf16.gmra.mxu2 %vm1667_vm13, %v9579_v14  ;;  %v10848_v14 = vld [vmem:[%s10984_s20 + $0xd0] sm:$0xff] }
 0x56e   : > { %v9730_v51 = vadd.f32 %v9659_v63, %v9540_v12  ;;  %10666 = vmatmul.msk.bf16.gmra.mxu1 %vm6145_vm6, %v14398_v6  ;;  %v9580_v42 = vpack.c.bf16 %v10849_v27, %v10848_v14  ;;  %v15368_v12 = vld [vmem:[#allocation20_spill] sm:$0xff] }
 0x570   : > { %v9765_v45 = vadd.f32 %v14840_v41, %v9730_v51  ;;  %v9664_v55 = vpop.f32.mrf.mxu2  ;;  %v8204_v51 = vadd.f32 %v15369_v8, %v15368_v12  ;;  %v10850_v12 = vld [vmem:[%s10984_s20 + $0xe0] sm:$0xff]  ;;  %v10851_v8 = vld [vmem:[%s10984_s20 + $0xe8] sm:$0xff] }
 0x572   : > { %9797 = vst.msk [vmem:[%s14850_s11 + $0x30] sm:$0xff] %vm6145_vm6, %v9765_v45  ;;  %v14941_v48 = vpop.f32.mrf.mxu3 }
 0x573   : > { %v9471_v1 = vpop.f32.mrf.mxu1 }
 0x574   : > { %v9541_v63 = vadd.f32 %v9471_v1, %v9143_v47  ;;  %v15370_v1 = vld [vmem:[#allocation59_spill] sm:$0xff] }
 0x576   : > { %v9731_v6 = vadd.f32 %v9661_v21, %v9541_v63  ;;  %v8491_v21 = vadd.f32 %v14869_v26, %v8204_v51  ;;  %v9581_v51 = vpack.c.bf16 %v10851_v8, %v10850_v12  ;;  %v10852_v8 = vld [vmem:[%s10984_s20 + $0xf0] sm:$0xff] }
 0x578   : > { %v9766_v35 = vadd.f32 %v14840_v41, %v9731_v6  ;;  %v9666_v34 = vpop.f32.mrf.mxu2  ;;  %v9145_v63 = vadd.f32 %v14878_v28, %v8491_v21  ;;  %v15371_v6 = vld [vmem:[#allocation24_spill] sm:$0xff] }
 0x57a   : > { %9798 = vst.msk [vmem:[%s14850_s11 + $0x38] sm:$0xff] %vm6145_vm6, %v9766_v35  ;;  %v15372_v35 = vld [vmem:[#allocation21_spill] sm:$0xff] }
 0x57b   : > { %v9474_v25 = vpop.f32.mrf.mxu1  ;;  %v8205_v26 = vadd.f32 %v15372_v35, %v15371_v6 }
 0x57c   : > { %v9542_v45 = vadd.f32 %v9474_v25, %v9144_v40 }
 0x57d   : > { %10684 = vmatmul.msk.bf16.gmra.mxu2 %vm1667_vm13, %v9580_v42  ;;  %v14950_v42 = vpop.f32.mrf.mxu0 }
 0x57e   : > { %v9732_v47 = vadd.f32 %v9664_v55, %v9542_v45  ;;  %10667 = vmatmul.msk.bf16.gmra.mxu1 %vm6145_vm6, %v15370_v1  ;;  %v8492_v55 = vadd.f32 %v14880_v3, %v8205_v26  ;;  %v14955_v45 = vpop.f32.mrf.mxu3  ;;  %v15374_v1 = vld [vmem:[#allocation22_spill] sm:$0xff] }
 0x580   : > { %v9767_v37 = vadd.f32 %v14840_v41, %v9732_v47  ;;  %v9669_v57 = vpop.f32.mrf.mxu2  ;;  %v9146_v28 = vadd.f32 %v14892_v44, %v8492_v55  ;;  %v15373_v47 = vld [vmem:[#allocation25_spill] sm:$0xff] }
 0x581   : > { %v8206_v3 = vadd.f32 %v15374_v1, %v15373_v47  ;;  %v15376_v1 = vld [vmem:[#allocation58_spill] sm:$0xff] }
 0x582   : > { %9799 = vst.msk [vmem:[%s14850_s11 + $0x40] sm:$0xff] %vm6145_vm6, %v9767_v37 }
 0x583   : > { %v9476_v58 = vpop.f32.mrf.mxu1  ;;  %v8493_v37 = vadd.f32 %v14895_v23, %v8206_v3  ;;  %v8208_v3 = vadd.f32 %v15376_v1, %v14563_v46 }
 0x584   : > { %v9543_v14 = vadd.f32 %v9476_v58, %v9145_v63 }
 0x585   : > { %v9093_v44 = vpop.f32.mrf.mxu0  ;;  %v9147_v35 = vadd.f32 %v14902_v13, %v8493_v37 }
 0x586   : > { %v9733_v27 = vadd.f32 %v9666_v34, %v9543_v14  ;;  %v15375_v14 = vld [vmem:[#allocation23_spill] sm:$0xff]  ;;  %v8442_v23 = vpop.f32.mrf.mxu3 }
 0x587   : > { %v8207_v55 = vadd.f32 %v15375_v14, %v14535_v7  ;;  %v9339_v7 = vrot.slane %v14741_v15, 5 }
 0x588   : > { %v9768_v40 = vadd.f32 %v14840_v41, %v9733_v27  ;;  %v9671_v25 = vpop.f32.mrf.mxu2 }
 0x58a   : > { %9800 = vst.msk [vmem:[%s14850_s11 + $0x48] sm:$0xff] %vm6145_vm6, %v9768_v40 }
 0x58b   : > { %v9479_v21 = vpop.f32.mrf.mxu1 }
 0x58c   : > { %v9544_v34 = vadd.f32 %v9479_v21, %v9146_v28 }
 0x58d   : > { %10685 = vmatmul.msk.bf16.gmra.mxu2 %vm1667_vm13, %v9581_v51  ;;  %v10853_v51 = vld [vmem:[%s10984_s20 + $0xf8] sm:$0xff]  ;;  %v9096_v13 = vpop.f32.mrf.mxu0 }
 0x58e   : > { %v9734_v63 = vadd.f32 %v9669_v57, %v9544_v34  ;;  %10668 = vmatmul.msk.bf16.gmra.mxu1 %vm6145_vm6, %v14546_v36  ;;  %v8494_v57 = vadd.f32 %v14910_v17, %v8207_v55  ;;  %v9582_v28 = vpack.c.bf16 %v10853_v51, %v10852_v8  ;;  %v8495_v34 = vadd.f32 %v14925_v31, %v8208_v3  ;;  %v8444_v37 = vpop.f32.mrf.mxu3 }
 0x590   : > { %v9769_v58 = vadd.f32 %v14840_v41, %v9734_v63  ;;  %v9674_v6 = vpop.f32.mrf.mxu2  ;;  %v9148_v21 = vadd.f32 %v14920_v39, %v8494_v57  ;;  %v9149_v46 = vadd.f32 %v14935_v29, %v8495_v34 }
 0x592   : > { %9801 = vst.msk [vmem:[%s14850_s11 + $0x50] sm:$0xff] %vm6145_vm6, %v9769_v58  ;;  %v9341_v58 = vrot.slane %v9339_v7, 4 }
 0x593   : > { %v9481_v26 = vpop.f32.mrf.mxu1 }
 0x594   : > { %v9545_v27 = vadd.f32 %v9481_v26, %v9147_v35  ;;  %v9342_v35 = vrot.slane %v14756_v61, 5 }
 0x595   : > { %v9098_v61 = vpop.f32.mrf.mxu0 }
 0x596   : > { %v9735_v40 = vadd.f32 %v9671_v25, %v9545_v27  ;;  %v9183_v25 = vld [vmem:[#allocation3 + $0xcc] sm:$0xe]  ;;  %v8447_v8 = vpop.f32.mrf.mxu3 }
 0x597   : > { %v10653_v39 = vrot.slane %v9183_v25, 9  ;;  %v8211_v25 = vadd.f32 %v14606_v0, %v14635_v11 }
 0x598   : > { %v9770_v36 = vadd.f32 %v14840_v41, %v9735_v40  ;;  %v9676_v12 = vpop.f32.mrf.mxu2 }
 0x599   : > { %v9340_v31 = vsel %vm10970_vm12, %v10653_v39, %v9339_v7 }
 0x59a   : > { %9802 = vst.msk [vmem:[%s14850_s11 + $0x58] sm:$0xff] %vm6145_vm6, %v9770_v36  ;;  %v9376_v40 = vunpack.c.l.b16 %v9340_v31 }
 0x59b   : > { %v9484_v47 = vpop.f32.mrf.mxu1 }
 0x59c   : > { %v9546_v17 = vadd.f32 %v9484_v47, %v9148_v21 }
 0x59d   : > { %10686 = vmatmul.msk.bf16.gmra.mxu2 %vm1667_vm13, %v9582_v28  ;;  %v9101_v47 = vpop.f32.mrf.mxu0 }
 0x59e   : > { %v9736_v63 = vadd.f32 %v9674_v6, %v9546_v17  ;;  %10669 = vmatmul.msk.bf16.gmra.mxu1 %vm6145_vm6, %v14600_v24  ;;  %v9343_v6 = vsel %vm10970_vm12, %v9341_v58, %v9342_v35  ;;  %v8209_v24 = vadd.f32 %v14552_v22, %v14596_v33  ;;  %v8210_v22 = vadd.f32 %v14583_v18, %v14614_v30  ;;  %v8449_v3 = vpop.f32.mrf.mxu3 }
 0x59f   : > { %v9377_v36 = vunpack.c.l.b16 %v9343_v6  ;;  %v8498_v30 = vadd.f32 %v8442_v23, %v8211_v25 }
 0x5a0   : > { %v9771_v15 = vadd.f32 %v14840_v41, %v9736_v63  ;;  %v9679_v26 = vpop.f32.mrf.mxu2  ;;  %v8496_v27 = vadd.f32 %v14941_v48, %v8209_v24  ;;  %v8497_v48 = vadd.f32 %v14955_v45, %v8210_v22 }
 0x5a1   : > { %v9393_v28 = vpack.c.b16 %v9377_v36, %v9376_v40  ;;  %v9152_v58 = vadd.f32 %v9096_v13, %v8498_v30  ;;  %v8213_v13 = vadd.f32 %v14644_v59, %v14671_v43  ;;  %v15377_v36 = vld [vmem:[#allocation29_spill] sm:$0xff] }
 0x5a2   : > { %9803 = vst.msk [vmem:[%s14850_s11 + $0x60] sm:$0xff] %vm6145_vm6, %v9771_v15  ;;  %v9150_v20 = vadd.f32 %v14950_v42, %v8496_v27  ;;  %v9151_v42 = vadd.f32 %v9093_v44, %v8497_v48  ;;  %v8212_v15 = vadd.f32 %v14625_v56, %v14650_v52  ;;  %v15379_v48 = vld [vmem:[#allocation30_spill] sm:$0xff] }
 0x5a3   : > { %v9486_v14 = vpop.f32.mrf.mxu1 }
 0x5a4   : > { %v9547_v55 = vadd.f32 %v9486_v14, %v9149_v46  ;;  %v8499_v46 = vadd.f32 %v8444_v37, %v8212_v15 }
 0x5a5   : > { %v9103_v39 = vpop.f32.mrf.mxu0 }
 0x5a6   : > { %v9737_v57 = vadd.f32 %v9676_v12, %v9547_v55  ;;  %v8452_v44 = vpop.f32.mrf.mxu3  ;;  %v9153_v14 = vadd.f32 %v9098_v61, %v8499_v46  ;;  %v8500_v55 = vadd.f32 %v8447_v8, %v8213_v13  ;;  %v15381_v46 = vld [vmem:[#allocation49_spill] sm:$0xff] }
 0x5a8   : > { %v9772_v29 = vadd.f32 %v14840_v41, %v9737_v57  ;;  %v9681_v51 = vpop.f32.mrf.mxu2  ;;  %v9154_v57 = vadd.f32 %v9101_v47, %v8500_v55 }
 0x5aa   : > { %9804 = vst.msk [vmem:[%s14850_s11 + $0x68] sm:$0xff] %vm6145_vm6, %v9772_v29  ;;  %v15378_v29 = vld [vmem:[#allocation9_spill] sm:$0xff] }
 0x5ab   : > { %v9489_v21 = vpop.f32.mrf.mxu1  ;;  %v8214_v61 = vadd.f32 %v15378_v29, %v15377_v36 }
 0x5ac   : > { %v9548_v33 = vadd.f32 %v9489_v21, %v9150_v20 }
 0x5ad   : > { %v9106_v31 = vpop.f32.mrf.mxu0 }
 0x5ae   : > { %v9738_v12 = vadd.f32 %v9679_v26, %v9548_v33  ;;  %10670 = vmatmul.msk.bf16.gmra.mxu1 %vm6145_vm6, %v9393_v28  ;;  %v8454_v56 = vpop.f32.mrf.mxu3  ;;  %v8501_v28 = vadd.f32 %v8449_v3, %v8214_v61 }
 0x5b0   : > { %v9773_v7 = vadd.f32 %v14840_v41, %v9738_v12  ;;  %v9684_v1 = vpop.f32.mrf.mxu2  ;;  %v9155_v22 = vadd.f32 %v9103_v39, %v8501_v28  ;;  %v8215_v12 = vadd.f32 %v15379_v48, %v14705_v5 }
 0x5b2   : > { %9805 = vst.msk [vmem:[%s14850_s11 + $0x70] sm:$0xff] %vm6145_vm6, %v9773_v7  ;;  %v8502_v7 = vadd.f32 %v8452_v44, %v8215_v12 }
 0x5b3   : > { %v9491_v17 = vpop.f32.mrf.mxu1 }
 0x5b4   : > { %v9549_v18 = vadd.f32 %v9491_v17, %v9151_v42 }
 0x5b5   : > { %v9108_v20 = vpop.f32.mrf.mxu0 }
 0x5b6   : > { %v9739_v45 = vadd.f32 %v9681_v51, %v9549_v18  ;;  %v8457_v43 = vpop.f32.mrf.mxu3  ;;  %v9156_v18 = vadd.f32 %v9106_v31, %v8502_v7 }
 0x5b8   : > { %v9774_v34 = vadd.f32 %v14840_v41, %v9739_v45  ;;  %v9686_v63 = vpop.f32.mrf.mxu2  ;;  %v15380_v45 = vld [vmem:[#allocation31_spill] sm:$0xff] }
 0x5ba   : > { %9806 = vst.msk [vmem:[%s14850_s11 + $0x78] sm:$0xff] %vm6145_vm6, %v9774_v34  ;;  %v8216_v34 = vadd.f32 %v15380_v45, %v14718_v60 }
 0x5bb   : > { %v9494_v35 = vpop.f32.mrf.mxu1 }
 0x5bc   : > { %v9550_v26 = vadd.f32 %v9494_v35, %v9152_v58  ;;  %v8503_v39 = vadd.f32 %v8454_v56, %v8216_v34 }
 0x5bd   : > { %v9111_v42 = vpop.f32.mrf.mxu0 }
 0x5be   : > { %v9740_v0 = vadd.f32 %v9684_v1, %v9550_v26  ;;  %v8459_v25 = vpop.f32.mrf.mxu3  ;;  %v9157_v44 = vadd.f32 %v9108_v20, %v8503_v39 }
 0x5c0   : > { %v9775_v11 = vadd.f32 %v14840_v41, %v9740_v0  ;;  %v9689_v23 = vpop.f32.mrf.mxu2  ;;  %v15382_v0 = vld [vmem:[#allocation34_spill] sm:$0xff] }
 0x5c2   : > { %9807 = vst.msk [vmem:[%s14850_s11 + $0x80] sm:$0xff] %vm6145_vm6, %v9775_v11  ;;  %v8217_v11 = vadd.f32 %v15382_v0, %v15381_v46  ;;  %v8222_v0 = vadd.f32 %v14784_v38, %v14799_v62 }
 0x5c3   : > { %v9496_v6 = vpop.f32.mrf.mxu1 }
 0x5c4   : > { %v9551_v24 = vadd.f32 %v9496_v6, %v9153_v14  ;;  %v8504_v31 = vadd.f32 %v8457_v43, %v8217_v11 }
 0x5c5   : > { %v9113_v15 = vpop.f32.mrf.mxu0 }
 0x5c6   : > { %v9741_v52 = vadd.f32 %v9686_v63, %v9551_v24  ;;  %v9158_v24 = vadd.f32 %v9111_v42, %v8504_v31  ;;  %v15386_v42 = vld [vmem:[#allocation28_spill] sm:$0xff] }
 0x5c8   : > { %v9776_v27 = vadd.f32 %v14840_v41, %v9741_v52  ;;  %v9691_v37 = vpop.f32.mrf.mxu2  ;;  %v15383_v52 = vld [vmem:[#allocation37_spill] sm:$0xff] }
 0x5ca   : > { %9808 = vst.msk [vmem:[%s14850_s11 + $0x88] sm:$0xff] %vm6145_vm6, %v9776_v27  ;;  %v15384_v27 = vld [vmem:[#allocation33_spill] sm:$0xff] }
 0x5cb   : > { %v9499_v40 = vpop.f32.mrf.mxu1 }
 0x5cc   : > { %v9552_v51 = vadd.f32 %v9499_v40, %v9154_v57 }
 0x5cd   : > { %v9116_v55 = vpop.f32.mrf.mxu0 }
 0x5ce   : > { %v9742_v59 = vadd.f32 %v9689_v23, %v9552_v51  ;;  %v8462_v23 = vpop.f32.mrf.mxu3 }
 0x5d0   : > { %v9777_v8 = vadd.f32 %v14840_v41, %v9742_v59  ;;  %v9694_v21 = vpop.f32.mrf.mxu2  ;;  %v15385_v59 = vld [vmem:[#allocation38_spill] sm:$0xff] }
 0x5d1   : > { %v8219_v43 = vadd.f32 %v15385_v59, %v14767_v54 }
 0x5d2   : > { %9809 = vst.msk [vmem:[%s14850_s11 + $0x90] sm:$0xff] %vm6145_vm6, %v9777_v8 }
 0x5d3   : > { %v9501_v33 = vpop.f32.mrf.mxu1 }
 0x5d4   : > { %v9553_v47 = vadd.f32 %v9501_v33, %v9155_v22  ;;  %v8506_v22 = vadd.f32 %v8462_v23, %v8219_v43  ;;  %v8225_v43 = vadd.f32 %v14812_v32, %v14824_v9 }
 0x5d6   : > { %v9743_v1 = vadd.f32 %v9691_v37, %v9553_v47  ;;  %v8218_v37 = vadd.f32 %v15384_v27, %v15383_v52  ;;  %v8464_v36 = vpop.f32.mrf.mxu3  ;;  %v9160_v7 = vadd.f32 %v9116_v55, %v8506_v22 }
 0x5d8   : > { %v9778_v3 = vadd.f32 %v14840_v41, %v9743_v1  ;;  %v9696_v17 = vpop.f32.mrf.mxu2  ;;  %v8505_v40 = vadd.f32 %v8459_v25, %v8218_v37 }
 0x5da   : > { %9810 = vst.msk [vmem:[%s14850_s11 + $0x98] sm:$0xff] %vm6145_vm6, %v9778_v3  ;;  %v9159_v20 = vadd.f32 %v9113_v15, %v8505_v40  ;;  %v8220_v3 = vadd.f32 %v15386_v42, %v14781_v19  ;;  %v8224_v40 = vadd.f32 %v14801_v2, %v14816_v4 }
 0x5db   : > { %v9504_v30 = vpop.f32.mrf.mxu1 }
 0x5dc   : > { %v9554_v63 = vadd.f32 %v9504_v30, %v9156_v18  ;;  %v8507_v25 = vadd.f32 %v8464_v36, %v8220_v3 }
 0x5de   : > { %v9744_v5 = vadd.f32 %v9694_v21, %v9554_v63  ;;  %v9118_v21 = vpop.f32.mrf.mxu0  ;;  %v8467_v48 = vpop.f32.mrf.mxu3 }
 0x5df   : > { %v9161_v34 = vadd.f32 %v9118_v21, %v8507_v25 }
 0x5e0   : > { %v9779_v58 = vadd.f32 %v14840_v41, %v9744_v5  ;;  %v9699_v35 = vpop.f32.mrf.mxu2  ;;  %v8221_v5 = vadd.f32 %v14774_v53, %v14790_v50 }
 0x5e2   : > { %9811 = vst.msk [vmem:[%s14850_s11 + $0xa0] sm:$0xff] %vm6145_vm6, %v9779_v58 }
 0x5e3   : > { %v9506_v26 = vpop.f32.mrf.mxu1 }
 0x5e4   : > { %v9555_v14 = vadd.f32 %v9506_v26, %v9157_v44 }
 0x5e6   : > { %v9745_v60 = vadd.f32 %v9696_v17, %v9555_v14  ;;  %v9121_v18 = vpop.f32.mrf.mxu0  ;;  %v8469_v45 = vpop.f32.mrf.mxu3 }
 0x5e7   : > { %v8509_v31 = vadd.f32 %v8469_v45, %v8222_v0 }
 0x5e8   : > { %v9780_v6 = vadd.f32 %v14840_v41, %v9745_v60  ;;  %v9701_v13 = vpop.f32.mrf.mxu2 }
 0x5ea   : > { %9812 = vst.msk [vmem:[%s14850_s11 + $0xa8] sm:$0xff] %vm6145_vm6, %v9780_v6 }
 0x5eb   : > { %v9509_v56 = vpop.f32.mrf.mxu1 }
 0x5ec   : > { %v9556_v57 = vadd.f32 %v9509_v56, %v9158_v24  ;;  %v8223_v24 = vadd.f32 %v14795_v16, %v14807_v49 }
 0x5ee   : > { %v9746_v29 = vadd.f32 %v9699_v35, %v9556_v57  ;;  %v8508_v35 = vadd.f32 %v8467_v48, %v8221_v5  ;;  %v9123_v44 = vpop.f32.mrf.mxu0  ;;  %v8472_v11 = vpop.f32.mrf.mxu3 }
 0x5ef   : > { %v9163_v60 = vadd.f32 %v9123_v44, %v8509_v31  ;;  %v8510_v56 = vadd.f32 %v8472_v11, %v8223_v24 }
 0x5f0   : > { %v9781_v61 = vadd.f32 %v14840_v41, %v9746_v29  ;;  %v9704_v51 = vpop.f32.mrf.mxu2  ;;  %v9162_v26 = vadd.f32 %v9121_v18, %v8508_v35 }
 0x5f2   : > { %9813 = vst.msk [vmem:[%s14850_s11 + $0xb0] sm:$0xff] %vm6145_vm6, %v9781_v61 }
 0x5f3   : > { %v9511_v28 = vpop.f32.mrf.mxu1 }
 0x5f4   : > { %v9557_v8 = vadd.f32 %v9511_v28, %v9159_v20 }
 0x5f6   : > { %v9747_v33 = vadd.f32 %v9701_v13, %v9557_v8  ;;  %v9126_v6 = vpop.f32.mrf.mxu0  ;;  %v8474_v38 = vpop.f32.mrf.mxu3 }
 0x5f7   : > { %v9164_v37 = vadd.f32 %v9126_v6, %v8510_v56  ;;  %v8511_v61 = vadd.f32 %v8474_v38, %v8224_v40 }
 0x5f8   : > { %v9782_v12 = vadd.f32 %v14840_v41, %v9747_v33  ;;  %v9706_v47 = vpop.f32.mrf.mxu2 }
 0x5fa   : > { %9814 = vst.msk [vmem:[%s14850_s11 + $0xb8] sm:$0xff] %vm6145_vm6, %v9782_v12 }
 0x5fb   : > { %v9514_v1 = vpop.f32.mrf.mxu1 }
 0x5fc   : > { %v9558_v17 = vadd.f32 %v9514_v1, %v9160_v7  ;;  %v15387_v7 = vld [vmem:[#allocation35_spill] sm:$0xff] }
 0x5fd   : > { %v8226_v1 = vadd.f32 %v15387_v7, %v14831_v10 }
 0x5fe   : > { %v9748_v54 = vadd.f32 %v9704_v51, %v9558_v17  ;;  %v9128_v29 = vpop.f32.mrf.mxu0  ;;  %v8477_v49 = vpop.f32.mrf.mxu3 }
 0x5ff   : > { %v9165_v28 = vadd.f32 %v9128_v29, %v8511_v61  ;;  %v8512_v2 = vadd.f32 %v8477_v49, %v8225_v43 }
 0x600   : > { %v9783_v30 = vadd.f32 %v14840_v41, %v9748_v54  ;;  %v9709_v39 = vpop.f32.mrf.mxu2 }
 0x602   : > { %9815 = vst.msk [vmem:[%s14850_s11 + $0xc0] sm:$0xff] %vm6145_vm6, %v9783_v30 }
 0x603   : > { %v9516_v63 = vpop.f32.mrf.mxu1 }
 0x604   : > { %v9559_v58 = vadd.f32 %v9516_v63, %v9161_v34 }
 0x606   : > { %v9749_v19 = vadd.f32 %v9706_v47, %v9559_v58  ;;  %v9131_v21 = vpop.f32.mrf.mxu0  ;;  %v8479_v48 = vpop.f32.mrf.mxu3 }
 0x607   : > { %v9166_v33 = vadd.f32 %v9131_v21, %v8512_v2  ;;  %v8513_v3 = vadd.f32 %v8479_v48, %v8226_v1 }
 0x608   : > { %v9784_v15 = vadd.f32 %v14840_v41, %v9749_v19  ;;  %v9711_v14 = vpop.f32.mrf.mxu2 }
 0x60a   : > { %9816 = vst.msk [vmem:[%s14850_s11 + $0xc8] sm:$0xff] %vm6145_vm6, %v9784_v15 }
 0x60b   : > { %v9519_v46 = vpop.f32.mrf.mxu1 }
 0x60c   : > { %v9560_v23 = vadd.f32 %v9519_v46, %v9162_v26 }
 0x60e   : > { %v9750_v53 = vadd.f32 %v9709_v39, %v9560_v23  ;;  %v9133_v9 = vpop.f32.mrf.mxu0 }
 0x60f   : > { %v9167_v25 = vadd.f32 %v9133_v9, %v8513_v3 }
 0x610   : > { %v9785_v50 = vadd.f32 %v14840_v41, %v9750_v53  ;;  %v9714_v52 = vpop.f32.mrf.mxu2 }
 0x612   : > { %9817 = vst.msk [vmem:[%s14850_s11 + $0xd0] sm:$0xff] %vm6145_vm6, %v9785_v50 }
 0x613   : > { %v9521_v13 = vpop.f32.mrf.mxu1 }
 0x614   : > { %v9561_v55 = vadd.f32 %v9521_v13, %v9163_v60 }
 0x616   : > { %v9751_v62 = vadd.f32 %v9711_v14, %v9561_v55 }
 0x618   : > { %v9786_v27 = vadd.f32 %v14840_v41, %v9751_v62  ;;  %v9716_v20 = vpop.f32.mrf.mxu2 }
 0x61a   : > { %9818 = vst.msk [vmem:[%s14850_s11 + $0xd8] sm:$0xff] %vm6145_vm6, %v9786_v27 }
 0x61b   : > { %v9524_v57 = vpop.f32.mrf.mxu1 }
 0x61c   : > { %v9562_v36 = vadd.f32 %v9524_v57, %v9164_v37 }
 0x61e   : > { %v9752_v16 = vadd.f32 %v9714_v52, %v9562_v36 }
 0x620   : > { %v9787_v51 = vadd.f32 %v14840_v41, %v9752_v16  ;;  %v9719_v12 = vpop.f32.mrf.mxu2 }
 0x622   : > { %9819 = vst.msk [vmem:[%s14850_s11 + $0xe0] sm:$0xff] %vm6145_vm6, %v9787_v51 }
 0x623   : > { %v9526_v59 = vpop.f32.mrf.mxu1 }
 0x624   : > { %v9563_v8 = vadd.f32 %v9526_v59, %v9165_v28 }
 0x626   : > { %v9753_v4 = vadd.f32 %v9716_v20, %v9563_v8 }
 0x628   : > { %v9788_v22 = vadd.f32 %v14840_v41, %v9753_v4  ;;  %v9721_v30 = vpop.f32.mrf.mxu2 }
 0x62a   : > { %9820 = vst.msk [vmem:[%s14850_s11 + $0xe8] sm:$0xff] %vm6145_vm6, %v9788_v22 }
 0x62b   : > { %v9529_v47 = vpop.f32.mrf.mxu1 }
 0x62c   : > { %v9564_v42 = vadd.f32 %v9529_v47, %v9166_v33 }
 0x62e   : > { %v9754_v32 = vadd.f32 %v9719_v12, %v9564_v42 }
 0x630   : > { %v9789_v17 = vadd.f32 %v14840_v41, %v9754_v32 }
 0x632   : > { %9821 = vst.msk [vmem:[%s14850_s11 + $0xf0] sm:$0xff] %vm6145_vm6, %v9789_v17 }
 0x633   : > { %v9531_v54 = vpop.f32.mrf.mxu1 }
 0x634   : > { %v9565_v18 = vadd.f32 %v9531_v54, %v9167_v25 }
 0x636   : > { %v9755_v45 = vadd.f32 %v9721_v30, %v9565_v18 }
 0x638   : > { %v9790_v34 = vadd.f32 %v14840_v41, %v9755_v45 }
 0x63a   : > { %9822 = vst.msk [vmem:[%s14850_s11 + $0xf8] sm:$0xff] %vm6145_vm6, %v9790_v34 }
 0x63b PF: > { %s19_s30 = sadd.s32 1, %s10860_s30  }
 0x63c   : > { %p16_p4 = scmp.ge.s32.totalorder %s19_s30, 4  }
 0x63e   :  { %18 = sbr.rel (!%p16_p4) target bundleno = 1 (0x1), region = 108 }

</bundles_post_ra>
